<compile_context>
chip_gen: v5e
topology: v5e:2x2
jax: 0.10.0
libtpu: 0.0.40
codegen_flags: <defaults>
</compile_context>

<pallas_src>
import functools

import jax
import jax.numpy as jnp
from jax.experimental import pallas as pl
from jax.experimental.pallas import tpu as pltpu


# ----------------------------------------------------------------------------
# Pallas kernels
# ----------------------------------------------------------------------------
def _adapter_kernel(x_ref, w1_ref, b1_ref, w2_ref, b2_ref, o_ref):
    """out = relu(relu(x@W1+b1)@W2+b2) + x"""
    x = x_ref[...]
    h1 = jnp.maximum(
        jnp.dot(x, w1_ref[...], preferred_element_type=jnp.float32)
        + b1_ref[...], 0.0)
    h2 = jnp.maximum(
        jnp.dot(h1.astype(w2_ref.dtype), w2_ref[...],
                preferred_element_type=jnp.float32)
        + b2_ref[...], 0.0)
    o_ref[...] = (h2 + x.astype(jnp.float32)).astype(o_ref.dtype)


def _make_fuse_resident_kernel(states_num):
    """Fused path, Wf fully VMEM-resident, hidden states as separate tiles."""

    def kernel(*refs):
        x_ref = refs[0]
        h_refs = refs[1:1 + states_num]
        w1_ref, b1_ref, w2_ref, b2_ref, wf_ref, bf_ref, o_ref = refs[1 + states_num:]

        x = x_ref[...]                                     # (TM, D_in) bf16
        h1 = jnp.maximum(
            jnp.dot(x, w1_ref[...], preferred_element_type=jnp.float32)
            + b1_ref[...], 0.0)                            # (TM, D_out) f32
        h2 = jnp.maximum(
            jnp.dot(h1.astype(w2_ref.dtype), w2_ref[...],
                    preferred_element_type=jnp.float32)
            + b2_ref[...], 0.0)                            # (TM, D_in) f32

        # residual + fuse bias exactly once, then per-state accumulation.
        acc = h2 + x.astype(jnp.float32) + bf_ref[...]
        for s in range(states_num):                        # static unrolled
            acc = acc + jnp.dot(h_refs[s][...], wf_ref[s],
                                preferred_element_type=jnp.float32)
        o_ref[...] = acc.astype(o_ref.dtype)

    return kernel


def _fuse_streamed_kernel(x_ref, h_ref, w1_ref, b1_ref, w2_ref, b2_ref,
                          wf_ref, bf_ref, o_ref, acc_ref):
    """Fused path with a reduction grid axis over the states dimension.

    grid = (num_m_tiles, states_num); the s axis streams one hidden-state tile
    (1, TM, D_in) and one Wf slice (1, D_in, D_in) per step.
    """
    s = pl.program_id(1)

    @pl.when(s == 0)
    def _():
        x = x_ref[...]
        h1 = jnp.maximum(
            jnp.dot(x, w1_ref[...], preferred_element_type=jnp.float32)
            + b1_ref[...], 0.0)
        h2 = jnp.maximum(
            jnp.dot(h1.astype(w2_ref.dtype), w2_ref[...],
                    preferred_element_type=jnp.float32)
            + b2_ref[...], 0.0)
        acc_ref[...] = h2 + x.astype(jnp.float32) + bf_ref[...]

    acc_ref[...] += jnp.dot(h_ref[0], wf_ref[0],
                            preferred_element_type=jnp.float32)

    @pl.when(s == pl.num_programs(1) - 1)
    def _():
        o_ref[...] = acc_ref[...].astype(o_ref.dtype)


# ----------------------------------------------------------------------------
# Wrapper
# ----------------------------------------------------------------------------
def _nbytes(shape, dtype):
    n = 1
    for d in shape:
        n *= d
    return n * jnp.dtype(dtype).itemsize


_VMEM_LIMIT = 48 * 1024 * 1024       # safe on v5e/v6e (128 MiB) and v7x (64 MiB)
_RESIDENT_BUDGET = 36 * 1024 * 1024  # switch to the streamed variant above this


def _resident_fuse_vmem_bytes(tm, d_in, d_out, states_num, cd, out_dtype):
    cb = jnp.dtype(cd).itemsize
    act = 2 * tm * d_in * cb * (1 + states_num)            # x + S hidden (dbl-buf)
    wts = (2 * d_in * d_out + states_num * d_in * d_in) * cb
    bias = 4 * (d_out + 2 * d_in)
    out = 2 * tm * d_in * jnp.dtype(out_dtype).itemsize
    return act + wts + bias + out


@functools.partial(
    jax.jit,
    static_argnames=("hidden_vision_fuse", "compute_dtype", "block_m", "fuse_mode"))
def adapter_forward(x, params, hidden_states, *, hidden_vision_fuse=True,
                    compute_dtype=jnp.bfloat16, block_m=512, fuse_mode="auto"):
    """x: (M, input_dim). hidden_states: list of `states_num` (M, input_dim)."""
    M, D_in = x.shape
    D_out = params["w1"].shape[1]
    S = len(hidden_states)
    cd = compute_dtype

    xb = x.astype(cd)
    w1 = params["w1"].astype(cd)
    w2 = params["w2"].astype(cd)
    b1 = params["b1"].astype(jnp.float32)
    b2 = params["b2"].astype(jnp.float32)

    tm = M if M <= block_m else block_m
    num_m = pl.cdiv(M, tm)
    out_shape = jax.ShapeDtypeStruct((M, D_in), x.dtype)

    if not hidden_vision_fuse:
        flops = 2 * M * 2 * D_in * D_out
        bytes_accessed = (_nbytes((M, D_in), cd)
                          + _nbytes((D_in, D_out), cd) * 2
                          + _nbytes((1, D_out), jnp.float32)
                          + _nbytes((1, D_in), jnp.float32)
                          + _nbytes((M, D_in), x.dtype))
        return pl.pallas_call(
            _adapter_kernel,
            out_shape=out_shape,
            grid=(num_m,),
            in_specs=[pl.BlockSpec((tm, D_in), lambda i: (i, 0)),
                      pl.BlockSpec(w1.shape, lambda i: (0, 0)),
                      pl.BlockSpec(b1.shape, lambda i: (0, 0)),
                      pl.BlockSpec(w2.shape, lambda i: (0, 0)),
                      pl.BlockSpec(b2.shape, lambda i: (0, 0))],
            out_specs=pl.BlockSpec((tm, D_in), lambda i: (i, 0)),
            compiler_params=pltpu.CompilerParams(
                dimension_semantics=("parallel",),
                vmem_limit_bytes=_VMEM_LIMIT),
            cost_estimate=pl.CostEstimate(flops=flops, transcendentals=0,
                                          bytes_accessed=bytes_accessed),
        )(xb, w1, b1, w2, b2)

    # ---------------- fused path ----------------
    bf = params["bf"].astype(jnp.float32)
    wf3 = params["wf"].astype(cd).reshape(S, D_in, D_in)

    flops = 2 * M * (2 * D_in * D_out + S * D_in * D_in)
    bytes_accessed = (
        _nbytes((M, D_in), cd) * (1 + S)
        + _nbytes((D_in, D_out), cd) * 2
        + _nbytes((S, D_in, D_in), cd)
        + _nbytes((1, D_out), jnp.float32)
        + _nbytes((1, D_in), jnp.float32) * 2
        + _nbytes((M, D_in), x.dtype))
    cost = pl.CostEstimate(flops=flops, transcendentals=0,
                           bytes_accessed=bytes_accessed)

    mode = fuse_mode
    if mode == "auto":
        mode = ("resident"
                if _resident_fuse_vmem_bytes(tm, D_in, D_out, S, cd, x.dtype)
                <= _RESIDENT_BUDGET else "streamed")

    if mode == "resident":
        hs = [h.astype(cd) for h in hidden_states]
        return pl.pallas_call(
            _make_fuse_resident_kernel(S),
            out_shape=out_shape,
            grid=(num_m,),
            in_specs=[pl.BlockSpec((tm, D_in), lambda i: (i, 0))] * (1 + S) + [
                pl.BlockSpec(w1.shape, lambda i: (0, 0)),
                pl.BlockSpec(b1.shape, lambda i: (0, 0)),
                pl.BlockSpec(w2.shape, lambda i: (0, 0)),
                pl.BlockSpec(b2.shape, lambda i: (0, 0)),
                pl.BlockSpec(wf3.shape, lambda i: (0, 0, 0)),
                pl.BlockSpec(bf.shape, lambda i: (0, 0))],
            out_specs=pl.BlockSpec((tm, D_in), lambda i: (i, 0)),
            compiler_params=pltpu.CompilerParams(
                dimension_semantics=("parallel",),
                vmem_limit_bytes=_VMEM_LIMIT),
            cost_estimate=cost,
        )(xb, *hs, w1, b1, w2, b2, wf3, bf)

    # "streamed": stack hidden states (S, M, D_in); grid = (M tiles, states).
    h_stack = jnp.stack([h.astype(cd) for h in hidden_states], axis=0)
    return pl.pallas_call(
        _fuse_streamed_kernel,
        out_shape=out_shape,
        grid=(num_m, S),
        in_specs=[pl.BlockSpec((tm, D_in), lambda i, s: (i, 0)),
                  pl.BlockSpec((1, tm, D_in), lambda i, s: (s, i, 0)),
                  pl.BlockSpec(w1.shape, lambda i, s: (0, 0)),
                  pl.BlockSpec(b1.shape, lambda i, s: (0, 0)),
                  pl.BlockSpec(w2.shape, lambda i, s: (0, 0)),
                  pl.BlockSpec(b2.shape, lambda i, s: (0, 0)),
                  pl.BlockSpec((1, D_in, D_in), lambda i, s: (s, 0, 0)),
                  pl.BlockSpec(bf.shape, lambda i, s: (0, 0))],
        out_specs=pl.BlockSpec((tm, D_in), lambda i, s: (i, 0)),
        scratch_shapes=[pltpu.VMEM((tm, D_in), jnp.float32)],
        compiler_params=pltpu.CompilerParams(
            dimension_semantics=("parallel", "arbitrary"),
            vmem_limit_bytes=_VMEM_LIMIT),
        cost_estimate=cost,
    )(xb, h_stack, w1, b1, w2, b2, wf3, bf)


# ----------------------------------------------------------------------------
# Parameter init (shapes follow AdapterModule.__init__, transposed vs PyTorch)
# ----------------------------------------------------------------------------
def init_params(key, input_dim, output_dim, states_num=13, dtype=jnp.float32):
    ks = jax.random.split(key, 6)
    w1 = jax.random.normal(ks[0], (input_dim, output_dim), dtype) * 0.05   # adapt1
    b1 = jax.random.normal(ks[1], (1, output_dim), dtype) * 0.05
    w2 = jax.random.normal(ks[2], (output_dim, input_dim), dtype) * 0.05   # adapt2
    b2 = jax.random.normal(ks[3], (1, input_dim), dtype) * 0.05
    wf = jax.random.normal(ks[4], (states_num * input_dim, input_dim), dtype) * 0.05  # fuse.project
    bf = jax.random.normal(ks[5], (1, input_dim), dtype) * 0.05
    return dict(w1=w1, b1=b1, w2=w2, b2=b2, wf=wf, bf=bf)


def reference_forward(x, params, hidden_states, hidden_vision_fuse=True,
                      compute_dtype=jnp.bfloat16):
    """Pure-JAX reference with the same bf16-operand / f32-accumulation policy."""
    cd = compute_dtype
    D = x.shape[-1]
    xb = x.astype(cd)
    w1 = params["w1"].astype(cd)
    w2 = params["w2"].astype(cd)
    b1 = params["b1"].astype(jnp.float32)
    b2 = params["b2"].astype(jnp.float32)
    h1 = jnp.maximum(jnp.dot(xb, w1, preferred_element_type=jnp.float32) + b1, 0.0)
    h2 = jnp.maximum(jnp.dot(h1.astype(cd), w2,
                             preferred_element_type=jnp.float32) + b2, 0.0)
    out = h2 + xb.astype(jnp.float32)
    if hidden_vision_fuse:
        wf = params["wf"].astype(cd)
        bf = params["bf"].astype(jnp.float32)
        out = out + bf
        for s, h in enumerate(hidden_states):
            out = out + jnp.dot(h.astype(cd), wf[s * D:(s + 1) * D, :],
                                preferred_element_type=jnp.float32)
    return out.astype(x.dtype)


if __name__ == "__main__":
    key = jax.random.PRNGKey(0)
    # Small but MXU/lane-friendly shapes (feature dims multiples of 128).
    input_dim, output_dim, states_num = 256, 128, 13
    M = 256  # tokens (batch*seq flattened); block_m=128 -> 2 pipelined M tiles

    k_x, k_h, k_p = jax.random.split(key, 3)
    x = jax.random.normal(k_x, (M, input_dim), jnp.float32)
    hkeys = jax.random.split(k_h, states_num)
    hidden_states = [jax.random.normal(hk, (M, input_dim), jnp.float32) for hk in hkeys]
    params = init_params(k_p, input_dim, output_dim, states_num)

    ref_fuse = reference_forward(x, params, hidden_states, hidden_vision_fuse=True)
    ref_plain = reference_forward(x, params, hidden_states, hidden_vision_fuse=False)

    # fused, Wf resident
    out_r = jax.block_until_ready(
        adapter_forward(x, params, hidden_states, hidden_vision_fuse=True,
                        block_m=128, fuse_mode="resident"))
    assert out_r.shape == (M, input_dim)
    assert jnp.allclose(out_r, ref_fuse, atol=5e-3, rtol=5e-3), "mismatch (fuse/resident)"

    # fused, Wf streamed over a states reduction axis
    out_s = jax.block_until_ready(
        adapter_forward(x, params, hidden_states, hidden_vision_fuse=True,
                        block_m=128, fuse_mode="streamed"))
    assert jnp.allclose(out_s, ref_fuse, atol=5e-3, rtol=5e-3), "mismatch (fuse/streamed)"

    # fused, auto selection
    out_a = jax.block_until_ready(
        adapter_forward(x, params, hidden_states, hidden_vision_fuse=True,
                        block_m=128, fuse_mode="auto"))
    assert jnp.allclose(out_a, ref_fuse, atol=5e-3, rtol=5e-3), "mismatch (fuse/auto)"

    # non-fused path
    out_p = jax.block_until_ready(
        adapter_forward(x, params, hidden_states, hidden_vision_fuse=False,
                        block_m=128))
    assert jnp.allclose(out_p, ref_plain, atol=5e-3, rtol=5e-3), "mismatch (no fuse)"

    print("KERNEL_OK")
</pallas_src>

<mosaic_0001>
module attributes {stable_mosaic.version = 11 : i64} {
  func.func @kernel(%arg0: i32, %arg1: memref<128x256xbf16, #tpu.memory_space<vmem>>, %arg2: memref<128x256xbf16, #tpu.memory_space<vmem>>, %arg3: memref<128x256xbf16, #tpu.memory_space<vmem>>, %arg4: memref<128x256xbf16, #tpu.memory_space<vmem>>, %arg5: memref<128x256xbf16, #tpu.memory_space<vmem>>, %arg6: memref<128x256xbf16, #tpu.memory_space<vmem>>, %arg7: memref<128x256xbf16, #tpu.memory_space<vmem>>, %arg8: memref<128x256xbf16, #tpu.memory_space<vmem>>, %arg9: memref<128x256xbf16, #tpu.memory_space<vmem>>, %arg10: memref<128x256xbf16, #tpu.memory_space<vmem>>, %arg11: memref<128x256xbf16, #tpu.memory_space<vmem>>, %arg12: memref<128x256xbf16, #tpu.memory_space<vmem>>, %arg13: memref<128x256xbf16, #tpu.memory_space<vmem>>, %arg14: memref<128x256xbf16, #tpu.memory_space<vmem>>, %arg15: memref<256x128xbf16, #tpu.memory_space<vmem>>, %arg16: memref<1x128xf32, #tpu.memory_space<vmem>>, %arg17: memref<128x256xbf16, #tpu.memory_space<vmem>>, %arg18: memref<1x256xf32, #tpu.memory_space<vmem>>, %arg19: memref<13x256x256xbf16, #tpu.memory_space<vmem>>, %arg20: memref<1x256xf32, #tpu.memory_space<vmem>>, %arg21: memref<128x256xf32, #tpu.memory_space<vmem>>) attributes {dimension_semantics = [#tpu.dimension_semantics<parallel>], iteration_bounds = array<i64: 2>, scalar_prefetch = 0 : i64, scratch_operands = 0 : i64, tpu.core_type = #tpu.core_type<tc>, window_params = [{transform_indices = @transform_0, window_bounds = array<i64: 128, 256>}, {transform_indices = @transform_1, window_bounds = array<i64: 128, 256>}, {transform_indices = @transform_2, window_bounds = array<i64: 128, 256>}, {transform_indices = @transform_3, window_bounds = array<i64: 128, 256>}, {transform_indices = @transform_4, window_bounds = array<i64: 128, 256>}, {transform_indices = @transform_5, window_bounds = array<i64: 128, 256>}, {transform_indices = @transform_6, window_bounds = array<i64: 128, 256>}, {transform_indices = @transform_7, window_bounds = array<i64: 128, 256>}, {transform_indices = @transform_8, window_bounds = array<i64: 128, 256>}, {transform_indices = @transform_9, window_bounds = array<i64: 128, 256>}, {transform_indices = @transform_10, window_bounds = array<i64: 128, 256>}, {transform_indices = @transform_11, window_bounds = array<i64: 128, 256>}, {transform_indices = @transform_12, window_bounds = array<i64: 128, 256>}, {transform_indices = @transform_13, window_bounds = array<i64: 128, 256>}, {pipeline_mode = #tpu.pipeline_mode<synchronous>, transform_indices = @transform_14, window_bounds = array<i64: 256, 128>}, {pipeline_mode = #tpu.pipeline_mode<synchronous>, transform_indices = @transform_15, window_bounds = array<i64: 1, 128>}, {pipeline_mode = #tpu.pipeline_mode<synchronous>, transform_indices = @transform_16, window_bounds = array<i64: 128, 256>}, {pipeline_mode = #tpu.pipeline_mode<synchronous>, transform_indices = @transform_17, window_bounds = array<i64: 1, 256>}, {pipeline_mode = #tpu.pipeline_mode<synchronous>, transform_indices = @transform_18, window_bounds = array<i64: 13, 256, 256>}, {pipeline_mode = #tpu.pipeline_mode<synchronous>, transform_indices = @transform_19, window_bounds = array<i64: 1, 256>}, {transform_indices = @transform_20, window_bounds = array<i64: 128, 256>}]} {
    %c0 = arith.constant 0 : index
    %c0_0 = arith.constant 0 : index
    %0 = vector.load %arg1[%c0, %c0_0] : memref<128x256xbf16, #tpu.memory_space<vmem>>, vector<128x256xbf16>
    %c0_1 = arith.constant 0 : index
    %c0_2 = arith.constant 0 : index
    %1 = vector.load %arg15[%c0_1, %c0_2] : memref<256x128xbf16, #tpu.memory_space<vmem>>, vector<256x128xbf16>
    %cst = arith.constant dense<0.000000e+00> : vector<128x128xf32>
    %2 = tpu.matmul %0, %1, %cst {dimension_numbers = #tpu.dot_dimension_numbers<[1], [0], [0], [1], [0, 0, 1, 1], [], []>} : vector<128x256xbf16>, vector<256x128xbf16>, vector<128x128xf32> -> vector<128x128xf32>
    %c0_3 = arith.constant 0 : index
    %c0_4 = arith.constant 0 : index
    %3 = vector.load %arg16[%c0_3, %c0_4] : memref<1x128xf32, #tpu.memory_space<vmem>>, vector<1x128xf32>
    %4 = vector.broadcast %3 : vector<1x128xf32> to vector<128x128xf32>
    %5 = arith.addf %2, %4 : vector<128x128xf32>
    %cst_5 = arith.constant 0.000000e+00 : f32
    %6 = vector.broadcast %cst_5 : f32 to vector<128x128xf32>
    %7 = arith.maximumf %5, %6 : vector<128x128xf32>
    %8 = arith.truncf %7 : vector<128x128xf32> to vector<128x128xbf16>
    %c0_6 = arith.constant 0 : index
    %c0_7 = arith.constant 0 : index
    %9 = vector.load %arg17[%c0_6, %c0_7] : memref<128x256xbf16, #tpu.memory_space<vmem>>, vector<128x256xbf16>
    %cst_8 = arith.constant dense<0.000000e+00> : vector<128x256xf32>
    %10 = tpu.matmul %8, %9, %cst_8 {dimension_numbers = #tpu.dot_dimension_numbers<[1], [0], [0], [1], [0, 0, 1, 1], [], []>} : vector<128x128xbf16>, vector<128x256xbf16>, vector<128x256xf32> -> vector<128x256xf32>
    %c0_9 = arith.constant 0 : index
    %c0_10 = arith.constant 0 : index
    %11 = vector.load %arg18[%c0_9, %c0_10] : memref<1x256xf32, #tpu.memory_space<vmem>>, vector<1x256xf32>
    %12 = vector.broadcast %11 : vector<1x256xf32> to vector<128x256xf32>
    %13 = arith.addf %10, %12 : vector<128x256xf32>
    %cst_11 = arith.constant 0.000000e+00 : f32
    %14 = vector.broadcast %cst_11 : f32 to vector<128x256xf32>
    %15 = arith.maximumf %13, %14 : vector<128x256xf32>
    %16 = arith.extf %0 : vector<128x256xbf16> to vector<128x256xf32>
    %17 = arith.addf %15, %16 : vector<128x256xf32>
    %c0_12 = arith.constant 0 : index
    %c0_13 = arith.constant 0 : index
    %18 = vector.load %arg20[%c0_12, %c0_13] : memref<1x256xf32, #tpu.memory_space<vmem>>, vector<1x256xf32>
    %19 = vector.broadcast %18 : vector<1x256xf32> to vector<128x256xf32>
    %20 = arith.addf %17, %19 : vector<128x256xf32>
    %c0_14 = arith.constant 0 : index
    %c0_15 = arith.constant 0 : index
    %21 = vector.load %arg2[%c0_14, %c0_15] : memref<128x256xbf16, #tpu.memory_space<vmem>>, vector<128x256xbf16>
    %c0_16 = arith.constant 0 : index
    %c0_17 = arith.constant 0 : index
    %c0_18 = arith.constant 0 : index
    %22 = vector.load %arg19[%c0_16, %c0_17, %c0_18] : memref<13x256x256xbf16, #tpu.memory_space<vmem>>, vector<1x256x256xbf16>
    %23 = vector.shape_cast %22 : vector<1x256x256xbf16> to vector<256x256xbf16>
    %cst_19 = arith.constant dense<0.000000e+00> : vector<128x256xf32>
    %24 = tpu.matmul %21, %23, %cst_19 {dimension_numbers = #tpu.dot_dimension_numbers<[1], [0], [0], [1], [0, 0, 1, 1], [], []>} : vector<128x256xbf16>, vector<256x256xbf16>, vector<128x256xf32> -> vector<128x256xf32>
    %25 = arith.addf %20, %24 : vector<128x256xf32>
    %c0_20 = arith.constant 0 : index
    %c0_21 = arith.constant 0 : index
    %26 = vector.load %arg3[%c0_20, %c0_21] : memref<128x256xbf16, #tpu.memory_space<vmem>>, vector<128x256xbf16>
    %c1 = arith.constant 1 : index
    %c0_22 = arith.constant 0 : index
    %c0_23 = arith.constant 0 : index
    %27 = vector.load %arg19[%c1, %c0_22, %c0_23] : memref<13x256x256xbf16, #tpu.memory_space<vmem>>, vector<1x256x256xbf16>
    %28 = vector.shape_cast %27 : vector<1x256x256xbf16> to vector<256x256xbf16>
    %cst_24 = arith.constant dense<0.000000e+00> : vector<128x256xf32>
    %29 = tpu.matmul %26, %28, %cst_24 {dimension_numbers = #tpu.dot_dimension_numbers<[1], [0], [0], [1], [0, 0, 1, 1], [], []>} : vector<128x256xbf16>, vector<256x256xbf16>, vector<128x256xf32> -> vector<128x256xf32>
    %30 = arith.addf %25, %29 : vector<128x256xf32>
    %c0_25 = arith.constant 0 : index
    %c0_26 = arith.constant 0 : index
    %31 = vector.load %arg4[%c0_25, %c0_26] : memref<128x256xbf16, #tpu.memory_space<vmem>>, vector<128x256xbf16>
    %c2 = arith.constant 2 : index
    %c0_27 = arith.constant 0 : index
    %c0_28 = arith.constant 0 : index
    %32 = vector.load %arg19[%c2, %c0_27, %c0_28] : memref<13x256x256xbf16, #tpu.memory_space<vmem>>, vector<1x256x256xbf16>
    %33 = vector.shape_cast %32 : vector<1x256x256xbf16> to vector<256x256xbf16>
    %cst_29 = arith.constant dense<0.000000e+00> : vector<128x256xf32>
    %34 = tpu.matmul %31, %33, %cst_29 {dimension_numbers = #tpu.dot_dimension_numbers<[1], [0], [0], [1], [0, 0, 1, 1], [], []>} : vector<128x256xbf16>, vector<256x256xbf16>, vector<128x256xf32> -> vector<128x256xf32>
    %35 = arith.addf %30, %34 : vector<128x256xf32>
    %c0_30 = arith.constant 0 : index
    %c0_31 = arith.constant 0 : index
    %36 = vector.load %arg5[%c0_30, %c0_31] : memref<128x256xbf16, #tpu.memory_space<vmem>>, vector<128x256xbf16>
    %c3 = arith.constant 3 : index
    %c0_32 = arith.constant 0 : index
    %c0_33 = arith.constant 0 : index
    %37 = vector.load %arg19[%c3, %c0_32, %c0_33] : memref<13x256x256xbf16, #tpu.memory_space<vmem>>, vector<1x256x256xbf16>
    %38 = vector.shape_cast %37 : vector<1x256x256xbf16> to vector<256x256xbf16>
    %cst_34 = arith.constant dense<0.000000e+00> : vector<128x256xf32>
    %39 = tpu.matmul %36, %38, %cst_34 {dimension_numbers = #tpu.dot_dimension_numbers<[1], [0], [0], [1], [0, 0, 1, 1], [], []>} : vector<128x256xbf16>, vector<256x256xbf16>, vector<128x256xf32> -> vector<128x256xf32>
    %40 = arith.addf %35, %39 : vector<128x256xf32>
    %c0_35 = arith.constant 0 : index
    %c0_36 = arith.constant 0 : index
    %41 = vector.load %arg6[%c0_35, %c0_36] : memref<128x256xbf16, #tpu.memory_space<vmem>>, vector<128x256xbf16>
    %c4 = arith.constant 4 : index
    %c0_37 = arith.constant 0 : index
    %c0_38 = arith.constant 0 : index
    %42 = vector.load %arg19[%c4, %c0_37, %c0_38] : memref<13x256x256xbf16, #tpu.memory_space<vmem>>, vector<1x256x256xbf16>
    %43 = vector.shape_cast %42 : vector<1x256x256xbf16> to vector<256x256xbf16>
    %cst_39 = arith.constant dense<0.000000e+00> : vector<128x256xf32>
    %44 = tpu.matmul %41, %43, %cst_39 {dimension_numbers = #tpu.dot_dimension_numbers<[1], [0], [0], [1], [0, 0, 1, 1], [], []>} : vector<128x256xbf16>, vector<256x256xbf16>, vector<128x256xf32> -> vector<128x256xf32>
    %45 = arith.addf %40, %44 : vector<128x256xf32>
    %c0_40 = arith.constant 0 : index
    %c0_41 = arith.constant 0 : index
    %46 = vector.load %arg7[%c0_40, %c0_41] : memref<128x256xbf16, #tpu.memory_space<vmem>>, vector<128x256xbf16>
    %c5 = arith.constant 5 : index
    %c0_42 = arith.constant 0 : index
    %c0_43 = arith.constant 0 : index
    %47 = vector.load %arg19[%c5, %c0_42, %c0_43] : memref<13x256x256xbf16, #tpu.memory_space<vmem>>, vector<1x256x256xbf16>
    %48 = vector.shape_cast %47 : vector<1x256x256xbf16> to vector<256x256xbf16>
    %cst_44 = arith.constant dense<0.000000e+00> : vector<128x256xf32>
    %49 = tpu.matmul %46, %48, %cst_44 {dimension_numbers = #tpu.dot_dimension_numbers<[1], [0], [0], [1], [0, 0, 1, 1], [], []>} : vector<128x256xbf16>, vector<256x256xbf16>, vector<128x256xf32> -> vector<128x256xf32>
    %50 = arith.addf %45, %49 : vector<128x256xf32>
    %c0_45 = arith.constant 0 : index
    %c0_46 = arith.constant 0 : index
    %51 = vector.load %arg8[%c0_45, %c0_46] : memref<128x256xbf16, #tpu.memory_space<vmem>>, vector<128x256xbf16>
    %c6 = arith.constant 6 : index
    %c0_47 = arith.constant 0 : index
    %c0_48 = arith.constant 0 : index
    %52 = vector.load %arg19[%c6, %c0_47, %c0_48] : memref<13x256x256xbf16, #tpu.memory_space<vmem>>, vector<1x256x256xbf16>
    %53 = vector.shape_cast %52 : vector<1x256x256xbf16> to vector<256x256xbf16>
    %cst_49 = arith.constant dense<0.000000e+00> : vector<128x256xf32>
    %54 = tpu.matmul %51, %53, %cst_49 {dimension_numbers = #tpu.dot_dimension_numbers<[1], [0], [0], [1], [0, 0, 1, 1], [], []>} : vector<128x256xbf16>, vector<256x256xbf16>, vector<128x256xf32> -> vector<128x256xf32>
    %55 = arith.addf %50, %54 : vector<128x256xf32>
    %c0_50 = arith.constant 0 : index
    %c0_51 = arith.constant 0 : index
    %56 = vector.load %arg9[%c0_50, %c0_51] : memref<128x256xbf16, #tpu.memory_space<vmem>>, vector<128x256xbf16>
    %c7 = arith.constant 7 : index
    %c0_52 = arith.constant 0 : index
    %c0_53 = arith.constant 0 : index
    %57 = vector.load %arg19[%c7, %c0_52, %c0_53] : memref<13x256x256xbf16, #tpu.memory_space<vmem>>, vector<1x256x256xbf16>
    %58 = vector.shape_cast %57 : vector<1x256x256xbf16> to vector<256x256xbf16>
    %cst_54 = arith.constant dense<0.000000e+00> : vector<128x256xf32>
    %59 = tpu.matmul %56, %58, %cst_54 {dimension_numbers = #tpu.dot_dimension_numbers<[1], [0], [0], [1], [0, 0, 1, 1], [], []>} : vector<128x256xbf16>, vector<256x256xbf16>, vector<128x256xf32> -> vector<128x256xf32>
    %60 = arith.addf %55, %59 : vector<128x256xf32>
    %c0_55 = arith.constant 0 : index
    %c0_56 = arith.constant 0 : index
    %61 = vector.load %arg10[%c0_55, %c0_56] : memref<128x256xbf16, #tpu.memory_space<vmem>>, vector<128x256xbf16>
    %c8 = arith.constant 8 : index
    %c0_57 = arith.constant 0 : index
    %c0_58 = arith.constant 0 : index
    %62 = vector.load %arg19[%c8, %c0_57, %c0_58] : memref<13x256x256xbf16, #tpu.memory_space<vmem>>, vector<1x256x256xbf16>
    %63 = vector.shape_cast %62 : vector<1x256x256xbf16> to vector<256x256xbf16>
    %cst_59 = arith.constant dense<0.000000e+00> : vector<128x256xf32>
    %64 = tpu.matmul %61, %63, %cst_59 {dimension_numbers = #tpu.dot_dimension_numbers<[1], [0], [0], [1], [0, 0, 1, 1], [], []>} : vector<128x256xbf16>, vector<256x256xbf16>, vector<128x256xf32> -> vector<128x256xf32>
    %65 = arith.addf %60, %64 : vector<128x256xf32>
    %c0_60 = arith.constant 0 : index
    %c0_61 = arith.constant 0 : index
    %66 = vector.load %arg11[%c0_60, %c0_61] : memref<128x256xbf16, #tpu.memory_space<vmem>>, vector<128x256xbf16>
    %c9 = arith.constant 9 : index
    %c0_62 = arith.constant 0 : index
    %c0_63 = arith.constant 0 : index
    %67 = vector.load %arg19[%c9, %c0_62, %c0_63] : memref<13x256x256xbf16, #tpu.memory_space<vmem>>, vector<1x256x256xbf16>
    %68 = vector.shape_cast %67 : vector<1x256x256xbf16> to vector<256x256xbf16>
    %cst_64 = arith.constant dense<0.000000e+00> : vector<128x256xf32>
    %69 = tpu.matmul %66, %68, %cst_64 {dimension_numbers = #tpu.dot_dimension_numbers<[1], [0], [0], [1], [0, 0, 1, 1], [], []>} : vector<128x256xbf16>, vector<256x256xbf16>, vector<128x256xf32> -> vector<128x256xf32>
    %70 = arith.addf %65, %69 : vector<128x256xf32>
    %c0_65 = arith.constant 0 : index
    %c0_66 = arith.constant 0 : index
    %71 = vector.load %arg12[%c0_65, %c0_66] : memref<128x256xbf16, #tpu.memory_space<vmem>>, vector<128x256xbf16>
    %c10 = arith.constant 10 : index
    %c0_67 = arith.constant 0 : index
    %c0_68 = arith.constant 0 : index
    %72 = vector.load %arg19[%c10, %c0_67, %c0_68] : memref<13x256x256xbf16, #tpu.memory_space<vmem>>, vector<1x256x256xbf16>
    %73 = vector.shape_cast %72 : vector<1x256x256xbf16> to vector<256x256xbf16>
    %cst_69 = arith.constant dense<0.000000e+00> : vector<128x256xf32>
    %74 = tpu.matmul %71, %73, %cst_69 {dimension_numbers = #tpu.dot_dimension_numbers<[1], [0], [0], [1], [0, 0, 1, 1], [], []>} : vector<128x256xbf16>, vector<256x256xbf16>, vector<128x256xf32> -> vector<128x256xf32>
    %75 = arith.addf %70, %74 : vector<128x256xf32>
    %c0_70 = arith.constant 0 : index
    %c0_71 = arith.constant 0 : index
    %76 = vector.load %arg13[%c0_70, %c0_71] : memref<128x256xbf16, #tpu.memory_space<vmem>>, vector<128x256xbf16>
    %c11 = arith.constant 11 : index
    %c0_72 = arith.constant 0 : index
    %c0_73 = arith.constant 0 : index
    %77 = vector.load %arg19[%c11, %c0_72, %c0_73] : memref<13x256x256xbf16, #tpu.memory_space<vmem>>, vector<1x256x256xbf16>
    %78 = vector.shape_cast %77 : vector<1x256x256xbf16> to vector<256x256xbf16>
    %cst_74 = arith.constant dense<0.000000e+00> : vector<128x256xf32>
    %79 = tpu.matmul %76, %78, %cst_74 {dimension_numbers = #tpu.dot_dimension_numbers<[1], [0], [0], [1], [0, 0, 1, 1], [], []>} : vector<128x256xbf16>, vector<256x256xbf16>, vector<128x256xf32> -> vector<128x256xf32>
    %80 = arith.addf %75, %79 : vector<128x256xf32>
    %c0_75 = arith.constant 0 : index
    %c0_76 = arith.constant 0 : index
    %81 = vector.load %arg14[%c0_75, %c0_76] : memref<128x256xbf16, #tpu.memory_space<vmem>>, vector<128x256xbf16>
    %c12 = arith.constant 12 : index
    %c0_77 = arith.constant 0 : index
    %c0_78 = arith.constant 0 : index
    %82 = vector.load %arg19[%c12, %c0_77, %c0_78] : memref<13x256x256xbf16, #tpu.memory_space<vmem>>, vector<1x256x256xbf16>
    %83 = vector.shape_cast %82 : vector<1x256x256xbf16> to vector<256x256xbf16>
    %cst_79 = arith.constant dense<0.000000e+00> : vector<128x256xf32>
    %84 = tpu.matmul %81, %83, %cst_79 {dimension_numbers = #tpu.dot_dimension_numbers<[1], [0], [0], [1], [0, 0, 1, 1], [], []>} : vector<128x256xbf16>, vector<256x256xbf16>, vector<128x256xf32> -> vector<128x256xf32>
    %85 = arith.addf %80, %84 : vector<128x256xf32>
    %c0_80 = arith.constant 0 : index
    %c0_81 = arith.constant 0 : index
    %86 = vector.load %arg21[%c0_80, %c0_81] : memref<128x256xf32, #tpu.memory_space<vmem>>, vector<128x256xf32>
    tpu.vector_store %arg21[%c0_80, %c0_81], %85 {strides = array<i32>} : memref<128x256xf32, #tpu.memory_space<vmem>>, vector<128x256xf32>,
    return
  }
  func.func @transform_0(%arg0: i32) -> (i32, i32) {
    %c0_i32 = arith.constant 0 : i32
    %c0_i32_0 = arith.constant 0 : i32
    return %arg0, %c0_i32 : i32, i32
  }
  func.func @transform_1(%arg0: i32) -> (i32, i32) {
    %c0_i32 = arith.constant 0 : i32
    %c0_i32_0 = arith.constant 0 : i32
    return %arg0, %c0_i32 : i32, i32
  }
  func.func @transform_2(%arg0: i32) -> (i32, i32) {
    %c0_i32 = arith.constant 0 : i32
    %c0_i32_0 = arith.constant 0 : i32
    return %arg0, %c0_i32 : i32, i32
  }
  func.func @transform_3(%arg0: i32) -> (i32, i32) {
    %c0_i32 = arith.constant 0 : i32
    %c0_i32_0 = arith.constant 0 : i32
    return %arg0, %c0_i32 : i32, i32
  }
  func.func @transform_4(%arg0: i32) -> (i32, i32) {
    %c0_i32 = arith.constant 0 : i32
    %c0_i32_0 = arith.constant 0 : i32
    return %arg0, %c0_i32 : i32, i32
  }
  func.func @transform_5(%arg0: i32) -> (i32, i32) {
    %c0_i32 = arith.constant 0 : i32
    %c0_i32_0 = arith.constant 0 : i32
    return %arg0, %c0_i32 : i32, i32
  }
  func.func @transform_6(%arg0: i32) -> (i32, i32) {
    %c0_i32 = arith.constant 0 : i32
    %c0_i32_0 = arith.constant 0 : i32
    return %arg0, %c0_i32 : i32, i32
  }
  func.func @transform_7(%arg0: i32) -> (i32, i32) {
    %c0_i32 = arith.constant 0 : i32
    %c0_i32_0 = arith.constant 0 : i32
    return %arg0, %c0_i32 : i32, i32
  }
  func.func @transform_8(%arg0: i32) -> (i32, i32) {
    %c0_i32 = arith.constant 0 : i32
    %c0_i32_0 = arith.constant 0 : i32
    return %arg0, %c0_i32 : i32, i32
  }
  func.func @transform_9(%arg0: i32) -> (i32, i32) {
    %c0_i32 = arith.constant 0 : i32
    %c0_i32_0 = arith.constant 0 : i32
    return %arg0, %c0_i32 : i32, i32
  }
  func.func @transform_10(%arg0: i32) -> (i32, i32) {
    %c0_i32 = arith.constant 0 : i32
    %c0_i32_0 = arith.constant 0 : i32
    return %arg0, %c0_i32 : i32, i32
  }
  func.func @transform_11(%arg0: i32) -> (i32, i32) {
    %c0_i32 = arith.constant 0 : i32
    %c0_i32_0 = arith.constant 0 : i32
    return %arg0, %c0_i32 : i32, i32
  }
  func.func @transform_12(%arg0: i32) -> (i32, i32) {
    %c0_i32 = arith.constant 0 : i32
    %c0_i32_0 = arith.constant 0 : i32
    return %arg0, %c0_i32 : i32, i32
  }
  func.func @transform_13(%arg0: i32) -> (i32, i32) {
    %c0_i32 = arith.constant 0 : i32
    %c0_i32_0 = arith.constant 0 : i32
    return %arg0, %c0_i32 : i32, i32
  }
  func.func @transform_14(%arg0: i32) -> (i32, i32) {
    %c0_i32 = arith.constant 0 : i32
    %c0_i32_0 = arith.constant 0 : i32
    %c0_i32_1 = arith.constant 0 : i32
    return %c0_i32, %c0_i32_0 : i32, i32
  }
  func.func @transform_15(%arg0: i32) -> (i32, i32) {
    %c0_i32 = arith.constant 0 : i32
    %c0_i32_0 = arith.constant 0 : i32
    %c0_i32_1 = arith.constant 0 : i32
    return %c0_i32, %c0_i32_0 : i32, i32
  }
  func.func @transform_16(%arg0: i32) -> (i32, i32) {
    %c0_i32 = arith.constant 0 : i32
    %c0_i32_0 = arith.constant 0 : i32
    %c0_i32_1 = arith.constant 0 : i32
    return %c0_i32, %c0_i32_0 : i32, i32
  }
  func.func @transform_17(%arg0: i32) -> (i32, i32) {
    %c0_i32 = arith.constant 0 : i32
    %c0_i32_0 = arith.constant 0 : i32
    %c0_i32_1 = arith.constant 0 : i32
    return %c0_i32, %c0_i32_0 : i32, i32
  }
  func.func @transform_18(%arg0: i32) -> (i32, i32, i32) {
    %c0_i32 = arith.constant 0 : i32
    %c0_i32_0 = arith.constant 0 : i32
    %c0_i32_1 = arith.constant 0 : i32
    %c0_i32_2 = arith.constant 0 : i32
    return %c0_i32, %c0_i32_0, %c0_i32_1 : i32, i32, i32
  }
  func.func @transform_19(%arg0: i32) -> (i32, i32) {
    %c0_i32 = arith.constant 0 : i32
    %c0_i32_0 = arith.constant 0 : i32
    %c0_i32_1 = arith.constant 0 : i32
    return %c0_i32, %c0_i32_0 : i32, i32
  }
  func.func @transform_20(%arg0: i32) -> (i32, i32) {
    %c0_i32 = arith.constant 0 : i32
    %c0_i32_0 = arith.constant 0 : i32
    return %arg0, %c0_i32 : i32, i32
  }
}

</mosaic_0001>

<bundles_post_ra>
// kernel: adapter_forward.1
= control target key start
LH: loop header
LB: loop body
LE: loop exit
PB: predicated region body
PF: predicated region fallthrough
CT: control target
= control target key end

     0   :  { %s18149_s0 = inlined_call_operand.vmem [shape: bf16[256,256], index: 0, kind: input, shape index: {}]   ;;  %s18150_s1 = inlined_call_operand.vmem [shape: bf16[256,256], index: 1, kind: input, shape index: {}]   ;;  %s18151_s2 = inlined_call_operand.vmem [shape: bf16[256,256], index: 2, kind: input, shape index: {}]   ;;  %s18152_s3 = inlined_call_operand.vmem [shape: bf16[256,256], index: 3, kind: input, shape index: {}]   ;;  %s18153_s4 = inlined_call_operand.vmem [shape: bf16[256,256], index: 4, kind: input, shape index: {}]   ;;  %s18154_s5 = inlined_call_operand.vmem [shape: bf16[256,256], index: 5, kind: input, shape index: {}]   ;;  %s18155_s6 = inlined_call_operand.vmem [shape: bf16[256,256], index: 6, kind: input, shape index: {}]   ;;  %s18156_s7 = inlined_call_operand.vmem [shape: bf16[256,256], index: 7, kind: input, shape index: {}]   ;;  %s18157_s8 = inlined_call_operand.vmem [shape: bf16[256,256], index: 8, kind: input, shape index: {}]   ;;  %s18158_s9 = inlined_call_operand.vmem [shape: bf16[256,256], index: 9, kind: input, shape index: {}]   ;;  %s18159_s10 = inlined_call_operand.vmem [shape: bf16[256,256], index: 10, kind: input, shape index: {}]   ;;  %s18160_s11 = inlined_call_operand.vmem [shape: bf16[256,256], index: 11, kind: input, shape index: {}]   ;;  %s18161_s12 = inlined_call_operand.vmem [shape: bf16[256,256], index: 12, kind: input, shape index: {}]   ;;  %s18162_s13 = inlined_call_operand.vmem [shape: bf16[256,256], index: 13, kind: input, shape index: {}]   ;;  %s18163_s14 = inlined_call_operand.vmem [shape: bf16[256,128], index: 14, kind: input, shape index: {}]   ;;  %s18164_s15 = inlined_call_operand.vmem [shape: f32[1,128], index: 15, kind: input, shape index: {}]   ;;  %s18165_s16 = inlined_call_operand.vmem [shape: bf16[128,256], index: 16, kind: input, shape index: {}]   ;;  %s18166_s17 = inlined_call_operand.vmem [shape: f32[1,256], index: 17, kind: input, shape index: {}]   ;;  %s18167_s18 = inlined_call_operand.vmem [shape: bf16[13,256,256], index: 18, kind: input, shape index: {}]   ;;  %s18168_s19 = inlined_call_operand.vmem [shape: f32[1,256], index: 19, kind: input, shape index: {}]   ;;  %s18169_s20 = inlined_call_operand.hbm [shape: f32[256,256], index: 20, kind: output, shape index: {}]  }
   0x1   :  { %18228 = sst [smem:[#allocation22_spill]] %s18149_s0 }
   0x2   :  { %18229 = sst [smem:[#allocation23_spill]] %s18150_s1 }
   0x3   :  { %18230 = sst [smem:[#allocation24_spill]] %s18151_s2 }
   0x4   :  { %18231 = sst [smem:[#allocation25_spill]] %s18152_s3 }
   0x5   :  { %18232 = sst [smem:[#allocation26_spill]] %s18153_s4 }
   0x6   :  { %18233 = sst [smem:[#allocation27_spill]] %s18163_s14 }
   0x7   :  { %18234 = sst [smem:[#allocation28_spill]] %s18165_s16 }
   0x8   :  { %25 = vsyncpa [#allocation3], 0 }
   0x9   :  { %27 = vsyncpa [#allocation3 + $0x1], 0  ;;  %s12656_s1 = smov 0   ;;  %s12658_s22 = smov 0  }
   0xa   :  { %s12660_s23 = smov 0   ;;  %s12662_s24 = smov 0  }
   0xb LB: > { %18235 = sst [smem:[#allocation5_spill]] %s12535_s1  ;;  %s12677_s2 = sadd.s32 4294967295, %s12547_s24   ;;  %s12547_s24 = sphi %s12662_s24, %s18365_s24   ;;  %s12543_s23 = sphi %s12660_s23, %s18370_s23   ;;  %s12539_s22 = sphi %s12658_s22, %s18369_s22   ;;  %s12535_s1 = sphi %s12656_s1, %s18368_s1  }
   0xc   : > { %18236 = sst [smem:[#allocation6_spill]] %s12543_s23  ;;  %s8630_s25 = sadd.s32 4294967294, %s12547_s24  }
   0xd   : > { %18237 = sst [smem:[#allocation7_spill]] %s12547_s24  ;;  %s12681_s3 = sadd.s32 1, %s12547_s24  }
   0xe   : > { %18238 = sst [smem:[#allocation8_spill]] %s12681_s3  ;;  %s530_s26 = sadd.s32 1, %s12543_s23 }
   0xf   : > { %s527_s27 = ssub.s32 %s12547_s24, %s12681_s3  ;;  %p540_p0 = scmp.ne.s32.totalorder %s12543_s23, %s12539_s22 }
  0x10   : > { %p528_p1 = scmp.eq.s32.totalorder %s527_s27, 0  ;;  %p541_p2 = scmp.eq.s32.totalorder %s12677_s2, 1 }
  0x11   : > { %p546_p3 = scmp.ne.s32.totalorder %s12539_s22, %s12535_s1  ;;  %p547_p4 = scmp.eq.s32.totalorder %s8630_s25, 1 }
  0x12   : > { %s12692_s28 = scalar_select %p528_p1, %s12543_s23, %s530_s26  }
  0x13   : > { %p12694_p5 = por %p541_p2, %p540_p0  ;;  %p12698_p6 = por %p547_p4, %p546_p3 }
  0x14   : > { %18239 = sst [smem:[#allocation9_spill]] %s12692_s28  ;;  %p8633_p7 = scmp.ge.s32.totalorder %s12547_s24, 1 }
  0x15   : > { %s18241_s29 = scalar_select %p12698_p6, 1, 0 }
  0x16   : > { %p723_p8 = scmp.lt.s32.totalorder %s12547_s24, 3 }
  0x17   : > { %18242 = sst [smem:[#allocation10_spill]] %s18241_s29 }
  0x18   : > { %p724_p9 = pnand %p8633_p7, %p723_p8 }
  0x1a   : > { %727 = sbr.rel (%p724_p9) target bundleno = 2135 (0x857), region = 100 }
  0x1f   : > { %s18243_s14 = sld [smem:[#allocation27_spill]]  ;;  %s8635_s21 = sshll.u32 %s12677_s2, 4  ;;  %v8991_v46 = vld [vmem:[%s18167_s18 + $0x70] sm:$0xf]  ;;  %v11848_v47 = vld [vmem:[%s18167_s18 + $0x74] sm:$0xf0] }
  0x20   : > { %p861_p10 = scmp.lt.s32.totalorder %s8635_s21, 31  ;;  %s18244_s25 = sld [smem:[#allocation22_spill]]  ;;  %v9055_v48 = vld [vmem:[%s18167_s18 + $0xf0] sm:$0xf]  ;;  %v8992_v49 = vor.u32 %v11848_v47, %v8991_v46  ;;  %v11864_v50 = vld [vmem:[%s18167_s18 + $0xf4] sm:$0xf0] }
  0x21   : > { %v9056_v51 = vor.u32 %v11864_v50, %v9055_v48  ;;  %v8983_v52 = vld [vmem:[%s18167_s18 + $0x60] sm:$0xf]  ;;  %v11846_v53 = vld [vmem:[%s18167_s18 + $0x64] sm:$0xf0]  ;;  %v8975_v58 = vld [vmem:[%s18167_s18 + $0x50] sm:$0xf] }
  0x22   : > { %s18372_s21 = smov (!%p861_p10, %s8635_s21), 31  ;;  %v9047_v54 = vld [vmem:[%s18167_s18 + $0xe0] sm:$0xf]  ;;  %v8984_v55 = vor.u32 %v11846_v53, %v8983_v52  ;;  %v11862_v56 = vld [vmem:[%s18167_s18 + $0xe4] sm:$0xf0]  ;;  %s18245_s16 = sld [smem:[#allocation28_spill]] }
  0x23   : > { %s12741_s23 = sshll.u32 %s18372_s21, 3  ;;  %v9048_v57 = vor.u32 %v11862_v56, %v9047_v54  ;;  %v11844_v59 = vld [vmem:[%s18167_s18 + $0x54] sm:$0xf0]  ;;  %v9039_v60 = vld [vmem:[%s18167_s18 + $0xd0] sm:$0xf]  ;;  %s18246_s27 = sld [smem:[#allocation23_spill]] }
  0x24   : > { %v11860_v61 = vld [vmem:[%s18167_s18 + $0xd4] sm:$0xf0]  ;;  %s18256_s1 = sld [smem:[#allocation25_spill]]  ;;  %s14570_s26 = scalar_lea.vmem %s18154_s5, %s12741_s23 }
  0x25   : > { %v11792_v0 = vld [vmem:[%s18243_s14 + $0x38] sm:$0xff]  ;;  %v11791_v2 = vld [vmem:[%s18243_s14 + $0x30] sm:$0xff]  ;;  %v11790_v4 = vld [vmem:[%s18243_s14 + $0x28] sm:$0xff]  ;;  %s14960_s30 = scalar_lea.vmem %s18155_s6, %s12741_s23  ;;  %s15350_s29 = scalar_lea.vmem %s18156_s7, %s12741_s23 }
  0x26   : > { %v11800_v1 = vld [vmem:[%s18243_s14 + $0x78] sm:$0xff]  ;;  %1187 = vmatpush.bf16.msra.mxu0 %v11792_v0  ;;  %v11799_v3 = vld [vmem:[%s18243_s14 + $0x70] sm:$0xff]  ;;  %v11798_v5 = vld [vmem:[%s18243_s14 + $0x68] sm:$0xff]  ;;  %s12753_s24 = scalar_lea.vmem %s18244_s25, %s12741_s23  ;;  %s16520_s0 = scalar_lea.vmem %s18159_s10, %s12741_s23 }
  0x27   : > { %1236 = vmatpush.bf16.msra.mxu1 %v11800_v1  ;;  %v11789_v6 = vld [vmem:[%s18243_s14 + $0x20] sm:$0xff]  ;;  %v11788_v8 = vld [vmem:[%s18243_s14 + $0x18] sm:$0xff]  ;;  %v11787_v10 = vld [vmem:[%s18243_s14 + $0x10] sm:$0xff]  ;;  %v8976_v1 = vor.u32 %v11844_v59, %v8975_v58 }
  0x28   : > { %v11797_v7 = vld [vmem:[%s18243_s14 + $0x60] sm:$0xff]  ;;  %v11796_v9 = vld [vmem:[%s18243_s14 + $0x58] sm:$0xff]  ;;  %v11795_v11 = vld [vmem:[%s18243_s14 + $0x50] sm:$0xff] }
  0x29   : > { %v11786_v12 = vld [vmem:[%s18243_s14 + $0x8] sm:$0xff]  ;;  %v11785_v14 = vld [vmem:[%s18243_s14] sm:$0xff]  ;;  %v8687_v22 = vld [vmem:[%s12753_s24 + $0x10] sm:$0xf] }
  0x2a   : > { %1188 = vmatpush.bf16.msra.mxu0 %v11791_v2  ;;  %v11794_v13 = vld [vmem:[%s18243_s14 + $0x48] sm:$0xff]  ;;  %v11793_v15 = vld [vmem:[%s18243_s14 + $0x40] sm:$0xff]  ;;  %v11772_v23 = vld [vmem:[%s12753_s24 + $0x14] sm:$0xf0]  ;;  %s13748_s28 = scalar_lea.vmem %s18256_s1, %s12741_s23  ;;  %s15740_s1 = scalar_lea.vmem %s18157_s8, %s12741_s23 }
  0x2b   : > { %1237 = vmatpush.bf16.msra.mxu1 %v11799_v3  ;;  %v8679_v16 = vld [vmem:[%s12753_s24] sm:$0xf]  ;;  %v11770_v17 = vld [vmem:[%s12753_s24 + $0x4] sm:$0xf0]  ;;  %v11769_v18 = vld [vmem:[%s12753_s24 + $0x4] sm:$0xf]  ;;  %v8688_v26 = vor.u32 %v11772_v23, %v8687_v22 }
  0x2c   : > { %v8681_v19 = vld [vmem:[%s12753_s24 + $0x8] sm:$0xf0]  ;;  %v8680_v20 = vor.u32 %v11770_v17, %v8679_v16  ;;  %v11771_v24 = vld [vmem:[%s12753_s24 + $0x14] sm:$0xf]  ;;  %v8689_v25 = vld [vmem:[%s12753_s24 + $0x18] sm:$0xf0] }
  0x2d   : > { %v8684_v21 = vor.u32 %v11769_v18, %v8681_v19  ;;  %v8692_v27 = vor.u32 %v11771_v24, %v8689_v25  ;;  %v8695_v28 = vld [vmem:[%s12753_s24 + $0x20] sm:$0xf]  ;;  %v11774_v29 = vld [vmem:[%s12753_s24 + $0x24] sm:$0xf0]  ;;  %v11773_v30 = vld [vmem:[%s12753_s24 + $0x24] sm:$0xf] }
  0x2e   : > { %1189 = vmatpush.bf16.msra.mxu0 %v11790_v4  ;;  %v8697_v31 = vld [vmem:[%s12753_s24 + $0x28] sm:$0xf0]  ;;  %v8696_v32 = vor.u32 %v11774_v29, %v8695_v28  ;;  %v8703_v34 = vld [vmem:[%s12753_s24 + $0x30] sm:$0xf]  ;;  %v11776_v35 = vld [vmem:[%s12753_s24 + $0x34] sm:$0xf0]  ;;  %v9040_v4 = vor.u32 %v11860_v61, %v9039_v60 }
  0x2f   : > { %1238 = vmatpush.bf16.msra.mxu1 %v11798_v5  ;;  %v8700_v33 = vor.u32 %v11773_v30, %v8697_v31  ;;  %v11775_v36 = vld [vmem:[%s12753_s24 + $0x34] sm:$0xf]  ;;  %v8705_v37 = vld [vmem:[%s12753_s24 + $0x38] sm:$0xf0]  ;;  %v8704_v38 = vor.u32 %v11776_v35, %v8703_v34  ;;  %v8711_v40 = vld [vmem:[%s12753_s24 + $0x40] sm:$0xf] }
  0x30   : > { %v8708_v39 = vor.u32 %v11775_v36, %v8705_v37  ;;  %v11778_v41 = vld [vmem:[%s12753_s24 + $0x44] sm:$0xf0]  ;;  %v11777_v42 = vld [vmem:[%s12753_s24 + $0x44] sm:$0xf]  ;;  %v8713_v43 = vld [vmem:[%s12753_s24 + $0x48] sm:$0xf0] }
  0x31   : > { %v8712_v44 = vor.u32 %v11778_v41, %v8711_v40  ;;  %v8716_v45 = vor.u32 %v11777_v42, %v8713_v43  ;;  %v8863_v62 = vld [vmem:[%s18245_s16 + $0x70] sm:$0xf]  ;;  %v11816_v63 = vld [vmem:[%s18245_s16 + $0x74] sm:$0xf0]  ;;  %v11815_v0 = vld [vmem:[%s18245_s16 + $0x74] sm:$0xf] }
  0x32   : > { %1190 = vmatpush.bf16.msra.mxu0 %v11789_v6  ;;  %v8864_v2 = vor.u32 %v11816_v63, %v8863_v62  ;;  %v8865_v3 = vld [vmem:[%s18245_s16 + $0x78] sm:$0xf0]  ;;  %v8967_v5 = vld [vmem:[%s18167_s18 + $0x40] sm:$0xf]  ;;  %v11842_v6 = vld [vmem:[%s18167_s18 + $0x44] sm:$0xf0] }
  0x33   : > { %1239 = vmatpush.bf16.msra.mxu1 %v11797_v7  ;;  %v8868_v7 = vor.u32 %v11815_v0, %v8865_v3  ;;  %v8959_v18 = vld [vmem:[%s18167_s18 + $0x30] sm:$0xf]  ;;  %v11840_v19 = vld [vmem:[%s18167_s18 + $0x34] sm:$0xf0]  ;;  %v8855_v24 = vld [vmem:[%s18245_s16 + $0x60] sm:$0xf] }
  0x34   : > { %1411 = vmatpush.bf16.msra.mxu2 %v8864_v2  ;;  %v11856_v22 = vld [vmem:[%s18167_s18 + $0xb4] sm:$0xf0]  ;;  %v11814_v25 = vld [vmem:[%s18245_s16 + $0x64] sm:$0xf0]  ;;  %v8857_v28 = vld [vmem:[%s18245_s16 + $0x68] sm:$0xf0] }
  0x35   : > { %1460 = vmatpush.bf16.msra.mxu3 %v8868_v7  ;;  %v8951_v29 = vld [vmem:[%s18167_s18 + $0x20] sm:$0xf]  ;;  %v11838_v30 = vld [vmem:[%s18167_s18 + $0x24] sm:$0xf0]  ;;  %v8847_v35 = vld [vmem:[%s18245_s16 + $0x50] sm:$0xf] }
  0x36   : > { %1191 = vmatpush.bf16.msra.mxu0 %v11788_v8  ;;  %v9031_v8 = vld [vmem:[%s18167_s18 + $0xc0] sm:$0xf]  ;;  %v11854_v34 = vld [vmem:[%s18167_s18 + $0xa4] sm:$0xf0]  ;;  %v11812_v37 = vld [vmem:[%s18245_s16 + $0x54] sm:$0xf0] }
  0x37   : > { %1240 = vmatpush.bf16.msra.mxu1 %v11796_v9  ;;  %v11858_v9 = vld [vmem:[%s18167_s18 + $0xc4] sm:$0xf0]  ;;  %v8848_v40 = vor.u32 %v11812_v37, %v8847_v35  ;;  %v8943_v42 = vld [vmem:[%s18167_s18 + $0x10] sm:$0xf]  ;;  %v11836_v43 = vld [vmem:[%s18167_s18 + $0x14] sm:$0xf0] }
  0x38   : > { %v11852_v46 = vld [vmem:[%s18167_s18 + $0x94] sm:$0xf0]  ;;  %v8839_v47 = vld [vmem:[%s18245_s16 + $0x40] sm:$0xf]  ;;  %v11810_v48 = vld [vmem:[%s18245_s16 + $0x44] sm:$0xf0] }
  0x39   : > { %v11809_v50 = vld [vmem:[%s18245_s16 + $0x44] sm:$0xf]  ;;  %v8840_v52 = vor.u32 %v11810_v48, %v8839_v47  ;;  %v8727_v53 = vld [vmem:[%s12753_s24 + $0x60] sm:$0xf]  ;;  %v11834_v59 = vld [vmem:[%s18167_s18 + $0x4] sm:$0xf0] }
  0x3a   : > { %1192 = vmatpush.bf16.msra.mxu0 %v11787_v10  ;;  %v8719_v10 = vld [vmem:[%s12753_s24 + $0x50] sm:$0xf]  ;;  %v11781_v56 = vld [vmem:[%s12753_s24 + $0x64] sm:$0xf]  ;;  %v8935_v58 = vld [vmem:[%s18167_s18] sm:$0xf] }
  0x3b   : > { %1241 = vmatpush.bf16.msra.mxu1 %v11795_v11  ;;  %v11780_v11 = vld [vmem:[%s12753_s24 + $0x54] sm:$0xf0]  ;;  %v8999_v60 = vld [vmem:[%s18167_s18 + $0x80] sm:$0xf]  ;;  %v8936_v61 = vor.u32 %v11834_v59, %v8935_v58  ;;  %v11850_v62 = vld [vmem:[%s18167_s18 + $0x84] sm:$0xf0] }
  0x3c   : > { %v8720_v16 = vor.u32 %v11780_v11, %v8719_v10  ;;  %v8831_v2 = vld [vmem:[%s18245_s16 + $0x30] sm:$0xf]  ;;  %v11808_v3 = vld [vmem:[%s18245_s16 + $0x34] sm:$0xf0]  ;;  %v11805_v10 = vld [vmem:[%s18245_s16 + $0x24] sm:$0xf] }
  0x3d   : > { %v11845_v48 = vld [vmem:[%s18167_s18 + $0x64] sm:$0xf] }
  0x3e   : > { %1193 = vmatpush.bf16.msra.mxu0 %v11786_v12  ;;  %v11779_v12 = vld [vmem:[%s12753_s24 + $0x54] sm:$0xf] }
  0x3f   : > { %1242 = vmatpush.bf16.msra.mxu1 %v11794_v13  ;;  %v8721_v13 = vld [vmem:[%s12753_s24 + $0x58] sm:$0xf0] }
  0x40   : > { %v8724_v17 = vor.u32 %v11779_v12, %v8721_v13  ;;  %v8825_v12 = vld [vmem:[%s18245_s16 + $0x28] sm:$0xf0] }
  0x41   : > { %v8828_v13 = vor.u32 %v11805_v10, %v8825_v12  ;;  %v11859_v10 = vld [vmem:[%s18167_s18 + $0xd4] sm:$0xf] }
  0x42   : > { %1194 = vmatpush.bf16.msra.mxu0 %v11785_v14  ;;  %v8968_v14 = vor.u32 %v11842_v6, %v8967_v5  ;;  %v8832_v5 = vor.u32 %v11808_v3, %v8831_v2  ;;  %v8833_v6 = vld [vmem:[%s18245_s16 + $0x38] sm:$0xf0] }
  0x43   : > { %1243 = vmatpush.bf16.msra.mxu1 %v11793_v15  ;;  %v9032_v15 = vor.u32 %v11858_v9, %v9031_v8  ;;  %v8823_v8 = vld [vmem:[%s18245_s16 + $0x20] sm:$0xf]  ;;  %v11806_v9 = vld [vmem:[%s18245_s16 + $0x24] sm:$0xf0] }
  0x44   : > { %v8824_v11 = vor.u32 %v11806_v9, %v8823_v8  ;;  %v8977_v8 = vld [vmem:[%s18167_s18 + $0x58] sm:$0xf0] }
  0x45   : > { %1195 = vmatmul.bf16.vlgmr.msra.gmra.mxu0 %v8680_v20  ;;  %v9023_v20 = vld [vmem:[%s18167_s18 + $0xb0] sm:$0xf] }
  0x46   : > { %1244 = vmatmul.bf16.vlgmr.msra.gmra.mxu1 %v8684_v21  ;;  %1931 = vmatpush.bf16.msrb.mxu0 %v8992_v49  ;;  %v8960_v21 = vor.u32 %v11840_v19, %v8959_v18  ;;  %v9024_v23 = vor.u32 %v11856_v22, %v9023_v20  ;;  %v8817_v18 = vld [vmem:[%s18245_s16 + $0x18] sm:$0xf0]  ;;  %v8735_v20 = vld [vmem:[%s12753_s24 + $0x70] sm:$0xf]  ;;  %v8807_v22 = vld [vmem:[%s18245_s16] sm:$0xf] }
  0x47   : > { %1980 = vmatpush.bf16.msrb.mxu1 %v9056_v51  ;;  %v8841_v51 = vld [vmem:[%s18245_s16 + $0x48] sm:$0xf0] }
  0x48   : > { %v8844_v54 = vor.u32 %v11809_v50, %v8841_v51  ;;  %v11861_v51 = vld [vmem:[%s18167_s18 + $0xe4] sm:$0xf] }
  0x4a   : > { %1932 = vmatpush.bf16.msrb.mxu0 %v8984_v55  ;;  %v11782_v55 = vld [vmem:[%s12753_s24 + $0x64] sm:$0xf0] }
  0x4b   : > { %1981 = vmatpush.bf16.msrb.mxu1 %v9048_v57  ;;  %v8729_v57 = vld [vmem:[%s12753_s24 + $0x68] sm:$0xf0]  ;;  %v8728_v63 = vor.u32 %v11782_v55, %v8727_v53 }
  0x4c   : > { %v8732_v0 = vor.u32 %v11781_v56, %v8729_v57 }
  0x4e   : > { %1933 = vmatpush.bf16.msrb.mxu0 %v8976_v1  ;;  %v9000_v1 = vor.u32 %v11850_v62, %v8999_v60 }
  0x4f   : > { %1982 = vmatpush.bf16.msrb.mxu1 %v9040_v4  ;;  %v11807_v4 = vld [vmem:[%s18245_s16 + $0x34] sm:$0xf] }
  0x50   : > { %v8836_v7 = vor.u32 %v11807_v4, %v8833_v6 }
  0x52   : > { %1934 = vmatpush.bf16.msrb.mxu0 %v8968_v14  ;;  %v8815_v14 = vld [vmem:[%s18245_s16 + $0x10] sm:$0xf] }
  0x53   : > { %1983 = vmatpush.bf16.msrb.mxu1 %v9032_v15  ;;  %v11804_v15 = vld [vmem:[%s18245_s16 + $0x14] sm:$0xf0] }
  0x55   : > { %1200 = vmatmul.bf16.gmra.mxu0 %v8688_v26  ;;  %v11813_v26 = vld [vmem:[%s18245_s16 + $0x64] sm:$0xf] }
  0x56   : > { %1249 = vmatmul.bf16.gmra.mxu1 %v8692_v27  ;;  %1935 = vmatpush.bf16.msrb.mxu0 %v8960_v21  ;;  %v8856_v27 = vor.u32 %v11814_v25, %v8855_v24  ;;  %v8860_v31 = vor.u32 %v11813_v26, %v8857_v28  ;;  %v11784_v21 = vld [vmem:[%s12753_s24 + $0x74] sm:$0xf0]  ;;  %v11801_v24 = vld [vmem:[%s18245_s16 + $0x4] sm:$0xf]  ;;  %v11783_v25 = vld [vmem:[%s12753_s24 + $0x74] sm:$0xf] }
  0x57   : > { %1984 = vmatpush.bf16.msrb.mxu1 %v9024_v23  ;;  %v11802_v23 = vld [vmem:[%s18245_s16 + $0x4] sm:$0xf0]  ;;  %v8737_v26 = vld [vmem:[%s12753_s24 + $0x78] sm:$0xf0]  ;;  %v8809_v28 = vld [vmem:[%s18245_s16 + $0x8] sm:$0xf0] }
  0x58   : > { %1412 = vmatpush.bf16.msra.mxu2 %v8856_v27  ;;  %1461 = vmatpush.bf16.msra.mxu3 %v8860_v31  ;;  %v8808_v27 = vor.u32 %v11802_v23, %v8807_v22  ;;  %v8740_v31 = vor.u32 %v11783_v25, %v8737_v26 }
  0x5c   : > { %1413 = vmatpush.bf16.msra.mxu2 %v8848_v40 }
  0x60   : > { %1414 = vmatpush.bf16.msra.mxu2 %v8840_v52  ;;  %v9049_v52 = vld [vmem:[%s18167_s18 + $0xe8] sm:$0xf0] }
  0x61   : > { %v9052_v53 = vor.u32 %v11861_v51, %v9049_v52 }
  0x64   : > { %1415 = vmatpush.bf16.msra.mxu2 %v8832_v5 }
  0x65   : > { %1205 = vmatmul.bf16.gmra.mxu0 %v8696_v32  ;;  %v8952_v32 = vor.u32 %v11838_v30, %v8951_v29  ;;  %v8812_v29 = vor.u32 %v11801_v24, %v8809_v28  ;;  %v8736_v30 = vor.u32 %v11784_v21, %v8735_v20 }
  0x66   : > { %1254 = vmatmul.bf16.gmra.mxu1 %v8700_v33  ;;  %v9015_v33 = vld [vmem:[%s18167_s18 + $0xa0] sm:$0xf] }
  0x67   : > { %v9016_v36 = vor.u32 %v11854_v34, %v9015_v33  ;;  %1936 = vmatpush.bf16.msrb.mxu0 %v8952_v32  ;;  %v11847_v32 = vld [vmem:[%s18167_s18 + $0x74] sm:$0xf]  ;;  %v8993_v33 = vld [vmem:[%s18167_s18 + $0x78] sm:$0xf0] }
  0x68   : > { %1416 = vmatpush.bf16.msra.mxu2 %v8824_v11  ;;  %v11863_v34 = vld [vmem:[%s18167_s18 + $0xf4] sm:$0xf]  ;;  %v8996_v35 = vor.u32 %v11847_v32, %v8993_v33  ;;  %v9041_v11 = vld [vmem:[%s18167_s18 + $0xd8] sm:$0xf0]  ;;  %v11857_v33 = vld [vmem:[%s18167_s18 + $0xc4] sm:$0xf] }
  0x69   : > { %1985 = vmatpush.bf16.msrb.mxu1 %v9016_v36  ;;  %v9057_v36 = vld [vmem:[%s18167_s18 + $0xf8] sm:$0xf0]  ;;  %v9044_v12 = vor.u32 %v11859_v10, %v9041_v11 }
  0x6a   : > { %v9060_v37 = vor.u32 %v11863_v34, %v9057_v36  ;;  %v9033_v34 = vld [vmem:[%s18167_s18 + $0xc8] sm:$0xf0] }
  0x75   : > { %1210 = vmatmul.bf16.gmra.mxu0 %v8704_v38  ;;  %v11811_v38 = vld [vmem:[%s18245_s16 + $0x54] sm:$0xf] }
  0x76   : > { %1259 = vmatmul.bf16.gmra.mxu1 %v8708_v39  ;;  %v8849_v39 = vld [vmem:[%s18245_s16 + $0x58] sm:$0xf0] }
  0x77   : > { %v8852_v41 = vor.u32 %v11811_v38, %v8849_v39 }
  0x79   : > { %1462 = vmatpush.bf16.msra.mxu3 %v8852_v41 }
  0x7d   : > { %1463 = vmatpush.bf16.msra.mxu3 %v8844_v54 }
  0x81   : > { %1464 = vmatpush.bf16.msra.mxu3 %v8836_v7  ;;  %v11843_v7 = vld [vmem:[%s18167_s18 + $0x54] sm:$0xf] }
  0x82   : > { %v8980_v9 = vor.u32 %v11843_v7, %v8977_v8 }
  0x85   : > { %1215 = vmatmul.bf16.gmra.mxu0 %v8712_v44  ;;  %v9007_v44 = vld [vmem:[%s18167_s18 + $0x90] sm:$0xf]  ;;  %1465 = vmatpush.bf16.msra.mxu3 %v8828_v13 }
  0x86   : > { %1264 = vmatmul.bf16.gmra.mxu1 %v8716_v45  ;;  %v8944_v45 = vor.u32 %v11836_v43, %v8943_v42  ;;  %v9008_v49 = vor.u32 %v11852_v46, %v9007_v44  ;;  %v13014_v46 = vld [vmem:[%s18164_s15] ss:$0 sm:$0xff] }
  0x88   : > { %1937 = vmatpush.bf16.msrb.mxu0 %v8944_v45  ;;  %1986 = vmatpush.bf16.msrb.mxu1 %v9008_v49  ;;  %v8985_v49 = vld [vmem:[%s18167_s18 + $0x68] sm:$0xf0] }
  0x89   : > { %v8988_v50 = vor.u32 %v11845_v48, %v8985_v49 }
  0x8c   : > { %1938 = vmatpush.bf16.msrb.mxu0 %v8936_v61  ;;  %1987 = vmatpush.bf16.msrb.mxu1 %v9000_v1 }
  0x95   : > { %1220 = vmatmul.bf16.gmra.mxu0 %v8720_v16  ;;  %v11803_v16 = vld [vmem:[%s18245_s16 + $0x14] sm:$0xf]  ;;  %s13001_s16 = scalar_lea.vmem %s18246_s27, %s12741_s23  ;;  %s18247_s27 = sld [smem:[#allocation24_spill]] }
  0x96   : > { %1269 = vmatmul.bf16.gmra.mxu1 %v8724_v17  ;;  %v8816_v17 = vor.u32 %v11804_v15, %v8815_v14  ;;  %v8820_v19 = vor.u32 %v11803_v16, %v8817_v18  ;;  %v8871_v38 = vld [vmem:[%s13001_s16] sm:$0xf]  ;;  %v11818_v39 = vld [vmem:[%s13001_s16 + $0x4] sm:$0xf0]  ;;  %v11817_v40 = vld [vmem:[%s13001_s16 + $0x4] sm:$0xf] }
  0x97   : > { %v8873_v41 = vld [vmem:[%s13001_s16 + $0x8] sm:$0xf0]  ;;  %v13007_v42 = vor.u32 %v11818_v39, %v8871_v38  ;;  %v8879_v59 = vld [vmem:[%s13001_s16 + $0x10] sm:$0xf]  ;;  %v11820_v60 = vld [vmem:[%s13001_s16 + $0x14] sm:$0xf0] }
  0x98   : > { %1417 = vmatpush.bf16.msra.mxu2 %v8816_v17  ;;  %1466 = vmatpush.bf16.msra.mxu3 %v8820_v19  ;;  %v13009_v43 = vor.u32 %v11817_v40, %v8873_v41  ;;  %v11819_v61 = vld [vmem:[%s13001_s16 + $0x14] sm:$0xf]  ;;  %v8881_v62 = vld [vmem:[%s13001_s16 + $0x18] sm:$0xf0]  ;;  %v13036_v2 = vor.u32 %v11820_v60, %v8879_v59  ;;  %v8887_v18 = vld [vmem:[%s13001_s16 + $0x20] sm:$0xf] }
  0x99   : > { %v13038_v3 = vor.u32 %v11819_v61, %v8881_v62  ;;  %v11822_v19 = vld [vmem:[%s13001_s16 + $0x24] sm:$0xf0]  ;;  %v11821_v20 = vld [vmem:[%s13001_s16 + $0x24] sm:$0xf]  ;;  %v8889_v21 = vld [vmem:[%s13001_s16 + $0x28] sm:$0xf0] }
  0x9a   : > { %v13060_v25 = vor.u32 %v11822_v19, %v8887_v18  ;;  %v13062_v26 = vor.u32 %v11821_v20, %v8889_v21  ;;  %v8895_v41 = vld [vmem:[%s13001_s16 + $0x30] sm:$0xf]  ;;  %v11855_v59 = vld [vmem:[%s18167_s18 + $0xb4] sm:$0xf]  ;;  %v9025_v60 = vld [vmem:[%s18167_s18 + $0xb8] sm:$0xf0] }
  0x9b   : > { %v9028_v61 = vor.u32 %v11855_v59, %v9025_v60  ;;  %v11825_v7 = vld [vmem:[%s13001_s16 + $0x44] sm:$0xf]  ;;  %v8905_v8 = vld [vmem:[%s13001_s16 + $0x48] sm:$0xf0]  ;;  %v9279_v19 = vld [vmem:[%s18167_s18 + $0x1f0] sm:$0xf]  ;;  %s13299_s21 = scalar_lea.vmem %s18247_s27, %s12741_s23 }
  0x9c   : > { %1418 = vmatpush.bf16.msra.mxu2 %v8808_v27  ;;  %1467 = vmatpush.bf16.msra.mxu3 %v8812_v29  ;;  %v11912_v20 = vld [vmem:[%s18167_s18 + $0x1f4] sm:$0xf0]  ;;  %v9191_v59 = vld [vmem:[%s18167_s18 + $0x140] sm:$0xf]  ;;  %v11890_v60 = vld [vmem:[%s18167_s18 + $0x144] sm:$0xf0] }
  0x9d   : > { %v9280_v21 = vor.u32 %v11912_v20, %v9279_v19  ;;  %v11851_v20 = vld [vmem:[%s18167_s18 + $0x94] sm:$0xf]  ;;  %s18268_s27 = sld [smem:[#allocation26_spill]] }
  0x9f   : > { %2497 = vmatpush.bf16.msra.mxu1 %v9280_v21  ;;  %v9009_v21 = vld [vmem:[%s18167_s18 + $0x98] sm:$0xf0] }
  0xa0   : > { %2029 = vmatpush.bf16.msrb.mxu2 %v8996_v35  ;;  %2078 = vmatpush.bf16.msrb.mxu3 %v9060_v37  ;;  %v9036_v35 = vor.u32 %v11857_v33, %v9033_v34  ;;  %v9271_v33 = vld [vmem:[%s18167_s18 + $0x1e0] sm:$0xf]  ;;  %v11910_v34 = vld [vmem:[%s18167_s18 + $0x1e4] sm:$0xf0] }
  0xa3   : > { %s14177_s3 = scalar_lea.vmem %s18268_s27, %s12741_s23  ;;  %s17690_s27 = scalar_lea.vmem %s18162_s13, %s12741_s23 }
  0xa4   : > { %2030 = vmatpush.bf16.msrb.mxu2 %v8988_v50  ;;  %2079 = vmatpush.bf16.msrb.mxu3 %v9052_v53 }
  0xa5   : > { %1225 = vmatmul.bf16.gmra.mxu0 %v8728_v63 }
  0xa6   : > { %1274 = vmatmul.bf16.gmra.mxu1 %v8732_v0 }
  0xa8   : > { %2031 = vmatpush.bf16.msrb.mxu2 %v8980_v9  ;;  %2080 = vmatpush.bf16.msrb.mxu3 %v9044_v12 }
  0xac   : > { %2081 = vmatpush.bf16.msrb.mxu3 %v9036_v35 }
  0xb0   : > { %2082 = vmatpush.bf16.msrb.mxu3 %v9028_v61  ;;  %v9192_v61 = vor.u32 %v11890_v60, %v9191_v59 }
  0xb5   : > { %1230 = vmatmul.bf16.gmra.mxu0 %v8736_v30  ;;  %v11841_v30 = vld [vmem:[%s18167_s18 + $0x44] sm:$0xf] }
  0xb6   : > { %1279 = vmatmul.bf16.gmra.mxu1 %v8740_v31  ;;  %v8969_v31 = vld [vmem:[%s18167_s18 + $0x48] sm:$0xf0] }
  0xb7   : > { %v8972_v32 = vor.u32 %v11841_v30, %v8969_v31  ;;  %v9207_v30 = vld [vmem:[%s18167_s18 + $0x160] sm:$0xf] }
  0xb9   : > { %2032 = vmatpush.bf16.msrb.mxu2 %v8972_v32  ;;  %v11894_v32 = vld [vmem:[%s18167_s18 + $0x164] sm:$0xf0] }
  0xc2   : > { %v1196_v44 = vpop.f32.mrf.mxu0 }
  0xc3   : > { %v1245_v45 = vpop.f32.mrf.mxu1  ;;  %v1197_v47 = vadd.f32 %v13014_v46, %v1196_v44  ;;  %v11824_v44 = vld [vmem:[%s13001_s16 + $0x34] sm:$0xf0] }
  0xc4   : > { %v13084_v51 = vor.u32 %v11824_v44, %v8895_v41  ;;  %v9199_v41 = vld [vmem:[%s18167_s18 + $0x150] sm:$0xf]  ;;  %v11892_v44 = vld [vmem:[%s18167_s18 + $0x154] sm:$0xf0] }
  0xc5   : > { %1939 = vmatmul.bf16.vlgmr.msrb.gmra.mxu0 %v13007_v42  ;;  %v1246_v56 = vadd.f32 %v1245_v45, %v1197_v47  ;;  %v11823_v45 = vld [vmem:[%s13001_s16 + $0x34] sm:$0xf]  ;;  %v8897_v47 = vld [vmem:[%s13001_s16 + $0x38] sm:$0xf0] }
  0xc6   : > { %1988 = vmatmul.bf16.vlgmr.msrb.gmra.mxu1 %v13009_v43  ;;  %v13086_v52 = vor.u32 %v11823_v45, %v8897_v47  ;;  %v9263_v45 = vld [vmem:[%s18167_s18 + $0x1d0] sm:$0xf]  ;;  %v9200_v47 = vor.u32 %v11892_v44, %v9199_v41  ;;  %v8919_v41 = vld [vmem:[%s13001_s16 + $0x60] sm:$0xf] }
  0xc7   : > { %v1285_v63 = vmax.f32 %v1246_v56, 0.0  ;;  %v11839_v56 = vld [vmem:[%s18167_s18 + $0x34] sm:$0xf] }
  0xca   : > { %v1198_v54 = vpop.f32.mrf.mxu0 }
  0xcb   : > { %v1247_v55 = vpop.f32.mrf.mxu1  ;;  %v1199_v57 = vadd.f32 %v13014_v46, %v1198_v54 }
  0xcd   : > { %v1248_v58 = vadd.f32 %v1247_v55, %v1199_v57  ;;  %v8961_v57 = vld [vmem:[%s18167_s18 + $0x38] sm:$0xf0] }
  0xcf   : > { %v1286_v0 = vmax.f32 %v1248_v58, 0.0  ;;  %v8964_v58 = vor.u32 %v11839_v56, %v8961_v57  ;;  %v8913_v56 = vld [vmem:[%s13001_s16 + $0x58] sm:$0xf0] }
  0xd1   : > { %v1301_v1 = vpack.c.bf16 %v1286_v0, %v1285_v63  ;;  %2033 = vmatpush.bf16.msrb.mxu2 %v8964_v58 }
  0xd2   : > { %v1201_v4 = vpop.f32.mrf.mxu0 }
  0xd3   : > { %v1250_v5 = vpop.f32.mrf.mxu1  ;;  %1419 = vmatmul.bf16.vlgmr.msra.gmra.mxu2 %v1301_v1  ;;  %1468 = vmatmul.bf16.vlgmr.msra.gmra.mxu3 %v1301_v1  ;;  %v1202_v6 = vadd.f32 %v13014_v46, %v1201_v4 }
  0xd5   : > { %1944 = vmatmul.bf16.gmra.mxu0 %v13036_v2  ;;  %v1251_v15 = vadd.f32 %v1250_v5, %v1202_v6  ;;  %v8903_v5 = vld [vmem:[%s13001_s16 + $0x40] sm:$0xf]  ;;  %v11826_v6 = vld [vmem:[%s13001_s16 + $0x44] sm:$0xf0] }
  0xd6   : > { %1993 = vmatmul.bf16.gmra.mxu1 %v13038_v3  ;;  %v13108_v12 = vor.u32 %v11826_v6, %v8903_v5 }
  0xd7   : > { %v1287_v22 = vmax.f32 %v1251_v15, 0.0 }
  0xda   : > { %v1203_v13 = vpop.f32.mrf.mxu0 }
  0xdb   : > { %v1252_v14 = vpop.f32.mrf.mxu1  ;;  %v1204_v16 = vadd.f32 %v13014_v46, %v1203_v13  ;;  %v13110_v13 = vor.u32 %v11825_v7, %v8905_v8  ;;  %v9183_v8 = vld [vmem:[%s18167_s18 + $0x130] sm:$0xf] }
  0xdd   : > { %v1253_v17 = vadd.f32 %v1252_v14, %v1204_v16  ;;  %v9215_v16 = vld [vmem:[%s18167_s18 + $0x170] sm:$0xf] }
  0xdf   : > { %v1288_v23 = vmax.f32 %v1253_v17, 0.0  ;;  %v11896_v17 = vld [vmem:[%s18167_s18 + $0x174] sm:$0xf0] }
  0xe0   : > { %v9216_v18 = vor.u32 %v11896_v17, %v9215_v16  ;;  %v11835_v17 = vld [vmem:[%s18167_s18 + $0x14] sm:$0xf] }
  0xe1   : > { %v1302_v24 = vpack.c.bf16 %v1288_v23, %v1287_v22  ;;  %v11837_v23 = vld [vmem:[%s18167_s18 + $0x24] sm:$0xf] }
  0xe2   : > { %v1206_v27 = vpop.f32.mrf.mxu0  ;;  %2448 = vmatpush.bf16.msra.mxu0 %v9216_v18  ;;  %v8945_v18 = vld [vmem:[%s18167_s18 + $0x18] sm:$0xf0] }
  0xe3   : > { %v1255_v28 = vpop.f32.mrf.mxu1  ;;  %1424 = vmatmul.bf16.gmra.mxu2 %v1302_v24  ;;  %1473 = vmatmul.bf16.gmra.mxu3 %v1302_v24  ;;  %v1207_v29 = vadd.f32 %v13014_v46, %v1206_v27  ;;  %v8953_v24 = vld [vmem:[%s18167_s18 + $0x28] sm:$0xf0]  ;;  %v8948_v19 = vor.u32 %v11835_v17, %v8945_v18  ;;  %v8927_v18 = vld [vmem:[%s13001_s16 + $0x70] sm:$0xf] }
  0xe4   : > { %v8956_v27 = vor.u32 %v11837_v23, %v8953_v24  ;;  %v9012_v23 = vor.u32 %v11851_v20, %v9009_v21  ;;  %v11886_v24 = vld [vmem:[%s18167_s18 + $0x124] sm:$0xf0]  ;;  %v11831_v20 = vld [vmem:[%s13001_s16 + $0x74] sm:$0xf]  ;;  %v8929_v21 = vld [vmem:[%s13001_s16 + $0x78] sm:$0xf0] }
  0xe5   : > { %1949 = vmatmul.bf16.gmra.mxu0 %v13060_v25  ;;  %v1256_v38 = vadd.f32 %v1255_v28, %v1207_v29  ;;  %v11853_v28 = vld [vmem:[%s18167_s18 + $0xa4] sm:$0xf]  ;;  %v9017_v29 = vld [vmem:[%s18167_s18 + $0xa8] sm:$0xf0] }
  0xe6   : > { %1998 = vmatmul.bf16.gmra.mxu1 %v13062_v26  ;;  %v9020_v31 = vor.u32 %v11853_v28, %v9017_v29  ;;  %2034 = vmatpush.bf16.msrb.mxu2 %v8956_v27  ;;  %v9239_v27 = vld [vmem:[%s18167_s18 + $0x1a0] sm:$0xf]  ;;  %v11902_v28 = vld [vmem:[%s18167_s18 + $0x1a4] sm:$0xf0] }
  0xe7   : > { %v1289_v48 = vmax.f32 %v1256_v38, 0.0  ;;  %v9272_v38 = vor.u32 %v11910_v34, %v9271_v33 }
  0xe8   : > { %2083 = vmatpush.bf16.msrb.mxu3 %v9020_v31 }
  0xe9   : > { %2498 = vmatpush.bf16.msra.mxu1 %v9272_v38 }
  0xea   : > { %v1208_v36 = vpop.f32.mrf.mxu0  ;;  %2035 = vmatpush.bf16.msrb.mxu2 %v8948_v19  ;;  %v11832_v19 = vld [vmem:[%s13001_s16 + $0x74] sm:$0xf0] }
  0xeb   : > { %v1257_v37 = vpop.f32.mrf.mxu1  ;;  %v1209_v39 = vadd.f32 %v13014_v46, %v1208_v36 }
  0xec   : > { %2084 = vmatpush.bf16.msrb.mxu3 %v9012_v23 }
  0xed   : > { %v1258_v40 = vadd.f32 %v1257_v37, %v1209_v39  ;;  %v9208_v37 = vor.u32 %v11894_v32, %v9207_v30  ;;  %v9240_v32 = vor.u32 %v11902_v28, %v9239_v27  ;;  %v13276_v27 = vor.u32 %v11832_v19, %v8927_v18 }
  0xee   : > { %v13278_v28 = vor.u32 %v11831_v20, %v8929_v21 }
  0xef   : > { %v1290_v49 = vmax.f32 %v1258_v40, 0.0  ;;  %2449 = vmatpush.bf16.msra.mxu0 %v9208_v37  ;;  %v9231_v37 = vld [vmem:[%s18167_s18 + $0x190] sm:$0xf] }
  0xf1   : > { %v1303_v50 = vpack.c.bf16 %v1290_v49, %v1289_v48  ;;  %v11908_v48 = vld [vmem:[%s18167_s18 + $0x1d4] sm:$0xf0] }
  0xf2   : > { %v1211_v53 = vpop.f32.mrf.mxu0 }
  0xf3   : > { %v1260_v54 = vpop.f32.mrf.mxu1  ;;  %1429 = vmatmul.bf16.gmra.mxu2 %v1303_v50  ;;  %1478 = vmatmul.bf16.gmra.mxu3 %v1303_v50  ;;  %v1212_v55 = vadd.f32 %v13014_v46, %v1211_v53  ;;  %v8911_v50 = vld [vmem:[%s13001_s16 + $0x50] sm:$0xf]  ;;  %v9264_v53 = vor.u32 %v11908_v48, %v9263_v45  ;;  %v11830_v45 = vld [vmem:[%s13001_s16 + $0x64] sm:$0xf0]  ;;  %v8921_v48 = vld [vmem:[%s13001_s16 + $0x68] sm:$0xf0] }
  0xf4   : > { %2450 = vmatpush.bf16.msra.mxu0 %v9200_v47  ;;  %v11829_v47 = vld [vmem:[%s13001_s16 + $0x64] sm:$0xf]  ;;  %v13252_v59 = vor.u32 %v11830_v45, %v8919_v41  ;;  %v9095_v45 = vld [vmem:[%s13299_s21] sm:$0xf] }
  0xf5   : > { %1954 = vmatmul.bf16.gmra.mxu0 %v13084_v51  ;;  %v1261_v0 = vadd.f32 %v1260_v54, %v1212_v55  ;;  %v11828_v54 = vld [vmem:[%s13001_s16 + $0x54] sm:$0xf0]  ;;  %v11827_v55 = vld [vmem:[%s13001_s16 + $0x54] sm:$0xf]  ;;  %2499 = vmatpush.bf16.msra.mxu1 %v9264_v53  ;;  %v9159_v53 = vld [vmem:[%s18167_s18 + $0x100] sm:$0xf]  ;;  %v13254_v60 = vor.u32 %v11829_v47, %v8921_v48  ;;  %s16910_s16 = scalar_lea.vmem %s18160_s11, %s12741_s23 }
  0xf6   : > { %2003 = vmatmul.bf16.gmra.mxu1 %v13086_v52  ;;  %v11866_v47 = vld [vmem:[%s13299_s21 + $0x4] sm:$0xf0]  ;;  %v11865_v48 = vld [vmem:[%s13299_s21 + $0x4] sm:$0xf] }
  0xf7   : > { %v1291_v9 = vmax.f32 %v1261_v0, 0.0 }
  0xf8   : > { %2451 = vmatpush.bf16.msra.mxu0 %v9192_v61 }
  0xfa   : > { %v1213_v62 = vpop.f32.mrf.mxu0 }
  0xfb   : > { %v1262_v63 = vpop.f32.mrf.mxu1  ;;  %v1214_v1 = vadd.f32 %v13014_v46, %v1213_v62  ;;  %v9255_v62 = vld [vmem:[%s18167_s18 + $0x1c0] sm:$0xf] }
  0xfd   : > { %v1263_v4 = vadd.f32 %v1262_v63, %v1214_v1  ;;  %v11906_v63 = vld [vmem:[%s18167_s18 + $0x1c4] sm:$0xf0]  ;;  %v13180_v1 = vor.u32 %v11828_v54, %v8911_v50 }
  0xfe   : > { %v9256_v5 = vor.u32 %v11906_v63, %v9255_v62  ;;  %v11882_v54 = vld [vmem:[%s18167_s18 + $0x104] sm:$0xf0] }
  0xff   : > { %v1292_v10 = vmax.f32 %v1263_v4, 0.0  ;;  %v13182_v4 = vor.u32 %v11827_v55, %v8913_v56  ;;  %v9160_v55 = vor.u32 %v11882_v54, %v9159_v53  ;;  %v9223_v56 = vld [vmem:[%s18167_s18 + $0x180] sm:$0xf] }
 0x100   : > { %2500 = vmatpush.bf16.msra.mxu1 %v9256_v5  ;;  %v8937_v5 = vld [vmem:[%s18167_s18 + $0x8] sm:$0xf0] }
 0x101   : > { %v1304_v11 = vpack.c.bf16 %v1292_v10, %v1291_v9  ;;  %v11888_v9 = vld [vmem:[%s18167_s18 + $0x134] sm:$0xf0] }
 0x102   : > { %v1216_v14 = vpop.f32.mrf.mxu0  ;;  %v9184_v10 = vor.u32 %v11888_v9, %v9183_v8  ;;  %v9001_v8 = vld [vmem:[%s18167_s18 + $0x88] sm:$0xf0] }
 0x103   : > { %v1265_v15 = vpop.f32.mrf.mxu1  ;;  %1434 = vmatmul.bf16.gmra.mxu2 %v1304_v11  ;;  %1483 = vmatmul.bf16.gmra.mxu3 %v1304_v11  ;;  %v1217_v22 = vadd.f32 %v13014_v46, %v1216_v14  ;;  %v9247_v11 = vld [vmem:[%s18167_s18 + $0x1b0] sm:$0xf]  ;;  %v11904_v14 = vld [vmem:[%s18167_s18 + $0x1b4] sm:$0xf0] }
 0x104   : > { %2452 = vmatpush.bf16.msra.mxu0 %v9184_v10 }
 0x105   : > { %1959 = vmatmul.bf16.gmra.mxu0 %v13108_v12  ;;  %v1266_v39 = vadd.f32 %v1265_v15, %v1217_v22  ;;  %v9248_v15 = vor.u32 %v11904_v14, %v9247_v11  ;;  %v9175_v22 = vld [vmem:[%s18167_s18 + $0x120] sm:$0xf] }
 0x106   : > { %2008 = vmatmul.bf16.gmra.mxu1 %v13110_v13  ;;  %v9176_v31 = vor.u32 %v11886_v24, %v9175_v22 }
 0x107   : > { %v1293_v57 = vmax.f32 %v1266_v39, 0.0  ;;  %2501 = vmatpush.bf16.msra.mxu1 %v9248_v15  ;;  %v11900_v39 = vld [vmem:[%s18167_s18 + $0x194] sm:$0xf0] }
 0x108   : > { %2453 = vmatpush.bf16.msra.mxu0 %v9176_v31  ;;  %v9232_v44 = vor.u32 %v11900_v39, %v9231_v37  ;;  %v11895_v31 = vld [vmem:[%s18167_s18 + $0x174] sm:$0xf] }
 0x10a   : > { %v1218_v35 = vpop.f32.mrf.mxu0 }
 0x10b   : > { %v1267_v36 = vpop.f32.mrf.mxu1  ;;  %v1219_v40 = vadd.f32 %v13014_v46, %v1218_v35  ;;  %v9167_v35 = vld [vmem:[%s18167_s18 + $0x110] sm:$0xf]  ;;  %2502 = vmatpush.bf16.msra.mxu1 %v9240_v32  ;;  %v9217_v32 = vld [vmem:[%s18167_s18 + $0x178] sm:$0xf0] }
 0x10d   : > { %v1268_v49 = vadd.f32 %v1267_v36, %v1219_v40  ;;  %v11884_v36 = vld [vmem:[%s18167_s18 + $0x114] sm:$0xf0] }
 0x10e   : > { %v9168_v38 = vor.u32 %v11884_v36, %v9167_v35  ;;  %v9281_v35 = vld [vmem:[%s18167_s18 + $0x1f8] sm:$0xf0] }
 0x10f   : > { %v1294_v58 = vmax.f32 %v1268_v49, 0.0  ;;  %2503 = vmatpush.bf16.msra.mxu1 %v9232_v44 }
 0x110   : > { %2454 = vmatpush.bf16.msra.mxu0 %v9168_v38 }
 0x111   : > { %v1305_v0 = vpack.c.bf16 %v1294_v58, %v1293_v57  ;;  %v11898_v57 = vld [vmem:[%s18167_s18 + $0x184] sm:$0xf0] }
 0x112   : > { %v1221_v6 = vpop.f32.mrf.mxu0  ;;  %v9224_v61 = vor.u32 %v11898_v57, %v9223_v56 }
 0x113   : > { %v1270_v7 = vpop.f32.mrf.mxu1  ;;  %1439 = vmatmul.bf16.gmra.mxu2 %v1305_v0  ;;  %1488 = vmatmul.bf16.gmra.mxu3 %v1305_v0  ;;  %v1222_v16 = vadd.f32 %v13014_v46, %v1221_v6  ;;  %v11833_v0 = vld [vmem:[%s18167_s18 + $0x4] sm:$0xf] }
 0x114   : > { %v11849_v6 = vld [vmem:[%s18167_s18 + $0x84] sm:$0xf]  ;;  %2455 = vmatpush.bf16.msra.mxu0 %v9160_v55  ;;  %2504 = vmatpush.bf16.msra.mxu1 %v9224_v61  ;;  %v13306_v55 = vor.u32 %v11866_v47, %v9095_v45 }
 0x115   : > { %1964 = vmatmul.bf16.gmra.mxu0 %v13180_v1  ;;  %v1271_v33 = vadd.f32 %v1270_v7, %v1222_v16  ;;  %v8940_v7 = vor.u32 %v11833_v0, %v8937_v5  ;;  %v9004_v9 = vor.u32 %v11849_v6, %v9001_v8  ;;  %v9273_v5 = vld [vmem:[%s18167_s18 + $0x1e8] sm:$0xf0] }
 0x116   : > { %2013 = vmatmul.bf16.gmra.mxu1 %v13182_v4 }
 0x117   : > { %v1295_v49 = vmax.f32 %v1271_v33, 0.0  ;;  %2036 = vmatpush.bf16.msrb.mxu2 %v8940_v7  ;;  %2085 = vmatpush.bf16.msrb.mxu3 %v9004_v9  ;;  %v11911_v33 = vld [vmem:[%s18167_s18 + $0x1f4] sm:$0xf] }
 0x118   : > { %v9284_v36 = vor.u32 %v11911_v33, %v9281_v35  ;;  %v9265_v35 = vld [vmem:[%s18167_s18 + $0x1d8] sm:$0xf0] }
 0x11a   : > { %v1223_v29 = vpop.f32.mrf.mxu0 }
 0x11b   : > { %v1272_v30 = vpop.f32.mrf.mxu1  ;;  %v1224_v34 = vadd.f32 %v13014_v46, %v1223_v29  ;;  %2595 = vmatpush.bf16.msra.mxu3 %v9284_v36 }
 0x11d   : > { %v1273_v40 = vadd.f32 %v1272_v30, %v1224_v34  ;;  %v9220_v34 = vor.u32 %v11895_v31, %v9217_v32  ;;  %v13362_v32 = vld [vmem:[%s18168_s19] sm:$0x3] }
 0x11f   : > { %v1296_v50 = vmax.f32 %v1273_v40, 0.0  ;;  %2546 = vmatpush.bf16.msra.mxu2 %v9220_v34 }
 0x121   : > { %v1306_v58 = vpack.c.bf16 %v1296_v50, %v1295_v49  ;;  %v9097_v49 = vld [vmem:[%s13299_s21 + $0x8] sm:$0xf0] }
 0x122   : > { %v1226_v62 = vpop.f32.mrf.mxu0  ;;  %v13308_v56 = vor.u32 %v11865_v48, %v9097_v49 }
 0x123   : > { %v1275_v63 = vpop.f32.mrf.mxu1  ;;  %1444 = vmatmul.bf16.gmra.mxu2 %v1306_v58  ;;  %1493 = vmatmul.bf16.gmra.mxu3 %v1306_v58  ;;  %v1227_v10 = vadd.f32 %v13014_v46, %v1226_v62  ;;  %v9209_v62 = vld [vmem:[%s18167_s18 + $0x168] sm:$0xf0] }
 0x125   : > { %1969 = vmatmul.bf16.gmra.mxu0 %v13252_v59  ;;  %v1276_v15 = vadd.f32 %v1275_v63, %v1227_v10  ;;  %v11909_v63 = vld [vmem:[%s18167_s18 + $0x1e4] sm:$0xf]  ;;  %v9103_v10 = vld [vmem:[%s13299_s21 + $0x10] sm:$0xf] }
 0x126   : > { %2018 = vmatmul.bf16.gmra.mxu1 %v13254_v60  ;;  %v9276_v6 = vor.u32 %v11909_v63, %v9273_v5  ;;  %v11870_v63 = vld [vmem:[%s13299_s21 + $0x24] sm:$0xf0]  ;;  %v9113_v5 = vld [vmem:[%s13299_s21 + $0x28] sm:$0xf0] }
 0x127   : > { %v1297_v22 = vmax.f32 %v1276_v15, 0.0  ;;  %v9105_v15 = vld [vmem:[%s13299_s21 + $0x18] sm:$0xf0] }
 0x128   : > { %2596 = vmatpush.bf16.msra.mxu3 %v9276_v6 }
 0x12a   : > { %v1228_v11 = vpop.f32.mrf.mxu0 }
 0x12b   : > { %v1277_v14 = vpop.f32.mrf.mxu1  ;;  %v1229_v16 = vadd.f32 %v13014_v46, %v1228_v11  ;;  %v11868_v11 = vld [vmem:[%s13299_s21 + $0x14] sm:$0xf0] }
 0x12d   : > { %v1278_v17 = vadd.f32 %v1277_v14, %v1229_v16  ;;  %v11867_v14 = vld [vmem:[%s13299_s21 + $0x14] sm:$0xf]  ;;  %v1325_v16 = vld [vmem:[%s18166_s17] sm:$0x3] }
 0x12e   : > { %v13337_v18 = vor.u32 %v11867_v14, %v9105_v15 }
 0x12f   : > { %v1298_v23 = vmax.f32 %v1278_v17, 0.0  ;;  %v13335_v17 = vor.u32 %v11868_v11, %v9103_v10 }
 0x131   : > { %v1307_v24 = vpack.c.bf16 %v1298_v23, %v1297_v22  ;;  %v959_v22 = vld [vmem:[%s12753_s24] sm:$0xff]  ;;  %v13344_v23 = vperm.slane %v1325_v16, 0 }
 0x132   : > { %v1231_v29 = vpop.f32.mrf.mxu0  ;;  %v1541_v31 = vunpack.c.l.bf16 %v959_v22 }
 0x133   : > { %v1280_v30 = vpop.f32.mrf.mxu1  ;;  %1449 = vmatmul.bf16.gmra.mxu2 %v1307_v24  ;;  %1498 = vmatmul.bf16.gmra.mxu3 %v1307_v24  ;;  %v1232_v37 = vadd.f32 %v13014_v46, %v1231_v29  ;;  %v13346_v24 = vperm.slane %v1325_v16, 1  ;;  %v11891_v29 = vld [vmem:[%s18167_s18 + $0x154] sm:$0xf] }
 0x135   : > { %1974 = vmatmul.bf16.gmra.mxu0 %v13276_v27  ;;  %v1281_v40 = vadd.f32 %v1280_v30, %v1232_v37  ;;  %v9201_v30 = vld [vmem:[%s18167_s18 + $0x158] sm:$0xf0] }
 0x136   : > { %2023 = vmatmul.bf16.gmra.mxu1 %v13278_v28  ;;  %v9204_v34 = vor.u32 %v11891_v29, %v9201_v30 }
 0x137   : > { %v1299_v50 = vmax.f32 %v1281_v40, 0.0 }
 0x13a   : > { %v1233_v38 = vpop.f32.mrf.mxu0 }
 0x13b   : > { %v1282_v39 = vpop.f32.mrf.mxu1  ;;  %v1234_v41 = vadd.f32 %v13014_v46, %v1233_v38  ;;  %v11893_v46 = vld [vmem:[%s18167_s18 + $0x164] sm:$0xf]  ;;  %v1542_v38 = vunpack.c.h.bf16 %v959_v22 }
 0x13c   : > { %v9212_v0 = vor.u32 %v11893_v46, %v9209_v62 }
 0x13d   : > { %v1283_v44 = vadd.f32 %v1282_v39, %v1234_v41  ;;  %v13370_v41 = vperm.slane %v13362_v32, 0 }
 0x13e   : > { %2547 = vmatpush.bf16.msra.mxu2 %v9212_v0  ;;  %v11869_v0 = vld [vmem:[%s13299_s21 + $0x24] sm:$0xf] }
 0x13f   : > { %v1300_v53 = vmax.f32 %v1283_v44, 0.0  ;;  %v13389_v16 = vor.u32 %v11869_v0, %v9113_v5 }
 0x141   : > { %v1308_v54 = vpack.c.bf16 %v1300_v53, %v1299_v50  ;;  %v960_v53 = vld [vmem:[%s12753_s24 + $0x8] sm:$0xff] }
 0x142   : > { %v1940_v57 = vpop.f32.mrf.mxu0  ;;  %2548 = vmatpush.bf16.msra.mxu2 %v9204_v34  ;;  %v1543_v46 = vunpack.c.l.bf16 %v960_v53 }
 0x143   : > { %v1989_v58 = vpop.f32.mrf.mxu1  ;;  %1454 = vmatmul.bf16.gmra.mxu2 %v1308_v54  ;;  %1503 = vmatmul.bf16.gmra.mxu3 %v1308_v54 }
 0x144   : > { %v13310_v61 = vadd.f32 %v1989_v58, %v1940_v57  ;;  %v9111_v57 = vld [vmem:[%s13299_s21 + $0x20] sm:$0xf] }
 0x145   : > { %2456 = vmatmul.bf16.vlgmr.msra.gmra.mxu0 %v13306_v55  ;;  %v13387_v15 = vor.u32 %v11870_v63, %v9111_v57  ;;  %v9119_v63 = vld [vmem:[%s13299_s21 + $0x30] sm:$0xf] }
 0x146   : > { %2505 = vmatmul.bf16.vlgmr.msra.gmra.mxu1 %v13308_v56 }
 0x14a   : > { %v1942_v7 = vpop.f32.mrf.mxu0 }
 0x14b   : > { %v1991_v8 = vpop.f32.mrf.mxu1 }
 0x14c   : > { %v13326_v9 = vadd.f32 %v1991_v8, %v1942_v7  ;;  %v1544_v8 = vunpack.c.h.bf16 %v960_v53 }
 0x152   : > { %v1945_v19 = vpop.f32.mrf.mxu0 }
 0x153   : > { %v1994_v20 = vpop.f32.mrf.mxu1  ;;  %2037 = vmatmul.bf16.vlgmr.msrb.gmra.mxu2 %v13007_v42  ;;  %2086 = vmatmul.bf16.vlgmr.msrb.gmra.mxu3 %v13009_v43  ;;  %v11907_v42 = vld [vmem:[%s18167_s18 + $0x1d4] sm:$0xf] }
 0x154   : > { %v13339_v21 = vadd.f32 %v1994_v20, %v1945_v19  ;;  %v9268_v39 = vor.u32 %v11907_v42, %v9265_v35  ;;  %v961_v42 = vld [vmem:[%s12753_s24 + $0x10] sm:$0xff] }
 0x155   : > { %2461 = vmatmul.bf16.gmra.mxu0 %v13335_v17  ;;  %v1546_v35 = vunpack.c.h.bf16 %v961_v42 }
 0x156   : > { %2510 = vmatmul.bf16.gmra.mxu1 %v13337_v18  ;;  %v1420_v43 = vpop.f32.mrf.mxu2  ;;  %v1469_v33 = vpop.f32.mrf.mxu3  ;;  %2597 = vmatpush.bf16.msra.mxu3 %v9268_v39 }
 0x157   : > { %v1421_v36 = vadd.f32 %v1420_v43, %v13344_v23  ;;  %v1470_v37 = vadd.f32 %v1469_v33, %v13346_v24  ;;  %v11889_v43 = vld [vmem:[%s18167_s18 + $0x144] sm:$0xf]  ;;  %v1545_v33 = vunpack.c.l.bf16 %v961_v42 }
 0x159   : > { %v1509_v40 = vmax.f32 %v1421_v36, 0.0  ;;  %v1510_v44 = vmax.f32 %v1470_v37, 0.0  ;;  %v9257_v37 = vld [vmem:[%s18167_s18 + $0x1c8] sm:$0xf0] }
 0x15a   : > { %v1947_v45 = vpop.f32.mrf.mxu0 }
 0x15b   : > { %v1996_v47 = vpop.f32.mrf.mxu1  ;;  %v1573_v48 = vadd.f32 %v1541_v31, %v1509_v40  ;;  %v13372_v49 = vadd.f32 %v1542_v38, %v1510_v44  ;;  %v9193_v31 = vld [vmem:[%s18167_s18 + $0x148] sm:$0xf0] }
 0x15c   : > { %v13374_v50 = vadd.f32 %v1996_v47, %v1947_v45  ;;  %v9196_v36 = vor.u32 %v11889_v43, %v9193_v31 }
 0x15d   : > { %v1611_v54 = vadd.f32 %v13370_v41, %v1573_v48 }
 0x15e   : > { %v1422_v58 = vpop.f32.mrf.mxu2  ;;  %v1471_v62 = vpop.f32.mrf.mxu3  ;;  %2549 = vmatpush.bf16.msra.mxu2 %v9196_v36  ;;  %v11887_v36 = vld [vmem:[%s18167_s18 + $0x134] sm:$0xf] }
 0x15f   : > { %v1423_v6 = vadd.f32 %v1422_v58, %v13344_v23  ;;  %v1472_v7 = vadd.f32 %v1471_v62, %v13346_v24  ;;  %v13385_v10 = vadd.f32 %v13310_v61, %v1611_v54 }
 0x161   : > { %v1511_v11 = vmax.f32 %v1423_v6, 0.0  ;;  %v1512_v14 = vmax.f32 %v1472_v7, 0.0  ;;  %v11872_v6 = vld [vmem:[%s13299_s21 + $0x34] sm:$0xf0]  ;;  %v11871_v7 = vld [vmem:[%s13299_s21 + $0x34] sm:$0xf] }
 0x162   : > { %v1950_v19 = vpop.f32.mrf.mxu0 }
 0x163   : > { %v1999_v20 = vpop.f32.mrf.mxu1  ;;  %v1575_v22 = vadd.f32 %v1543_v46, %v1511_v11  ;;  %v13391_v29 = vadd.f32 %v1544_v8, %v1512_v14  ;;  %2042 = vmatmul.bf16.gmra.mxu2 %v13036_v2  ;;  %2091 = vmatmul.bf16.gmra.mxu3 %v13038_v3  ;;  %v11905_v2 = vld [vmem:[%s18167_s18 + $0x1c4] sm:$0xf]  ;;  %v962_v46 = vld [vmem:[%s12753_s24 + $0x18] sm:$0xff] }
 0x164   : > { %v13393_v30 = vadd.f32 %v1999_v20, %v1950_v19  ;;  %v9260_v40 = vor.u32 %v11905_v2, %v9257_v37  ;;  %v1547_v0 = vunpack.c.l.bf16 %v962_v46  ;;  %v9121_v8 = vld [vmem:[%s13299_s21 + $0x38] sm:$0xf0]  ;;  %v1548_v19 = vunpack.c.h.bf16 %v962_v46 }
 0x165   : > { %v1613_v61 = vadd.f32 %v13370_v41, %v1575_v22  ;;  %2466 = vmatmul.bf16.gmra.mxu0 %v13387_v15  ;;  %v13435_v43 = vor.u32 %v11871_v7, %v9121_v8  ;;  %v9185_v37 = vld [vmem:[%s18167_s18 + $0x138] sm:$0xf0]  ;;  %v964_v8 = vld [vmem:[%s12753_s24 + $0x28] sm:$0xff] }
 0x166   : > { %2515 = vmatmul.bf16.gmra.mxu1 %v13389_v16  ;;  %v1425_v3 = vpop.f32.mrf.mxu2  ;;  %v1474_v34 = vpop.f32.mrf.mxu3  ;;  %2598 = vmatpush.bf16.msra.mxu3 %v9260_v40 }
 0x167   : > { %v1426_v38 = vadd.f32 %v1425_v3, %v13344_v23  ;;  %v1475_v39 = vadd.f32 %v1474_v34, %v13346_v24  ;;  %v13416_v44 = vadd.f32 %v13326_v9, %v1613_v61  ;;  %v13433_v61 = vor.u32 %v11872_v6, %v9119_v63 }
 0x169   : > { %v1513_v45 = vmax.f32 %v1426_v38, 0.0  ;;  %v1514_v47 = vmax.f32 %v1475_v39, 0.0 }
 0x16a   : > { %v1952_v48 = vpop.f32.mrf.mxu0 }
 0x16b   : > { %v2001_v53 = vpop.f32.mrf.mxu1  ;;  %v1577_v54 = vadd.f32 %v1545_v33, %v1513_v45  ;;  %v13418_v57 = vadd.f32 %v1546_v35, %v1514_v47  ;;  %v963_v35 = vld [vmem:[%s12753_s24 + $0x20] sm:$0xff]  ;;  %v9188_v45 = vor.u32 %v11887_v36, %v9185_v37  ;;  %v9249_v47 = vld [vmem:[%s18167_s18 + $0x1b8] sm:$0xf0] }
 0x16c   : > { %v13420_v58 = vadd.f32 %v2001_v53, %v1952_v48  ;;  %v1549_v38 = vunpack.c.l.bf16 %v963_v35  ;;  %v1550_v40 = vunpack.c.h.bf16 %v963_v35 }
 0x16d   : > { %v1615_v62 = vadd.f32 %v13370_v41, %v1577_v54  ;;  %2550 = vmatpush.bf16.msra.mxu2 %v9188_v45 }
 0x16e   : > { %v1427_v9 = vpop.f32.mrf.mxu2  ;;  %v1476_v5 = vpop.f32.mrf.mxu3 }
 0x16f   : > { %v1428_v11 = vadd.f32 %v1427_v9, %v13344_v23  ;;  %v1477_v14 = vadd.f32 %v1476_v5, %v13346_v24  ;;  %v13431_v20 = vadd.f32 %v13339_v21, %v1615_v62 }
 0x171   : > { %v1515_v22 = vmax.f32 %v1428_v11, 0.0  ;;  %v1516_v42 = vmax.f32 %v1477_v14, 0.0  ;;  %v9127_v14 = vld [vmem:[%s13299_s21 + $0x40] sm:$0xf] }
 0x172   : > { %v1955_v31 = vpop.f32.mrf.mxu0 }
 0x173   : > { %v2004_v2 = vpop.f32.mrf.mxu1  ;;  %v1579_v3 = vadd.f32 %v1547_v0, %v1515_v22  ;;  %v13437_v33 = vadd.f32 %v1548_v19, %v1516_v42  ;;  %2047 = vmatmul.bf16.gmra.mxu2 %v13060_v25  ;;  %2096 = vmatmul.bf16.gmra.mxu3 %v13062_v26  ;;  %v11903_v25 = vld [vmem:[%s18167_s18 + $0x1b4] sm:$0xf]  ;;  %v1551_v19 = vunpack.c.l.bf16 %v964_v8  ;;  %v11874_v42 = vld [vmem:[%s13299_s21 + $0x44] sm:$0xf0] }
 0x174   : > { %v13439_v34 = vadd.f32 %v2004_v2, %v1955_v31  ;;  %v9252_v54 = vor.u32 %v11903_v25, %v9249_v47  ;;  %v11873_v31 = vld [vmem:[%s13299_s21 + $0x44] sm:$0xf]  ;;  %v9129_v2 = vld [vmem:[%s13299_s21 + $0x48] sm:$0xf0] }
 0x175   : > { %v1617_v21 = vadd.f32 %v13370_v41, %v1579_v3  ;;  %2471 = vmatmul.bf16.gmra.mxu0 %v13433_v61 }
 0x176   : > { %2520 = vmatmul.bf16.gmra.mxu1 %v13435_v43  ;;  %v1430_v26 = vpop.f32.mrf.mxu2  ;;  %v1479_v39 = vpop.f32.mrf.mxu3  ;;  %2599 = vmatpush.bf16.msra.mxu3 %v9252_v54  ;;  %v11944_v54 = vld [vmem:[%s18167_s18 + $0x274] sm:$0xf0] }
 0x177   : > { %v1431_v48 = vadd.f32 %v1430_v26, %v13344_v23  ;;  %v1480_v53 = vadd.f32 %v1479_v39, %v13346_v24  ;;  %v13462_v46 = vadd.f32 %v13374_v50, %v1617_v21  ;;  %v1552_v21 = vunpack.c.h.bf16 %v964_v8 }
 0x178   : > { %v13479_v26 = vor.u32 %v11874_v42, %v9127_v14  ;;  %v9241_v42 = vld [vmem:[%s18167_s18 + $0x1a8] sm:$0xf0] }
 0x179   : > { %v1517_v62 = vmax.f32 %v1431_v48, 0.0  ;;  %v1518_v63 = vmax.f32 %v1480_v53, 0.0  ;;  %v965_v53 = vld [vmem:[%s12753_s24 + $0x30] sm:$0xff] }
 0x17a   : > { %v1957_v9 = vpop.f32.mrf.mxu0  ;;  %v1553_v14 = vunpack.c.l.bf16 %v965_v53 }
 0x17b   : > { %v2006_v0 = vpop.f32.mrf.mxu1  ;;  %v1581_v5 = vadd.f32 %v1549_v38, %v1517_v62  ;;  %v13464_v6 = vadd.f32 %v1550_v40, %v1518_v63  ;;  %v13481_v38 = vor.u32 %v11873_v31, %v9129_v2  ;;  %v9503_v63 = vld [vmem:[%s18167_s18 + $0x2f0] sm:$0xf] }
 0x17c   : > { %v13466_v7 = vadd.f32 %v2006_v0, %v1957_v9  ;;  %v11885_v9 = vld [vmem:[%s18167_s18 + $0x124] sm:$0xf]  ;;  %v9177_v0 = vld [vmem:[%s18167_s18 + $0x128] sm:$0xf0] }
 0x17d   : > { %v1619_v11 = vadd.f32 %v13370_v41, %v1581_v5  ;;  %v11901_v5 = vld [vmem:[%s18167_s18 + $0x1a4] sm:$0xf] }
 0x17e   : > { %v1432_v50 = vpop.f32.mrf.mxu2  ;;  %v1481_v22 = vpop.f32.mrf.mxu3 }
 0x17f   : > { %v1433_v3 = vadd.f32 %v1432_v50, %v13344_v23  ;;  %v1482_v35 = vadd.f32 %v1481_v22, %v13346_v24  ;;  %v13477_v36 = vadd.f32 %v13393_v30, %v1619_v11  ;;  %v9439_v30 = vld [vmem:[%s18167_s18 + $0x270] sm:$0xf]  ;;  %v9180_v22 = vor.u32 %v11885_v9, %v9177_v0  ;;  %v11940_v0 = vld [vmem:[%s18167_s18 + $0x254] sm:$0xf0] }
 0x180   : > { %v9440_v62 = vor.u32 %v11944_v54, %v9439_v30  ;;  %v9423_v9 = vld [vmem:[%s18167_s18 + $0x250] sm:$0xf] }
 0x181   : > { %v1519_v37 = vmax.f32 %v1433_v3, 0.0  ;;  %v1520_v25 = vmax.f32 %v1482_v35, 0.0  ;;  %v9244_v3 = vor.u32 %v11901_v5, %v9241_v42  ;;  %v9431_v35 = vld [vmem:[%s18167_s18 + $0x260] sm:$0xf]  ;;  %2551 = vmatpush.bf16.msra.mxu2 %v9180_v22  ;;  %v9487_v5 = vld [vmem:[%s18167_s18 + $0x2d0] sm:$0xf] }
 0x182   : > { %v1960_v39 = vpop.f32.mrf.mxu0  ;;  %2965 = vmatpush.bf16.msrb.mxu0 %v9440_v62  ;;  %v966_v62 = vld [vmem:[%s12753_s24 + $0x38] sm:$0xff] }
 0x183   : > { %v2009_v40 = vpop.f32.mrf.mxu1  ;;  %v1583_v45 = vadd.f32 %v1551_v19, %v1519_v37  ;;  %v13483_v47 = vadd.f32 %v1552_v21, %v1520_v25  ;;  %2052 = vmatmul.bf16.gmra.mxu2 %v13084_v51  ;;  %2101 = vmatmul.bf16.gmra.mxu3 %v13086_v52  ;;  %v11960_v51 = vld [vmem:[%s18167_s18 + $0x2f4] sm:$0xf0]  ;;  %v1554_v19 = vunpack.c.h.bf16 %v965_v53  ;;  %v11942_v21 = vld [vmem:[%s18167_s18 + $0x264] sm:$0xf0]  ;;  %v9495_v37 = vld [vmem:[%s18167_s18 + $0x2e0] sm:$0xf]  ;;  %v1555_v42 = vunpack.c.l.bf16 %v966_v62 }
 0x184   : > { %v13485_v48 = vadd.f32 %v2009_v40, %v1960_v39  ;;  %v9504_v8 = vor.u32 %v11960_v51, %v9503_v63  ;;  %v9432_v39 = vor.u32 %v11942_v21, %v9431_v35  ;;  %v11958_v40 = vld [vmem:[%s18167_s18 + $0x2e4] sm:$0xf0]  ;;  %2600 = vmatpush.bf16.msra.mxu3 %v9244_v3  ;;  %v11875_v3 = vld [vmem:[%s13299_s21 + $0x54] sm:$0xf]  ;;  %v9137_v35 = vld [vmem:[%s13299_s21 + $0x58] sm:$0xf0] }
 0x185   : > { %v1621_v52 = vadd.f32 %v13370_v41, %v1583_v45  ;;  %2476 = vmatmul.bf16.gmra.mxu0 %v13479_v26  ;;  %v9496_v63 = vor.u32 %v11958_v40, %v9495_v37  ;;  %v9415_v40 = vld [vmem:[%s18167_s18 + $0x240] sm:$0xf] }
 0x186   : > { %2525 = vmatmul.bf16.gmra.mxu1 %v13481_v38  ;;  %v1435_v11 = vpop.f32.mrf.mxu2  ;;  %v1484_v50 = vpop.f32.mrf.mxu3  ;;  %2966 = vmatpush.bf16.msrb.mxu0 %v9432_v39  ;;  %v1556_v39 = vunpack.c.h.bf16 %v966_v62  ;;  %v11954_v62 = vld [vmem:[%s18167_s18 + $0x2c4] sm:$0xf0] }
 0x187   : > { %v1436_v31 = vadd.f32 %v1435_v11, %v13344_v23  ;;  %v1485_v2 = vadd.f32 %v1484_v50, %v13346_v24  ;;  %3014 = vmatpush.bf16.msrb.mxu1 %v9504_v8  ;;  %v13529_v25 = vadd.f32 %v13420_v58, %v1621_v52  ;;  %v9424_v8 = vor.u32 %v11940_v0, %v9423_v9  ;;  %v11956_v11 = vld [vmem:[%s18167_s18 + $0x2d4] sm:$0xf0]  ;;  %v9135_v50 = vld [vmem:[%s13299_s21 + $0x50] sm:$0xf] }
 0x188   : > { %v13575_v0 = vor.u32 %v11875_v3, %v9137_v35  ;;  %v11883_v3 = vld [vmem:[%s18167_s18 + $0x114] sm:$0xf]  ;;  %v9169_v35 = vld [vmem:[%s18167_s18 + $0x118] sm:$0xf0] }
 0x189   : > { %v1521_v45 = vmax.f32 %v1436_v31, 0.0  ;;  %v1522_v53 = vmax.f32 %v1485_v2, 0.0  ;;  %v11876_v2 = vld [vmem:[%s13299_s21 + $0x54] sm:$0xf0] }
 0x18a   : > { %v1962_v30 = vpop.f32.mrf.mxu0  ;;  %2967 = vmatpush.bf16.msrb.mxu0 %v9424_v8  ;;  %v13573_v9 = vor.u32 %v11876_v2, %v9135_v50  ;;  %18249 = vst [vmem:[#allocation12_spill] sm:$0xff] %v13575_v0  ;;  %v9407_v50 = vld [vmem:[%s18167_s18 + $0x230] sm:$0xf] }
 0x18b   : > { %v2011_v54 = vpop.f32.mrf.mxu1  ;;  %v1585_v51 = vadd.f32 %v1553_v14, %v1521_v45  ;;  %v13535_v58 = vadd.f32 %v1554_v19, %v1522_v53  ;;  %3015 = vmatpush.bf16.msrb.mxu1 %v9496_v63  ;;  %v9488_v19 = vor.u32 %v11956_v11, %v9487_v5  ;;  %v11938_v45 = vld [vmem:[%s18167_s18 + $0x244] sm:$0xf0]  ;;  %v9479_v53 = vld [vmem:[%s18167_s18 + $0x2c0] sm:$0xf] }
 0x18c   : > { %v13537_v52 = vadd.f32 %v2011_v54, %v1962_v30  ;;  %v9416_v54 = vor.u32 %v11938_v45, %v9415_v40  ;;  %18248 = vst [vmem:[#allocation11_spill] sm:$0xff] %v13573_v9  ;;  %v9480_v11 = vor.u32 %v11954_v62, %v9479_v53  ;;  %v9233_v62 = vld [vmem:[%s18167_s18 + $0x198] sm:$0xf0] }
 0x18d   : > { %v1623_v14 = vadd.f32 %v13370_v41, %v1585_v51 }
 0x18e   : > { %v1437_v22 = vpop.f32.mrf.mxu2  ;;  %v1486_v31 = vpop.f32.mrf.mxu3  ;;  %2968 = vmatpush.bf16.msrb.mxu0 %v9416_v54  ;;  %v9172_v54 = vor.u32 %v11883_v3, %v9169_v35  ;;  %v968_v35 = vld [vmem:[%s12753_s24 + $0x48] sm:$0xff] }
 0x18f   : > { %v1438_v21 = vadd.f32 %v1437_v22, %v13344_v23  ;;  %v1487_v37 = vadd.f32 %v1486_v31, %v13346_v24  ;;  %v13568_v30 = vadd.f32 %v13439_v34, %v1623_v14  ;;  %3016 = vmatpush.bf16.msrb.mxu1 %v9488_v19  ;;  %v967_v19 = vld [vmem:[%s12753_s24 + $0x40] sm:$0xff]  ;;  %v11936_v31 = vld [vmem:[%s18167_s18 + $0x234] sm:$0xf0] }
 0x190   : > { %v9408_v2 = vor.u32 %v11936_v31, %v9407_v50  ;;  %v1557_v40 = vunpack.c.l.bf16 %v967_v19  ;;  %v1558_v53 = vunpack.c.h.bf16 %v967_v19  ;;  %2552 = vmatpush.bf16.msra.mxu2 %v9172_v54  ;;  %v11950_v31 = vld [vmem:[%s18167_s18 + $0x2a4] sm:$0xf0]  ;;  %v9455_v54 = vld [vmem:[%s18167_s18 + $0x290] sm:$0xf] }
 0x191   : > { %v1523_v63 = vmax.f32 %v1438_v21, 0.0  ;;  %v1524_v51 = vmax.f32 %v1487_v37, 0.0  ;;  %v11899_v21 = vld [vmem:[%s18167_s18 + $0x194] sm:$0xf] }
 0x192   : > { %v1965_v5 = vpop.f32.mrf.mxu0  ;;  %2969 = vmatpush.bf16.msrb.mxu0 %v9408_v2 }
 0x193   : > { %v2014_v8 = vpop.f32.mrf.mxu1  ;;  %v1587_v22 = vadd.f32 %v1555_v42, %v1523_v63  ;;  %v13577_v34 = vadd.f32 %v1556_v39, %v1524_v51  ;;  %2057 = vmatmul.bf16.gmra.mxu2 %v13108_v12  ;;  %2106 = vmatmul.bf16.gmra.mxu3 %v13110_v13  ;;  %v9471_v42 = vld [vmem:[%s18167_s18 + $0x2b0] sm:$0xf]  ;;  %v11952_v12 = vld [vmem:[%s18167_s18 + $0x2b4] sm:$0xf0] }
 0x194   : > { %v13579_v14 = vadd.f32 %v2014_v8, %v1965_v5  ;;  %3017 = vmatpush.bf16.msrb.mxu1 %v9480_v11  ;;  %v9472_v37 = vor.u32 %v11952_v12, %v9471_v42  ;;  %v9236_v5 = vor.u32 %v11899_v21, %v9233_v62  ;;  %v9399_v8 = vld [vmem:[%s18167_s18 + $0x220] sm:$0xf]  ;;  %v11934_v11 = vld [vmem:[%s18167_s18 + $0x224] sm:$0xf0] }
 0x195   : > { %v1625_v13 = vadd.f32 %v13370_v41, %v1587_v22  ;;  %2481 = vmatmul.bf16.gmra.mxu0 %v13573_v9  ;;  %v9463_v22 = vld [vmem:[%s18167_s18 + $0x2a0] sm:$0xf]  ;;  %v9400_v50 = vor.u32 %v11934_v11, %v9399_v8  ;;  %v1559_v8 = vunpack.c.l.bf16 %v968_v35 }
 0x196   : > { %2530 = vmatmul.bf16.gmra.mxu1 %v13575_v0  ;;  %v1440_v39 = vpop.f32.mrf.mxu2  ;;  %v1489_v45 = vpop.f32.mrf.mxu3  ;;  %2601 = vmatpush.bf16.msra.mxu3 %v9236_v5  ;;  %v9464_v21 = vor.u32 %v11950_v31, %v9463_v22  ;;  %v11878_v22 = vld [vmem:[%s13299_s21 + $0x64] sm:$0xf0]  ;;  %v9145_v31 = vld [vmem:[%s13299_s21 + $0x68] sm:$0xf0] }
 0x197   : > { %v1441_v63 = vadd.f32 %v1440_v39, %v13344_v23  ;;  %v1490_v51 = vadd.f32 %v1489_v45, %v13346_v24  ;;  %v13623_v19 = vadd.f32 %v13466_v7, %v1625_v13  ;;  %2970 = vmatpush.bf16.msrb.mxu0 %v9400_v50  ;;  %v11932_v45 = vld [vmem:[%s18167_s18 + $0x214] sm:$0xf0]  ;;  %v11877_v50 = vld [vmem:[%s13299_s21 + $0x64] sm:$0xf] }
 0x198   : > { %3018 = vmatpush.bf16.msrb.mxu1 %v9472_v37  ;;  %v9391_v37 = vld [vmem:[%s18167_s18 + $0x210] sm:$0xf] }
 0x199   : > { %v1525_v2 = vmax.f32 %v1441_v63, 0.0  ;;  %v1526_v42 = vmax.f32 %v1490_v51, 0.0  ;;  %v9143_v63 = vld [vmem:[%s13299_s21 + $0x60] sm:$0xf] }
 0x19a   : > { %v1967_v12 = vpop.f32.mrf.mxu0 }
 0x19b   : > { %v2016_v3 = vpop.f32.mrf.mxu1  ;;  %v1589_v39 = vadd.f32 %v1557_v40, %v1525_v2  ;;  %v13629_v7 = vadd.f32 %v1558_v53, %v1526_v42  ;;  %v9392_v40 = vor.u32 %v11932_v45, %v9391_v37  ;;  %v11948_v53 = vld [vmem:[%s18167_s18 + $0x294] sm:$0xf0] }
 0x19c   : > { %v13631_v13 = vadd.f32 %v2016_v3, %v1967_v12  ;;  %3019 = vmatpush.bf16.msrb.mxu1 %v9464_v21  ;;  %v9456_v51 = vor.u32 %v11948_v53, %v9455_v54  ;;  %v1560_v12 = vunpack.c.h.bf16 %v968_v35  ;;  %v9383_v3 = vld [vmem:[%s18167_s18 + $0x200] sm:$0xf]  ;;  %v11930_v21 = vld [vmem:[%s18167_s18 + $0x204] sm:$0xf0]  ;;  %v13667_v53 = vor.u32 %v11878_v22, %v9143_v63 }
 0x19d   : > { %18250 = vst [vmem:[#allocation13_spill] sm:$0xff] %v13629_v7  ;;  %v1627_v62 = vadd.f32 %v13370_v41, %v1589_v39  ;;  %2971 = vmatpush.bf16.msrb.mxu0 %v9392_v40  ;;  %v9447_v39 = vld [vmem:[%s18167_s18 + $0x280] sm:$0xf]  ;;  %v9384_v45 = vor.u32 %v11930_v21, %v9383_v3  ;;  %v11946_v35 = vld [vmem:[%s18167_s18 + $0x284] sm:$0xf0] }
 0x19e   : > { %v1442_v5 = vpop.f32.mrf.mxu2  ;;  %v1491_v11 = vpop.f32.mrf.mxu3  ;;  %18251 = vst [vmem:[#allocation14_spill] sm:$0xff] %v13667_v53  ;;  %v9448_v9 = vor.u32 %v11946_v35, %v9447_v39 }
 0x19f   : > { %v1443_v2 = vadd.f32 %v1442_v5, %v13344_v23  ;;  %v1492_v42 = vadd.f32 %v1491_v11, %v13346_v24  ;;  %v13662_v37 = vadd.f32 %v13485_v48, %v1627_v62  ;;  %v13669_v5 = vor.u32 %v11877_v50, %v9145_v31  ;;  %v9225_v31 = vld [vmem:[%s18167_s18 + $0x188] sm:$0xf0] }
 0x1a0   : > { %3020 = vmatpush.bf16.msrb.mxu1 %v9456_v51  ;;  %v969_v51 = vld [vmem:[%s12753_s24 + $0x50] sm:$0xff] }
 0x1a1   : > { %v1527_v54 = vmax.f32 %v1443_v2, 0.0  ;;  %v1528_v40 = vmax.f32 %v1492_v42, 0.0  ;;  %18252 = vst [vmem:[#allocation15_spill] sm:$0xff] %v13669_v5  ;;  %2972 = vmatpush.bf16.msrb.mxu0 %v9384_v45 }
 0x1a2   : > { %v1970_v11 = vpop.f32.mrf.mxu0 }
 0x1a3   : > { %v2019_v0 = vpop.f32.mrf.mxu1  ;;  %v1591_v7 = vadd.f32 %v1559_v8, %v1527_v54  ;;  %v13671_v48 = vadd.f32 %v1560_v12, %v1528_v40  ;;  %2062 = vmatmul.bf16.gmra.mxu2 %v13180_v1  ;;  %2111 = vmatmul.bf16.gmra.mxu3 %v13182_v4  ;;  %v11881_v8 = vld [vmem:[%s18167_s18 + $0x104] sm:$0xf] }
 0x1a4   : > { %v13673_v62 = vadd.f32 %v2019_v0, %v1970_v11  ;;  %3021 = vmatpush.bf16.msrb.mxu1 %v9448_v9  ;;  %v9161_v0 = vld [vmem:[%s18167_s18 + $0x108] sm:$0xf0]  ;;  %v11897_v1 = vld [vmem:[%s18167_s18 + $0x184] sm:$0xf]  ;;  %v1561_v9 = vunpack.c.l.bf16 %v969_v51 }
 0x1a5   : > { %v1629_v63 = vadd.f32 %v13370_v41, %v1591_v7  ;;  %2486 = vmatmul.bf16.gmra.mxu0 %v13667_v53  ;;  %v1562_v7 = vunpack.c.h.bf16 %v969_v51  ;;  %v9164_v50 = vor.u32 %v11881_v8, %v9161_v0  ;;  %v9228_v12 = vor.u32 %v11897_v1, %v9225_v31  ;;  %v970_v51 = vld [vmem:[%s12753_s24 + $0x58] sm:$0xff]  ;;  %v9151_v0 = vld [vmem:[%s13299_s21 + $0x70] sm:$0xf] }
 0x1a6   : > { %2535 = vmatmul.bf16.gmra.mxu1 %v13669_v5  ;;  %v1445_v4 = vpop.f32.mrf.mxu2  ;;  %v1494_v22 = vpop.f32.mrf.mxu3 }
 0x1a7   : > { %v1446_v2 = vadd.f32 %v1445_v4, %v13344_v23  ;;  %v1495_v42 = vadd.f32 %v1494_v22, %v13346_v24  ;;  %v13696_v3 = vadd.f32 %v13537_v52, %v1629_v63  ;;  %2553 = vmatpush.bf16.msra.mxu2 %v9164_v50  ;;  %2602 = vmatpush.bf16.msra.mxu3 %v9228_v12  ;;  %v1563_v63 = vunpack.c.l.bf16 %v970_v51  ;;  %v11880_v4 = vld [vmem:[%s13299_s21 + $0x74] sm:$0xf0]  ;;  %v11879_v22 = vld [vmem:[%s13299_s21 + $0x74] sm:$0xf]  ;;  %v9153_v50 = vld [vmem:[%s13299_s21 + $0x78] sm:$0xf0] }
 0x1a9   : > { %v1529_v21 = vmax.f32 %v1446_v2, 0.0  ;;  %v1530_v39 = vmax.f32 %v1495_v42, 0.0 }
 0x1aa   : > { %v1972_v45 = vpop.f32.mrf.mxu0 }
 0x1ab   : > { %v2021_v35 = vpop.f32.mrf.mxu1  ;;  %v1593_v54 = vadd.f32 %v1561_v9, %v1529_v21  ;;  %v13698_v40 = vadd.f32 %v1562_v7, %v1530_v39  ;;  %v1564_v9 = vunpack.c.h.bf16 %v970_v51  ;;  %v13713_v21 = vor.u32 %v11880_v4, %v9151_v0  ;;  %v971_v51 = vld [vmem:[%s12753_s24 + $0x60] sm:$0xff]  ;;  %v9441_v0 = vld [vmem:[%s18167_s18 + $0x278] sm:$0xf0] }
 0x1ac   : > { %v13700_v11 = vadd.f32 %v2021_v35, %v1972_v45  ;;  %v13715_v39 = vor.u32 %v11879_v22, %v9153_v50  ;;  %v9505_v22 = vld [vmem:[%s18167_s18 + $0x2f8] sm:$0xf0] }
 0x1ad   : > { %v1631_v8 = vadd.f32 %v13370_v41, %v1593_v54  ;;  %18253 = vst [vmem:[#allocation16_spill] sm:$0xff] %v13713_v21 }
 0x1ae   : > { %v1447_v52 = vpop.f32.mrf.mxu2  ;;  %v1496_v1 = vpop.f32.mrf.mxu3  ;;  %18254 = vst [vmem:[#allocation17_spill] sm:$0xff] %v13715_v39 }
 0x1af   : > { %v1448_v31 = vadd.f32 %v1447_v52, %v13344_v23  ;;  %v1497_v2 = vadd.f32 %v1496_v1, %v13346_v24  ;;  %v13711_v7 = vadd.f32 %v13579_v14, %v1631_v8  ;;  %v11943_v8 = vld [vmem:[%s18167_s18 + $0x274] sm:$0xf]  ;;  %v1565_v52 = vunpack.c.l.bf16 %v971_v51 }
 0x1b0   : > { %v1566_v1 = vunpack.c.h.bf16 %v971_v51  ;;  %v9444_v4 = vor.u32 %v11943_v8, %v9441_v0  ;;  %v9319_v0 = vld [vmem:[%s13748_s28] sm:$0xf] }
 0x1b1   : > { %v1531_v42 = vmax.f32 %v1448_v31, 0.0  ;;  %v1532_v12 = vmax.f32 %v1497_v2, 0.0 }
 0x1b2   : > { %v1975_v45 = vpop.f32.mrf.mxu0  ;;  %3063 = vmatpush.bf16.msrb.mxu2 %v9444_v4  ;;  %v11914_v4 = vld [vmem:[%s13748_s28 + $0x4] sm:$0xf0] }
 0x1b3   : > { %v2024_v35 = vpop.f32.mrf.mxu1  ;;  %v1595_v54 = vadd.f32 %v1563_v63, %v1531_v42  ;;  %v13717_v5 = vadd.f32 %v1564_v9, %v1532_v12  ;;  %2067 = vmatmul.bf16.gmra.mxu2 %v13252_v59  ;;  %2116 = vmatmul.bf16.gmra.mxu3 %v13254_v60  ;;  %v11959_v59 = vld [vmem:[%s18167_s18 + $0x2f4] sm:$0xf] }
 0x1b4   : > { %v13719_v53 = vadd.f32 %v2024_v35, %v1975_v45  ;;  %v9508_v2 = vor.u32 %v11959_v59, %v9505_v22  ;;  %v11913_v22 = vld [vmem:[%s13748_s28 + $0x4] sm:$0xf] }
 0x1b5   : > { %18255 = vst [vmem:[#allocation18_spill] sm:$0xff] %v13717_v5  ;;  %v1633_v14 = vadd.f32 %v13370_v41, %v1595_v54  ;;  %2491 = vmatmul.bf16.gmra.mxu0 %v13713_v21 }
 0x1b6   : > { %2540 = vmatmul.bf16.gmra.mxu1 %v13715_v39  ;;  %v1450_v60 = vpop.f32.mrf.mxu2  ;;  %v1499_v63 = vpop.f32.mrf.mxu3  ;;  %3112 = vmatpush.bf16.msrb.mxu3 %v9508_v2 }
 0x1b7   : > { %v1451_v50 = vadd.f32 %v1450_v60, %v13344_v23  ;;  %v1500_v31 = vadd.f32 %v1499_v63, %v13346_v24  ;;  %v13742_v9 = vadd.f32 %v13631_v13, %v1633_v14  ;;  %v972_v14 = vld [vmem:[%s12753_s24 + $0x68] sm:$0xff] }
 0x1b8   : > { %v1567_v60 = vunpack.c.l.bf16 %v972_v14 }
 0x1b9   : > { %v1533_v42 = vmax.f32 %v1451_v50, 0.0  ;;  %v1534_v12 = vmax.f32 %v1500_v31, 0.0  ;;  %v9321_v50 = vld [vmem:[%s13748_s28 + $0x8] sm:$0xf0] }
 0x1ba   : > { %v1977_v45 = vpop.f32.mrf.mxu0 }
 0x1bb   : > { %v2026_v35 = vpop.f32.mrf.mxu1  ;;  %v1597_v54 = vadd.f32 %v1565_v52, %v1533_v42  ;;  %v13750_v51 = vadd.f32 %v1566_v1, %v1534_v12  ;;  %v1568_v52 = vunpack.c.h.bf16 %v972_v14  ;;  %v973_v14 = vld [vmem:[%s12753_s24 + $0x70] sm:$0xff] }
 0x1bc   : > { %v13752_v13 = vadd.f32 %v2026_v35, %v1977_v45  ;;  %v13765_v45 = vor.u32 %v11914_v4, %v9319_v0  ;;  %v13767_v35 = vor.u32 %v11913_v22, %v9321_v50  ;;  %v11941_v0 = vld [vmem:[%s18167_s18 + $0x264] sm:$0xf] }
 0x1bd   : > { %18257 = vst [vmem:[#allocation19_spill] sm:$0xff] %v13750_v51  ;;  %v1635_v8 = vadd.f32 %v13370_v41, %v1597_v54 }
 0x1be   : > { %v1452_v59 = vpop.f32.mrf.mxu2  ;;  %v1501_v63 = vpop.f32.mrf.mxu3  ;;  %18258 = vst [vmem:[#allocation20_spill] sm:$0xff] %v13765_v45 }
 0x1bf   : > { %v1453_v31 = vadd.f32 %v1452_v59, %v13344_v23  ;;  %v1502_v2 = vadd.f32 %v1501_v63, %v13346_v24  ;;  %v13763_v1 = vadd.f32 %v13673_v62, %v1635_v8  ;;  %18259 = vst [vmem:[#allocation21_spill] sm:$0xff] %v13767_v35 }
 0x1c1   : > { %v1535_v42 = vmax.f32 %v1453_v31, 0.0  ;;  %v1536_v12 = vmax.f32 %v1502_v2, 0.0 }
 0x1c2   : > { %v2457_v54 = vpop.f32.mrf.mxu0 }
 0x1c3   : > { %v2506_v39 = vpop.f32.mrf.mxu1  ;;  %v1599_v21 = vadd.f32 %v1567_v60, %v1535_v42  ;;  %v13769_v51 = vadd.f32 %v1568_v52, %v1536_v12  ;;  %2072 = vmatmul.bf16.gmra.mxu2 %v13276_v27  ;;  %2121 = vmatmul.bf16.gmra.mxu3 %v13278_v28  ;;  %v9433_v27 = vld [vmem:[%s18167_s18 + $0x268] sm:$0xf0]  ;;  %v11957_v28 = vld [vmem:[%s18167_s18 + $0x2e4] sm:$0xf] }
 0x1c4   : > { %v2507_v5 = vadd.f32 %v2506_v39, %v2457_v54  ;;  %v1569_v39 = vunpack.c.l.bf16 %v973_v14  ;;  %v9436_v59 = vor.u32 %v11941_v0, %v9433_v27  ;;  %v9497_v60 = vld [vmem:[%s18167_s18 + $0x2e8] sm:$0xf0]  ;;  %v974_v0 = vld [vmem:[%s12753_s24 + $0x78] sm:$0xff]  ;;  %s16130_s24 = scalar_lea.vmem %s18158_s9, %s12741_s23 }
 0x1c5   : > { %v1637_v62 = vadd.f32 %v13370_v41, %v1599_v21  ;;  %2973 = vmatmul.bf16.vlgmr.msrb.gmra.mxu0 %v13765_v45  ;;  %v9500_v22 = vor.u32 %v11957_v28, %v9497_v60  ;;  %v11915_v60 = vld [vmem:[%s13748_s28 + $0x14] sm:$0xf] }
 0x1c6   : > { %v13776_v8 = vadd.f32 %v2507_v5, %v13385_v10  ;;  %3022 = vmatmul.bf16.vlgmr.msrb.gmra.mxu1 %v13767_v35  ;;  %v1455_v21 = vpop.f32.mrf.mxu2  ;;  %v1504_v10 = vpop.f32.mrf.mxu3  ;;  %v1570_v5 = vunpack.c.h.bf16 %v973_v14  ;;  %3064 = vmatpush.bf16.msrb.mxu2 %v9436_v59  ;;  %v11916_v59 = vld [vmem:[%s13748_s28 + $0x14] sm:$0xf0] }
 0x1c7   : > { %v1456_v63 = vadd.f32 %v1455_v21, %v13344_v23  ;;  %v1505_v4 = vadd.f32 %v1504_v10, %v13346_v24  ;;  %v13795_v50 = vadd.f32 %v13700_v11, %v1637_v62  ;;  %3113 = vmatpush.bf16.msrb.mxu3 %v9500_v22  ;;  %v9327_v11 = vld [vmem:[%s13748_s28 + $0x10] sm:$0xf]  ;;  %v1571_v21 = vunpack.c.l.bf16 %v974_v0 }
 0x1c9   : > { %v1537_v31 = vmax.f32 %v1456_v63, 0.0  ;;  %v1538_v2 = vmax.f32 %v1505_v4, 0.0  ;;  %v9329_v63 = vld [vmem:[%s13748_s28 + $0x18] sm:$0xf0] }
 0x1ca   : > { %v2459_v52 = vpop.f32.mrf.mxu0 }
 0x1cb   : > { %v2508_v42 = vpop.f32.mrf.mxu1  ;;  %v1601_v12 = vadd.f32 %v1569_v39, %v1537_v31  ;;  %v13797_v54 = vadd.f32 %v1570_v5, %v1538_v2  ;;  %v1572_v5 = vunpack.c.h.bf16 %v974_v0  ;;  %v11939_v0 = vld [vmem:[%s18167_s18 + $0x254] sm:$0xf] }
 0x1cc   : > { %v2509_v14 = vadd.f32 %v2508_v42, %v2459_v52  ;;  %v13813_v52 = vor.u32 %v11916_v59, %v9327_v11 }
 0x1cd   : > { %v1639_v27 = vadd.f32 %v13370_v41, %v1601_v12 }
 0x1ce   : > { %v13802_v28 = vadd.f32 %v2509_v14, %v13416_v44  ;;  %v1457_v62 = vpop.f32.mrf.mxu2  ;;  %v1506_v10 = vpop.f32.mrf.mxu3  ;;  %v13815_v44 = vor.u32 %v11915_v60, %v9329_v63 }
 0x1cf   : > { %v1458_v4 = vadd.f32 %v1457_v62, %v13344_v23  ;;  %v1507_v39 = vadd.f32 %v1506_v10, %v13346_v24  ;;  %v13811_v22 = vadd.f32 %v13719_v53, %v1639_v27  ;;  %v13822_v23 = vperm.slane %v13362_v32, 1 }
 0x1d1   : > { %v1539_v31 = vmax.f32 %v1458_v4, 0.0  ;;  %v1540_v2 = vmax.f32 %v1507_v39, 0.0  ;;  %v1612_v27 = vadd.f32 %v13822_v23, %v13372_v49  ;;  %v9335_v39 = vld [vmem:[%s13748_s28 + $0x20] sm:$0xf]  ;;  %v11918_v49 = vld [vmem:[%s13748_s28 + $0x24] sm:$0xf0] }
 0x1d2   : > { %v2462_v42 = vpop.f32.mrf.mxu0 }
 0x1d3   : > { %v2511_v12 = vpop.f32.mrf.mxu1  ;;  %v1603_v14 = vadd.f32 %v1571_v21, %v1539_v31  ;;  %v13817_v35 = vadd.f32 %v1572_v5, %v1540_v2  ;;  %2554 = vmatmul.bf16.vlgmr.msra.gmra.mxu2 %v13306_v55  ;;  %2603 = vmatmul.bf16.vlgmr.msra.gmra.mxu3 %v13308_v56  ;;  %v9425_v55 = vld [vmem:[%s18167_s18 + $0x258] sm:$0xf0]  ;;  %v11955_v56 = vld [vmem:[%s18167_s18 + $0x2d4] sm:$0xf]  ;;  %v11917_v2 = vld [vmem:[%s13748_s28 + $0x24] sm:$0xf] }
 0x1d4   : > { %v2512_v45 = vadd.f32 %v2511_v12, %v2462_v42  ;;  %v9337_v42 = vld [vmem:[%s13748_s28 + $0x28] sm:$0xf0] }
 0x1d5   : > { %v1641_v24 = vadd.f32 %v13370_v41, %v1603_v14  ;;  %2978 = vmatmul.bf16.gmra.mxu0 %v13813_v52 }
 0x1d6   : > { %v13826_v53 = vadd.f32 %v2512_v45, %v13431_v20  ;;  %3027 = vmatmul.bf16.gmra.mxu1 %v13815_v44  ;;  %v2038_v32 = vpop.f32.mrf.mxu2  ;;  %v2087_v41 = vpop.f32.mrf.mxu3  ;;  %v9428_v20 = vor.u32 %v11939_v0, %v9425_v55  ;;  %v9489_v45 = vld [vmem:[%s18167_s18 + $0x2d8] sm:$0xf0]  ;;  %v13862_v0 = vor.u32 %v11917_v2, %v9337_v42  ;;  %v11920_v42 = vld [vmem:[%s13748_s28 + $0x34] sm:$0xf0] }
 0x1d7   : > { %v2088_v11 = vadd.f32 %v2087_v41, %v2038_v32  ;;  %v9492_v62 = vor.u32 %v11955_v56, %v9489_v45  ;;  %v13845_v21 = vadd.f32 %v13752_v13, %v1641_v24  ;;  %v1614_v13 = vadd.f32 %v13822_v23, %v13391_v29  ;;  %v11937_v29 = vld [vmem:[%s18167_s18 + $0x244] sm:$0xf]  ;;  %v9417_v41 = vld [vmem:[%s18167_s18 + $0x248] sm:$0xf0] }
 0x1d8   : > { %3065 = vmatpush.bf16.msrb.mxu2 %v9428_v20  ;;  %v13860_v24 = vor.u32 %v11918_v49, %v9335_v39  ;;  %v9420_v20 = vor.u32 %v11937_v29, %v9417_v41  ;;  %v9481_v45 = vld [vmem:[%s18167_s18 + $0x2c8] sm:$0xf0] }
 0x1d9   : > { %v13847_v10 = vadd.f32 %v2088_v11, %v1612_v27  ;;  %3114 = vmatpush.bf16.msrb.mxu3 %v9492_v62  ;;  %v1616_v27 = vadd.f32 %v13822_v23, %v13418_v57  ;;  %v1618_v57 = vadd.f32 %v13822_v23, %v13437_v33  ;;  %v11935_v33 = vld [vmem:[%s18167_s18 + $0x234] sm:$0xf] }
 0x1da   : > { %v2464_v59 = vpop.f32.mrf.mxu0 }
 0x1db   : > { %v2513_v60 = vpop.f32.mrf.mxu1 }
 0x1dc   : > { %v2514_v63 = vadd.f32 %v2513_v60, %v2464_v59  ;;  %3066 = vmatpush.bf16.msrb.mxu2 %v9420_v20 }
 0x1de   : > { %v13850_v4 = vadd.f32 %v2514_v63, %v13462_v46  ;;  %v2040_v5 = vpop.f32.mrf.mxu2  ;;  %v2089_v31 = vpop.f32.mrf.mxu3 }
 0x1df   : > { %v2090_v12 = vadd.f32 %v2089_v31, %v2040_v5  ;;  %v9343_v31 = vld [vmem:[%s13748_s28 + $0x30] sm:$0xf] }
 0x1e1   : > { %v13858_v14 = vadd.f32 %v2090_v12, %v1614_v13  ;;  %v11919_v13 = vld [vmem:[%s13748_s28 + $0x34] sm:$0xf]  ;;  %v9345_v12 = vld [vmem:[%s13748_s28 + $0x38] sm:$0xf0] }
 0x1e2   : > { %v2467_v55 = vpop.f32.mrf.mxu0  ;;  %v13900_v29 = vor.u32 %v11919_v13, %v9345_v12  ;;  %v11922_v12 = vld [vmem:[%s13748_s28 + $0x44] sm:$0xf0] }
 0x1e3   : > { %v2516_v56 = vpop.f32.mrf.mxu1  ;;  %2559 = vmatmul.bf16.gmra.mxu2 %v13335_v17  ;;  %2608 = vmatmul.bf16.gmra.mxu3 %v13337_v18  ;;  %v11953_v17 = vld [vmem:[%s18167_s18 + $0x2c4] sm:$0xf] }
 0x1e4   : > { %v2517_v46 = vadd.f32 %v2516_v56, %v2467_v55  ;;  %v9484_v62 = vor.u32 %v11953_v17, %v9481_v45  ;;  %v9473_v45 = vld [vmem:[%s18167_s18 + $0x2b8] sm:$0xf0] }
 0x1e5   : > { %2983 = vmatmul.bf16.gmra.mxu0 %v13860_v24 }
 0x1e6   : > { %v13867_v32 = vadd.f32 %v2517_v46, %v13477_v36  ;;  %3032 = vmatmul.bf16.gmra.mxu1 %v13862_v0  ;;  %v2043_v18 = vpop.f32.mrf.mxu2  ;;  %v2092_v36 = vpop.f32.mrf.mxu3  ;;  %3115 = vmatpush.bf16.msrb.mxu3 %v9484_v62  ;;  %v13898_v46 = vor.u32 %v11920_v42, %v9343_v31 }
 0x1e7   : > { %v2093_v11 = vadd.f32 %v2092_v36, %v2043_v18  ;;  %v9409_v36 = vld [vmem:[%s18167_s18 + $0x238] sm:$0xf0] }
 0x1e8   : > { %v9412_v20 = vor.u32 %v11935_v33, %v9409_v36 }
 0x1e9   : > { %v13885_v59 = vadd.f32 %v2093_v11, %v1616_v27  ;;  %v1620_v27 = vadd.f32 %v13822_v23, %v13464_v6  ;;  %v1622_v6 = vadd.f32 %v13822_v23, %v13483_v47  ;;  %v11992_v47 = vld [vmem:[%s18167_s18 + $0x374] sm:$0xf0] }
 0x1ea   : > { %v2469_v60 = vpop.f32.mrf.mxu0  ;;  %3067 = vmatpush.bf16.msrb.mxu2 %v9412_v20  ;;  %v9727_v20 = vld [vmem:[%s18167_s18 + $0x3f0] sm:$0xf] }
 0x1eb   : > { %v2518_v63 = vpop.f32.mrf.mxu1 }
 0x1ec   : > { %v2519_v39 = vadd.f32 %v2518_v63, %v2469_v60 }
 0x1ee   : > { %v13888_v5 = vadd.f32 %v2519_v39, %v13529_v25  ;;  %v2045_v49 = vpop.f32.mrf.mxu2  ;;  %v2094_v2 = vpop.f32.mrf.mxu3 }
 0x1ef   : > { %v2095_v55 = vadd.f32 %v2094_v2, %v2045_v49  ;;  %v9351_v2 = vld [vmem:[%s13748_s28 + $0x40] sm:$0xf] }
 0x1f1   : > { %v13896_v56 = vadd.f32 %v2095_v55, %v1618_v57  ;;  %v11921_v57 = vld [vmem:[%s13748_s28 + $0x44] sm:$0xf]  ;;  %v9353_v55 = vld [vmem:[%s13748_s28 + $0x48] sm:$0xf0] }
 0x1f2   : > { %v2472_v41 = vpop.f32.mrf.mxu0  ;;  %v13938_v33 = vor.u32 %v11921_v57, %v9353_v55  ;;  %v11990_v57 = vld [vmem:[%s18167_s18 + $0x364] sm:$0xf0]  ;;  %v9719_v55 = vld [vmem:[%s18167_s18 + $0x3e0] sm:$0xf] }
 0x1f3   : > { %v2521_v17 = vpop.f32.mrf.mxu1  ;;  %2564 = vmatmul.bf16.gmra.mxu2 %v13387_v15  ;;  %2613 = vmatmul.bf16.gmra.mxu3 %v13389_v16  ;;  %v11951_v15 = vld [vmem:[%s18167_s18 + $0x2b4] sm:$0xf] }
 0x1f4   : > { %v2522_v25 = vadd.f32 %v2521_v17, %v2472_v41  ;;  %v9476_v62 = vor.u32 %v11951_v15, %v9473_v45  ;;  %v12008_v45 = vld [vmem:[%s18167_s18 + $0x3f4] sm:$0xf0] }
 0x1f5   : > { %2988 = vmatmul.bf16.gmra.mxu0 %v13898_v46 }
 0x1f6   : > { %v13905_v18 = vadd.f32 %v2522_v25, %v13568_v30  ;;  %3037 = vmatmul.bf16.gmra.mxu1 %v13900_v29  ;;  %v2048_v16 = vpop.f32.mrf.mxu2  ;;  %v2097_v30 = vpop.f32.mrf.mxu3  ;;  %3116 = vmatpush.bf16.msrb.mxu3 %v9476_v62  ;;  %v13936_v25 = vor.u32 %v11922_v12, %v9351_v2  ;;  %v9728_v62 = vor.u32 %v12008_v45, %v9727_v20  ;;  %v9655_v12 = vld [vmem:[%s18167_s18 + $0x360] sm:$0xf]  ;;  %v9711_v20 = vld [vmem:[%s18167_s18 + $0x3d0] sm:$0xf] }
 0x1f7   : > { %v2098_v11 = vadd.f32 %v2097_v30, %v2048_v16  ;;  %v9663_v16 = vld [vmem:[%s18167_s18 + $0x370] sm:$0xf]  ;;  %v1624_v2 = vadd.f32 %v13822_v23, %v13535_v58  ;;  %v12006_v58 = vld [vmem:[%s18167_s18 + $0x3e4] sm:$0xf0] }
 0x1f8   : > { %v9664_v30 = vor.u32 %v11992_v47, %v9663_v16  ;;  %3531 = vmatpush.bf16.msra.mxu1 %v9728_v62  ;;  %v9647_v47 = vld [vmem:[%s18167_s18 + $0x350] sm:$0xf] }
 0x1f9   : > { %v13923_v60 = vadd.f32 %v2098_v11, %v1620_v27  ;;  %v9401_v27 = vld [vmem:[%s18167_s18 + $0x228] sm:$0xf0]  ;;  %v11949_v11 = vld [vmem:[%s18167_s18 + $0x2a4] sm:$0xf] }
 0x1fa   : > { %v2474_v63 = vpop.f32.mrf.mxu0  ;;  %3482 = vmatpush.bf16.msra.mxu0 %v9664_v30  ;;  %v11988_v30 = vld [vmem:[%s18167_s18 + $0x354] sm:$0xf0] }
 0x1fb   : > { %v2523_v39 = vpop.f32.mrf.mxu1  ;;  %v9648_v45 = vor.u32 %v11988_v30, %v9647_v47  ;;  %v9631_v30 = vld [vmem:[%s18167_s18 + $0x330] sm:$0xf] }
 0x1fc   : > { %v2524_v31 = vadd.f32 %v2523_v39, %v2474_v63 }
 0x1fe   : > { %v13926_v49 = vadd.f32 %v2524_v31, %v13623_v19  ;;  %v2050_v42 = vpop.f32.mrf.mxu2  ;;  %v2099_v13 = vpop.f32.mrf.mxu3  ;;  %v9465_v31 = vld [vmem:[%s18167_s18 + $0x2a8] sm:$0xf0] }
 0x1ff   : > { %v2100_v41 = vadd.f32 %v2099_v13, %v2050_v42  ;;  %v9468_v13 = vor.u32 %v11949_v11, %v9465_v31  ;;  %v9359_v11 = vld [vmem:[%s13748_s28 + $0x50] sm:$0xf]  ;;  %v11923_v31 = vld [vmem:[%s13748_s28 + $0x54] sm:$0xf] }
 0x201   : > { %v13934_v17 = vadd.f32 %v2100_v41, %v1622_v6  ;;  %v9656_v6 = vor.u32 %v11990_v57, %v9655_v12  ;;  %3117 = vmatpush.bf16.msrb.mxu3 %v9468_v13  ;;  %v9639_v12 = vld [vmem:[%s18167_s18 + $0x340] sm:$0xf] }
 0x202   : > { %v2477_v36 = vpop.f32.mrf.mxu0  ;;  %v9703_v57 = vld [vmem:[%s18167_s18 + $0x3c0] sm:$0xf] }
 0x203   : > { %v2526_v15 = vpop.f32.mrf.mxu1  ;;  %2569 = vmatmul.bf16.gmra.mxu2 %v13433_v61  ;;  %2618 = vmatmul.bf16.gmra.mxu3 %v13435_v43  ;;  %v11933_v43 = vld [vmem:[%s18167_s18 + $0x224] sm:$0xf] }
 0x204   : > { %v2527_v19 = vadd.f32 %v2526_v15, %v2477_v36  ;;  %v9404_v39 = vor.u32 %v11933_v43, %v9401_v27  ;;  %v9720_v36 = vor.u32 %v12006_v58, %v9719_v55  ;;  %3483 = vmatpush.bf16.msra.mxu0 %v9656_v6  ;;  %v12004_v43 = vld [vmem:[%s18167_s18 + $0x3d4] sm:$0xf0]  ;;  %v12002_v6 = vld [vmem:[%s18167_s18 + $0x3c4] sm:$0xf0] }
 0x205   : > { %2993 = vmatmul.bf16.gmra.mxu0 %v13936_v25  ;;  %v9712_v62 = vor.u32 %v12004_v43, %v9711_v20  ;;  %v11984_v20 = vld [vmem:[%s18167_s18 + $0x334] sm:$0xf0]  ;;  %v9695_v43 = vld [vmem:[%s18167_s18 + $0x3b0] sm:$0xf] }
 0x206   : > { %v13955_v61 = vadd.f32 %v2527_v19, %v13662_v37  ;;  %3042 = vmatmul.bf16.gmra.mxu1 %v13938_v33  ;;  %v2053_v63 = vpop.f32.mrf.mxu2  ;;  %v2102_v37 = vpop.f32.mrf.mxu3  ;;  %3068 = vmatpush.bf16.msrb.mxu2 %v9404_v39  ;;  %v11924_v39 = vld [vmem:[%s13748_s28 + $0x54] sm:$0xf0] }
 0x207   : > { %v2103_v42 = vadd.f32 %v2102_v37, %v2053_v63  ;;  %3532 = vmatpush.bf16.msra.mxu1 %v9720_v36  ;;  %v14022_v58 = vor.u32 %v11924_v39, %v9359_v11  ;;  %v11931_v11 = vld [vmem:[%s18167_s18 + $0x214] sm:$0xf] }
 0x208   : > { %3484 = vmatpush.bf16.msra.mxu0 %v9648_v45  ;;  %v9632_v45 = vor.u32 %v11984_v20, %v9631_v30 }
 0x209   : > { %v13985_v41 = vadd.f32 %v2103_v42, %v1624_v2  ;;  %v9361_v2 = vld [vmem:[%s13748_s28 + $0x58] sm:$0xf0]  ;;  %v1626_v42 = vadd.f32 %v13822_v23, %v13577_v34 }
 0x20a   : > { %v2479_v15 = vpop.f32.mrf.mxu0  ;;  %v14024_v36 = vor.u32 %v11923_v31, %v9361_v2  ;;  %v9457_v2 = vld [vmem:[%s18167_s18 + $0x298] sm:$0xf0] }
 0x20b   : > { %v2528_v19 = vpop.f32.mrf.mxu1  ;;  %3533 = vmatpush.bf16.msra.mxu1 %v9712_v62  ;;  %v9393_v62 = vld [vmem:[%s18167_s18 + $0x218] sm:$0xf0] }
 0x20c   : > { %v2529_v16 = vadd.f32 %v2528_v19, %v2479_v15  ;;  %v9704_v15 = vor.u32 %v12002_v6, %v9703_v57  ;;  %v9396_v31 = vor.u32 %v11931_v11, %v9393_v62  ;;  %v9623_v57 = vld [vmem:[%s18167_s18 + $0x320] sm:$0xf]  ;;  %v9679_v11 = vld [vmem:[%s18167_s18 + $0x390] sm:$0xf] }
 0x20d   : > { %v9687_v6 = vld [vmem:[%s18167_s18 + $0x3a0] sm:$0xf] }
 0x20e   : > { %v14000_v27 = vadd.f32 %v2529_v16, %v13696_v3  ;;  %v2055_v63 = vpop.f32.mrf.mxu2  ;;  %v2104_v37 = vpop.f32.mrf.mxu3  ;;  %v11986_v3 = vld [vmem:[%s18167_s18 + $0x344] sm:$0xf0]  ;;  %3069 = vmatpush.bf16.msrb.mxu2 %v9396_v31 }
 0x20f   : > { %v2105_v13 = vadd.f32 %v2104_v37, %v2055_v63  ;;  %v9640_v55 = vor.u32 %v11986_v3, %v9639_v12  ;;  %3534 = vmatpush.bf16.msra.mxu1 %v9704_v15  ;;  %v11947_v63 = vld [vmem:[%s18167_s18 + $0x294] sm:$0xf] }
 0x210   : > { %v9460_v3 = vor.u32 %v11947_v63, %v9457_v2  ;;  %v11996_v63 = vld [vmem:[%s18167_s18 + $0x394] sm:$0xf0] }
 0x211   : > { %v14020_v34 = vadd.f32 %v2105_v13, %v1626_v42  ;;  %3485 = vmatpush.bf16.msra.mxu0 %v9640_v55  ;;  %v18260_v42 = vld [vmem:[#allocation13_spill] sm:$0xff]  ;;  %v11982_v55 = vld [vmem:[%s18167_s18 + $0x324] sm:$0xf0] }
 0x212   : > { %v2482_v19 = vpop.f32.mrf.mxu0  ;;  %v1628_v13 = vadd.f32 %v13822_v23, %v18260_v42  ;;  %v9624_v15 = vor.u32 %v11982_v55, %v9623_v57  ;;  %3118 = vmatpush.bf16.msrb.mxu3 %v9460_v3  ;;  %v11926_v42 = vld [vmem:[%s13748_s28 + $0x64] sm:$0xf0]  ;;  %v1630_v3 = vadd.f32 %v13822_v23, %v13671_v48  ;;  %v9607_v55 = vld [vmem:[%s18167_s18 + $0x300] sm:$0xf] }
 0x213   : > { %v2531_v16 = vpop.f32.mrf.mxu1  ;;  %2574 = vmatmul.bf16.gmra.mxu2 %v13479_v26  ;;  %2623 = vmatmul.bf16.gmra.mxu3 %v13481_v38  ;;  %v12000_v26 = vld [vmem:[%s18167_s18 + $0x3b4] sm:$0xf0] }
 0x214   : > { %v2532_v47 = vadd.f32 %v2531_v16, %v2482_v19  ;;  %v9696_v37 = vor.u32 %v12000_v26, %v9695_v43  ;;  %v11998_v19 = vld [vmem:[%s18167_s18 + $0x3a4] sm:$0xf0]  ;;  %v9615_v43 = vld [vmem:[%s18167_s18 + $0x310] sm:$0xf]  ;;  %v11980_v26 = vld [vmem:[%s18167_s18 + $0x314] sm:$0xf0] }
 0x215   : > { %2998 = vmatmul.bf16.gmra.mxu0 %v14022_v58  ;;  %v9616_v62 = vor.u32 %v11980_v26, %v9615_v43 }
 0x216   : > { %v14041_v38 = vadd.f32 %v2532_v47, %v13711_v7  ;;  %3047 = vmatmul.bf16.gmra.mxu1 %v14024_v36  ;;  %v2058_v39 = vpop.f32.mrf.mxu2  ;;  %v2107_v7 = vpop.f32.mrf.mxu3  ;;  %3486 = vmatpush.bf16.msra.mxu0 %v9632_v45  ;;  %v9688_v47 = vor.u32 %v11998_v19, %v9687_v6  ;;  %v9671_v6 = vld [vmem:[%s18167_s18 + $0x380] sm:$0xf]  ;;  %v11994_v19 = vld [vmem:[%s18167_s18 + $0x384] sm:$0xf0] }
 0x217   : > { %v2108_v12 = vadd.f32 %v2107_v7, %v2058_v39  ;;  %3535 = vmatpush.bf16.msra.mxu1 %v9696_v37  ;;  %v9367_v39 = vld [vmem:[%s13748_s28 + $0x60] sm:$0xf]  ;;  %v9680_v7 = vor.u32 %v11996_v63, %v9679_v11 }
 0x218   : > { %v18261_v11 = vld [vmem:[#allocation11_spill] sm:$0xff] }
 0x219   : > { %v14071_v16 = vadd.f32 %v2108_v12, %v1628_v13  ;;  %v11925_v13 = vld [vmem:[%s13748_s28 + $0x64] sm:$0xf]  ;;  %v9369_v12 = vld [vmem:[%s13748_s28 + $0x68] sm:$0xf0] }
 0x21a   : > { %v2484_v30 = vpop.f32.mrf.mxu0  ;;  %3487 = vmatpush.bf16.msra.mxu0 %v9624_v15 }
 0x21b   : > { %v2533_v20 = vpop.f32.mrf.mxu1  ;;  %3536 = vmatpush.bf16.msra.mxu1 %v9688_v47  ;;  %v14108_v47 = vor.u32 %v11926_v42, %v9367_v39  ;;  %v11929_v39 = vld [vmem:[%s18167_s18 + $0x204] sm:$0xf] }
 0x21c   : > { %v2534_v45 = vadd.f32 %v2533_v20, %v2484_v30  ;;  %v14110_v30 = vor.u32 %v11925_v13, %v9369_v12  ;;  %v9672_v20 = vor.u32 %v11994_v19, %v9671_v6  ;;  %v9449_v13 = vld [vmem:[%s18167_s18 + $0x288] sm:$0xf0]  ;;  %v1632_v12 = vadd.f32 %v13822_v23, %v13698_v40 }
 0x21e   : > { %v14086_v37 = vadd.f32 %v2534_v45, %v13742_v9  ;;  %v2060_v31 = vpop.f32.mrf.mxu2  ;;  %v2109_v2 = vpop.f32.mrf.mxu3  ;;  %3488 = vmatpush.bf16.msra.mxu0 %v9616_v62  ;;  %v11978_v9 = vld [vmem:[%s18167_s18 + $0x304] sm:$0xf0] }
 0x21f   : > { %v2110_v57 = vadd.f32 %v2109_v2, %v2060_v31  ;;  %3537 = vmatpush.bf16.msra.mxu1 %v9680_v7  ;;  %v9608_v15 = vor.u32 %v11978_v9, %v9607_v55  ;;  %v18262_v62 = vld [vmem:[#allocation12_spill] sm:$0xff]  ;;  %v11945_v31 = vld [vmem:[%s18167_s18 + $0x284] sm:$0xf] }
 0x220   : > { %v9385_v7 = vld [vmem:[%s18167_s18 + $0x208] sm:$0xf0] }
 0x221   : > { %v14106_v48 = vadd.f32 %v2110_v57, %v1630_v3  ;;  %v9388_v42 = vor.u32 %v11929_v39, %v9385_v7  ;;  %v9452_v57 = vor.u32 %v11945_v31, %v9449_v13  ;;  %v18263_v39 = vld [vmem:[#allocation18_spill] sm:$0xff] }
 0x222   : > { %v2487_v45 = vpop.f32.mrf.mxu0  ;;  %3489 = vmatpush.bf16.msra.mxu0 %v9608_v15  ;;  %v1634_v40 = vadd.f32 %v13822_v23, %v18263_v39 }
 0x223   : > { %v2536_v43 = vpop.f32.mrf.mxu1  ;;  %2579 = vmatmul.bf16.gmra.mxu2 %v18261_v11  ;;  %2628 = vmatmul.bf16.gmra.mxu3 %v18262_v62  ;;  %v11927_v11 = vld [vmem:[%s13748_s28 + $0x74] sm:$0xf]  ;;  %v9377_v62 = vld [vmem:[%s13748_s28 + $0x78] sm:$0xf0] }
 0x224   : > { %v2537_v26 = vadd.f32 %v2536_v43, %v2487_v45  ;;  %3538 = vmatpush.bf16.msra.mxu1 %v9672_v20  ;;  %3070 = vmatpush.bf16.msrb.mxu2 %v9388_v42  ;;  %v9375_v20 = vld [vmem:[%s13748_s28 + $0x70] sm:$0xf] }
 0x225   : > { %3003 = vmatmul.bf16.gmra.mxu0 %v14108_v47  ;;  %3119 = vmatpush.bf16.msrb.mxu3 %v9452_v57 }
 0x226   : > { %v14115_v63 = vadd.f32 %v2537_v26, %v13763_v1  ;;  %3052 = vmatmul.bf16.gmra.mxu1 %v14110_v30  ;;  %v2063_v2 = vpop.f32.mrf.mxu2  ;;  %v2112_v1 = vpop.f32.mrf.mxu3  ;;  %v11928_v26 = vld [vmem:[%s13748_s28 + $0x74] sm:$0xf0]  ;;  %s17300_s28 = scalar_lea.vmem %s18161_s12, %s12741_s23 }
 0x227   : > { %v2113_v3 = vadd.f32 %v2112_v1, %v2063_v2  ;;  %v14146_v2 = vor.u32 %v11928_v26, %v9375_v20  ;;  %v14148_v1 = vor.u32 %v11927_v11, %v9377_v62  ;;  %v18267_v26 = vld [vmem:[#allocation19_spill] sm:$0xff] }
 0x228   : > { %v1636_v11 = vadd.f32 %v13822_v23, %v18267_v26 }
 0x229   : > { %v14133_v55 = vadd.f32 %v2113_v3, %v1632_v12  ;;  %18264 = vst [vmem:[#allocation13_spill] sm:$0xff] %v14148_v1  ;;  %v18265_v12 = vld [vmem:[#allocation14_spill] sm:$0xff]  ;;  %v18266_v3 = vld [vmem:[#allocation15_spill] sm:$0xff] }
 0x22a   : > { %v2489_v9 = vpop.f32.mrf.mxu0 }
 0x22b   : > { %v2538_v6 = vpop.f32.mrf.mxu1 }
 0x22c   : > { %v2539_v15 = vadd.f32 %v2538_v6, %v2489_v9  ;;  %v11991_v9 = vld [vmem:[%s18167_s18 + $0x374] sm:$0xf]  ;;  %v9665_v6 = vld [vmem:[%s18167_s18 + $0x378] sm:$0xf0] }
 0x22e   : > { %v14136_v19 = vadd.f32 %v2539_v15, %v13795_v50  ;;  %v2065_v45 = vpop.f32.mrf.mxu2  ;;  %v2114_v43 = vpop.f32.mrf.mxu3  ;;  %v12007_v15 = vld [vmem:[%s18167_s18 + $0x3f4] sm:$0xf] }
 0x22f   : > { %v2115_v7 = vadd.f32 %v2114_v43, %v2065_v45  ;;  %v9668_v45 = vor.u32 %v11991_v9, %v9665_v6  ;;  %v9729_v43 = vld [vmem:[%s18167_s18 + $0x3f8] sm:$0xf0]  ;;  %v11962_v6 = vld [vmem:[%s14177_s3 + $0x4] sm:$0xf0] }
 0x230   : > { %v9732_v39 = vor.u32 %v12007_v15, %v9729_v43  ;;  %v11961_v15 = vld [vmem:[%s14177_s3 + $0x4] sm:$0xf] }
 0x231   : > { %v14144_v31 = vadd.f32 %v2115_v7, %v1634_v40  ;;  %3580 = vmatpush.bf16.msra.mxu2 %v9668_v45 }
 0x232   : > { %v2492_v42 = vpop.f32.mrf.mxu0  ;;  %3629 = vmatpush.bf16.msra.mxu3 %v9732_v39 }
 0x233   : > { %v2541_v13 = vpop.f32.mrf.mxu1  ;;  %2584 = vmatmul.bf16.gmra.mxu2 %v18265_v12  ;;  %2633 = vmatmul.bf16.gmra.mxu3 %v18266_v3  ;;  %v9543_v12 = vld [vmem:[%s14177_s3] sm:$0xf] }
 0x234   : > { %v2542_v50 = vadd.f32 %v2541_v13, %v2492_v42  ;;  %v14190_v26 = vor.u32 %v11962_v6, %v9543_v12  ;;  %v9657_v12 = vld [vmem:[%s18167_s18 + $0x368] sm:$0xf0] }
 0x235   : > { %3008 = vmatmul.bf16.gmra.mxu0 %v14146_v2 }
 0x236   : > { %v14153_v57 = vadd.f32 %v2542_v50, %v13811_v22  ;;  %3057 = vmatmul.bf16.gmra.mxu1 %v14148_v1  ;;  %v2068_v20 = vpop.f32.mrf.mxu2  ;;  %v2117_v22 = vpop.f32.mrf.mxu3  ;;  %18269 = vst [vmem:[#allocation11_spill] sm:$0xff] %v14190_v26  ;;  %v9553_v1 = vld [vmem:[%s14177_s3 + $0x18] sm:$0xf0] }
 0x237   : > { %v2118_v62 = vadd.f32 %v2117_v22, %v2068_v20  ;;  %v9545_v20 = vld [vmem:[%s14177_s3 + $0x8] sm:$0xf0]  ;;  %v1638_v22 = vadd.f32 %v13822_v23, %v13769_v51  ;;  %v11989_v51 = vld [vmem:[%s18167_s18 + $0x364] sm:$0xf] }
 0x238   : > { %v9660_v6 = vor.u32 %v11989_v51, %v9657_v12  ;;  %v9551_v51 = vld [vmem:[%s14177_s3 + $0x10] sm:$0xf] }
 0x239   : > { %v14171_v40 = vadd.f32 %v2118_v62, %v1636_v11  ;;  %v14192_v11 = vor.u32 %v11961_v15, %v9545_v20  ;;  %v9721_v15 = vld [vmem:[%s18167_s18 + $0x3e8] sm:$0xf0]  ;;  %v1640_v20 = vadd.f32 %v13822_v23, %v13797_v54  ;;  %v1642_v54 = vadd.f32 %v13822_v23, %v13817_v35  ;;  %v11987_v35 = vld [vmem:[%s18167_s18 + $0x354] sm:$0xf]  ;;  %v9649_v23 = vld [vmem:[%s18167_s18 + $0x358] sm:$0xf0] }
 0x23a   : > { %v2494_v7 = vpop.f32.mrf.mxu0  ;;  %3581 = vmatpush.bf16.msra.mxu2 %v9660_v6 }
 0x23b   : > { %v2543_v42 = vpop.f32.mrf.mxu1  ;;  %18270 = vst [vmem:[#allocation12_spill] sm:$0xff] %v14192_v11 }
 0x23c   : > { %v2544_v13 = vadd.f32 %v2543_v42, %v2494_v7  ;;  %v18271_v7 = vld [vmem:[#allocation16_spill] sm:$0xff]  ;;  %v18272_v42 = vld [vmem:[#allocation17_spill] sm:$0xff] }
 0x23e   : > { %v14180_v50 = vadd.f32 %v2544_v13, %v13845_v21  ;;  %v2070_v3 = vpop.f32.mrf.mxu2  ;;  %v2119_v9 = vpop.f32.mrf.mxu3 }
 0x23f   : > { %v2120_v45 = vadd.f32 %v2119_v9, %v2070_v3  ;;  %v12005_v3 = vld [vmem:[%s18167_s18 + $0x3e4] sm:$0xf] }
 0x241   : > { %v14188_v43 = vadd.f32 %v2120_v45, %v1638_v22  ;;  %v9724_v45 = vor.u32 %v12005_v3, %v9721_v15 }
 0x242   : > { %v2974_v62 = vpop.f32.mrf.mxu0 }
 0x243   : > { %v3023_v39 = vpop.f32.mrf.mxu1  ;;  %2589 = vmatmul.bf16.gmra.mxu2 %v18271_v7  ;;  %2638 = vmatmul.bf16.gmra.mxu3 %v18272_v42 }
 0x244   : > { %v3024_v21 = vadd.f32 %v3023_v39, %v2974_v62  ;;  %3630 = vmatpush.bf16.msra.mxu3 %v9724_v45  ;;  %v18276_v45 = vld [vmem:[#allocation21_spill] sm:$0xff] }
 0x245   : > { %3490 = vmatmul.bf16.vlgmr.msra.gmra.mxu0 %v14190_v26  ;;  %v11964_v26 = vld [vmem:[%s14177_s3 + $0x14] sm:$0xf0] }
 0x246   : > { %v14197_v13 = vadd.f32 %v3024_v21, %v13776_v8  ;;  %3539 = vmatmul.bf16.vlgmr.msra.gmra.mxu1 %v14192_v11  ;;  %v2073_v9 = vpop.f32.mrf.mxu2  ;;  %v2122_v8 = vpop.f32.mrf.mxu3 }
 0x247   : > { %v2123_v22 = vadd.f32 %v2122_v8, %v2073_v9  ;;  %v14228_v8 = vor.u32 %v11964_v26, %v9551_v51 }
 0x248   : > { %18273 = vst [vmem:[#allocation18_spill] sm:$0xff] %v14197_v13  ;;  %v11963_v13 = vld [vmem:[%s14177_s3 + $0x14] sm:$0xf] }
 0x249   : > { %v14215_v62 = vadd.f32 %v2123_v22, %v1640_v20  ;;  %v14230_v6 = vor.u32 %v11963_v13, %v9553_v1  ;;  %v18275_v22 = vld [vmem:[#allocation20_spill] sm:$0xff]  ;;  %v12003_v1 = vld [vmem:[%s18167_s18 + $0x3d4] sm:$0xf]  ;;  %v9713_v13 = vld [vmem:[%s18167_s18 + $0x3d8] sm:$0xf0] }
 0x24a   : > { %v2976_v39 = vpop.f32.mrf.mxu0 }
 0x24b   : > { %v3025_v21 = vpop.f32.mrf.mxu1  ;;  %18274 = vst [vmem:[#allocation14_spill] sm:$0xff] %v14230_v6 }
 0x24c   : > { %v3026_v7 = vadd.f32 %v3025_v21, %v2976_v39 }
 0x24e   : > { %v14218_v42 = vadd.f32 %v3026_v7, %v13802_v28  ;;  %v2075_v12 = vpop.f32.mrf.mxu2  ;;  %v2124_v11 = vpop.f32.mrf.mxu3  ;;  %v9716_v7 = vor.u32 %v12003_v1, %v9713_v13 }
 0x24f   : > { %v2125_v3 = vadd.f32 %v2124_v11, %v2075_v12  ;;  %v9652_v11 = vor.u32 %v11987_v35, %v9649_v23  ;;  %v11965_v35 = vld [vmem:[%s14177_s3 + $0x24] sm:$0xf]  ;;  %v9561_v23 = vld [vmem:[%s14177_s3 + $0x28] sm:$0xf0] }
 0x250   : > { %3631 = vmatpush.bf16.msra.mxu3 %v9716_v7  ;;  %v9705_v7 = vld [vmem:[%s18167_s18 + $0x3c8] sm:$0xf0] }
 0x251   : > { %v14226_v9 = vadd.f32 %v2125_v3, %v1642_v54  ;;  %3582 = vmatpush.bf16.msra.mxu2 %v9652_v11 }
 0x252   : > { %v2979_v15 = vpop.f32.mrf.mxu0 }
 0x253   : > { %v3028_v20 = vpop.f32.mrf.mxu1  ;;  %3071 = vmatmul.bf16.vlgmr.msrb.gmra.mxu2 %v18275_v22  ;;  %3120 = vmatmul.bf16.vlgmr.msrb.gmra.mxu3 %v18276_v45  ;;  %v11966_v45 = vld [vmem:[%s14177_s3 + $0x24] sm:$0xf0] }
 0x254   : > { %v3029_v28 = vadd.f32 %v3028_v20, %v2979_v15  ;;  %v9559_v20 = vld [vmem:[%s14177_s3 + $0x20] sm:$0xf] }
 0x255   : > { %3495 = vmatmul.bf16.gmra.mxu0 %v14228_v8 }
 0x256   : > { %v14235_v39 = vadd.f32 %v3029_v28, %v13826_v53  ;;  %3544 = vmatmul.bf16.gmra.mxu1 %v14230_v6  ;;  %v2555_v26 = vpop.f32.mrf.mxu2  ;;  %v2604_v53 = vpop.f32.mrf.mxu3 }
 0x257   : > { %v2605_v21 = vadd.f32 %v2604_v53, %v2555_v26  ;;  %v14264_v26 = vor.u32 %v11966_v45, %v9559_v20 }
 0x259   : > { %v14252_v51 = vadd.f32 %v2605_v21, %v13847_v10  ;;  %v14266_v10 = vor.u32 %v11965_v35, %v9561_v23  ;;  %v9567_v35 = vld [vmem:[%s14177_s3 + $0x30] sm:$0xf] }
 0x25a   : > { %v2981_v12 = vpop.f32.mrf.mxu0 }
 0x25b   : > { %v3030_v54 = vpop.f32.mrf.mxu1 }
 0x25c   : > { %v3031_v3 = vadd.f32 %v3030_v54, %v2981_v12 }
 0x25e   : > { %v14255_v15 = vadd.f32 %v3031_v3, %v13850_v4  ;;  %v2557_v28 = vpop.f32.mrf.mxu2  ;;  %v2606_v22 = vpop.f32.mrf.mxu3 }
 0x25f   : > { %v2607_v6 = vadd.f32 %v2606_v22, %v2557_v28 }
 0x261   : > { %v14262_v1 = vadd.f32 %v2607_v6, %v13858_v14  ;;  %v11985_v14 = vld [vmem:[%s18167_s18 + $0x344] sm:$0xf]  ;;  %v9641_v6 = vld [vmem:[%s18167_s18 + $0x348] sm:$0xf0] }
 0x262   : > { %v2984_v53 = vpop.f32.mrf.mxu0  ;;  %v9644_v21 = vor.u32 %v11985_v14, %v9641_v6  ;;  %v9569_v14 = vld [vmem:[%s14177_s3 + $0x38] sm:$0xf0] }
 0x263   : > { %v3033_v11 = vpop.f32.mrf.mxu1  ;;  %3076 = vmatmul.bf16.gmra.mxu2 %v13813_v52  ;;  %3125 = vmatmul.bf16.gmra.mxu3 %v13815_v44  ;;  %v12001_v52 = vld [vmem:[%s18167_s18 + $0x3c4] sm:$0xf] }
 0x264   : > { %v3034_v13 = vadd.f32 %v3033_v11, %v2984_v53  ;;  %v9708_v54 = vor.u32 %v12001_v52, %v9705_v7  ;;  %3583 = vmatpush.bf16.msra.mxu2 %v9644_v21  ;;  %v11968_v11 = vld [vmem:[%s14177_s3 + $0x34] sm:$0xf0] }
 0x265   : > { %3500 = vmatmul.bf16.gmra.mxu0 %v14264_v26 }
 0x266   : > { %v14271_v4 = vadd.f32 %v3034_v13, %v13867_v32  ;;  %3549 = vmatmul.bf16.gmra.mxu1 %v14266_v10  ;;  %v2560_v44 = vpop.f32.mrf.mxu2  ;;  %v2609_v32 = vpop.f32.mrf.mxu3  ;;  %3632 = vmatpush.bf16.msra.mxu3 %v9708_v54  ;;  %v11967_v13 = vld [vmem:[%s14177_s3 + $0x34] sm:$0xf] }
 0x267   : > { %v2610_v12 = vadd.f32 %v2609_v32, %v2560_v44  ;;  %v14300_v44 = vor.u32 %v11968_v11, %v9567_v35 }
 0x269   : > { %v14288_v3 = vadd.f32 %v2610_v12, %v13885_v59  ;;  %v14302_v59 = vor.u32 %v11967_v13, %v9569_v14  ;;  %v9633_v12 = vld [vmem:[%s18167_s18 + $0x338] sm:$0xf0]  ;;  %v9575_v14 = vld [vmem:[%s14177_s3 + $0x40] sm:$0xf] }
 0x26a   : > { %v2986_v20 = vpop.f32.mrf.mxu0 }
 0x26b   : > { %v3035_v28 = vpop.f32.mrf.mxu1 }
 0x26c   : > { %v3036_v22 = vadd.f32 %v3035_v28, %v2986_v20  ;;  %v9697_v20 = vld [vmem:[%s18167_s18 + $0x3b8] sm:$0xf0] }
 0x26e   : > { %v14291_v45 = vadd.f32 %v3036_v22, %v13888_v5  ;;  %v2562_v23 = vpop.f32.mrf.mxu2  ;;  %v2611_v53 = vpop.f32.mrf.mxu3 }
 0x26f   : > { %v2612_v6 = vadd.f32 %v2611_v53, %v2562_v23 }
 0x271   : > { %v14298_v52 = vadd.f32 %v2612_v6, %v13896_v56  ;;  %v11983_v56 = vld [vmem:[%s18167_s18 + $0x334] sm:$0xf] }
 0x272   : > { %v2989_v32 = vpop.f32.mrf.mxu0  ;;  %v9636_v54 = vor.u32 %v11983_v56, %v9633_v12  ;;  %v9577_v56 = vld [vmem:[%s14177_s3 + $0x48] sm:$0xf0] }
 0x273   : > { %v3038_v21 = vpop.f32.mrf.mxu1  ;;  %3081 = vmatmul.bf16.gmra.mxu2 %v13860_v24  ;;  %3130 = vmatmul.bf16.gmra.mxu3 %v13862_v0  ;;  %v11999_v24 = vld [vmem:[%s18167_s18 + $0x3b4] sm:$0xf] }
 0x274   : > { %v3039_v7 = vadd.f32 %v3038_v21, %v2989_v32  ;;  %v9700_v22 = vor.u32 %v11999_v24, %v9697_v20  ;;  %3584 = vmatpush.bf16.msra.mxu2 %v9636_v54  ;;  %v11970_v21 = vld [vmem:[%s14177_s3 + $0x44] sm:$0xf0] }
 0x275   : > { %3505 = vmatmul.bf16.gmra.mxu0 %v14300_v44 }
 0x276   : > { %v14307_v5 = vadd.f32 %v3039_v7, %v13905_v18  ;;  %3554 = vmatmul.bf16.gmra.mxu1 %v14302_v59  ;;  %v2565_v0 = vpop.f32.mrf.mxu2  ;;  %v2614_v18 = vpop.f32.mrf.mxu3  ;;  %3633 = vmatpush.bf16.msra.mxu3 %v9700_v22  ;;  %v11969_v7 = vld [vmem:[%s14177_s3 + $0x44] sm:$0xf]  ;;  %v9951_v22 = vld [vmem:[%s18167_s18 + $0x4f0] sm:$0xf] }
 0x277   : > { %v2615_v28 = vadd.f32 %v2614_v18, %v2565_v0  ;;  %v14336_v0 = vor.u32 %v11970_v21, %v9575_v14  ;;  %v9689_v21 = vld [vmem:[%s18167_s18 + $0x3a8] sm:$0xf0] }
 0x279   : > { %v14324_v35 = vadd.f32 %v2615_v28, %v13923_v60  ;;  %v14338_v60 = vor.u32 %v11969_v7, %v9577_v56 }
 0x27a   : > { %v2991_v23 = vpop.f32.mrf.mxu0 }
 0x27b   : > { %v3040_v53 = vpop.f32.mrf.mxu1 }
 0x27c   : > { %v3041_v11 = vadd.f32 %v3040_v53, %v2991_v23  ;;  %v12056_v23 = vld [vmem:[%s18167_s18 + $0x4f4] sm:$0xf0]  ;;  %v9625_v53 = vld [vmem:[%s18167_s18 + $0x328] sm:$0xf0] }
 0x27d   : > { %v9952_v14 = vor.u32 %v12056_v23, %v9951_v22 }
 0x27e   : > { %v14327_v13 = vadd.f32 %v3041_v11, %v13926_v49  ;;  %v2567_v6 = vpop.f32.mrf.mxu2  ;;  %v2616_v32 = vpop.f32.mrf.mxu3  ;;  %v9887_v49 = vld [vmem:[%s18167_s18 + $0x470] sm:$0xf]  ;;  %v11997_v11 = vld [vmem:[%s18167_s18 + $0x3a4] sm:$0xf] }
 0x27f   : > { %v2617_v12 = vadd.f32 %v2616_v32, %v2567_v6  ;;  %v9692_v56 = vor.u32 %v11997_v11, %v9689_v21  ;;  %4048 = vmatpush.bf16.msrb.mxu1 %v9952_v14  ;;  %v12036_v11 = vld [vmem:[%s18167_s18 + $0x454] sm:$0xf0] }
 0x281   : > { %v14334_v24 = vadd.f32 %v2617_v12, %v13934_v17  ;;  %v12040_v17 = vld [vmem:[%s18167_s18 + $0x474] sm:$0xf0]  ;;  %v9879_v12 = vld [vmem:[%s18167_s18 + $0x460] sm:$0xf]  ;;  %3634 = vmatpush.bf16.msra.mxu3 %v9692_v56 }
 0x282   : > { %v2994_v18 = vpop.f32.mrf.mxu0  ;;  %v9888_v28 = vor.u32 %v12040_v17, %v9887_v49  ;;  %v12054_v49 = vld [vmem:[%s18167_s18 + $0x4e4] sm:$0xf0] }
 0x283   : > { %v3043_v54 = vpop.f32.mrf.mxu1  ;;  %3086 = vmatmul.bf16.gmra.mxu2 %v13898_v46  ;;  %3135 = vmatmul.bf16.gmra.mxu3 %v13900_v29  ;;  %v11981_v29 = vld [vmem:[%s18167_s18 + $0x324] sm:$0xf] }
 0x284   : > { %v3044_v20 = vadd.f32 %v3043_v54, %v2994_v18  ;;  %v9628_v32 = vor.u32 %v11981_v29, %v9625_v53  ;;  %3999 = vmatpush.bf16.msrb.mxu0 %v9888_v28  ;;  %v12038_v18 = vld [vmem:[%s18167_s18 + $0x464] sm:$0xf0]  ;;  %v9943_v54 = vld [vmem:[%s18167_s18 + $0x4e0] sm:$0xf]  ;;  %v9871_v53 = vld [vmem:[%s18167_s18 + $0x450] sm:$0xf] }
 0x285   : > { %3510 = vmatmul.bf16.gmra.mxu0 %v14336_v0  ;;  %v9944_v28 = vor.u32 %v12054_v49, %v9943_v54  ;;  %v9872_v14 = vor.u32 %v12036_v11, %v9871_v53  ;;  %v9585_v54 = vld [vmem:[%s14177_s3 + $0x58] sm:$0xf0]  ;;  %v9863_v49 = vld [vmem:[%s18167_s18 + $0x440] sm:$0xf] }
 0x286   : > { %v14355_v46 = vadd.f32 %v3044_v20, %v13955_v61  ;;  %3559 = vmatmul.bf16.gmra.mxu1 %v14338_v60  ;;  %v2570_v6 = vpop.f32.mrf.mxu2  ;;  %v2619_v61 = vpop.f32.mrf.mxu3  ;;  %3585 = vmatpush.bf16.msra.mxu2 %v9628_v32  ;;  %v9880_v20 = vor.u32 %v12038_v18, %v9879_v12  ;;  %v9583_v32 = vld [vmem:[%s14177_s3 + $0x50] sm:$0xf]  ;;  %v11972_v12 = vld [vmem:[%s14177_s3 + $0x54] sm:$0xf0]  ;;  %v11971_v18 = vld [vmem:[%s14177_s3 + $0x54] sm:$0xf] }
 0x287   : > { %v2620_v7 = vadd.f32 %v2619_v61, %v2570_v6  ;;  %4049 = vmatpush.bf16.msrb.mxu1 %v9944_v28  ;;  %v12052_v6 = vld [vmem:[%s18167_s18 + $0x4d4] sm:$0xf0]  ;;  %v12034_v28 = vld [vmem:[%s18167_s18 + $0x444] sm:$0xf0]  ;;  %v14420_v53 = vor.u32 %v11972_v12, %v9583_v32  ;;  %v14422_v11 = vor.u32 %v11971_v18, %v9585_v54  ;;  %v11979_v12 = vld [vmem:[%s18167_s18 + $0x314] sm:$0xf] }
 0x288   : > { %4000 = vmatpush.bf16.msrb.mxu0 %v9880_v20  ;;  %v9617_v18 = vld [vmem:[%s18167_s18 + $0x318] sm:$0xf0]  ;;  %v11995_v54 = vld [vmem:[%s18167_s18 + $0x394] sm:$0xf] }
 0x289   : > { %v14384_v17 = vadd.f32 %v2620_v7, %v13985_v41  ;;  %v9935_v41 = vld [vmem:[%s18167_s18 + $0x4d0] sm:$0xf] }
 0x28a   : > { %v2996_v22 = vpop.f32.mrf.mxu0  ;;  %v9936_v21 = vor.u32 %v12052_v6, %v9935_v41 }
 0x28b   : > { %v3045_v23 = vpop.f32.mrf.mxu1 }
 0x28c   : > { %v3046_v29 = vadd.f32 %v3045_v23, %v2996_v22  ;;  %4001 = vmatpush.bf16.msrb.mxu0 %v9872_v14  ;;  %4050 = vmatpush.bf16.msrb.mxu1 %v9936_v21  ;;  %v9864_v22 = vor.u32 %v12034_v28, %v9863_v49  ;;  %v12050_v23 = vld [vmem:[%s18167_s18 + $0x4c4] sm:$0xf0]  ;;  %v9620_v28 = vor.u32 %v11979_v12, %v9617_v18  ;;  %v9839_v18 = vld [vmem:[%s18167_s18 + $0x410] sm:$0xf] }
 0x28e   : > { %v14399_v61 = vadd.f32 %v3046_v29, %v14000_v27  ;;  %v2572_v7 = vpop.f32.mrf.mxu2  ;;  %v2621_v56 = vpop.f32.mrf.mxu3  ;;  %v9927_v27 = vld [vmem:[%s18167_s18 + $0x4c0] sm:$0xf]  ;;  %3586 = vmatpush.bf16.msra.mxu2 %v9620_v28 }
 0x28f   : > { %v2622_v20 = vadd.f32 %v2621_v56, %v2572_v7  ;;  %v9928_v41 = vor.u32 %v12050_v23, %v9927_v27  ;;  %v9855_v7 = vld [vmem:[%s18167_s18 + $0x430] sm:$0xf]  ;;  %v9681_v27 = vld [vmem:[%s18167_s18 + $0x398] sm:$0xf0]  ;;  %v9591_v28 = vld [vmem:[%s14177_s3 + $0x60] sm:$0xf] }
 0x290   : > { %4002 = vmatpush.bf16.msrb.mxu0 %v9864_v22  ;;  %v9919_v56 = vld [vmem:[%s18167_s18 + $0x4b0] sm:$0xf]  ;;  %v9684_v23 = vor.u32 %v11995_v54, %v9681_v27  ;;  %v12028_v54 = vld [vmem:[%s18167_s18 + $0x414] sm:$0xf0] }
 0x291   : > { %v14418_v29 = vadd.f32 %v2622_v20, %v14020_v34  ;;  %v12032_v34 = vld [vmem:[%s18167_s18 + $0x434] sm:$0xf0]  ;;  %4051 = vmatpush.bf16.msrb.mxu1 %v9928_v41  ;;  %v9847_v41 = vld [vmem:[%s18167_s18 + $0x420] sm:$0xf] }
 0x292   : > { %v2999_v14 = vpop.f32.mrf.mxu0  ;;  %v9856_v32 = vor.u32 %v12032_v34, %v9855_v7  ;;  %v12046_v7 = vld [vmem:[%s18167_s18 + $0x4a4] sm:$0xf0]  ;;  %3635 = vmatpush.bf16.msra.mxu3 %v9684_v23 }
 0x293   : > { %v3048_v6 = vpop.f32.mrf.mxu1  ;;  %3091 = vmatmul.bf16.gmra.mxu2 %v13936_v25  ;;  %3140 = vmatmul.bf16.gmra.mxu3 %v13938_v33  ;;  %v12048_v25 = vld [vmem:[%s18167_s18 + $0x4b4] sm:$0xf0] }
 0x294   : > { %v3049_v21 = vadd.f32 %v3048_v6, %v2999_v14  ;;  %v9920_v20 = vor.u32 %v12048_v25, %v9919_v56  ;;  %4003 = vmatpush.bf16.msrb.mxu0 %v9856_v32  ;;  %v12030_v14 = vld [vmem:[%s18167_s18 + $0x424] sm:$0xf0]  ;;  %v9911_v6 = vld [vmem:[%s18167_s18 + $0x4a0] sm:$0xf] }
 0x295   : > { %3515 = vmatmul.bf16.gmra.mxu0 %v14420_v53  ;;  %v9912_v32 = vor.u32 %v12046_v7, %v9911_v6  ;;  %v9593_v6 = vld [vmem:[%s14177_s3 + $0x68] sm:$0xf0]  ;;  %v9831_v7 = vld [vmem:[%s18167_s18 + $0x400] sm:$0xf] }
 0x296   : > { %v14439_v33 = vadd.f32 %v3049_v21, %v14041_v38  ;;  %3564 = vmatmul.bf16.gmra.mxu1 %v14422_v11  ;;  %v2575_v49 = vpop.f32.mrf.mxu2  ;;  %v2624_v38 = vpop.f32.mrf.mxu3  ;;  %v9848_v21 = vor.u32 %v12030_v14, %v9847_v41  ;;  %v11974_v41 = vld [vmem:[%s14177_s3 + $0x64] sm:$0xf0]  ;;  %v11973_v14 = vld [vmem:[%s14177_s3 + $0x64] sm:$0xf] }
 0x297   : > { %v2625_v22 = vadd.f32 %v2624_v38, %v2575_v49  ;;  %4052 = vmatpush.bf16.msrb.mxu1 %v9920_v20  ;;  %v9840_v20 = vor.u32 %v12028_v54, %v9839_v18  ;;  %v12044_v49 = vld [vmem:[%s18167_s18 + $0x494] sm:$0xf0]  ;;  %v14504_v18 = vor.u32 %v11974_v41, %v9591_v28  ;;  %v14506_v54 = vor.u32 %v11973_v14, %v9593_v6  ;;  %v9609_v28 = vld [vmem:[%s18167_s18 + $0x308] sm:$0xf0] }
 0x298   : > { %4004 = vmatpush.bf16.msrb.mxu0 %v9848_v21  ;;  %v9673_v41 = vld [vmem:[%s18167_s18 + $0x388] sm:$0xf0] }
 0x299   : > { %v14468_v34 = vadd.f32 %v2625_v22, %v14071_v16  ;;  %v9903_v16 = vld [vmem:[%s18167_s18 + $0x490] sm:$0xf] }
 0x29a   : > { %v3001_v56 = vpop.f32.mrf.mxu0  ;;  %v9904_v27 = vor.u32 %v12044_v49, %v9903_v16 }
 0x29b   : > { %v3050_v25 = vpop.f32.mrf.mxu1  ;;  %4053 = vmatpush.bf16.msrb.mxu1 %v9912_v32  ;;  %v12026_v32 = vld [vmem:[%s18167_s18 + $0x404] sm:$0xf0] }
 0x29c   : > { %v3051_v12 = vadd.f32 %v3050_v25, %v3001_v56  ;;  %4005 = vmatpush.bf16.msrb.mxu0 %v9840_v20  ;;  %v9832_v56 = vor.u32 %v12026_v32, %v9831_v7  ;;  %v12042_v25 = vld [vmem:[%s18167_s18 + $0x484] sm:$0xf0] }
 0x29e   : > { %v14483_v38 = vadd.f32 %v3051_v12, %v14086_v37  ;;  %v2577_v22 = vpop.f32.mrf.mxu2  ;;  %v2626_v23 = vpop.f32.mrf.mxu3  ;;  %v9895_v37 = vld [vmem:[%s18167_s18 + $0x480] sm:$0xf] }
 0x29f   : > { %v2627_v21 = vadd.f32 %v2626_v23, %v2577_v22  ;;  %4054 = vmatpush.bf16.msrb.mxu1 %v9904_v27  ;;  %v9896_v16 = vor.u32 %v12042_v25, %v9895_v37  ;;  %v9599_v25 = vld [vmem:[%s14177_s3 + $0x70] sm:$0xf] }
 0x2a0   : > { %4006 = vmatpush.bf16.msrb.mxu0 %v9832_v56 }
 0x2a1   : > { %v14502_v12 = vadd.f32 %v2627_v21, %v14106_v48  ;;  %v11977_v48 = vld [vmem:[%s18167_s18 + $0x304] sm:$0xf] }
 0x2a2   : > { %v3004_v20 = vpop.f32.mrf.mxu0  ;;  %v9612_v23 = vor.u32 %v11977_v48, %v9609_v28  ;;  %v9601_v48 = vld [vmem:[%s14177_s3 + $0x78] sm:$0xf0] }
 0x2a3   : > { %v3053_v49 = vpop.f32.mrf.mxu1  ;;  %3096 = vmatmul.bf16.gmra.mxu2 %v14022_v58  ;;  %3145 = vmatmul.bf16.gmra.mxu3 %v14024_v36  ;;  %v11993_v58 = vld [vmem:[%s18167_s18 + $0x384] sm:$0xf] }
 0x2a4   : > { %v3054_v22 = vadd.f32 %v3053_v49, %v3004_v20  ;;  %4055 = vmatpush.bf16.msrb.mxu1 %v9896_v16  ;;  %v9676_v6 = vor.u32 %v11993_v58, %v9673_v41  ;;  %3587 = vmatpush.bf16.msra.mxu2 %v9612_v23  ;;  %v11976_v49 = vld [vmem:[%s14177_s3 + $0x74] sm:$0xf0] }
 0x2a5   : > { %3520 = vmatmul.bf16.gmra.mxu0 %v14504_v18 }
 0x2a6   : > { %v14511_v27 = vadd.f32 %v3054_v22, %v14115_v63  ;;  %3569 = vmatmul.bf16.gmra.mxu1 %v14506_v54  ;;  %v2580_v36 = vpop.f32.mrf.mxu2  ;;  %v2629_v63 = vpop.f32.mrf.mxu3  ;;  %3636 = vmatpush.bf16.msra.mxu3 %v9676_v6  ;;  %v11975_v22 = vld [vmem:[%s14177_s3 + $0x74] sm:$0xf] }
 0x2a7   : > { %v2630_v14 = vadd.f32 %v2629_v63, %v2580_v36  ;;  %v14540_v36 = vor.u32 %v11976_v49, %v9599_v25 }
 0x2a9   : > { %v14528_v21 = vadd.f32 %v2630_v14, %v14133_v55  ;;  %v14542_v55 = vor.u32 %v11975_v22, %v9601_v48  ;;  %v9889_v14 = vld [vmem:[%s18167_s18 + $0x478] sm:$0xf0]  ;;  %v9767_v48 = vld [vmem:[%s14570_s26] sm:$0xf] }
 0x2aa   : > { %v3006_v7 = vpop.f32.mrf.mxu0 }
 0x2ab   : > { %v3055_v32 = vpop.f32.mrf.mxu1 }
 0x2ac   : > { %v3056_v37 = vadd.f32 %v3055_v32, %v3006_v7  ;;  %v9953_v7 = vld [vmem:[%s18167_s18 + $0x4f8] sm:$0xf0] }
 0x2ae   : > { %v14531_v56 = vadd.f32 %v3056_v37, %v14136_v19  ;;  %v2582_v16 = vpop.f32.mrf.mxu2  ;;  %v2631_v20 = vpop.f32.mrf.mxu3 }
 0x2af   : > { %v2632_v28 = vadd.f32 %v2631_v20, %v2582_v16 }
 0x2b1   : > { %v14538_v58 = vadd.f32 %v2632_v28, %v14144_v31  ;;  %v12039_v31 = vld [vmem:[%s18167_s18 + $0x474] sm:$0xf] }
 0x2b2   : > { %v3009_v63 = vpop.f32.mrf.mxu0  ;;  %v9892_v6 = vor.u32 %v12039_v31, %v9889_v14 }
 0x2b3   : > { %v3058_v23 = vpop.f32.mrf.mxu1  ;;  %3101 = vmatmul.bf16.gmra.mxu2 %v14108_v47  ;;  %3150 = vmatmul.bf16.gmra.mxu3 %v14110_v30  ;;  %v12055_v47 = vld [vmem:[%s18167_s18 + $0x4f4] sm:$0xf] }
 0x2b4   : > { %v3059_v41 = vadd.f32 %v3058_v23, %v3009_v63  ;;  %v9956_v37 = vor.u32 %v12055_v47, %v9953_v7  ;;  %4097 = vmatpush.bf16.msrb.mxu2 %v9892_v6  ;;  %v12010_v63 = vld [vmem:[%s14570_s26 + $0x4] sm:$0xf0]  ;;  %v12009_v23 = vld [vmem:[%s14570_s26 + $0x4] sm:$0xf] }
 0x2b5   : > { %3525 = vmatmul.bf16.gmra.mxu0 %v14540_v36  ;;  %v14582_v47 = vor.u32 %v12010_v63, %v9767_v48 }
 0x2b6   : > { %v14547_v19 = vadd.f32 %v3059_v41, %v14153_v57  ;;  %3574 = vmatmul.bf16.gmra.mxu1 %v14542_v55  ;;  %v2585_v30 = vpop.f32.mrf.mxu2  ;;  %v2634_v57 = vpop.f32.mrf.mxu3  ;;  %4146 = vmatpush.bf16.msrb.mxu3 %v9956_v37  ;;  %v9769_v41 = vld [vmem:[%s14570_s26 + $0x8] sm:$0xf0] }
 0x2b7   : > { %v2635_v32 = vadd.f32 %v2634_v57, %v2585_v30  ;;  %18277 = vst [vmem:[#allocation15_spill] sm:$0xff] %v14582_v47  ;;  %v14584_v30 = vor.u32 %v12009_v23, %v9769_v41 }
 0x2b9   : > { %v14564_v25 = vadd.f32 %v2635_v32, %v14171_v40  ;;  %18278 = vst [vmem:[#allocation19_spill] sm:$0xff] %v14584_v30  ;;  %v18280_v32 = vld [vmem:[#allocation18_spill] sm:$0xff] }
 0x2ba   : > { %v3011_v16 = vpop.f32.mrf.mxu0 }
 0x2bb   : > { %v3060_v20 = vpop.f32.mrf.mxu1 }
 0x2bc   : > { %v3061_v49 = vadd.f32 %v3060_v20, %v3011_v16  ;;  %v9881_v16 = vld [vmem:[%s18167_s18 + $0x468] sm:$0xf0] }
 0x2be   : > { %v14573_v22 = vadd.f32 %v3061_v49, %v14180_v50  ;;  %v2587_v28 = vpop.f32.mrf.mxu2  ;;  %v2636_v40 = vpop.f32.mrf.mxu3  ;;  %v18279_v50 = vld [vmem:[#allocation13_spill] sm:$0xff] }
 0x2bf   : > { %v2637_v31 = vadd.f32 %v2636_v40, %v2587_v28  ;;  %v9945_v28 = vld [vmem:[%s18167_s18 + $0x4e8] sm:$0xf0] }
 0x2c1   : > { %v14580_v14 = vadd.f32 %v2637_v31, %v14188_v43  ;;  %v12037_v43 = vld [vmem:[%s18167_s18 + $0x464] sm:$0xf] }
 0x2c2   : > { %v3491_v57 = vpop.f32.mrf.mxu0  ;;  %v9884_v48 = vor.u32 %v12037_v43, %v9881_v16  ;;  %v12012_v43 = vld [vmem:[%s14570_s26 + $0x14] sm:$0xf0]  ;;  %v12011_v16 = vld [vmem:[%s14570_s26 + $0x14] sm:$0xf] }
 0x2c3   : > { %v3540_v6 = vpop.f32.mrf.mxu1  ;;  %3106 = vmatmul.bf16.gmra.mxu2 %v14146_v2  ;;  %3155 = vmatmul.bf16.gmra.mxu3 %v18279_v50  ;;  %v12053_v2 = vld [vmem:[%s18167_s18 + $0x4e4] sm:$0xf] }
 0x2c4   : > { %v3541_v7 = vadd.f32 %v3540_v6, %v3491_v57  ;;  %v9948_v63 = vor.u32 %v12053_v2, %v9945_v28  ;;  %4098 = vmatpush.bf16.msrb.mxu2 %v9884_v48 }
 0x2c5   : > { %4007 = vmatmul.bf16.vlgmr.msrb.gmra.mxu0 %v14582_v47 }
 0x2c6   : > { %v14589_v37 = vadd.f32 %v3541_v7, %v18280_v32  ;;  %4056 = vmatmul.bf16.vlgmr.msrb.gmra.mxu1 %v14584_v30  ;;  %v2590_v20 = vpop.f32.mrf.mxu2  ;;  %v2639_v49 = vpop.f32.mrf.mxu3  ;;  %4147 = vmatpush.bf16.msrb.mxu3 %v9948_v63  ;;  %v9775_v7 = vld [vmem:[%s14570_s26 + $0x10] sm:$0xf]  ;;  %v9777_v30 = vld [vmem:[%s14570_s26 + $0x18] sm:$0xf0] }
 0x2c7   : > { %v2640_v40 = vadd.f32 %v2639_v49, %v2590_v20  ;;  %v14618_v20 = vor.u32 %v12012_v43, %v9775_v7 }
 0x2c9   : > { %v14606_v23 = vadd.f32 %v2640_v40, %v14215_v62  ;;  %18281 = vst [vmem:[#allocation16_spill] sm:$0xff] %v14618_v20  ;;  %v14620_v62 = vor.u32 %v12011_v16, %v9777_v30  ;;  %v18283_v40 = vld [vmem:[#allocation11_spill] sm:$0xff]  ;;  %v12051_v30 = vld [vmem:[%s18167_s18 + $0x4d4] sm:$0xf] }
 0x2ca   : > { %v3493_v41 = vpop.f32.mrf.mxu0 }
 0x2cb   : > { %v3542_v31 = vpop.f32.mrf.mxu1  ;;  %18282 = vst [vmem:[#allocation17_spill] sm:$0xff] %v14620_v62 }
 0x2cc   : > { %v3543_v57 = vadd.f32 %v3542_v31, %v3493_v41 }
 0x2ce   : > { %v14609_v6 = vadd.f32 %v3543_v57, %v14218_v42  ;;  %v2592_v50 = vpop.f32.mrf.mxu2  ;;  %v2641_v32 = vpop.f32.mrf.mxu3  ;;  %v18284_v42 = vld [vmem:[#allocation12_spill] sm:$0xff]  ;;  %v9937_v57 = vld [vmem:[%s18167_s18 + $0x4d8] sm:$0xf0] }
 0x2cf   : > { %v2642_v47 = vadd.f32 %v2641_v32, %v2592_v50  ;;  %v9940_v50 = vor.u32 %v12051_v30, %v9937_v57 }
 0x2d1   : > { %v14616_v2 = vadd.f32 %v2642_v47, %v14226_v9  ;;  %v12035_v9 = vld [vmem:[%s18167_s18 + $0x454] sm:$0xf]  ;;  %v9873_v47 = vld [vmem:[%s18167_s18 + $0x458] sm:$0xf0]  ;;  %4148 = vmatpush.bf16.msrb.mxu3 %v9940_v50 }
 0x2d2   : > { %v3496_v49 = vpop.f32.mrf.mxu0  ;;  %v9876_v31 = vor.u32 %v12035_v9, %v9873_v47  ;;  %v12014_v9 = vld [vmem:[%s14570_s26 + $0x24] sm:$0xf0]  ;;  %v12013_v47 = vld [vmem:[%s14570_s26 + $0x24] sm:$0xf] }
 0x2d3   : > { %v3545_v48 = vpop.f32.mrf.mxu1  ;;  %3588 = vmatmul.bf16.vlgmr.msra.gmra.mxu2 %v18283_v40  ;;  %3637 = vmatmul.bf16.vlgmr.msra.gmra.mxu3 %v18284_v42 }
 0x2d4   : > { %v3546_v28 = vadd.f32 %v3545_v48, %v3496_v49  ;;  %4099 = vmatpush.bf16.msrb.mxu2 %v9876_v31 }
 0x2d5   : > { %4012 = vmatmul.bf16.gmra.mxu0 %v14618_v20 }
 0x2d6   : > { %v14625_v63 = vadd.f32 %v3546_v28, %v14235_v39  ;;  %4061 = vmatmul.bf16.gmra.mxu1 %v14620_v62  ;;  %v3072_v41 = vpop.f32.mrf.mxu2  ;;  %v3121_v39 = vpop.f32.mrf.mxu3  ;;  %v9783_v28 = vld [vmem:[%s14570_s26 + $0x20] sm:$0xf]  ;;  %v9785_v62 = vld [vmem:[%s14570_s26 + $0x28] sm:$0xf0] }
 0x2d7   : > { %v3122_v7 = vadd.f32 %v3121_v39, %v3072_v41  ;;  %v14654_v41 = vor.u32 %v12014_v9, %v9783_v28 }
 0x2d9   : > { %v14642_v32 = vadd.f32 %v3122_v7, %v14252_v51  ;;  %v14656_v51 = vor.u32 %v12013_v47, %v9785_v62 }
 0x2da   : > { %v3498_v43 = vpop.f32.mrf.mxu0 }
 0x2db   : > { %v3547_v16 = vpop.f32.mrf.mxu1  ;;  %18285 = vst [vmem:[#allocation20_spill] sm:$0xff] %v14656_v51 }
 0x2dc   : > { %v3548_v49 = vadd.f32 %v3547_v16, %v3498_v43  ;;  %v9929_v43 = vld [vmem:[%s18167_s18 + $0x4c8] sm:$0xf0] }
 0x2de   : > { %v14645_v48 = vadd.f32 %v3548_v49, %v14255_v15  ;;  %v3074_v40 = vpop.f32.mrf.mxu2  ;;  %v3123_v42 = vpop.f32.mrf.mxu3  ;;  %v18286_v15 = vld [vmem:[#allocation14_spill] sm:$0xff] }
 0x2df   : > { %v3124_v20 = vadd.f32 %v3123_v42, %v3074_v40 }
 0x2e1   : > { %v14652_v30 = vadd.f32 %v3124_v20, %v14262_v1  ;;  %v12033_v1 = vld [vmem:[%s18167_s18 + $0x444] sm:$0xf]  ;;  %v9865_v20 = vld [vmem:[%s18167_s18 + $0x448] sm:$0xf0] }
 0x2e2   : > { %v3501_v39 = vpop.f32.mrf.mxu0  ;;  %v9868_v50 = vor.u32 %v12033_v1, %v9865_v20  ;;  %v12015_v1 = vld [vmem:[%s14570_s26 + $0x34] sm:$0xf]  ;;  %v9793_v20 = vld [vmem:[%s14570_s26 + $0x38] sm:$0xf0] }
 0x2e3   : > { %v3550_v31 = vpop.f32.mrf.mxu1  ;;  %3593 = vmatmul.bf16.gmra.mxu2 %v14228_v8  ;;  %3642 = vmatmul.bf16.gmra.mxu3 %v18286_v15  ;;  %v12049_v8 = vld [vmem:[%s18167_s18 + $0x4c4] sm:$0xf]  ;;  %v12016_v15 = vld [vmem:[%s14570_s26 + $0x34] sm:$0xf0] }
 0x2e4   : > { %v3551_v57 = vadd.f32 %v3550_v31, %v3501_v39  ;;  %v9932_v49 = vor.u32 %v12049_v8, %v9929_v43  ;;  %4100 = vmatpush.bf16.msrb.mxu2 %v9868_v50  ;;  %v9791_v39 = vld [vmem:[%s14570_s26 + $0x30] sm:$0xf] }
 0x2e5   : > { %4017 = vmatmul.bf16.gmra.mxu0 %v14654_v41 }
 0x2e6   : > { %v14661_v7 = vadd.f32 %v3551_v57, %v14271_v4  ;;  %4066 = vmatmul.bf16.gmra.mxu1 %v14656_v51  ;;  %v3077_v62 = vpop.f32.mrf.mxu2  ;;  %v3126_v4 = vpop.f32.mrf.mxu3  ;;  %4149 = vmatpush.bf16.msrb.mxu3 %v9932_v49  ;;  %v9921_v49 = vld [vmem:[%s18167_s18 + $0x4b8] sm:$0xf0] }
 0x2e7   : > { %v3127_v16 = vadd.f32 %v3126_v4, %v3077_v62  ;;  %v14690_v62 = vor.u32 %v12016_v15, %v9791_v39 }
 0x2e9   : > { %v14678_v28 = vadd.f32 %v3127_v16, %v14288_v3  ;;  %v14692_v3 = vor.u32 %v12015_v1, %v9793_v20  ;;  %v9799_v1 = vld [vmem:[%s14570_s26 + $0x40] sm:$0xf] }
 0x2ea   : > { %v3503_v40 = vpop.f32.mrf.mxu0 }
 0x2eb   : > { %v3552_v42 = vpop.f32.mrf.mxu1 }
 0x2ec   : > { %v3553_v9 = vadd.f32 %v3552_v42, %v3503_v40 }
 0x2ee   : > { %v14681_v47 = vadd.f32 %v3553_v9, %v14291_v45  ;;  %v3079_v31 = vpop.f32.mrf.mxu2  ;;  %v3128_v57 = vpop.f32.mrf.mxu3 }
 0x2ef   : > { %v3129_v51 = vadd.f32 %v3128_v57, %v3079_v31 }
 0x2f1   : > { %v14688_v8 = vadd.f32 %v3129_v51, %v14298_v52  ;;  %v12031_v52 = vld [vmem:[%s18167_s18 + $0x434] sm:$0xf]  ;;  %v9857_v51 = vld [vmem:[%s18167_s18 + $0x438] sm:$0xf0] }
 0x2f2   : > { %v3506_v4 = vpop.f32.mrf.mxu0  ;;  %v9860_v16 = vor.u32 %v12031_v52, %v9857_v51  ;;  %v9801_v52 = vld [vmem:[%s14570_s26 + $0x48] sm:$0xf0] }
 0x2f3   : > { %v3555_v50 = vpop.f32.mrf.mxu1  ;;  %3598 = vmatmul.bf16.gmra.mxu2 %v14264_v26  ;;  %3647 = vmatmul.bf16.gmra.mxu3 %v14266_v10  ;;  %v12047_v26 = vld [vmem:[%s18167_s18 + $0x4b4] sm:$0xf] }
 0x2f4   : > { %v3556_v43 = vadd.f32 %v3555_v50, %v3506_v4  ;;  %v9924_v42 = vor.u32 %v12047_v26, %v9921_v49  ;;  %4101 = vmatpush.bf16.msrb.mxu2 %v9860_v16  ;;  %v12018_v50 = vld [vmem:[%s14570_s26 + $0x44] sm:$0xf0] }
 0x2f5   : > { %4022 = vmatmul.bf16.gmra.mxu0 %v14690_v62 }
 0x2f6   : > { %v14697_v45 = vadd.f32 %v3556_v43, %v14307_v5  ;;  %4071 = vmatmul.bf16.gmra.mxu1 %v14692_v3  ;;  %v3082_v10 = vpop.f32.mrf.mxu2  ;;  %v3131_v5 = vpop.f32.mrf.mxu3  ;;  %4150 = vmatpush.bf16.msrb.mxu3 %v9924_v42  ;;  %v12017_v43 = vld [vmem:[%s14570_s26 + $0x44] sm:$0xf]  ;;  %v10175_v42 = vld [vmem:[%s18167_s18 + $0x5f0] sm:$0xf] }
 0x2f7   : > { %v3132_v40 = vadd.f32 %v3131_v5, %v3082_v10  ;;  %v14726_v10 = vor.u32 %v12018_v50, %v9799_v1  ;;  %v9913_v50 = vld [vmem:[%s18167_s18 + $0x4a8] sm:$0xf0] }
 0x2f9   : > { %v14714_v9 = vadd.f32 %v3132_v40, %v14324_v35  ;;  %v14728_v35 = vor.u32 %v12017_v43, %v9801_v52 }
 0x2fa   : > { %v3508_v39 = vpop.f32.mrf.mxu0 }
 0x2fb   : > { %v3557_v31 = vpop.f32.mrf.mxu1 }
 0x2fc   : > { %v3558_v57 = vadd.f32 %v3557_v31, %v3508_v39  ;;  %v12104_v39 = vld [vmem:[%s18167_s18 + $0x5f4] sm:$0xf0]  ;;  %v9849_v31 = vld [vmem:[%s18167_s18 + $0x428] sm:$0xf0] }
 0x2fd   : > { %v10176_v1 = vor.u32 %v12104_v39, %v10175_v42 }
 0x2fe   : > { %v14717_v15 = vadd.f32 %v3558_v57, %v14327_v13  ;;  %v3084_v20 = vpop.f32.mrf.mxu2  ;;  %v3133_v4 = vpop.f32.mrf.mxu3  ;;  %v10111_v13 = vld [vmem:[%s18167_s18 + $0x570] sm:$0xf]  ;;  %v12045_v57 = vld [vmem:[%s18167_s18 + $0x4a4] sm:$0xf] }
 0x2ff   : > { %v3134_v51 = vadd.f32 %v3133_v4, %v3084_v20  ;;  %v9916_v52 = vor.u32 %v12045_v57, %v9913_v50  ;;  %4565 = vmatpush.bf16.msra.mxu1 %v10176_v1  ;;  %v12084_v57 = vld [vmem:[%s18167_s18 + $0x554] sm:$0xf0] }
 0x301   : > { %v14724_v26 = vadd.f32 %v3134_v51, %v14334_v24  ;;  %v12088_v24 = vld [vmem:[%s18167_s18 + $0x574] sm:$0xf0]  ;;  %v10103_v51 = vld [vmem:[%s18167_s18 + $0x560] sm:$0xf]  ;;  %4151 = vmatpush.bf16.msrb.mxu3 %v9916_v52 }
 0x302   : > { %v3511_v5 = vpop.f32.mrf.mxu0  ;;  %v10112_v40 = vor.u32 %v12088_v24, %v10111_v13  ;;  %v12102_v13 = vld [vmem:[%s18167_s18 + $0x5e4] sm:$0xf0] }
 0x303   : > { %v3560_v16 = vpop.f32.mrf.mxu1  ;;  %3603 = vmatmul.bf16.gmra.mxu2 %v14300_v44  ;;  %3652 = vmatmul.bf16.gmra.mxu3 %v14302_v59  ;;  %v12029_v59 = vld [vmem:[%s18167_s18 + $0x424] sm:$0xf] }
 0x304   : > { %v3561_v49 = vadd.f32 %v3560_v16, %v3511_v5  ;;  %v9852_v4 = vor.u32 %v12029_v59, %v9849_v31  ;;  %4516 = vmatpush.bf16.msra.mxu0 %v10112_v40  ;;  %v12086_v5 = vld [vmem:[%s18167_s18 + $0x564] sm:$0xf0]  ;;  %v10167_v16 = vld [vmem:[%s18167_s18 + $0x5e0] sm:$0xf]  ;;  %v10095_v31 = vld [vmem:[%s18167_s18 + $0x550] sm:$0xf] }
 0x305   : > { %4027 = vmatmul.bf16.gmra.mxu0 %v14726_v10  ;;  %v10168_v40 = vor.u32 %v12102_v13, %v10167_v16  ;;  %v10096_v1 = vor.u32 %v12084_v57, %v10095_v31  ;;  %v9809_v16 = vld [vmem:[%s14570_s26 + $0x58] sm:$0xf0]  ;;  %v10087_v13 = vld [vmem:[%s18167_s18 + $0x540] sm:$0xf] }
 0x306   : > { %v14745_v44 = vadd.f32 %v3561_v49, %v14355_v46  ;;  %4076 = vmatmul.bf16.gmra.mxu1 %v14728_v35  ;;  %v3087_v20 = vpop.f32.mrf.mxu2  ;;  %v3136_v46 = vpop.f32.mrf.mxu3  ;;  %4102 = vmatpush.bf16.msrb.mxu2 %v9852_v4  ;;  %v10104_v49 = vor.u32 %v12086_v5, %v10103_v51  ;;  %v9807_v4 = vld [vmem:[%s14570_s26 + $0x50] sm:$0xf]  ;;  %v12020_v51 = vld [vmem:[%s14570_s26 + $0x54] sm:$0xf0]  ;;  %v12019_v5 = vld [vmem:[%s14570_s26 + $0x54] sm:$0xf] }
 0x307   : > { %v3137_v43 = vadd.f32 %v3136_v46, %v3087_v20  ;;  %4566 = vmatpush.bf16.msra.mxu1 %v10168_v40  ;;  %v12100_v20 = vld [vmem:[%s18167_s18 + $0x5d4] sm:$0xf0]  ;;  %v12082_v40 = vld [vmem:[%s18167_s18 + $0x544] sm:$0xf0]  ;;  %v14810_v31 = vor.u32 %v12020_v51, %v9807_v4  ;;  %v14812_v57 = vor.u32 %v12019_v5, %v9809_v16  ;;  %v12027_v51 = vld [vmem:[%s18167_s18 + $0x414] sm:$0xf] }
 0x308   : > { %4517 = vmatpush.bf16.msra.mxu0 %v10104_v49  ;;  %v9841_v5 = vld [vmem:[%s18167_s18 + $0x418] sm:$0xf0]  ;;  %v12043_v16 = vld [vmem:[%s18167_s18 + $0x494] sm:$0xf] }
 0x309   : > { %v14774_v24 = vadd.f32 %v3137_v43, %v14384_v17  ;;  %v10159_v17 = vld [vmem:[%s18167_s18 + $0x5d0] sm:$0xf] }
 0x30a   : > { %v3513_v42 = vpop.f32.mrf.mxu0  ;;  %v10160_v50 = vor.u32 %v12100_v20, %v10159_v17 }
 0x30b   : > { %v3562_v39 = vpop.f32.mrf.mxu1 }
 0x30c   : > { %v3563_v59 = vadd.f32 %v3562_v39, %v3513_v42  ;;  %4518 = vmatpush.bf16.msra.mxu0 %v10096_v1  ;;  %4567 = vmatpush.bf16.msra.mxu1 %v10160_v50  ;;  %v10088_v42 = vor.u32 %v12082_v40, %v10087_v13  ;;  %v12098_v39 = vld [vmem:[%s18167_s18 + $0x5c4] sm:$0xf0]  ;;  %v9844_v40 = vor.u32 %v12027_v51, %v9841_v5  ;;  %v10063_v5 = vld [vmem:[%s18167_s18 + $0x510] sm:$0xf] }
 0x30e   : > { %v14789_v46 = vadd.f32 %v3563_v59, %v14399_v61  ;;  %v3089_v43 = vpop.f32.mrf.mxu2  ;;  %v3138_v52 = vpop.f32.mrf.mxu3  ;;  %v10151_v61 = vld [vmem:[%s18167_s18 + $0x5c0] sm:$0xf]  ;;  %4103 = vmatpush.bf16.msrb.mxu2 %v9844_v40 }
 0x30f   : > { %v3139_v49 = vadd.f32 %v3138_v52, %v3089_v43  ;;  %v10152_v17 = vor.u32 %v12098_v39, %v10151_v61  ;;  %v10079_v43 = vld [vmem:[%s18167_s18 + $0x530] sm:$0xf]  ;;  %v9905_v61 = vld [vmem:[%s18167_s18 + $0x498] sm:$0xf0]  ;;  %v9815_v40 = vld [vmem:[%s14570_s26 + $0x60] sm:$0xf] }
 0x310   : > { %4519 = vmatpush.bf16.msra.mxu0 %v10088_v42  ;;  %v10143_v52 = vld [vmem:[%s18167_s18 + $0x5b0] sm:$0xf]  ;;  %v9908_v39 = vor.u32 %v12043_v16, %v9905_v61  ;;  %v12076_v16 = vld [vmem:[%s18167_s18 + $0x514] sm:$0xf0] }
 0x311   : > { %v14808_v59 = vadd.f32 %v3139_v49, %v14418_v29  ;;  %v12080_v29 = vld [vmem:[%s18167_s18 + $0x534] sm:$0xf0]  ;;  %4568 = vmatpush.bf16.msra.mxu1 %v10152_v17  ;;  %v10071_v17 = vld [vmem:[%s18167_s18 + $0x520] sm:$0xf] }
 0x312   : > { %v3516_v1 = vpop.f32.mrf.mxu0  ;;  %v10080_v4 = vor.u32 %v12080_v29, %v10079_v43  ;;  %v12094_v43 = vld [vmem:[%s18167_s18 + $0x5a4] sm:$0xf0]  ;;  %4152 = vmatpush.bf16.msrb.mxu3 %v9908_v39 }
 0x313   : > { %v3565_v20 = vpop.f32.mrf.mxu1  ;;  %3608 = vmatmul.bf16.gmra.mxu2 %v14336_v0  ;;  %3657 = vmatmul.bf16.gmra.mxu3 %v14338_v60  ;;  %v12096_v0 = vld [vmem:[%s18167_s18 + $0x5b4] sm:$0xf0] }
 0x314   : > { %v3566_v50 = vadd.f32 %v3565_v20, %v3516_v1  ;;  %v10144_v49 = vor.u32 %v12096_v0, %v10143_v52  ;;  %4520 = vmatpush.bf16.msra.mxu0 %v10080_v4  ;;  %v12078_v1 = vld [vmem:[%s18167_s18 + $0x524] sm:$0xf0]  ;;  %v10135_v20 = vld [vmem:[%s18167_s18 + $0x5a0] sm:$0xf] }
 0x315   : > { %4032 = vmatmul.bf16.gmra.mxu0 %v14810_v31  ;;  %v10136_v4 = vor.u32 %v12094_v43, %v10135_v20  ;;  %v9817_v20 = vld [vmem:[%s14570_s26 + $0x68] sm:$0xf0]  ;;  %v10055_v43 = vld [vmem:[%s18167_s18 + $0x500] sm:$0xf] }
 0x316   : > { %v14829_v60 = vadd.f32 %v3566_v50, %v14439_v33  ;;  %4081 = vmatmul.bf16.gmra.mxu1 %v14812_v57  ;;  %v3092_v13 = vpop.f32.mrf.mxu2  ;;  %v3141_v33 = vpop.f32.mrf.mxu3  ;;  %v10072_v50 = vor.u32 %v12078_v1, %v10071_v17  ;;  %v12022_v17 = vld [vmem:[%s14570_s26 + $0x64] sm:$0xf0]  ;;  %v12021_v1 = vld [vmem:[%s14570_s26 + $0x64] sm:$0xf] }
 0x317   : > { %v3142_v42 = vadd.f32 %v3141_v33, %v3092_v13  ;;  %4569 = vmatpush.bf16.msra.mxu1 %v10144_v49  ;;  %v10064_v49 = vor.u32 %v12076_v16, %v10063_v5  ;;  %v12092_v13 = vld [vmem:[%s18167_s18 + $0x594] sm:$0xf0]  ;;  %v14894_v5 = vor.u32 %v12022_v17, %v9815_v40  ;;  %v14896_v16 = vor.u32 %v12021_v1, %v9817_v20  ;;  %v9833_v40 = vld [vmem:[%s18167_s18 + $0x408] sm:$0xf0] }
 0x318   : > { %4521 = vmatpush.bf16.msra.mxu0 %v10072_v50  ;;  %v9897_v17 = vld [vmem:[%s18167_s18 + $0x488] sm:$0xf0] }
 0x319   : > { %v14858_v29 = vadd.f32 %v3142_v42, %v14468_v34  ;;  %v10127_v34 = vld [vmem:[%s18167_s18 + $0x590] sm:$0xf] }
 0x31a   : > { %v3518_v52 = vpop.f32.mrf.mxu0  ;;  %v10128_v61 = vor.u32 %v12092_v13, %v10127_v34 }
 0x31b   : > { %v3567_v0 = vpop.f32.mrf.mxu1  ;;  %4570 = vmatpush.bf16.msra.mxu1 %v10136_v4  ;;  %v12074_v4 = vld [vmem:[%s18167_s18 + $0x504] sm:$0xf0] }
 0x31c   : > { %v3568_v51 = vadd.f32 %v3567_v0, %v3518_v52  ;;  %4522 = vmatpush.bf16.msra.mxu0 %v10064_v49  ;;  %v10056_v52 = vor.u32 %v12074_v4, %v10055_v43  ;;  %v12090_v0 = vld [vmem:[%s18167_s18 + $0x584] sm:$0xf0] }
 0x31e   : > { %v14873_v33 = vadd.f32 %v3568_v51, %v14483_v38  ;;  %v3094_v42 = vpop.f32.mrf.mxu2  ;;  %v3143_v39 = vpop.f32.mrf.mxu3  ;;  %v10119_v38 = vld [vmem:[%s18167_s18 + $0x580] sm:$0xf] }
 0x31f   : > { %v3144_v50 = vadd.f32 %v3143_v39, %v3094_v42  ;;  %4571 = vmatpush.bf16.msra.mxu1 %v10128_v61  ;;  %v10120_v34 = vor.u32 %v12090_v0, %v10119_v38  ;;  %v9823_v0 = vld [vmem:[%s14570_s26 + $0x70] sm:$0xf] }
 0x320   : > { %4523 = vmatpush.bf16.msra.mxu0 %v10056_v52 }
 0x321   : > { %v14892_v51 = vadd.f32 %v3144_v50, %v14502_v12  ;;  %v12025_v12 = vld [vmem:[%s18167_s18 + $0x404] sm:$0xf] }
 0x322   : > { %v3521_v49 = vpop.f32.mrf.mxu0  ;;  %v9836_v39 = vor.u32 %v12025_v12, %v9833_v40  ;;  %v9825_v12 = vld [vmem:[%s14570_s26 + $0x78] sm:$0xf0] }
 0x323   : > { %v3570_v13 = vpop.f32.mrf.mxu1  ;;  %3613 = vmatmul.bf16.gmra.mxu2 %v14420_v53  ;;  %3662 = vmatmul.bf16.gmra.mxu3 %v14422_v11  ;;  %v12041_v53 = vld [vmem:[%s18167_s18 + $0x484] sm:$0xf] }
 0x324   : > { %v3571_v42 = vadd.f32 %v3570_v13, %v3521_v49  ;;  %4572 = vmatpush.bf16.msra.mxu1 %v10120_v34  ;;  %v9900_v20 = vor.u32 %v12041_v53, %v9897_v17  ;;  %4104 = vmatpush.bf16.msrb.mxu2 %v9836_v39  ;;  %v12024_v13 = vld [vmem:[%s14570_s26 + $0x74] sm:$0xf0] }
 0x325   : > { %4037 = vmatmul.bf16.gmra.mxu0 %v14894_v5 }
 0x326   : > { %v14901_v61 = vadd.f32 %v3571_v42, %v14511_v27  ;;  %4086 = vmatmul.bf16.gmra.mxu1 %v14896_v16  ;;  %v3097_v11 = vpop.f32.mrf.mxu2  ;;  %v3146_v27 = vpop.f32.mrf.mxu3  ;;  %4153 = vmatpush.bf16.msrb.mxu3 %v9900_v20  ;;  %v12023_v42 = vld [vmem:[%s14570_s26 + $0x74] sm:$0xf] }
 0x327   : > { %v3147_v1 = vadd.f32 %v3146_v27, %v3097_v11  ;;  %v14930_v11 = vor.u32 %v12024_v13, %v9823_v0 }
 0x329   : > { %v14918_v50 = vadd.f32 %v3147_v1, %v14528_v21  ;;  %v14932_v21 = vor.u32 %v12023_v42, %v9825_v12  ;;  %v10113_v1 = vld [vmem:[%s18167_s18 + $0x578] sm:$0xf0]  ;;  %v9991_v12 = vld [vmem:[%s14960_s30] sm:$0xf] }
 0x32a   : > { %v3523_v43 = vpop.f32.mrf.mxu0 }
 0x32b   : > { %v3572_v4 = vpop.f32.mrf.mxu1 }
 0x32c   : > { %v3573_v38 = vadd.f32 %v3572_v4, %v3523_v43  ;;  %v10177_v43 = vld [vmem:[%s18167_s18 + $0x5f8] sm:$0xf0] }
 0x32e   : > { %v14921_v52 = vadd.f32 %v3573_v38, %v14531_v56  ;;  %v3099_v34 = vpop.f32.mrf.mxu2  ;;  %v3148_v49 = vpop.f32.mrf.mxu3 }
 0x32f   : > { %v3149_v40 = vadd.f32 %v3148_v49, %v3099_v34 }
 0x331   : > { %v14928_v53 = vadd.f32 %v3149_v40, %v14538_v58  ;;  %v12087_v58 = vld [vmem:[%s18167_s18 + $0x574] sm:$0xf] }
 0x332   : > { %v3526_v27 = vpop.f32.mrf.mxu0  ;;  %v10116_v20 = vor.u32 %v12087_v58, %v10113_v1 }
 0x333   : > { %v3575_v39 = vpop.f32.mrf.mxu1  ;;  %3618 = vmatmul.bf16.gmra.mxu2 %v14504_v18  ;;  %3667 = vmatmul.bf16.gmra.mxu3 %v14506_v54  ;;  %v12103_v18 = vld [vmem:[%s18167_s18 + $0x5f4] sm:$0xf] }
 0x334   : > { %v3576_v17 = vadd.f32 %v3575_v39, %v3526_v27  ;;  %v10180_v38 = vor.u32 %v12103_v18, %v10177_v43  ;;  %4614 = vmatpush.bf16.msra.mxu2 %v10116_v20  ;;  %v12058_v27 = vld [vmem:[%s14960_s30 + $0x4] sm:$0xf0]  ;;  %v12057_v39 = vld [vmem:[%s14960_s30 + $0x4] sm:$0xf] }
 0x335   : > { %4042 = vmatmul.bf16.gmra.mxu0 %v14930_v11  ;;  %v14972_v18 = vor.u32 %v12058_v27, %v9991_v12 }
 0x336   : > { %v14937_v56 = vadd.f32 %v3576_v17, %v14547_v19  ;;  %4091 = vmatmul.bf16.gmra.mxu1 %v14932_v21  ;;  %v3102_v54 = vpop.f32.mrf.mxu2  ;;  %v3151_v19 = vpop.f32.mrf.mxu3  ;;  %4663 = vmatpush.bf16.msra.mxu3 %v10180_v38  ;;  %v9993_v17 = vld [vmem:[%s14960_s30 + $0x8] sm:$0xf0] }
 0x337   : > { %v3152_v4 = vadd.f32 %v3151_v19, %v3102_v54  ;;  %v14974_v54 = vor.u32 %v12057_v39, %v9993_v17  ;;  %v9999_v17 = vld [vmem:[%s14960_s30 + $0x10] sm:$0xf] }
 0x339   : > { %v14954_v0 = vadd.f32 %v3152_v4, %v14564_v25  ;;  %v10105_v4 = vld [vmem:[%s18167_s18 + $0x568] sm:$0xf0] }
 0x33a   : > { %v3528_v34 = vpop.f32.mrf.mxu0 }
 0x33b   : > { %v3577_v49 = vpop.f32.mrf.mxu1 }
 0x33c   : > { %v3578_v13 = vadd.f32 %v3577_v49, %v3528_v34  ;;  %v10169_v34 = vld [vmem:[%s18167_s18 + $0x5e8] sm:$0xf0] }
 0x33e   : > { %v14963_v42 = vadd.f32 %v3578_v13, %v14573_v22  ;;  %v3104_v40 = vpop.f32.mrf.mxu2  ;;  %v3153_v25 = vpop.f32.mrf.mxu3 }
 0x33f   : > { %v3154_v58 = vadd.f32 %v3153_v25, %v3104_v40 }
 0x341   : > { %v14970_v1 = vadd.f32 %v3154_v58, %v14580_v14  ;;  %v12085_v14 = vld [vmem:[%s18167_s18 + $0x564] sm:$0xf] }
 0x342   : > { %v4008_v19 = vpop.f32.mrf.mxu0  ;;  %v10108_v38 = vor.u32 %v12085_v14, %v10105_v4  ;;  %v10001_v14 = vld [vmem:[%s14960_s30 + $0x18] sm:$0xf0] }
 0x343   : > { %v4057_v20 = vpop.f32.mrf.mxu1  ;;  %3623 = vmatmul.bf16.gmra.mxu2 %v14540_v36  ;;  %3672 = vmatmul.bf16.gmra.mxu3 %v14542_v55  ;;  %v12101_v36 = vld [vmem:[%s18167_s18 + $0x5e4] sm:$0xf] }
 0x344   : > { %v4058_v43 = vadd.f32 %v4057_v20, %v4008_v19  ;;  %v10172_v13 = vor.u32 %v12101_v36, %v10169_v34  ;;  %4615 = vmatpush.bf16.msra.mxu2 %v10108_v38  ;;  %v12060_v20 = vld [vmem:[%s14960_s30 + $0x14] sm:$0xf0] }
 0x345   : > { %4524 = vmatmul.bf16.vlgmr.msra.gmra.mxu0 %v14972_v18 }
 0x346   : > { %v14979_v22 = vadd.f32 %v4058_v43, %v14589_v37  ;;  %4573 = vmatmul.bf16.vlgmr.msra.gmra.mxu1 %v14974_v54  ;;  %v3107_v55 = vpop.f32.mrf.mxu2  ;;  %v3156_v37 = vpop.f32.mrf.mxu3  ;;  %4664 = vmatpush.bf16.msra.mxu3 %v10172_v13  ;;  %v12059_v43 = vld [vmem:[%s14960_s30 + $0x14] sm:$0xf] }
 0x347   : > { %v3157_v49 = vadd.f32 %v3156_v37, %v3107_v55  ;;  %v15008_v55 = vor.u32 %v12060_v20, %v9999_v17 }
 0x349   : > { %v14996_v12 = vadd.f32 %v3157_v49, %v14606_v23  ;;  %18287 = vst [vmem:[#allocation21_spill] sm:$0xff] %v15008_v55  ;;  %v15010_v23 = vor.u32 %v12059_v43, %v10001_v14  ;;  %v18289_v49 = vld [vmem:[#allocation15_spill] sm:$0xff] }
 0x34a   : > { %v4010_v40 = vpop.f32.mrf.mxu0 }
 0x34b   : > { %v4059_v25 = vpop.f32.mrf.mxu1  ;;  %18288 = vst [vmem:[#allocation13_spill] sm:$0xff] %v15010_v23 }
 0x34c   : > { %v4060_v27 = vadd.f32 %v4059_v25, %v4010_v40  ;;  %v10097_v40 = vld [vmem:[%s18167_s18 + $0x558] sm:$0xf0]  ;;  %v12099_v25 = vld [vmem:[%s18167_s18 + $0x5d4] sm:$0xf] }
 0x34e   : > { %v14999_v39 = vadd.f32 %v4060_v27, %v14609_v6  ;;  %v3109_v58 = vpop.f32.mrf.mxu2  ;;  %v3158_v19 = vpop.f32.mrf.mxu3  ;;  %v18290_v6 = vld [vmem:[#allocation19_spill] sm:$0xff] }
 0x34f   : > { %v3159_v4 = vadd.f32 %v3158_v19, %v3109_v58  ;;  %v10161_v58 = vld [vmem:[%s18167_s18 + $0x5d8] sm:$0xf0] }
 0x350   : > { %v10164_v20 = vor.u32 %v12099_v25, %v10161_v58 }
 0x351   : > { %v15006_v36 = vadd.f32 %v3159_v4, %v14616_v2  ;;  %v12083_v2 = vld [vmem:[%s18167_s18 + $0x554] sm:$0xf] }
 0x352   : > { %v4013_v37 = vpop.f32.mrf.mxu0  ;;  %v10100_v17 = vor.u32 %v12083_v2, %v10097_v40  ;;  %4665 = vmatpush.bf16.msra.mxu3 %v10164_v20  ;;  %v12062_v2 = vld [vmem:[%s14960_s30 + $0x24] sm:$0xf0]  ;;  %v12061_v40 = vld [vmem:[%s14960_s30 + $0x24] sm:$0xf] }
 0x353   : > { %v4062_v38 = vpop.f32.mrf.mxu1  ;;  %4105 = vmatmul.bf16.vlgmr.msrb.gmra.mxu2 %v18289_v49  ;;  %4154 = vmatmul.bf16.vlgmr.msrb.gmra.mxu3 %v18290_v6 }
 0x354   : > { %v4063_v34 = vadd.f32 %v4062_v38, %v4013_v37  ;;  %4616 = vmatpush.bf16.msra.mxu2 %v10100_v17 }
 0x355   : > { %4529 = vmatmul.bf16.gmra.mxu0 %v15008_v55 }
 0x356   : > { %v15015_v13 = vadd.f32 %v4063_v34, %v14625_v63  ;;  %4578 = vmatmul.bf16.gmra.mxu1 %v15010_v23  ;;  %v3589_v27 = vpop.f32.mrf.mxu2  ;;  %v3638_v63 = vpop.f32.mrf.mxu3  ;;  %v10007_v34 = vld [vmem:[%s14960_s30 + $0x20] sm:$0xf]  ;;  %v10009_v23 = vld [vmem:[%s14960_s30 + $0x28] sm:$0xf0] }
 0x357   : > { %v3639_v19 = vadd.f32 %v3638_v63, %v3589_v27  ;;  %v15044_v27 = vor.u32 %v12062_v2, %v10007_v34 }
 0x359   : > { %v15032_v43 = vadd.f32 %v3639_v19, %v14642_v32  ;;  %18291 = vst [vmem:[#allocation18_spill] sm:$0xff] %v15044_v27  ;;  %v15046_v32 = vor.u32 %v12061_v40, %v10009_v23  ;;  %v18293_v19 = vld [vmem:[#allocation16_spill] sm:$0xff]  ;;  %v12097_v23 = vld [vmem:[%s18167_s18 + $0x5c4] sm:$0xf] }
 0x35a   : > { %v4015_v14 = vpop.f32.mrf.mxu0 }
 0x35b   : > { %v4064_v4 = vpop.f32.mrf.mxu1  ;;  %18292 = vst [vmem:[#allocation11_spill] sm:$0xff] %v15046_v32 }
 0x35c   : > { %v4065_v37 = vadd.f32 %v4064_v4, %v4015_v14 }
 0x35e   : > { %v15035_v38 = vadd.f32 %v4065_v37, %v14645_v48  ;;  %v3591_v49 = vpop.f32.mrf.mxu2  ;;  %v3640_v6 = vpop.f32.mrf.mxu3  ;;  %v18294_v48 = vld [vmem:[#allocation17_spill] sm:$0xff]  ;;  %v10153_v37 = vld [vmem:[%s18167_s18 + $0x5c8] sm:$0xf0] }
 0x35f   : > { %v3641_v55 = vadd.f32 %v3640_v6, %v3591_v49  ;;  %v10156_v49 = vor.u32 %v12097_v23, %v10153_v37 }
 0x361   : > { %v15042_v25 = vadd.f32 %v3641_v55, %v14652_v30  ;;  %v12081_v30 = vld [vmem:[%s18167_s18 + $0x544] sm:$0xf]  ;;  %v10089_v55 = vld [vmem:[%s18167_s18 + $0x548] sm:$0xf0]  ;;  %4666 = vmatpush.bf16.msra.mxu3 %v10156_v49 }
 0x362   : > { %v4018_v63 = vpop.f32.mrf.mxu0  ;;  %v10092_v4 = vor.u32 %v12081_v30, %v10089_v55  ;;  %v12064_v30 = vld [vmem:[%s14960_s30 + $0x34] sm:$0xf0]  ;;  %v12063_v55 = vld [vmem:[%s14960_s30 + $0x34] sm:$0xf] }
 0x363   : > { %v4067_v17 = vpop.f32.mrf.mxu1  ;;  %4110 = vmatmul.bf16.gmra.mxu2 %v18293_v19  ;;  %4159 = vmatmul.bf16.gmra.mxu3 %v18294_v48 }
 0x364   : > { %v4068_v58 = vadd.f32 %v4067_v17, %v4018_v63  ;;  %4617 = vmatpush.bf16.msra.mxu2 %v10092_v4 }
 0x365   : > { %4534 = vmatmul.bf16.gmra.mxu0 %v15044_v27 }
 0x366   : > { %v15051_v20 = vadd.f32 %v4068_v58, %v14661_v7  ;;  %4583 = vmatmul.bf16.gmra.mxu1 %v15046_v32  ;;  %v3594_v14 = vpop.f32.mrf.mxu2  ;;  %v3643_v7 = vpop.f32.mrf.mxu3  ;;  %v10015_v58 = vld [vmem:[%s14960_s30 + $0x30] sm:$0xf]  ;;  %v10017_v32 = vld [vmem:[%s14960_s30 + $0x38] sm:$0xf0] }
 0x367   : > { %v3644_v34 = vadd.f32 %v3643_v7, %v3594_v14  ;;  %v15080_v14 = vor.u32 %v12064_v30, %v10015_v58 }
 0x369   : > { %v15068_v6 = vadd.f32 %v3644_v34, %v14678_v28  ;;  %v15082_v28 = vor.u32 %v12063_v55, %v10017_v32 }
 0x36a   : > { %v4020_v2 = vpop.f32.mrf.mxu0 }
 0x36b   : > { %v4069_v40 = vpop.f32.mrf.mxu1  ;;  %18295 = vst [vmem:[#allocation12_spill] sm:$0xff] %v15082_v28 }
 0x36c   : > { %v4070_v63 = vadd.f32 %v4069_v40, %v4020_v2  ;;  %v10145_v2 = vld [vmem:[%s18167_s18 + $0x5b8] sm:$0xf0] }
 0x36e   : > { %v15071_v17 = vadd.f32 %v4070_v63, %v14681_v47  ;;  %v3596_v19 = vpop.f32.mrf.mxu2  ;;  %v3645_v48 = vpop.f32.mrf.mxu3  ;;  %v18296_v47 = vld [vmem:[#allocation20_spill] sm:$0xff] }
 0x36f   : > { %v3646_v27 = vadd.f32 %v3645_v48, %v3596_v19 }
 0x371   : > { %v15078_v23 = vadd.f32 %v3646_v27, %v14688_v8  ;;  %v12079_v8 = vld [vmem:[%s18167_s18 + $0x534] sm:$0xf]  ;;  %v10081_v27 = vld [vmem:[%s18167_s18 + $0x538] sm:$0xf0] }
 0x372   : > { %v4023_v7 = vpop.f32.mrf.mxu0  ;;  %v10084_v49 = vor.u32 %v12079_v8, %v10081_v27  ;;  %v12065_v8 = vld [vmem:[%s14960_s30 + $0x44] sm:$0xf]  ;;  %v10025_v27 = vld [vmem:[%s14960_s30 + $0x48] sm:$0xf0] }
 0x373   : > { %v4072_v4 = vpop.f32.mrf.mxu1  ;;  %4115 = vmatmul.bf16.gmra.mxu2 %v14654_v41  ;;  %4164 = vmatmul.bf16.gmra.mxu3 %v18296_v47  ;;  %v12095_v41 = vld [vmem:[%s18167_s18 + $0x5b4] sm:$0xf]  ;;  %v12066_v47 = vld [vmem:[%s14960_s30 + $0x44] sm:$0xf0] }
 0x374   : > { %v4073_v37 = vadd.f32 %v4072_v4, %v4023_v7  ;;  %v10148_v63 = vor.u32 %v12095_v41, %v10145_v2  ;;  %4618 = vmatpush.bf16.msra.mxu2 %v10084_v49  ;;  %v10023_v7 = vld [vmem:[%s14960_s30 + $0x40] sm:$0xf] }
 0x375   : > { %4539 = vmatmul.bf16.gmra.mxu0 %v15080_v14 }
 0x376   : > { %v15087_v34 = vadd.f32 %v4073_v37, %v14697_v45  ;;  %4588 = vmatmul.bf16.gmra.mxu1 %v15082_v28  ;;  %v3599_v32 = vpop.f32.mrf.mxu2  ;;  %v3648_v45 = vpop.f32.mrf.mxu3  ;;  %4667 = vmatpush.bf16.msra.mxu3 %v10148_v63  ;;  %v12152_v63 = vld [vmem:[%s18167_s18 + $0x6f4] sm:$0xf0] }
 0x377   : > { %v3649_v40 = vadd.f32 %v3648_v45, %v3599_v32  ;;  %v15116_v32 = vor.u32 %v12066_v47, %v10023_v7 }
 0x379   : > { %v15104_v58 = vadd.f32 %v3649_v40, %v14714_v9  ;;  %v15118_v9 = vor.u32 %v12065_v8, %v10025_v27  ;;  %v10399_v40 = vld [vmem:[%s18167_s18 + $0x6f0] sm:$0xf]  ;;  %v10327_v27 = vld [vmem:[%s18167_s18 + $0x660] sm:$0xf] }
 0x37a   : > { %v4025_v19 = vpop.f32.mrf.mxu0 }
 0x37b   : > { %v4074_v48 = vpop.f32.mrf.mxu1 }
 0x37c   : > { %v4075_v30 = vadd.f32 %v4074_v48, %v4025_v19  ;;  %v10073_v19 = vld [vmem:[%s18167_s18 + $0x528] sm:$0xf0]  ;;  %v12093_v48 = vld [vmem:[%s18167_s18 + $0x5a4] sm:$0xf] }
 0x37e   : > { %v15107_v55 = vadd.f32 %v4075_v30, %v14717_v15  ;;  %v3601_v4 = vpop.f32.mrf.mxu2  ;;  %v3650_v37 = vpop.f32.mrf.mxu3  ;;  %v10335_v15 = vld [vmem:[%s18167_s18 + $0x670] sm:$0xf]  ;;  %v10400_v30 = vor.u32 %v12152_v63, %v10399_v40 }
 0x37f   : > { %v3651_v28 = vadd.f32 %v3650_v37, %v3601_v4  ;;  %v10137_v37 = vld [vmem:[%s18167_s18 + $0x5a8] sm:$0xf0] }
 0x380   : > { %v10140_v8 = vor.u32 %v12093_v48, %v10137_v37  ;;  %5082 = vmatpush.bf16.msrb.mxu1 %v10400_v30  ;;  %v12132_v48 = vld [vmem:[%s18167_s18 + $0x654] sm:$0xf0] }
 0x381   : > { %v15114_v41 = vadd.f32 %v3651_v28, %v14724_v26  ;;  %v12136_v26 = vld [vmem:[%s18167_s18 + $0x674] sm:$0xf0] }
 0x382   : > { %v4028_v45 = vpop.f32.mrf.mxu0  ;;  %v10336_v28 = vor.u32 %v12136_v26, %v10335_v15  ;;  %v12150_v15 = vld [vmem:[%s18167_s18 + $0x6e4] sm:$0xf0]  ;;  %4668 = vmatpush.bf16.msra.mxu3 %v10140_v8 }
 0x383   : > { %v4077_v49 = vpop.f32.mrf.mxu1  ;;  %4120 = vmatmul.bf16.gmra.mxu2 %v14690_v62  ;;  %4169 = vmatmul.bf16.gmra.mxu3 %v14692_v3  ;;  %v12077_v3 = vld [vmem:[%s18167_s18 + $0x524] sm:$0xf] }
 0x384   : > { %v4078_v2 = vadd.f32 %v4077_v49, %v4028_v45  ;;  %v10076_v4 = vor.u32 %v12077_v3, %v10073_v19  ;;  %5033 = vmatpush.bf16.msrb.mxu0 %v10336_v28  ;;  %v12134_v45 = vld [vmem:[%s18167_s18 + $0x664] sm:$0xf0]  ;;  %v10391_v49 = vld [vmem:[%s18167_s18 + $0x6e0] sm:$0xf]  ;;  %v10319_v19 = vld [vmem:[%s18167_s18 + $0x650] sm:$0xf] }
 0x385   : > { %4544 = vmatmul.bf16.gmra.mxu0 %v15116_v32  ;;  %v10392_v28 = vor.u32 %v12150_v15, %v10391_v49  ;;  %v10320_v30 = vor.u32 %v12132_v48, %v10319_v19  ;;  %v10033_v49 = vld [vmem:[%s14960_s30 + $0x58] sm:$0xf0]  ;;  %v10311_v15 = vld [vmem:[%s18167_s18 + $0x640] sm:$0xf] }
 0x386   : > { %v15135_v62 = vadd.f32 %v4078_v2, %v14745_v44  ;;  %4593 = vmatmul.bf16.gmra.mxu1 %v15118_v9  ;;  %v3604_v7 = vpop.f32.mrf.mxu2  ;;  %v3653_v44 = vpop.f32.mrf.mxu3  ;;  %4619 = vmatpush.bf16.msra.mxu2 %v10076_v4  ;;  %v10328_v2 = vor.u32 %v12134_v45, %v10327_v27  ;;  %v10031_v4 = vld [vmem:[%s14960_s30 + $0x50] sm:$0xf]  ;;  %v12068_v27 = vld [vmem:[%s14960_s30 + $0x54] sm:$0xf0]  ;;  %v12067_v45 = vld [vmem:[%s14960_s30 + $0x54] sm:$0xf] }
 0x387   : > { %v3654_v47 = vadd.f32 %v3653_v44, %v3604_v7  ;;  %5083 = vmatpush.bf16.msrb.mxu1 %v10392_v28  ;;  %v12148_v7 = vld [vmem:[%s18167_s18 + $0x6d4] sm:$0xf0]  ;;  %v12130_v28 = vld [vmem:[%s18167_s18 + $0x644] sm:$0xf0]  ;;  %v15200_v19 = vor.u32 %v12068_v27, %v10031_v4  ;;  %v15202_v48 = vor.u32 %v12067_v45, %v10033_v49  ;;  %v12075_v27 = vld [vmem:[%s18167_s18 + $0x514] sm:$0xf] }
 0x388   : > { %5034 = vmatpush.bf16.msrb.mxu0 %v10328_v2  ;;  %v10065_v45 = vld [vmem:[%s18167_s18 + $0x518] sm:$0xf0]  ;;  %v12091_v49 = vld [vmem:[%s18167_s18 + $0x594] sm:$0xf] }
 0x389   : > { %v15164_v26 = vadd.f32 %v3654_v47, %v14774_v24  ;;  %v10383_v24 = vld [vmem:[%s18167_s18 + $0x6d0] sm:$0xf] }
 0x38a   : > { %v4030_v40 = vpop.f32.mrf.mxu0  ;;  %v10384_v37 = vor.u32 %v12148_v7, %v10383_v24 }
 0x38b   : > { %v4079_v63 = vpop.f32.mrf.mxu1 }
 0x38c   : > { %v4080_v3 = vadd.f32 %v4079_v63, %v4030_v40  ;;  %5035 = vmatpush.bf16.msrb.mxu0 %v10320_v30  ;;  %5084 = vmatpush.bf16.msrb.mxu1 %v10384_v37  ;;  %v10312_v40 = vor.u32 %v12130_v28, %v10311_v15  ;;  %v12146_v63 = vld [vmem:[%s18167_s18 + $0x6c4] sm:$0xf0]  ;;  %v10068_v28 = vor.u32 %v12075_v27, %v10065_v45  ;;  %v10287_v45 = vld [vmem:[%s18167_s18 + $0x610] sm:$0xf] }
 0x38e   : > { %v15179_v44 = vadd.f32 %v4080_v3, %v14789_v46  ;;  %v3606_v47 = vpop.f32.mrf.mxu2  ;;  %v3655_v8 = vpop.f32.mrf.mxu3  ;;  %v10375_v46 = vld [vmem:[%s18167_s18 + $0x6c0] sm:$0xf]  ;;  %4620 = vmatpush.bf16.msra.mxu2 %v10068_v28 }
 0x38f   : > { %v3656_v2 = vadd.f32 %v3655_v8, %v3606_v47  ;;  %v10376_v24 = vor.u32 %v12146_v63, %v10375_v46  ;;  %v10303_v47 = vld [vmem:[%s18167_s18 + $0x630] sm:$0xf]  ;;  %v10129_v46 = vld [vmem:[%s18167_s18 + $0x598] sm:$0xf0]  ;;  %v10039_v28 = vld [vmem:[%s14960_s30 + $0x60] sm:$0xf] }
 0x390   : > { %5036 = vmatpush.bf16.msrb.mxu0 %v10312_v40  ;;  %v10367_v8 = vld [vmem:[%s18167_s18 + $0x6b0] sm:$0xf]  ;;  %v10132_v63 = vor.u32 %v12091_v49, %v10129_v46  ;;  %v12124_v49 = vld [vmem:[%s18167_s18 + $0x614] sm:$0xf0] }
 0x391   : > { %v15198_v3 = vadd.f32 %v3656_v2, %v14808_v59  ;;  %v12128_v59 = vld [vmem:[%s18167_s18 + $0x634] sm:$0xf0]  ;;  %5085 = vmatpush.bf16.msrb.mxu1 %v10376_v24  ;;  %v10295_v24 = vld [vmem:[%s18167_s18 + $0x620] sm:$0xf] }
 0x392   : > { %v4033_v30 = vpop.f32.mrf.mxu0  ;;  %v10304_v4 = vor.u32 %v12128_v59, %v10303_v47  ;;  %v12142_v47 = vld [vmem:[%s18167_s18 + $0x6a4] sm:$0xf0]  ;;  %4669 = vmatpush.bf16.msra.mxu3 %v10132_v63 }
 0x393   : > { %v4082_v7 = vpop.f32.mrf.mxu1  ;;  %4125 = vmatmul.bf16.gmra.mxu2 %v14726_v10  ;;  %4174 = vmatmul.bf16.gmra.mxu3 %v14728_v35  ;;  %v12144_v10 = vld [vmem:[%s18167_s18 + $0x6b4] sm:$0xf0] }
 0x394   : > { %v4083_v37 = vadd.f32 %v4082_v7, %v4033_v30  ;;  %v10368_v2 = vor.u32 %v12144_v10, %v10367_v8  ;;  %5037 = vmatpush.bf16.msrb.mxu0 %v10304_v4  ;;  %v12126_v30 = vld [vmem:[%s18167_s18 + $0x624] sm:$0xf0]  ;;  %v10359_v7 = vld [vmem:[%s18167_s18 + $0x6a0] sm:$0xf] }
 0x395   : > { %4549 = vmatmul.bf16.gmra.mxu0 %v15200_v19  ;;  %v10360_v4 = vor.u32 %v12142_v47, %v10359_v7  ;;  %v10041_v7 = vld [vmem:[%s14960_s30 + $0x68] sm:$0xf0]  ;;  %v10279_v47 = vld [vmem:[%s18167_s18 + $0x600] sm:$0xf] }
 0x396   : > { %v15219_v35 = vadd.f32 %v4083_v37, %v14829_v60  ;;  %4598 = vmatmul.bf16.gmra.mxu1 %v15202_v48  ;;  %v3609_v15 = vpop.f32.mrf.mxu2  ;;  %v3658_v60 = vpop.f32.mrf.mxu3  ;;  %v10296_v37 = vor.u32 %v12126_v30, %v10295_v24  ;;  %v12070_v24 = vld [vmem:[%s14960_s30 + $0x64] sm:$0xf0]  ;;  %v12069_v30 = vld [vmem:[%s14960_s30 + $0x64] sm:$0xf] }
 0x397   : > { %v3659_v40 = vadd.f32 %v3658_v60, %v3609_v15  ;;  %5086 = vmatpush.bf16.msrb.mxu1 %v10368_v2  ;;  %v10288_v2 = vor.u32 %v12124_v49, %v10287_v45  ;;  %v12140_v15 = vld [vmem:[%s18167_s18 + $0x694] sm:$0xf0]  ;;  %v15284_v45 = vor.u32 %v12070_v24, %v10039_v28  ;;  %v15286_v49 = vor.u32 %v12069_v30, %v10041_v7  ;;  %v10057_v28 = vld [vmem:[%s18167_s18 + $0x508] sm:$0xf0] }
 0x398   : > { %5038 = vmatpush.bf16.msrb.mxu0 %v10296_v37  ;;  %v10121_v24 = vld [vmem:[%s18167_s18 + $0x588] sm:$0xf0] }
 0x399   : > { %v15248_v59 = vadd.f32 %v3659_v40, %v14858_v29  ;;  %v10351_v29 = vld [vmem:[%s18167_s18 + $0x690] sm:$0xf] }
 0x39a   : > { %v4035_v8 = vpop.f32.mrf.mxu0  ;;  %v10352_v46 = vor.u32 %v12140_v15, %v10351_v29 }
 0x39b   : > { %v4084_v10 = vpop.f32.mrf.mxu1  ;;  %5087 = vmatpush.bf16.msrb.mxu1 %v10360_v4  ;;  %v12122_v4 = vld [vmem:[%s18167_s18 + $0x604] sm:$0xf0] }
 0x39c   : > { %v4085_v27 = vadd.f32 %v4084_v10, %v4035_v8  ;;  %5039 = vmatpush.bf16.msrb.mxu0 %v10288_v2  ;;  %v10280_v8 = vor.u32 %v12122_v4, %v10279_v47  ;;  %v12138_v10 = vld [vmem:[%s18167_s18 + $0x684] sm:$0xf0] }
 0x39e   : > { %v15263_v60 = vadd.f32 %v4085_v27, %v14873_v33  ;;  %v3611_v40 = vpop.f32.mrf.mxu2  ;;  %v3660_v63 = vpop.f32.mrf.mxu3  ;;  %v10343_v33 = vld [vmem:[%s18167_s18 + $0x680] sm:$0xf] }
 0x39f   : > { %v3661_v37 = vadd.f32 %v3660_v63, %v3611_v40  ;;  %5088 = vmatpush.bf16.msrb.mxu1 %v10352_v46  ;;  %v10344_v29 = vor.u32 %v12138_v10, %v10343_v33  ;;  %v10047_v10 = vld [vmem:[%s14960_s30 + $0x70] sm:$0xf] }
 0x3a0   : > { %5040 = vmatpush.bf16.msrb.mxu0 %v10280_v8 }
 0x3a1   : > { %v15282_v27 = vadd.f32 %v3661_v37, %v14892_v51  ;;  %v12073_v51 = vld [vmem:[%s18167_s18 + $0x504] sm:$0xf] }
 0x3a2   : > { %v4038_v2 = vpop.f32.mrf.mxu0  ;;  %v10060_v63 = vor.u32 %v12073_v51, %v10057_v28  ;;  %v10049_v51 = vld [vmem:[%s14960_s30 + $0x78] sm:$0xf0] }
 0x3a3   : > { %v4087_v15 = vpop.f32.mrf.mxu1  ;;  %4130 = vmatmul.bf16.gmra.mxu2 %v14810_v31  ;;  %4179 = vmatmul.bf16.gmra.mxu3 %v14812_v57  ;;  %v12089_v31 = vld [vmem:[%s18167_s18 + $0x584] sm:$0xf] }
 0x3a4   : > { %v4088_v40 = vadd.f32 %v4087_v15, %v4038_v2  ;;  %5089 = vmatpush.bf16.msrb.mxu1 %v10344_v29  ;;  %v10124_v7 = vor.u32 %v12089_v31, %v10121_v24  ;;  %4621 = vmatpush.bf16.msra.mxu2 %v10060_v63  ;;  %v12072_v15 = vld [vmem:[%s14960_s30 + $0x74] sm:$0xf0] }
 0x3a5   : > { %4554 = vmatmul.bf16.gmra.mxu0 %v15284_v45 }
 0x3a6   : > { %v15291_v46 = vadd.f32 %v4088_v40, %v14901_v61  ;;  %4603 = vmatmul.bf16.gmra.mxu1 %v15286_v49  ;;  %v3614_v57 = vpop.f32.mrf.mxu2  ;;  %v3663_v61 = vpop.f32.mrf.mxu3  ;;  %4670 = vmatpush.bf16.msra.mxu3 %v10124_v7  ;;  %v12071_v40 = vld [vmem:[%s14960_s30 + $0x74] sm:$0xf] }
 0x3a7   : > { %v3664_v30 = vadd.f32 %v3663_v61, %v3614_v57  ;;  %v15320_v57 = vor.u32 %v12072_v15, %v10047_v10 }
 0x3a9   : > { %v15308_v37 = vadd.f32 %v3664_v30, %v14918_v50  ;;  %v15322_v50 = vor.u32 %v12071_v40, %v10049_v51  ;;  %v10337_v30 = vld [vmem:[%s18167_s18 + $0x678] sm:$0xf0]  ;;  %v10215_v51 = vld [vmem:[%s15350_s29] sm:$0xf] }
 0x3aa   : > { %v4040_v47 = vpop.f32.mrf.mxu0 }
 0x3ab   : > { %v4089_v4 = vpop.f32.mrf.mxu1 }
 0x3ac   : > { %v4090_v33 = vadd.f32 %v4089_v4, %v4040_v47  ;;  %v10401_v47 = vld [vmem:[%s18167_s18 + $0x6f8] sm:$0xf0] }
 0x3ae   : > { %v15311_v8 = vadd.f32 %v4090_v33, %v14921_v52  ;;  %v3616_v29 = vpop.f32.mrf.mxu2  ;;  %v3665_v2 = vpop.f32.mrf.mxu3 }
 0x3af   : > { %v3666_v28 = vadd.f32 %v3665_v2, %v3616_v29 }
 0x3b1   : > { %v15318_v31 = vadd.f32 %v3666_v28, %v14928_v53  ;;  %v12135_v53 = vld [vmem:[%s18167_s18 + $0x674] sm:$0xf] }
 0x3b2   : > { %v4043_v61 = vpop.f32.mrf.mxu0  ;;  %v10340_v7 = vor.u32 %v12135_v53, %v10337_v30 }
 0x3b3   : > { %v4092_v63 = vpop.f32.mrf.mxu1  ;;  %4135 = vmatmul.bf16.gmra.mxu2 %v14894_v5  ;;  %4184 = vmatmul.bf16.gmra.mxu3 %v14896_v16  ;;  %v12151_v5 = vld [vmem:[%s18167_s18 + $0x6f4] sm:$0xf] }
 0x3b4   : > { %v4093_v24 = vadd.f32 %v4092_v63, %v4043_v61  ;;  %v10404_v33 = vor.u32 %v12151_v5, %v10401_v47  ;;  %5131 = vmatpush.bf16.msrb.mxu2 %v10340_v7  ;;  %v12106_v61 = vld [vmem:[%s15350_s29 + $0x4] sm:$0xf0]  ;;  %v12105_v63 = vld [vmem:[%s15350_s29 + $0x4] sm:$0xf] }
 0x3b5   : > { %4559 = vmatmul.bf16.gmra.mxu0 %v15320_v57  ;;  %v15362_v5 = vor.u32 %v12106_v61, %v10215_v51 }
 0x3b6   : > { %v15327_v52 = vadd.f32 %v4093_v24, %v14937_v56  ;;  %4608 = vmatmul.bf16.gmra.mxu1 %v15322_v50  ;;  %v3619_v16 = vpop.f32.mrf.mxu2  ;;  %v3668_v56 = vpop.f32.mrf.mxu3  ;;  %5180 = vmatpush.bf16.msrb.mxu3 %v10404_v33  ;;  %v10217_v24 = vld [vmem:[%s15350_s29 + $0x8] sm:$0xf0] }
 0x3b7   : > { %v3669_v4 = vadd.f32 %v3668_v56, %v3619_v16  ;;  %v15364_v16 = vor.u32 %v12105_v63, %v10217_v24  ;;  %v10223_v24 = vld [vmem:[%s15350_s29 + $0x10] sm:$0xf] }
 0x3b9   : > { %v15344_v10 = vadd.f32 %v3669_v4, %v14954_v0  ;;  %v10329_v4 = vld [vmem:[%s18167_s18 + $0x668] sm:$0xf0] }
 0x3ba   : > { %v4045_v29 = vpop.f32.mrf.mxu0 }
 0x3bb   : > { %v4094_v2 = vpop.f32.mrf.mxu1 }
 0x3bc   : > { %v4095_v15 = vadd.f32 %v4094_v2, %v4045_v29  ;;  %v10393_v29 = vld [vmem:[%s18167_s18 + $0x6e8] sm:$0xf0] }
 0x3be   : > { %v15353_v40 = vadd.f32 %v4095_v15, %v14963_v42  ;;  %v3621_v28 = vpop.f32.mrf.mxu2  ;;  %v3670_v0 = vpop.f32.mrf.mxu3 }
 0x3bf   : > { %v3671_v53 = vadd.f32 %v3670_v0, %v3621_v28 }
 0x3c1   : > { %v15360_v30 = vadd.f32 %v3671_v53, %v14970_v1  ;;  %v12133_v1 = vld [vmem:[%s18167_s18 + $0x664] sm:$0xf] }
 0x3c2   : > { %v4525_v56 = vpop.f32.mrf.mxu0  ;;  %v10332_v33 = vor.u32 %v12133_v1, %v10329_v4  ;;  %v10225_v1 = vld [vmem:[%s15350_s29 + $0x18] sm:$0xf0] }
 0x3c3   : > { %v4574_v7 = vpop.f32.mrf.mxu1  ;;  %4140 = vmatmul.bf16.gmra.mxu2 %v14930_v11  ;;  %4189 = vmatmul.bf16.gmra.mxu3 %v14932_v21  ;;  %v12149_v11 = vld [vmem:[%s18167_s18 + $0x6e4] sm:$0xf] }
 0x3c4   : > { %v4575_v47 = vadd.f32 %v4574_v7, %v4525_v56  ;;  %v10396_v15 = vor.u32 %v12149_v11, %v10393_v29  ;;  %5132 = vmatpush.bf16.msrb.mxu2 %v10332_v33  ;;  %v12108_v7 = vld [vmem:[%s15350_s29 + $0x14] sm:$0xf0] }
 0x3c5   : > { %5041 = vmatmul.bf16.vlgmr.msrb.gmra.mxu0 %v15362_v5 }
 0x3c6   : > { %v15369_v42 = vadd.f32 %v4575_v47, %v14979_v22  ;;  %5090 = vmatmul.bf16.vlgmr.msrb.gmra.mxu1 %v15364_v16  ;;  %v3624_v21 = vpop.f32.mrf.mxu2  ;;  %v3673_v22 = vpop.f32.mrf.mxu3  ;;  %5181 = vmatpush.bf16.msrb.mxu3 %v10396_v15  ;;  %v12107_v47 = vld [vmem:[%s15350_s29 + $0x14] sm:$0xf] }
 0x3c7   : > { %v3674_v2 = vadd.f32 %v3673_v22, %v3624_v21  ;;  %v15398_v21 = vor.u32 %v12108_v7, %v10223_v24 }
 0x3c9   : > { %v15386_v51 = vadd.f32 %v3674_v2, %v14996_v12  ;;  %v15400_v12 = vor.u32 %v12107_v47, %v10225_v1  ;;  %v10321_v2 = vld [vmem:[%s18167_s18 + $0x658] sm:$0xf0]  ;;  %v10231_v1 = vld [vmem:[%s15350_s29 + $0x20] sm:$0xf] }
 0x3ca   : > { %v4527_v28 = vpop.f32.mrf.mxu0 }
 0x3cb   : > { %v4576_v0 = vpop.f32.mrf.mxu1 }
 0x3cc   : > { %v4577_v61 = vadd.f32 %v4576_v0, %v4527_v28  ;;  %v10385_v28 = vld [vmem:[%s18167_s18 + $0x6d8] sm:$0xf0] }
 0x3ce   : > { %v15389_v63 = vadd.f32 %v4577_v61, %v14999_v39  ;;  %v3626_v53 = vpop.f32.mrf.mxu2  ;;  %v3675_v56 = vpop.f32.mrf.mxu3 }
 0x3cf   : > { %v3676_v4 = vadd.f32 %v3675_v56, %v3626_v53 }
 0x3d1   : > { %v15396_v11 = vadd.f32 %v3676_v4, %v15006_v36  ;;  %v12131_v36 = vld [vmem:[%s18167_s18 + $0x654] sm:$0xf] }
 0x3d2   : > { %v4530_v22 = vpop.f32.mrf.mxu0  ;;  %v10324_v15 = vor.u32 %v12131_v36, %v10321_v2  ;;  %v10233_v36 = vld [vmem:[%s15350_s29 + $0x28] sm:$0xf0] }
 0x3d3   : > { %v4579_v33 = vpop.f32.mrf.mxu1  ;;  %4622 = vmatmul.bf16.vlgmr.msra.gmra.mxu2 %v14972_v18  ;;  %4671 = vmatmul.bf16.vlgmr.msra.gmra.mxu3 %v14974_v54  ;;  %v12147_v18 = vld [vmem:[%s18167_s18 + $0x6d4] sm:$0xf] }
 0x3d4   : > { %v4580_v29 = vadd.f32 %v4579_v33, %v4530_v22  ;;  %v10388_v61 = vor.u32 %v12147_v18, %v10385_v28  ;;  %5133 = vmatpush.bf16.msrb.mxu2 %v10324_v15  ;;  %v12110_v33 = vld [vmem:[%s15350_s29 + $0x24] sm:$0xf0] }
 0x3d5   : > { %5046 = vmatmul.bf16.gmra.mxu0 %v15398_v21 }
 0x3d6   : > { %v15405_v39 = vadd.f32 %v4580_v29, %v15015_v13  ;;  %5095 = vmatmul.bf16.gmra.mxu1 %v15400_v12  ;;  %v4106_v54 = vpop.f32.mrf.mxu2  ;;  %v4155_v13 = vpop.f32.mrf.mxu3  ;;  %5182 = vmatpush.bf16.msrb.mxu3 %v10388_v61  ;;  %v12109_v29 = vld [vmem:[%s15350_s29 + $0x24] sm:$0xf] }
 0x3d7   : > { %v4156_v0 = vadd.f32 %v4155_v13, %v4106_v54  ;;  %v15434_v54 = vor.u32 %v12110_v33, %v10231_v1 }
 0x3d9   : > { %v15422_v24 = vadd.f32 %v4156_v0, %v15032_v43  ;;  %18297 = vst [vmem:[#allocation14_spill] sm:$0xff] %v15434_v54  ;;  %v15436_v43 = vor.u32 %v12109_v29, %v10233_v36  ;;  %v18299_v0 = vld [vmem:[#allocation21_spill] sm:$0xff] }
 0x3da   : > { %v4532_v53 = vpop.f32.mrf.mxu0 }
 0x3db   : > { %v4581_v56 = vpop.f32.mrf.mxu1  ;;  %18298 = vst [vmem:[#allocation15_spill] sm:$0xff] %v15436_v43 }
 0x3dc   : > { %v4582_v7 = vadd.f32 %v4581_v56, %v4532_v53  ;;  %v10313_v53 = vld [vmem:[%s18167_s18 + $0x648] sm:$0xf0]  ;;  %v12145_v56 = vld [vmem:[%s18167_s18 + $0x6c4] sm:$0xf] }
 0x3de   : > { %v15425_v47 = vadd.f32 %v4582_v7, %v15035_v38  ;;  %v4108_v4 = vpop.f32.mrf.mxu2  ;;  %v4157_v22 = vpop.f32.mrf.mxu3  ;;  %v18300_v38 = vld [vmem:[#allocation13_spill] sm:$0xff] }
 0x3df   : > { %v4158_v2 = vadd.f32 %v4157_v22, %v4108_v4  ;;  %v10377_v4 = vld [vmem:[%s18167_s18 + $0x6c8] sm:$0xf0] }
 0x3e0   : > { %v10380_v33 = vor.u32 %v12145_v56, %v10377_v4 }
 0x3e1   : > { %v15432_v18 = vadd.f32 %v4158_v2, %v15042_v25  ;;  %v12129_v25 = vld [vmem:[%s18167_s18 + $0x644] sm:$0xf] }
 0x3e2   : > { %v4535_v13 = vpop.f32.mrf.mxu0  ;;  %v10316_v1 = vor.u32 %v12129_v25, %v10313_v53  ;;  %5183 = vmatpush.bf16.msrb.mxu3 %v10380_v33  ;;  %v12112_v25 = vld [vmem:[%s15350_s29 + $0x34] sm:$0xf0]  ;;  %v12111_v53 = vld [vmem:[%s15350_s29 + $0x34] sm:$0xf] }
 0x3e3   : > { %v4584_v15 = vpop.f32.mrf.mxu1  ;;  %4627 = vmatmul.bf16.gmra.mxu2 %v18299_v0  ;;  %4676 = vmatmul.bf16.gmra.mxu3 %v18300_v38 }
 0x3e4   : > { %v4585_v28 = vadd.f32 %v4584_v15, %v4535_v13  ;;  %5134 = vmatpush.bf16.msrb.mxu2 %v10316_v1 }
 0x3e5   : > { %5051 = vmatmul.bf16.gmra.mxu0 %v15434_v54 }
 0x3e6   : > { %v15441_v61 = vadd.f32 %v4585_v28, %v15051_v20  ;;  %5100 = vmatmul.bf16.gmra.mxu1 %v15436_v43  ;;  %v4111_v7 = vpop.f32.mrf.mxu2  ;;  %v4160_v20 = vpop.f32.mrf.mxu3  ;;  %v10239_v28 = vld [vmem:[%s15350_s29 + $0x30] sm:$0xf]  ;;  %v10241_v43 = vld [vmem:[%s15350_s29 + $0x38] sm:$0xf0] }
 0x3e7   : > { %v4161_v22 = vadd.f32 %v4160_v20, %v4111_v7  ;;  %v15470_v7 = vor.u32 %v12112_v25, %v10239_v28 }
 0x3e9   : > { %v15458_v29 = vadd.f32 %v4161_v22, %v15068_v6  ;;  %18301 = vst [vmem:[#allocation19_spill] sm:$0xff] %v15470_v7  ;;  %v15472_v6 = vor.u32 %v12111_v53, %v10241_v43  ;;  %v18303_v22 = vld [vmem:[#allocation18_spill] sm:$0xff]  ;;  %v12143_v43 = vld [vmem:[%s18167_s18 + $0x6b4] sm:$0xf] }
 0x3ea   : > { %v4537_v36 = vpop.f32.mrf.mxu0 }
 0x3eb   : > { %v4586_v2 = vpop.f32.mrf.mxu1  ;;  %18302 = vst [vmem:[#allocation16_spill] sm:$0xff] %v15472_v6 }
 0x3ec   : > { %v4587_v13 = vadd.f32 %v4586_v2, %v4537_v36 }
 0x3ee   : > { %v15461_v15 = vadd.f32 %v4587_v13, %v15071_v17  ;;  %v4113_v0 = vpop.f32.mrf.mxu2  ;;  %v4162_v38 = vpop.f32.mrf.mxu3  ;;  %v18304_v17 = vld [vmem:[#allocation11_spill] sm:$0xff]  ;;  %v10369_v13 = vld [vmem:[%s18167_s18 + $0x6b8] sm:$0xf0] }
 0x3ef   : > { %v4163_v54 = vadd.f32 %v4162_v38, %v4113_v0  ;;  %v10372_v0 = vor.u32 %v12143_v43, %v10369_v13 }
 0x3f1   : > { %v15468_v56 = vadd.f32 %v4163_v54, %v15078_v23  ;;  %v12127_v23 = vld [vmem:[%s18167_s18 + $0x634] sm:$0xf]  ;;  %v10305_v54 = vld [vmem:[%s18167_s18 + $0x638] sm:$0xf0]  ;;  %5184 = vmatpush.bf16.msrb.mxu3 %v10372_v0  ;;  %v12200_v0 = vld [vmem:[%s18167_s18 + $0x7f4] sm:$0xf0] }
 0x3f2   : > { %v4540_v20 = vpop.f32.mrf.mxu0  ;;  %v10308_v2 = vor.u32 %v12127_v23, %v10305_v54  ;;  %v12114_v23 = vld [vmem:[%s15350_s29 + $0x44] sm:$0xf0]  ;;  %v12113_v54 = vld [vmem:[%s15350_s29 + $0x44] sm:$0xf] }
 0x3f3   : > { %v4589_v1 = vpop.f32.mrf.mxu1  ;;  %4632 = vmatmul.bf16.gmra.mxu2 %v18303_v22  ;;  %4681 = vmatmul.bf16.gmra.mxu3 %v18304_v17 }
 0x3f4   : > { %v4590_v4 = vadd.f32 %v4589_v1, %v4540_v20  ;;  %5135 = vmatpush.bf16.msrb.mxu2 %v10308_v2 }
 0x3f5   : > { %5056 = vmatmul.bf16.gmra.mxu0 %v15470_v7 }
 0x3f6   : > { %v15477_v33 = vadd.f32 %v4590_v4, %v15087_v34  ;;  %5105 = vmatmul.bf16.gmra.mxu1 %v15472_v6  ;;  %v4116_v36 = vpop.f32.mrf.mxu2  ;;  %v4165_v34 = vpop.f32.mrf.mxu3  ;;  %v10247_v4 = vld [vmem:[%s15350_s29 + $0x40] sm:$0xf]  ;;  %v10249_v6 = vld [vmem:[%s15350_s29 + $0x48] sm:$0xf0] }
 0x3f7   : > { %v4166_v28 = vadd.f32 %v4165_v34, %v4116_v36  ;;  %v15506_v36 = vor.u32 %v12114_v23, %v10247_v4  ;;  %v10361_v23 = vld [vmem:[%s18167_s18 + $0x6a8] sm:$0xf0] }
 0x3f9   : > { %v15494_v38 = vadd.f32 %v4166_v28, %v15104_v58  ;;  %v15508_v58 = vor.u32 %v12113_v54, %v10249_v6  ;;  %v10559_v28 = vld [vmem:[%s18167_s18 + $0x770] sm:$0xf] }
 0x3fa   : > { %v4542_v25 = vpop.f32.mrf.mxu0  ;;  %v10623_v6 = vld [vmem:[%s18167_s18 + $0x7f0] sm:$0xf] }
 0x3fb   : > { %v4591_v53 = vpop.f32.mrf.mxu1  ;;  %v10624_v4 = vor.u32 %v12200_v0, %v10623_v6 }
 0x3fc   : > { %v4592_v20 = vadd.f32 %v4591_v53, %v4542_v25  ;;  %v12125_v25 = vld [vmem:[%s18167_s18 + $0x624] sm:$0xf]  ;;  %v10297_v53 = vld [vmem:[%s18167_s18 + $0x628] sm:$0xf0] }
 0x3fd   : > { %5599 = vmatpush.bf16.msra.mxu1 %v10624_v4  ;;  %v12180_v4 = vld [vmem:[%s18167_s18 + $0x754] sm:$0xf0] }
 0x3fe   : > { %v15497_v1 = vadd.f32 %v4592_v20, %v15107_v55  ;;  %v4118_v22 = vpop.f32.mrf.mxu2  ;;  %v4167_v17 = vpop.f32.mrf.mxu3  ;;  %v18305_v55 = vld [vmem:[#allocation12_spill] sm:$0xff]  ;;  %v12141_v20 = vld [vmem:[%s18167_s18 + $0x6a4] sm:$0xf] }
 0x3ff   : > { %v4168_v7 = vadd.f32 %v4167_v17, %v4118_v22  ;;  %v10300_v17 = vor.u32 %v12125_v25, %v10297_v53 }
 0x401   : > { %v15504_v43 = vadd.f32 %v4168_v7, %v15114_v41  ;;  %v12184_v41 = vld [vmem:[%s18167_s18 + $0x774] sm:$0xf0]  ;;  %5136 = vmatpush.bf16.msrb.mxu2 %v10300_v17 }
 0x402   : > { %v4545_v34 = vpop.f32.mrf.mxu0  ;;  %v10560_v7 = vor.u32 %v12184_v41, %v10559_v28  ;;  %v12198_v41 = vld [vmem:[%s18167_s18 + $0x7e4] sm:$0xf0] }
 0x403   : > { %v4594_v2 = vpop.f32.mrf.mxu1  ;;  %4637 = vmatmul.bf16.gmra.mxu2 %v15080_v14  ;;  %4686 = vmatmul.bf16.gmra.mxu3 %v18305_v55  ;;  %v10615_v55 = vld [vmem:[%s18167_s18 + $0x7e0] sm:$0xf] }
 0x404   : > { %v4595_v13 = vadd.f32 %v4594_v2, %v4545_v34  ;;  %5550 = vmatpush.bf16.msra.mxu0 %v10560_v7  ;;  %v10364_v34 = vor.u32 %v12141_v20, %v10361_v23  ;;  %v10551_v2 = vld [vmem:[%s18167_s18 + $0x760] sm:$0xf]  ;;  %v10616_v6 = vor.u32 %v12198_v41, %v10615_v55  ;;  %v10543_v20 = vld [vmem:[%s18167_s18 + $0x750] sm:$0xf]  ;;  %v12115_v55 = vld [vmem:[%s15350_s29 + $0x54] sm:$0xf] }
 0x405   : > { %5061 = vmatmul.bf16.gmra.mxu0 %v15506_v36  ;;  %v10255_v23 = vld [vmem:[%s15350_s29 + $0x50] sm:$0xf] }
 0x406   : > { %v15525_v14 = vadd.f32 %v4595_v13, %v15135_v62  ;;  %5110 = vmatmul.bf16.gmra.mxu1 %v15508_v58  ;;  %v4121_v22 = vpop.f32.mrf.mxu2  ;;  %v4170_v62 = vpop.f32.mrf.mxu3  ;;  %v12182_v13 = vld [vmem:[%s18167_s18 + $0x764] sm:$0xf0]  ;;  %5185 = vmatpush.bf16.msrb.mxu3 %v10364_v34 }
 0x407   : > { %v4171_v54 = vadd.f32 %v4170_v62, %v4121_v22  ;;  %v10552_v28 = vor.u32 %v12182_v13, %v10551_v2  ;;  %5600 = vmatpush.bf16.msra.mxu1 %v10616_v6  ;;  %v10544_v22 = vor.u32 %v12180_v4, %v10543_v20  ;;  %v12196_v62 = vld [vmem:[%s18167_s18 + $0x7d4] sm:$0xf0]  ;;  %v10535_v6 = vld [vmem:[%s18167_s18 + $0x740] sm:$0xf] }
 0x408   : > { %v12116_v13 = vld [vmem:[%s15350_s29 + $0x54] sm:$0xf0] }
 0x409   : > { %v15554_v7 = vadd.f32 %v4171_v54, %v15164_v26  ;;  %5551 = vmatpush.bf16.msra.mxu0 %v10552_v28  ;;  %v10607_v26 = vld [vmem:[%s18167_s18 + $0x7d0] sm:$0xf]  ;;  %v10257_v28 = vld [vmem:[%s15350_s29 + $0x58] sm:$0xf0]  ;;  %v15590_v4 = vor.u32 %v12116_v13, %v10255_v23 }
 0x40a   : > { %v4547_v0 = vpop.f32.mrf.mxu0  ;;  %v10608_v54 = vor.u32 %v12196_v62, %v10607_v26  ;;  %v15592_v26 = vor.u32 %v12115_v55, %v10257_v28  ;;  %v10591_v13 = vld [vmem:[%s18167_s18 + $0x7b0] sm:$0xf]  ;;  %v12123_v55 = vld [vmem:[%s18167_s18 + $0x614] sm:$0xf]  ;;  %v10289_v28 = vld [vmem:[%s18167_s18 + $0x618] sm:$0xf0] }
 0x40b   : > { %v4596_v25 = vpop.f32.mrf.mxu1 }
 0x40c   : > { %v4597_v53 = vadd.f32 %v4596_v25, %v4547_v0  ;;  %5601 = vmatpush.bf16.msra.mxu1 %v10608_v54  ;;  %v12178_v0 = vld [vmem:[%s18167_s18 + $0x744] sm:$0xf0] }
 0x40d   : > { %5552 = vmatpush.bf16.msra.mxu0 %v10544_v22  ;;  %v10536_v25 = vor.u32 %v12178_v0, %v10535_v6 }
 0x40e   : > { %v15569_v17 = vadd.f32 %v4597_v53, %v15179_v44  ;;  %v4123_v34 = vpop.f32.mrf.mxu2  ;;  %v4172_v2 = vpop.f32.mrf.mxu3  ;;  %v10599_v44 = vld [vmem:[%s18167_s18 + $0x7c0] sm:$0xf]  ;;  %v12194_v53 = vld [vmem:[%s18167_s18 + $0x7c4] sm:$0xf0] }
 0x40f   : > { %v4173_v41 = vadd.f32 %v4172_v2, %v4123_v34  ;;  %v10600_v22 = vor.u32 %v12194_v53, %v10599_v44  ;;  %v10527_v2 = vld [vmem:[%s18167_s18 + $0x730] sm:$0xf]  ;;  %v10292_v44 = vor.u32 %v12123_v55, %v10289_v28 }
 0x411   : > { %v15588_v20 = vadd.f32 %v4173_v41, %v15198_v3  ;;  %5553 = vmatpush.bf16.msra.mxu0 %v10536_v25  ;;  %v12176_v3 = vld [vmem:[%s18167_s18 + $0x734] sm:$0xf0]  ;;  %5602 = vmatpush.bf16.msra.mxu1 %v10600_v22  ;;  %v12139_v41 = vld [vmem:[%s18167_s18 + $0x694] sm:$0xf]  ;;  %v10353_v25 = vld [vmem:[%s18167_s18 + $0x698] sm:$0xf0] }
 0x412   : > { %v4550_v62 = vpop.f32.mrf.mxu0  ;;  %v10528_v23 = vor.u32 %v12176_v3, %v10527_v2  ;;  %v10356_v22 = vor.u32 %v12139_v41, %v10353_v25  ;;  %5137 = vmatpush.bf16.msrb.mxu2 %v10292_v44  ;;  %v12190_v3 = vld [vmem:[%s18167_s18 + $0x7a4] sm:$0xf0]  ;;  %v10511_v41 = vld [vmem:[%s18167_s18 + $0x710] sm:$0xf]  ;;  %v10263_v25 = vld [vmem:[%s15350_s29 + $0x60] sm:$0xf] }
 0x413   : > { %v4599_v54 = vpop.f32.mrf.mxu1  ;;  %4642 = vmatmul.bf16.gmra.mxu2 %v15116_v32  ;;  %4691 = vmatmul.bf16.gmra.mxu3 %v15118_v9  ;;  %v12192_v32 = vld [vmem:[%s18167_s18 + $0x7b4] sm:$0xf0] }
 0x414   : > { %v4600_v34 = vadd.f32 %v4599_v54, %v4550_v62  ;;  %v10592_v6 = vor.u32 %v12192_v32, %v10591_v13  ;;  %v10519_v62 = vld [vmem:[%s18167_s18 + $0x720] sm:$0xf]  ;;  %v12174_v54 = vld [vmem:[%s18167_s18 + $0x724] sm:$0xf0]  ;;  %5186 = vmatpush.bf16.msrb.mxu3 %v10356_v22 }
 0x415   : > { %5066 = vmatmul.bf16.gmra.mxu0 %v15590_v4  ;;  %v10520_v2 = vor.u32 %v12174_v54, %v10519_v62  ;;  %v12118_v54 = vld [vmem:[%s15350_s29 + $0x64] sm:$0xf0] }
 0x416   : > { %v15609_v9 = vadd.f32 %v4600_v34, %v15219_v35  ;;  %5115 = vmatmul.bf16.gmra.mxu1 %v15592_v26  ;;  %v4126_v0 = vpop.f32.mrf.mxu2  ;;  %v4175_v35 = vpop.f32.mrf.mxu3  ;;  %5554 = vmatpush.bf16.msra.mxu0 %v10528_v23  ;;  %v10583_v34 = vld [vmem:[%s18167_s18 + $0x7a0] sm:$0xf] }
 0x417   : > { %v4176_v53 = vadd.f32 %v4175_v35, %v4126_v0  ;;  %5603 = vmatpush.bf16.msra.mxu1 %v10592_v6  ;;  %v10584_v13 = vor.u32 %v12190_v3, %v10583_v34  ;;  %v12172_v6 = vld [vmem:[%s18167_s18 + $0x714] sm:$0xf0]  ;;  %v12117_v34 = vld [vmem:[%s15350_s29 + $0x64] sm:$0xf] }
 0x418   : > { %v10512_v0 = vor.u32 %v12172_v6, %v10511_v41  ;;  %v12188_v35 = vld [vmem:[%s18167_s18 + $0x794] sm:$0xf0]  ;;  %v15674_v6 = vor.u32 %v12118_v54, %v10263_v25  ;;  %v10281_v25 = vld [vmem:[%s18167_s18 + $0x608] sm:$0xf0] }
 0x419   : > { %v15638_v23 = vadd.f32 %v4176_v53, %v15248_v59  ;;  %v10575_v59 = vld [vmem:[%s18167_s18 + $0x790] sm:$0xf] }
 0x41a   : > { %v4552_v32 = vpop.f32.mrf.mxu0  ;;  %5555 = vmatpush.bf16.msra.mxu0 %v10520_v2  ;;  %v10576_v53 = vor.u32 %v12188_v35, %v10575_v59  ;;  %v10265_v2 = vld [vmem:[%s15350_s29 + $0x68] sm:$0xf0] }
 0x41b   : > { %v4601_v55 = vpop.f32.mrf.mxu1  ;;  %5604 = vmatpush.bf16.msra.mxu1 %v10584_v13  ;;  %v10503_v13 = vld [vmem:[%s18167_s18 + $0x700] sm:$0xf]  ;;  %v15676_v59 = vor.u32 %v12117_v34, %v10265_v2  ;;  %v10345_v34 = vld [vmem:[%s18167_s18 + $0x688] sm:$0xf0] }
 0x41c   : > { %v4602_v28 = vadd.f32 %v4601_v55, %v4552_v32  ;;  %v12170_v32 = vld [vmem:[%s18167_s18 + $0x704] sm:$0xf0] }
 0x41d   : > { %v10504_v55 = vor.u32 %v12170_v32, %v10503_v13  ;;  %18306 = vst [vmem:[#allocation17_spill] sm:$0xff] %v15676_v59 }
 0x41e   : > { %v15653_v44 = vadd.f32 %v4602_v28, %v15263_v60  ;;  %v4128_v22 = vpop.f32.mrf.mxu2  ;;  %v4177_v62 = vpop.f32.mrf.mxu3  ;;  %5556 = vmatpush.bf16.msra.mxu0 %v10512_v0  ;;  %v10567_v60 = vld [vmem:[%s18167_s18 + $0x780] sm:$0xf]  ;;  %v12186_v28 = vld [vmem:[%s18167_s18 + $0x784] sm:$0xf0] }
 0x41f   : > { %v4178_v3 = vadd.f32 %v4177_v62, %v4128_v22  ;;  %5605 = vmatpush.bf16.msra.mxu1 %v10576_v53  ;;  %v10568_v0 = vor.u32 %v12186_v28, %v10567_v60 }
 0x421   : > { %v15672_v41 = vadd.f32 %v4178_v3, %v15282_v27  ;;  %v12121_v27 = vld [vmem:[%s18167_s18 + $0x604] sm:$0xf] }
 0x422   : > { %v4555_v35 = vpop.f32.mrf.mxu0  ;;  %5557 = vmatpush.bf16.msra.mxu0 %v10504_v55  ;;  %v10284_v54 = vor.u32 %v12121_v27, %v10281_v25  ;;  %v12119_v27 = vld [vmem:[%s15350_s29 + $0x74] sm:$0xf]  ;;  %v10273_v25 = vld [vmem:[%s15350_s29 + $0x78] sm:$0xf0] }
 0x423   : > { %v4604_v22 = vpop.f32.mrf.mxu1  ;;  %4647 = vmatmul.bf16.gmra.mxu2 %v15200_v19  ;;  %4696 = vmatmul.bf16.gmra.mxu3 %v15202_v48  ;;  %v12137_v19 = vld [vmem:[%s18167_s18 + $0x684] sm:$0xf] }
 0x424   : > { %v4605_v62 = vadd.f32 %v4604_v22, %v4555_v35  ;;  %5606 = vmatpush.bf16.msra.mxu1 %v10568_v0  ;;  %v10348_v3 = vor.u32 %v12137_v19, %v10345_v34  ;;  %5138 = vmatpush.bf16.msrb.mxu2 %v10284_v54  ;;  %v10271_v0 = vld [vmem:[%s15350_s29 + $0x70] sm:$0xf] }
 0x425   : > { %5071 = vmatmul.bf16.gmra.mxu0 %v15674_v6 }
 0x426   : > { %v15681_v53 = vadd.f32 %v4605_v62, %v15291_v46  ;;  %5120 = vmatmul.bf16.gmra.mxu1 %v15676_v59  ;;  %v4131_v48 = vpop.f32.mrf.mxu2  ;;  %v4180_v46 = vpop.f32.mrf.mxu3  ;;  %5187 = vmatpush.bf16.msrb.mxu3 %v10348_v3  ;;  %v12120_v62 = vld [vmem:[%s15350_s29 + $0x74] sm:$0xf0]  ;;  %v10625_v3 = vld [vmem:[%s18167_s18 + $0x7f8] sm:$0xf0] }
 0x427   : > { %v4181_v2 = vadd.f32 %v4180_v46, %v4131_v48  ;;  %v15710_v48 = vor.u32 %v12120_v62, %v10271_v0 }
 0x429   : > { %v15698_v13 = vadd.f32 %v4181_v2, %v15308_v37  ;;  %v15712_v37 = vor.u32 %v12119_v27, %v10273_v25  ;;  %v10439_v27 = vld [vmem:[%s15740_s1] sm:$0xf] }
 0x42a   : > { %v4557_v32 = vpop.f32.mrf.mxu0 }
 0x42b   : > { %v4606_v60 = vpop.f32.mrf.mxu1 }
 0x42c   : > { %v4607_v55 = vadd.f32 %v4606_v60, %v4557_v32 }
 0x42e   : > { %v15701_v28 = vadd.f32 %v4607_v55, %v15311_v8  ;;  %v4133_v35 = vpop.f32.mrf.mxu2  ;;  %v4182_v22 = vpop.f32.mrf.mxu3 }
 0x42f   : > { %v4183_v59 = vadd.f32 %v4182_v22, %v4133_v35 }
 0x431   : > { %v15708_v19 = vadd.f32 %v4183_v59, %v15318_v31  ;;  %v12183_v31 = vld [vmem:[%s18167_s18 + $0x774] sm:$0xf]  ;;  %v10561_v59 = vld [vmem:[%s18167_s18 + $0x778] sm:$0xf0] }
 0x432   : > { %v4560_v46 = vpop.f32.mrf.mxu0  ;;  %v10564_v2 = vor.u32 %v12183_v31, %v10561_v59 }
 0x433   : > { %v4609_v54 = vpop.f32.mrf.mxu1  ;;  %4652 = vmatmul.bf16.gmra.mxu2 %v15284_v45  ;;  %4701 = vmatmul.bf16.gmra.mxu3 %v15286_v49  ;;  %v12199_v45 = vld [vmem:[%s18167_s18 + $0x7f4] sm:$0xf] }
 0x434   : > { %v4610_v34 = vadd.f32 %v4609_v54, %v4560_v46  ;;  %v10628_v60 = vor.u32 %v12199_v45, %v10625_v3  ;;  %5648 = vmatpush.bf16.msra.mxu2 %v10564_v2  ;;  %v12154_v46 = vld [vmem:[%s15740_s1 + $0x4] sm:$0xf0]  ;;  %v12153_v54 = vld [vmem:[%s15740_s1 + $0x4] sm:$0xf] }
 0x435   : > { %5076 = vmatmul.bf16.gmra.mxu0 %v15710_v48  ;;  %v15752_v45 = vor.u32 %v12154_v46, %v10439_v27 }
 0x436   : > { %v15717_v8 = vadd.f32 %v4610_v34, %v15327_v52  ;;  %5125 = vmatmul.bf16.gmra.mxu1 %v15712_v37  ;;  %v4136_v49 = vpop.f32.mrf.mxu2  ;;  %v4185_v52 = vpop.f32.mrf.mxu3  ;;  %5697 = vmatpush.bf16.msra.mxu3 %v10628_v60  ;;  %v10441_v34 = vld [vmem:[%s15740_s1 + $0x8] sm:$0xf0] }
 0x437   : > { %v4186_v32 = vadd.f32 %v4185_v52, %v4136_v49  ;;  %v15754_v49 = vor.u32 %v12153_v54, %v10441_v34  ;;  %v10447_v34 = vld [vmem:[%s15740_s1 + $0x10] sm:$0xf] }
 0x439   : > { %v15734_v55 = vadd.f32 %v4186_v32, %v15344_v10  ;;  %v10553_v32 = vld [vmem:[%s18167_s18 + $0x768] sm:$0xf0] }
 0x43a   : > { %v4562_v0 = vpop.f32.mrf.mxu0 }
 0x43b   : > { %v4611_v35 = vpop.f32.mrf.mxu1 }
 0x43c   : > { %v4612_v22 = vadd.f32 %v4611_v35, %v4562_v0  ;;  %v10617_v0 = vld [vmem:[%s18167_s18 + $0x7e8] sm:$0xf0] }
 0x43e   : > { %v15743_v62 = vadd.f32 %v4612_v22, %v15353_v40  ;;  %v4138_v25 = vpop.f32.mrf.mxu2  ;;  %v4187_v10 = vpop.f32.mrf.mxu3 }
 0x43f   : > { %v4188_v31 = vadd.f32 %v4187_v10, %v4138_v25 }
 0x441   : > { %v15750_v59 = vadd.f32 %v4188_v31, %v15360_v30  ;;  %v12181_v30 = vld [vmem:[%s18167_s18 + $0x764] sm:$0xf] }
 0x442   : > { %v5042_v52 = vpop.f32.mrf.mxu0  ;;  %v10556_v60 = vor.u32 %v12181_v30, %v10553_v32  ;;  %v10449_v30 = vld [vmem:[%s15740_s1 + $0x18] sm:$0xf0] }
 0x443   : > { %v5091_v2 = vpop.f32.mrf.mxu1  ;;  %4657 = vmatmul.bf16.gmra.mxu2 %v15320_v57  ;;  %4706 = vmatmul.bf16.gmra.mxu3 %v15322_v50  ;;  %v12197_v57 = vld [vmem:[%s18167_s18 + $0x7e4] sm:$0xf] }
 0x444   : > { %v5092_v3 = vadd.f32 %v5091_v2, %v5042_v52  ;;  %v10620_v22 = vor.u32 %v12197_v57, %v10617_v0  ;;  %5649 = vmatpush.bf16.msra.mxu2 %v10556_v60  ;;  %v12156_v2 = vld [vmem:[%s15740_s1 + $0x14] sm:$0xf0] }
 0x445   : > { %5558 = vmatmul.bf16.vlgmr.msra.gmra.mxu0 %v15752_v45 }
 0x446   : > { %v15759_v40 = vadd.f32 %v5092_v3, %v15369_v42  ;;  %5607 = vmatmul.bf16.vlgmr.msra.gmra.mxu1 %v15754_v49  ;;  %v4141_v50 = vpop.f32.mrf.mxu2  ;;  %v4190_v42 = vpop.f32.mrf.mxu3  ;;  %5698 = vmatpush.bf16.msra.mxu3 %v10620_v22  ;;  %v12155_v3 = vld [vmem:[%s15740_s1 + $0x14] sm:$0xf] }
 0x447   : > { %v4191_v35 = vadd.f32 %v4190_v42, %v4141_v50  ;;  %v15788_v50 = vor.u32 %v12156_v2, %v10447_v34 }
 0x449   : > { %v15776_v27 = vadd.f32 %v4191_v35, %v15386_v51  ;;  %v15790_v51 = vor.u32 %v12155_v3, %v10449_v30  ;;  %v10545_v35 = vld [vmem:[%s18167_s18 + $0x758] sm:$0xf0]  ;;  %v10455_v30 = vld [vmem:[%s15740_s1 + $0x20] sm:$0xf] }
 0x44a   : > { %v5044_v25 = vpop.f32.mrf.mxu0 }
 0x44b   : > { %v5093_v10 = vpop.f32.mrf.mxu1 }
 0x44c   : > { %v5094_v46 = vadd.f32 %v5093_v10, %v5044_v25  ;;  %v10609_v25 = vld [vmem:[%s18167_s18 + $0x7d8] sm:$0xf0] }
 0x44e   : > { %v15779_v54 = vadd.f32 %v5094_v46, %v15389_v63  ;;  %v4143_v31 = vpop.f32.mrf.mxu2  ;;  %v4192_v52 = vpop.f32.mrf.mxu3 }
 0x44f   : > { %v4193_v32 = vadd.f32 %v4192_v52, %v4143_v31 }
 0x451   : > { %v15786_v57 = vadd.f32 %v4193_v32, %v15396_v11  ;;  %v12179_v11 = vld [vmem:[%s18167_s18 + $0x754] sm:$0xf] }
 0x452   : > { %v5047_v42 = vpop.f32.mrf.mxu0  ;;  %v10548_v22 = vor.u32 %v12179_v11, %v10545_v35  ;;  %v10457_v11 = vld [vmem:[%s15740_s1 + $0x28] sm:$0xf0] }
 0x453   : > { %v5096_v60 = vpop.f32.mrf.mxu1  ;;  %5139 = vmatmul.bf16.vlgmr.msrb.gmra.mxu2 %v15362_v5  ;;  %5188 = vmatmul.bf16.vlgmr.msrb.gmra.mxu3 %v15364_v16  ;;  %v12195_v5 = vld [vmem:[%s18167_s18 + $0x7d4] sm:$0xf] }
 0x454   : > { %v5097_v0 = vadd.f32 %v5096_v60, %v5047_v42  ;;  %v10612_v46 = vor.u32 %v12195_v5, %v10609_v25  ;;  %5650 = vmatpush.bf16.msra.mxu2 %v10548_v22  ;;  %v12158_v60 = vld [vmem:[%s15740_s1 + $0x24] sm:$0xf0] }
 0x455   : > { %5563 = vmatmul.bf16.gmra.mxu0 %v15788_v50 }
 0x456   : > { %v15795_v63 = vadd.f32 %v5097_v0, %v15405_v39  ;;  %5612 = vmatmul.bf16.gmra.mxu1 %v15790_v51  ;;  %v4623_v16 = vpop.f32.mrf.mxu2  ;;  %v4672_v39 = vpop.f32.mrf.mxu3  ;;  %5699 = vmatpush.bf16.msra.mxu3 %v10612_v46  ;;  %v12157_v0 = vld [vmem:[%s15740_s1 + $0x24] sm:$0xf] }
 0x457   : > { %v4673_v10 = vadd.f32 %v4672_v39, %v4623_v16  ;;  %v15824_v16 = vor.u32 %v12158_v60, %v10455_v30 }
 0x459   : > { %v15812_v34 = vadd.f32 %v4673_v10, %v15422_v24  ;;  %v15826_v24 = vor.u32 %v12157_v0, %v10457_v11  ;;  %v10537_v10 = vld [vmem:[%s18167_s18 + $0x748] sm:$0xf0]  ;;  %v10463_v11 = vld [vmem:[%s15740_s1 + $0x30] sm:$0xf] }
 0x45a   : > { %v5049_v31 = vpop.f32.mrf.mxu0 }
 0x45b   : > { %v5098_v52 = vpop.f32.mrf.mxu1 }
 0x45c   : > { %v5099_v2 = vadd.f32 %v5098_v52, %v5049_v31  ;;  %v10601_v31 = vld [vmem:[%s18167_s18 + $0x7c8] sm:$0xf0] }
 0x45e   : > { %v15815_v3 = vadd.f32 %v5099_v2, %v15425_v47  ;;  %v4625_v32 = vpop.f32.mrf.mxu2  ;;  %v4674_v42 = vpop.f32.mrf.mxu3 }
 0x45f   : > { %v4675_v35 = vadd.f32 %v4674_v42, %v4625_v32 }
 0x461   : > { %v15822_v5 = vadd.f32 %v4675_v35, %v15432_v18  ;;  %v12177_v18 = vld [vmem:[%s18167_s18 + $0x744] sm:$0xf] }
 0x462   : > { %v5052_v39 = vpop.f32.mrf.mxu0  ;;  %v10540_v46 = vor.u32 %v12177_v18, %v10537_v10  ;;  %v10465_v18 = vld [vmem:[%s15740_s1 + $0x38] sm:$0xf0] }
 0x463   : > { %v5101_v22 = vpop.f32.mrf.mxu1  ;;  %5144 = vmatmul.bf16.gmra.mxu2 %v15398_v21  ;;  %5193 = vmatmul.bf16.gmra.mxu3 %v15400_v12  ;;  %v12193_v21 = vld [vmem:[%s18167_s18 + $0x7c4] sm:$0xf] }
 0x464   : > { %v5102_v25 = vadd.f32 %v5101_v22, %v5052_v39  ;;  %v10604_v2 = vor.u32 %v12193_v21, %v10601_v31  ;;  %5651 = vmatpush.bf16.msra.mxu2 %v10540_v46  ;;  %v12160_v22 = vld [vmem:[%s15740_s1 + $0x34] sm:$0xf0] }
 0x465   : > { %5568 = vmatmul.bf16.gmra.mxu0 %v15824_v16 }
 0x466   : > { %v15831_v47 = vadd.f32 %v5102_v25, %v15441_v61  ;;  %5617 = vmatmul.bf16.gmra.mxu1 %v15826_v24  ;;  %v4628_v12 = vpop.f32.mrf.mxu2  ;;  %v4677_v61 = vpop.f32.mrf.mxu3  ;;  %5700 = vmatpush.bf16.msra.mxu3 %v10604_v2  ;;  %v12159_v25 = vld [vmem:[%s15740_s1 + $0x34] sm:$0xf] }
 0x467   : > { %v4678_v52 = vadd.f32 %v4677_v61, %v4628_v12  ;;  %v15860_v12 = vor.u32 %v12160_v22, %v10463_v11 }
 0x469   : > { %v15848_v30 = vadd.f32 %v4678_v52, %v15458_v29  ;;  %18307 = vst [vmem:[#allocation20_spill] sm:$0xff] %v15860_v12  ;;  %v15862_v29 = vor.u32 %v12159_v25, %v10465_v18  ;;  %v18309_v52 = vld [vmem:[#allocation14_spill] sm:$0xff] }
 0x46a   : > { %v5054_v32 = vpop.f32.mrf.mxu0 }
 0x46b   : > { %v5103_v42 = vpop.f32.mrf.mxu1  ;;  %18308 = vst [vmem:[#allocation21_spill] sm:$0xff] %v15862_v29 }
 0x46c   : > { %v5104_v60 = vadd.f32 %v5103_v42, %v5054_v32  ;;  %v10529_v32 = vld [vmem:[%s18167_s18 + $0x738] sm:$0xf0]  ;;  %v12191_v42 = vld [vmem:[%s18167_s18 + $0x7b4] sm:$0xf] }
 0x46e   : > { %v15851_v0 = vadd.f32 %v5104_v60, %v15461_v15  ;;  %v4630_v35 = vpop.f32.mrf.mxu2  ;;  %v4679_v39 = vpop.f32.mrf.mxu3  ;;  %v18310_v15 = vld [vmem:[#allocation15_spill] sm:$0xff] }
 0x46f   : > { %v4680_v10 = vadd.f32 %v4679_v39, %v4630_v35  ;;  %v10593_v35 = vld [vmem:[%s18167_s18 + $0x7b8] sm:$0xf0] }
 0x470   : > { %v10596_v22 = vor.u32 %v12191_v42, %v10593_v35 }
 0x471   : > { %v15858_v21 = vadd.f32 %v4680_v10, %v15468_v56  ;;  %v12175_v56 = vld [vmem:[%s18167_s18 + $0x734] sm:$0xf] }
 0x472   : > { %v5057_v61 = vpop.f32.mrf.mxu0  ;;  %v10532_v11 = vor.u32 %v12175_v56, %v10529_v32  ;;  %5701 = vmatpush.bf16.msra.mxu3 %v10596_v22  ;;  %v12162_v56 = vld [vmem:[%s15740_s1 + $0x44] sm:$0xf0]  ;;  %v12161_v32 = vld [vmem:[%s15740_s1 + $0x44] sm:$0xf]  ;;  %v10783_v22 = vld [vmem:[%s18167_s18 + $0x870] sm:$0xf] }
 0x473   : > { %v5106_v46 = vpop.f32.mrf.mxu1  ;;  %5149 = vmatmul.bf16.gmra.mxu2 %v18309_v52  ;;  %5198 = vmatmul.bf16.gmra.mxu3 %v18310_v15 }
 0x474   : > { %v5107_v31 = vadd.f32 %v5106_v46, %v5057_v61  ;;  %5652 = vmatpush.bf16.msra.mxu2 %v10532_v11 }
 0x475   : > { %5573 = vmatmul.bf16.gmra.mxu0 %v15860_v12 }
 0x476   : > { %v15867_v2 = vadd.f32 %v5107_v31, %v15477_v33  ;;  %5622 = vmatmul.bf16.gmra.mxu1 %v15862_v29  ;;  %v4633_v60 = vpop.f32.mrf.mxu2  ;;  %v4682_v33 = vpop.f32.mrf.mxu3  ;;  %v10471_v31 = vld [vmem:[%s15740_s1 + $0x40] sm:$0xf]  ;;  %v10473_v29 = vld [vmem:[%s15740_s1 + $0x48] sm:$0xf0] }
 0x477   : > { %v4683_v39 = vadd.f32 %v4682_v33, %v4633_v60  ;;  %v15896_v60 = vor.u32 %v12162_v56, %v10471_v31  ;;  %v10521_v31 = vld [vmem:[%s18167_s18 + $0x728] sm:$0xf0] }
 0x479   : > { %v15884_v25 = vadd.f32 %v4683_v39, %v15494_v38  ;;  %v15898_v38 = vor.u32 %v12161_v32, %v10473_v29  ;;  %v18311_v39 = vld [vmem:[#allocation19_spill] sm:$0xff]  ;;  %v10847_v29 = vld [vmem:[%s18167_s18 + $0x8f0] sm:$0xf] }
 0x47a   : > { %v5059_v18 = vpop.f32.mrf.mxu0 }
 0x47b   : > { %v5108_v10 = vpop.f32.mrf.mxu1 }
 0x47c   : > { %v5109_v61 = vadd.f32 %v5108_v10, %v5059_v18  ;;  %v12248_v18 = vld [vmem:[%s18167_s18 + $0x8f4] sm:$0xf0] }
 0x47e   : > { %v15887_v46 = vadd.f32 %v5109_v61, %v15497_v1  ;;  %v4635_v52 = vpop.f32.mrf.mxu2  ;;  %v4684_v15 = vpop.f32.mrf.mxu3  ;;  %v18312_v1 = vld [vmem:[#allocation16_spill] sm:$0xff]  ;;  %v12173_v61 = vld [vmem:[%s18167_s18 + $0x724] sm:$0xf] }
 0x47f   : > { %v4685_v12 = vadd.f32 %v4684_v15, %v4635_v52  ;;  %v12189_v52 = vld [vmem:[%s18167_s18 + $0x7a4] sm:$0xf]  ;;  %v10848_v15 = vor.u32 %v12248_v18, %v10847_v29  ;;  %v10524_v32 = vor.u32 %v12173_v61, %v10521_v31 }
 0x481   : > { %v15894_v42 = vadd.f32 %v4685_v12, %v15504_v43  ;;  %v12232_v43 = vld [vmem:[%s18167_s18 + $0x874] sm:$0xf0]  ;;  %6116 = vmatpush.bf16.msrb.mxu1 %v10848_v15  ;;  %5653 = vmatpush.bf16.msra.mxu2 %v10524_v32  ;;  %v10767_v15 = vld [vmem:[%s18167_s18 + $0x850] sm:$0xf] }
 0x482   : > { %v5062_v33 = vpop.f32.mrf.mxu0  ;;  %v10784_v12 = vor.u32 %v12232_v43, %v10783_v22  ;;  %v10839_v22 = vld [vmem:[%s18167_s18 + $0x8e0] sm:$0xf]  ;;  %v12244_v32 = vld [vmem:[%s18167_s18 + $0x8d4] sm:$0xf0] }
 0x483   : > { %v5111_v11 = vpop.f32.mrf.mxu1  ;;  %5154 = vmatmul.bf16.gmra.mxu2 %v18311_v39  ;;  %5203 = vmatmul.bf16.gmra.mxu3 %v18312_v1  ;;  %v10775_v39 = vld [vmem:[%s18167_s18 + $0x860] sm:$0xf]  ;;  %v12230_v1 = vld [vmem:[%s18167_s18 + $0x864] sm:$0xf0] }
 0x484   : > { %v5112_v35 = vadd.f32 %v5111_v11, %v5062_v33  ;;  %v10585_v33 = vld [vmem:[%s18167_s18 + $0x7a8] sm:$0xf0]  ;;  %6067 = vmatpush.bf16.msrb.mxu0 %v10784_v12  ;;  %v10776_v43 = vor.u32 %v12230_v1, %v10775_v39  ;;  %v12246_v12 = vld [vmem:[%s18167_s18 + $0x8e4] sm:$0xf0] }
 0x485   : > { %5578 = vmatmul.bf16.gmra.mxu0 %v15896_v60  ;;  %v10840_v18 = vor.u32 %v12246_v12, %v10839_v22  ;;  %v12164_v22 = vld [vmem:[%s15740_s1 + $0x54] sm:$0xf0]  ;;  %v10481_v12 = vld [vmem:[%s15740_s1 + $0x58] sm:$0xf0] }
 0x486   : > { %v15915_v10 = vadd.f32 %v5112_v35, %v15525_v14  ;;  %5627 = vmatmul.bf16.gmra.mxu1 %v15898_v38  ;;  %v4638_v56 = vpop.f32.mrf.mxu2  ;;  %v4687_v14 = vpop.f32.mrf.mxu3  ;;  %v10588_v35 = vor.u32 %v12189_v52, %v10585_v33 }
 0x487   : > { %v4688_v11 = vadd.f32 %v4687_v14, %v4638_v56  ;;  %6117 = vmatpush.bf16.msrb.mxu1 %v10840_v18  ;;  %v12228_v56 = vld [vmem:[%s18167_s18 + $0x854] sm:$0xf0] }
 0x488   : > { %5702 = vmatpush.bf16.msra.mxu3 %v10588_v35  ;;  %6068 = vmatpush.bf16.msrb.mxu0 %v10776_v43  ;;  %v10768_v14 = vor.u32 %v12228_v56, %v10767_v15  ;;  %v12163_v43 = vld [vmem:[%s15740_s1 + $0x54] sm:$0xf]  ;;  %v12242_v15 = vld [vmem:[%s18167_s18 + $0x8c4] sm:$0xf0] }
 0x489   : > { %v15944_v29 = vadd.f32 %v4688_v11, %v15554_v7  ;;  %v10831_v7 = vld [vmem:[%s18167_s18 + $0x8d0] sm:$0xf] }
 0x48a   : > { %v5064_v61 = vpop.f32.mrf.mxu0  ;;  %v10479_v11 = vld [vmem:[%s15740_s1 + $0x50] sm:$0xf]  ;;  %v10832_v35 = vor.u32 %v12244_v32, %v10831_v7 }
 0x48b   : > { %v5113_v31 = vpop.f32.mrf.mxu1  ;;  %v15980_v7 = vor.u32 %v12164_v22, %v10479_v11  ;;  %v10815_v22 = vld [vmem:[%s18167_s18 + $0x8b0] sm:$0xf] }
 0x48c   : > { %v5114_v52 = vadd.f32 %v5113_v31, %v5064_v61  ;;  %6069 = vmatpush.bf16.msrb.mxu0 %v10768_v14  ;;  %6118 = vmatpush.bf16.msrb.mxu1 %v10832_v35  ;;  %v10759_v61 = vld [vmem:[%s18167_s18 + $0x840] sm:$0xf]  ;;  %v12226_v31 = vld [vmem:[%s18167_s18 + $0x844] sm:$0xf0]  ;;  %v15982_v14 = vor.u32 %v12163_v43, %v10481_v12  ;;  %v12171_v43 = vld [vmem:[%s18167_s18 + $0x714] sm:$0xf] }
 0x48d   : > { %v10513_v12 = vld [vmem:[%s18167_s18 + $0x718] sm:$0xf0] }
 0x48e   : > { %v15959_v33 = vadd.f32 %v5114_v52, %v15569_v17  ;;  %v4640_v39 = vpop.f32.mrf.mxu2  ;;  %v4689_v1 = vpop.f32.mrf.mxu3  ;;  %v10823_v17 = vld [vmem:[%s18167_s18 + $0x8c0] sm:$0xf]  ;;  %v10760_v52 = vor.u32 %v12226_v31, %v10759_v61  ;;  %18313 = vst [vmem:[#allocation13_spill] sm:$0xff] %v15982_v14  ;;  %v10751_v61 = vld [vmem:[%s18167_s18 + $0x830] sm:$0xf] }
 0x48f   : > { %v4690_v18 = vadd.f32 %v4689_v1, %v4640_v39  ;;  %v10824_v32 = vor.u32 %v12242_v15, %v10823_v17  ;;  %v10577_v15 = vld [vmem:[%s18167_s18 + $0x798] sm:$0xf0] }
 0x490   : > { %6070 = vmatpush.bf16.msrb.mxu0 %v10760_v52  ;;  %v10516_v52 = vor.u32 %v12171_v43, %v10513_v12 }
 0x491   : > { %v15978_v56 = vadd.f32 %v4690_v18, %v15588_v20  ;;  %v12224_v20 = vld [vmem:[%s18167_s18 + $0x834] sm:$0xf0]  ;;  %6119 = vmatpush.bf16.msrb.mxu1 %v10824_v32  ;;  %v12187_v18 = vld [vmem:[%s18167_s18 + $0x794] sm:$0xf] }
 0x492   : > { %v5067_v35 = vpop.f32.mrf.mxu0  ;;  %v10752_v11 = vor.u32 %v12224_v20, %v10751_v61  ;;  %v10807_v61 = vld [vmem:[%s18167_s18 + $0x8a0] sm:$0xf]  ;;  %5654 = vmatpush.bf16.msra.mxu2 %v10516_v52  ;;  %v12236_v52 = vld [vmem:[%s18167_s18 + $0x894] sm:$0xf0] }
 0x493   : > { %v5116_v39 = vpop.f32.mrf.mxu1  ;;  %5159 = vmatmul.bf16.gmra.mxu2 %v15506_v36  ;;  %5208 = vmatmul.bf16.gmra.mxu3 %v15508_v58  ;;  %v12240_v36 = vld [vmem:[%s18167_s18 + $0x8b4] sm:$0xf0] }
 0x494   : > { %v5117_v1 = vadd.f32 %v5116_v39, %v5067_v35  ;;  %v10816_v31 = vor.u32 %v12240_v36, %v10815_v22  ;;  %6071 = vmatpush.bf16.msrb.mxu0 %v10752_v11  ;;  %v10580_v35 = vor.u32 %v12187_v18, %v10577_v15  ;;  %v10743_v39 = vld [vmem:[%s18167_s18 + $0x820] sm:$0xf]  ;;  %v12238_v11 = vld [vmem:[%s18167_s18 + $0x8a4] sm:$0xf0] }
 0x495   : > { %5583 = vmatmul.bf16.gmra.mxu0 %v15980_v7  ;;  %v10808_v36 = vor.u32 %v12238_v11, %v10807_v61  ;;  %v12166_v61 = vld [vmem:[%s15740_s1 + $0x64] sm:$0xf0]  ;;  %v10489_v11 = vld [vmem:[%s15740_s1 + $0x68] sm:$0xf0] }
 0x496   : > { %v15999_v58 = vadd.f32 %v5117_v1, %v15609_v9  ;;  %5632 = vmatmul.bf16.gmra.mxu1 %v15982_v14  ;;  %v4643_v17 = vpop.f32.mrf.mxu2  ;;  %v4692_v9 = vpop.f32.mrf.mxu3  ;;  %v12222_v1 = vld [vmem:[%s18167_s18 + $0x824] sm:$0xf0]  ;;  %5703 = vmatpush.bf16.msra.mxu3 %v10580_v35 }
 0x497   : > { %v4693_v32 = vadd.f32 %v4692_v9, %v4643_v17  ;;  %6120 = vmatpush.bf16.msrb.mxu1 %v10816_v31  ;;  %v10744_v20 = vor.u32 %v12222_v1, %v10743_v39  ;;  %v10735_v31 = vld [vmem:[%s18167_s18 + $0x810] sm:$0xf]  ;;  %v12220_v17 = vld [vmem:[%s18167_s18 + $0x814] sm:$0xf0] }
 0x498   : > { %v10736_v9 = vor.u32 %v12220_v17, %v10735_v31  ;;  %v12234_v31 = vld [vmem:[%s18167_s18 + $0x884] sm:$0xf0] }
 0x499   : > { %v16028_v22 = vadd.f32 %v4693_v32, %v15638_v23  ;;  %6072 = vmatpush.bf16.msrb.mxu0 %v10744_v20  ;;  %v10799_v23 = vld [vmem:[%s18167_s18 + $0x890] sm:$0xf]  ;;  %v10487_v32 = vld [vmem:[%s15740_s1 + $0x60] sm:$0xf]  ;;  %v12165_v20 = vld [vmem:[%s15740_s1 + $0x64] sm:$0xf] }
 0x49a   : > { %v5069_v43 = vpop.f32.mrf.mxu0  ;;  %v10800_v35 = vor.u32 %v12236_v52, %v10799_v23  ;;  %v16064_v23 = vor.u32 %v12166_v61, %v10487_v32  ;;  %v10505_v32 = vld [vmem:[%s18167_s18 + $0x708] sm:$0xf0] }
 0x49b   : > { %v5118_v12 = vpop.f32.mrf.mxu1  ;;  %6121 = vmatpush.bf16.msrb.mxu1 %v10808_v36  ;;  %v10727_v36 = vld [vmem:[%s18167_s18 + $0x800] sm:$0xf]  ;;  %v10569_v61 = vld [vmem:[%s18167_s18 + $0x788] sm:$0xf0] }
 0x49c   : > { %v5119_v18 = vadd.f32 %v5118_v12, %v5069_v43  ;;  %v12218_v12 = vld [vmem:[%s18167_s18 + $0x804] sm:$0xf0] }
 0x49d   : > { %6073 = vmatpush.bf16.msrb.mxu0 %v10736_v9  ;;  %v16066_v9 = vor.u32 %v12165_v20, %v10489_v11 }
 0x49e   : > { %v16043_v15 = vadd.f32 %v5119_v18, %v15653_v44  ;;  %v4645_v39 = vpop.f32.mrf.mxu2  ;;  %v4694_v1 = vpop.f32.mrf.mxu3  ;;  %v10791_v44 = vld [vmem:[%s18167_s18 + $0x880] sm:$0xf]  ;;  %v10728_v18 = vor.u32 %v12218_v12, %v10727_v36 }
 0x49f   : > { %v4695_v43 = vadd.f32 %v4694_v1, %v4645_v39  ;;  %6122 = vmatpush.bf16.msrb.mxu1 %v10800_v35  ;;  %18314 = vst [vmem:[#allocation18_spill] sm:$0xff] %v16066_v9  ;;  %v10792_v52 = vor.u32 %v12234_v31, %v10791_v44  ;;  %v10495_v31 = vld [vmem:[%s15740_s1 + $0x70] sm:$0xf] }
 0x4a1   : > { %v16062_v17 = vadd.f32 %v4695_v43, %v15672_v41  ;;  %6074 = vmatpush.bf16.msrb.mxu0 %v10728_v18  ;;  %v12169_v41 = vld [vmem:[%s18167_s18 + $0x704] sm:$0xf] }
 0x4a2   : > { %v5072_v39 = vpop.f32.mrf.mxu0 }
 0x4a3   : > { %v5121_v1 = vpop.f32.mrf.mxu1  ;;  %5164 = vmatmul.bf16.gmra.mxu2 %v15590_v4  ;;  %5213 = vmatmul.bf16.gmra.mxu3 %v15592_v26  ;;  %v12185_v4 = vld [vmem:[%s18167_s18 + $0x784] sm:$0xf] }
 0x4a4   : > { %v5122_v14 = vadd.f32 %v5121_v1, %v5072_v39  ;;  %6123 = vmatpush.bf16.msrb.mxu1 %v10792_v52  ;;  %v10572_v11 = vor.u32 %v12185_v4, %v10569_v61  ;;  %v12168_v1 = vld [vmem:[%s15740_s1 + $0x74] sm:$0xf0] }
 0x4a5   : > { %5588 = vmatmul.bf16.gmra.mxu0 %v16064_v23 }
 0x4a6   : > { %v16071_v35 = vadd.f32 %v5122_v14, %v15681_v53  ;;  %5637 = vmatmul.bf16.gmra.mxu1 %v16066_v9  ;;  %v4648_v26 = vpop.f32.mrf.mxu2  ;;  %v4697_v53 = vpop.f32.mrf.mxu3  ;;  %v10508_v14 = vor.u32 %v12169_v41, %v10505_v32  ;;  %5704 = vmatpush.bf16.msra.mxu3 %v10572_v11  ;;  %v12167_v41 = vld [vmem:[%s15740_s1 + $0x74] sm:$0xf]  ;;  %v10497_v32 = vld [vmem:[%s15740_s1 + $0x78] sm:$0xf0] }
 0x4a7   : > { %v4698_v20 = vadd.f32 %v4697_v53, %v4648_v26  ;;  %v16100_v26 = vor.u32 %v12168_v1, %v10495_v31 }
 0x4a8   : > { %5655 = vmatpush.bf16.msra.mxu2 %v10508_v14 }
 0x4a9   : > { %v16088_v43 = vadd.f32 %v4698_v20, %v15698_v13  ;;  %v16102_v13 = vor.u32 %v12167_v41, %v10497_v32 }
 0x4aa   : > { %v5074_v36 = vpop.f32.mrf.mxu0 }
 0x4ab   : > { %v5123_v12 = vpop.f32.mrf.mxu1 }
 0x4ac   : > { %v5124_v44 = vadd.f32 %v5123_v12, %v5074_v36  ;;  %v10849_v12 = vld [vmem:[%s18167_s18 + $0x8f8] sm:$0xf0] }
 0x4ae   : > { %v16091_v18 = vadd.f32 %v5124_v44, %v15701_v28  ;;  %v4650_v52 = vpop.f32.mrf.mxu2  ;;  %v4699_v39 = vpop.f32.mrf.mxu3  ;;  %v18315_v28 = vld [vmem:[#allocation17_spill] sm:$0xff] }
 0x4af   : > { %v4700_v9 = vadd.f32 %v4699_v39, %v4650_v52 }
 0x4b1   : > { %v16098_v4 = vadd.f32 %v4700_v9, %v15708_v19  ;;  %v12231_v19 = vld [vmem:[%s18167_s18 + $0x874] sm:$0xf]  ;;  %v10785_v9 = vld [vmem:[%s18167_s18 + $0x878] sm:$0xf0] }
 0x4b2   : > { %v5077_v53 = vpop.f32.mrf.mxu0  ;;  %v10788_v36 = vor.u32 %v12231_v19, %v10785_v9  ;;  %v10665_v19 = vld [vmem:[%s16130_s24 + $0x8] sm:$0xf0] }
 0x4b3   : > { %v5126_v14 = vpop.f32.mrf.mxu1  ;;  %5169 = vmatmul.bf16.gmra.mxu2 %v15674_v6  ;;  %5218 = vmatmul.bf16.gmra.mxu3 %v18315_v28  ;;  %v12247_v6 = vld [vmem:[%s18167_s18 + $0x8f4] sm:$0xf]  ;;  %v12201_v28 = vld [vmem:[%s16130_s24 + $0x4] sm:$0xf] }
 0x4b4   : > { %v5127_v61 = vadd.f32 %v5126_v14, %v5077_v53  ;;  %v10852_v31 = vor.u32 %v12247_v6, %v10849_v12  ;;  %6165 = vmatpush.bf16.msrb.mxu2 %v10788_v36  ;;  %v10663_v53 = vld [vmem:[%s16130_s24] sm:$0xf] }
 0x4b5   : > { %5593 = vmatmul.bf16.gmra.mxu0 %v16100_v26 }
 0x4b6   : > { %v16107_v20 = vadd.f32 %v5127_v61, %v15717_v8  ;;  %5642 = vmatmul.bf16.gmra.mxu1 %v16102_v13  ;;  %v4653_v11 = vpop.f32.mrf.mxu2  ;;  %v4702_v8 = vpop.f32.mrf.mxu3  ;;  %6214 = vmatpush.bf16.msrb.mxu3 %v10852_v31  ;;  %v12202_v61 = vld [vmem:[%s16130_s24 + $0x4] sm:$0xf0]  ;;  %v10777_v31 = vld [vmem:[%s18167_s18 + $0x868] sm:$0xf0] }
 0x4b7   : > { %v4703_v44 = vadd.f32 %v4702_v8, %v4653_v11  ;;  %v16142_v11 = vor.u32 %v12202_v61, %v10663_v53  ;;  %v16144_v8 = vor.u32 %v12201_v28, %v10665_v19 }
 0x4b9   : > { %v16124_v52 = vadd.f32 %v4703_v44, %v15734_v55  ;;  %18316 = vst [vmem:[#allocation11_spill] sm:$0xff] %v16144_v8 }
 0x4ba   : > { %v5079_v39 = vpop.f32.mrf.mxu0 }
 0x4bb   : > { %v5128_v1 = vpop.f32.mrf.mxu1 }
 0x4bc   : > { %v5129_v41 = vadd.f32 %v5128_v1, %v5079_v39  ;;  %v10841_v1 = vld [vmem:[%s18167_s18 + $0x8e8] sm:$0xf0] }
 0x4be   : > { %v16133_v32 = vadd.f32 %v5129_v41, %v15743_v62  ;;  %v4655_v14 = vpop.f32.mrf.mxu2  ;;  %v4704_v55 = vpop.f32.mrf.mxu3 }
 0x4bf   : > { %v4705_v9 = vadd.f32 %v4704_v55, %v4655_v14 }
 0x4c1   : > { %v16140_v6 = vadd.f32 %v4705_v9, %v15750_v59  ;;  %v12229_v59 = vld [vmem:[%s18167_s18 + $0x864] sm:$0xf]  ;;  %v10671_v9 = vld [vmem:[%s16130_s24 + $0x10] sm:$0xf] }
 0x4c2   : > { %v5559_v36 = vpop.f32.mrf.mxu0  ;;  %v10780_v39 = vor.u32 %v12229_v59, %v10777_v31  ;;  %v12203_v59 = vld [vmem:[%s16130_s24 + $0x14] sm:$0xf]  ;;  %v10673_v31 = vld [vmem:[%s16130_s24 + $0x18] sm:$0xf0] }
 0x4c3   : > { %v5608_v12 = vpop.f32.mrf.mxu1  ;;  %5174 = vmatmul.bf16.gmra.mxu2 %v15710_v48  ;;  %5223 = vmatmul.bf16.gmra.mxu3 %v15712_v37  ;;  %v12245_v48 = vld [vmem:[%s18167_s18 + $0x8e4] sm:$0xf] }
 0x4c4   : > { %v5609_v44 = vadd.f32 %v5608_v12, %v5559_v36  ;;  %v10844_v53 = vor.u32 %v12245_v48, %v10841_v1  ;;  %6166 = vmatpush.bf16.msrb.mxu2 %v10780_v39 }
 0x4c5   : > { %6075 = vmatmul.bf16.vlgmr.msrb.gmra.mxu0 %v16142_v11 }
 0x4c6   : > { %v16149_v62 = vadd.f32 %v5609_v44, %v15759_v40  ;;  %6124 = vmatmul.bf16.vlgmr.msrb.gmra.mxu1 %v16144_v8  ;;  %v4658_v37 = vpop.f32.mrf.mxu2  ;;  %v4707_v40 = vpop.f32.mrf.mxu3  ;;  %6215 = vmatpush.bf16.msrb.mxu3 %v10844_v53  ;;  %v12204_v44 = vld [vmem:[%s16130_s24 + $0x14] sm:$0xf0]  ;;  %v10833_v53 = vld [vmem:[%s18167_s18 + $0x8d8] sm:$0xf0] }
 0x4c7   : > { %v4708_v41 = vadd.f32 %v4707_v40, %v4658_v37  ;;  %v16178_v37 = vor.u32 %v12204_v44, %v10671_v9 }
 0x4c9   : > { %v16166_v14 = vadd.f32 %v4708_v41, %v15776_v27  ;;  %v16180_v27 = vor.u32 %v12203_v59, %v10673_v31  ;;  %v10679_v59 = vld [vmem:[%s16130_s24 + $0x20] sm:$0xf] }
 0x4ca   : > { %v5561_v55 = vpop.f32.mrf.mxu0 }
 0x4cb   : > { %v5610_v61 = vpop.f32.mrf.mxu1 }
 0x4cc   : > { %v5611_v28 = vadd.f32 %v5610_v61, %v5561_v55 }
 0x4ce   : > { %v16169_v19 = vadd.f32 %v5611_v28, %v15779_v54  ;;  %v4660_v36 = vpop.f32.mrf.mxu2  ;;  %v4709_v12 = vpop.f32.mrf.mxu3 }
 0x4cf   : > { %v4710_v8 = vadd.f32 %v4709_v12, %v4660_v36 }
 0x4d1   : > { %v16176_v48 = vadd.f32 %v4710_v8, %v15786_v57  ;;  %v12227_v57 = vld [vmem:[%s18167_s18 + $0x854] sm:$0xf]  ;;  %v10769_v8 = vld [vmem:[%s18167_s18 + $0x858] sm:$0xf0] }
 0x4d2   : > { %v5564_v40 = vpop.f32.mrf.mxu0  ;;  %v10772_v41 = vor.u32 %v12227_v57, %v10769_v8  ;;  %v10681_v57 = vld [vmem:[%s16130_s24 + $0x28] sm:$0xf0] }
 0x4d3   : > { %v5613_v39 = vpop.f32.mrf.mxu1  ;;  %5656 = vmatmul.bf16.vlgmr.msra.gmra.mxu2 %v15752_v45  ;;  %5705 = vmatmul.bf16.vlgmr.msra.gmra.mxu3 %v15754_v49  ;;  %v12243_v45 = vld [vmem:[%s18167_s18 + $0x8d4] sm:$0xf] }
 0x4d4   : > { %v5614_v1 = vadd.f32 %v5613_v39, %v5564_v40  ;;  %v10836_v61 = vor.u32 %v12243_v45, %v10833_v53  ;;  %6167 = vmatpush.bf16.msrb.mxu2 %v10772_v41  ;;  %v12206_v39 = vld [vmem:[%s16130_s24 + $0x24] sm:$0xf0] }
 0x4d5   : > { %6080 = vmatmul.bf16.gmra.mxu0 %v16178_v37 }
 0x4d6   : > { %v16185_v54 = vadd.f32 %v5614_v1, %v15795_v63  ;;  %6129 = vmatmul.bf16.gmra.mxu1 %v16180_v27  ;;  %v5140_v49 = vpop.f32.mrf.mxu2  ;;  %v5189_v63 = vpop.f32.mrf.mxu3  ;;  %6216 = vmatpush.bf16.msrb.mxu3 %v10836_v61  ;;  %v12205_v1 = vld [vmem:[%s16130_s24 + $0x24] sm:$0xf] }
 0x4d7   : > { %v5190_v55 = vadd.f32 %v5189_v63, %v5140_v49  ;;  %v16214_v49 = vor.u32 %v12206_v39, %v10679_v59 }
 0x4d9   : > { %v16202_v28 = vadd.f32 %v5190_v55, %v15812_v34  ;;  %v16216_v34 = vor.u32 %v12205_v1, %v10681_v57  ;;  %v10761_v55 = vld [vmem:[%s18167_s18 + $0x848] sm:$0xf0]  ;;  %v10687_v57 = vld [vmem:[%s16130_s24 + $0x30] sm:$0xf] }
 0x4da   : > { %v5566_v9 = vpop.f32.mrf.mxu0 }
 0x4db   : > { %v5615_v36 = vpop.f32.mrf.mxu1 }
 0x4dc   : > { %v5616_v12 = vadd.f32 %v5615_v36, %v5566_v9  ;;  %v10825_v9 = vld [vmem:[%s18167_s18 + $0x8c8] sm:$0xf0] }
 0x4de   : > { %v16205_v44 = vadd.f32 %v5616_v12, %v15815_v3  ;;  %v5142_v31 = vpop.f32.mrf.mxu2  ;;  %v5191_v40 = vpop.f32.mrf.mxu3 }
 0x4df   : > { %v5192_v8 = vadd.f32 %v5191_v40, %v5142_v31 }
 0x4e1   : > { %v16212_v45 = vadd.f32 %v5192_v8, %v15822_v5  ;;  %v12225_v5 = vld [vmem:[%s18167_s18 + $0x844] sm:$0xf] }
 0x4e2   : > { %v5569_v63 = vpop.f32.mrf.mxu0  ;;  %v10764_v61 = vor.u32 %v12225_v5, %v10761_v55  ;;  %v10689_v5 = vld [vmem:[%s16130_s24 + $0x38] sm:$0xf0] }
 0x4e3   : > { %v5618_v41 = vpop.f32.mrf.mxu1  ;;  %5661 = vmatmul.bf16.gmra.mxu2 %v15788_v50  ;;  %5710 = vmatmul.bf16.gmra.mxu3 %v15790_v51  ;;  %v12241_v50 = vld [vmem:[%s18167_s18 + $0x8c4] sm:$0xf] }
 0x4e4   : > { %v5619_v53 = vadd.f32 %v5618_v41, %v5569_v63  ;;  %v10828_v12 = vor.u32 %v12241_v50, %v10825_v9  ;;  %6168 = vmatpush.bf16.msrb.mxu2 %v10764_v61  ;;  %v12208_v41 = vld [vmem:[%s16130_s24 + $0x34] sm:$0xf0] }
 0x4e5   : > { %6085 = vmatmul.bf16.gmra.mxu0 %v16214_v49 }
 0x4e6   : > { %v16221_v3 = vadd.f32 %v5619_v53, %v15831_v47  ;;  %6134 = vmatmul.bf16.gmra.mxu1 %v16216_v34  ;;  %v5145_v51 = vpop.f32.mrf.mxu2  ;;  %v5194_v47 = vpop.f32.mrf.mxu3  ;;  %6217 = vmatpush.bf16.msrb.mxu3 %v10828_v12  ;;  %v12207_v53 = vld [vmem:[%s16130_s24 + $0x34] sm:$0xf] }
 0x4e7   : > { %v5195_v36 = vadd.f32 %v5194_v47, %v5145_v51  ;;  %v16250_v51 = vor.u32 %v12208_v41, %v10687_v57 }
 0x4e9   : > { %v16238_v59 = vadd.f32 %v5195_v36, %v15848_v30  ;;  %v16252_v30 = vor.u32 %v12207_v53, %v10689_v5  ;;  %v10753_v36 = vld [vmem:[%s18167_s18 + $0x838] sm:$0xf0]  ;;  %v10695_v5 = vld [vmem:[%s16130_s24 + $0x40] sm:$0xf] }
 0x4ea   : > { %v5571_v31 = vpop.f32.mrf.mxu0 }
 0x4eb   : > { %v5620_v40 = vpop.f32.mrf.mxu1 }
 0x4ec   : > { %v5621_v39 = vadd.f32 %v5620_v40, %v5571_v31  ;;  %v10817_v31 = vld [vmem:[%s18167_s18 + $0x8b8] sm:$0xf0] }
 0x4ee   : > { %v16241_v1 = vadd.f32 %v5621_v39, %v15851_v0  ;;  %v5147_v8 = vpop.f32.mrf.mxu2  ;;  %v5196_v63 = vpop.f32.mrf.mxu3 }
 0x4ef   : > { %v5197_v55 = vadd.f32 %v5196_v63, %v5147_v8 }
 0x4f1   : > { %v16248_v50 = vadd.f32 %v5197_v55, %v15858_v21  ;;  %v12223_v21 = vld [vmem:[%s18167_s18 + $0x834] sm:$0xf] }
 0x4f2   : > { %v5574_v47 = vpop.f32.mrf.mxu0  ;;  %v10756_v12 = vor.u32 %v12223_v21, %v10753_v36  ;;  %v10697_v21 = vld [vmem:[%s16130_s24 + $0x48] sm:$0xf0] }
 0x4f3   : > { %v5623_v61 = vpop.f32.mrf.mxu1  ;;  %5666 = vmatmul.bf16.gmra.mxu2 %v15824_v16  ;;  %5715 = vmatmul.bf16.gmra.mxu3 %v15826_v24  ;;  %v12239_v16 = vld [vmem:[%s18167_s18 + $0x8b4] sm:$0xf] }
 0x4f4   : > { %v5624_v9 = vadd.f32 %v5623_v61, %v5574_v47  ;;  %v10820_v39 = vor.u32 %v12239_v16, %v10817_v31  ;;  %6169 = vmatpush.bf16.msrb.mxu2 %v10756_v12  ;;  %v12210_v61 = vld [vmem:[%s16130_s24 + $0x44] sm:$0xf0] }
 0x4f5   : > { %6090 = vmatmul.bf16.gmra.mxu0 %v16250_v51 }
 0x4f6   : > { %v16257_v0 = vadd.f32 %v5624_v9, %v15867_v2  ;;  %6139 = vmatmul.bf16.gmra.mxu1 %v16252_v30  ;;  %v5150_v24 = vpop.f32.mrf.mxu2  ;;  %v5199_v2 = vpop.f32.mrf.mxu3  ;;  %6218 = vmatpush.bf16.msrb.mxu3 %v10820_v39  ;;  %v12209_v9 = vld [vmem:[%s16130_s24 + $0x44] sm:$0xf]  ;;  %v11007_v39 = vld [vmem:[%s18167_s18 + $0x970] sm:$0xf] }
 0x4f7   : > { %v5200_v40 = vadd.f32 %v5199_v2, %v5150_v24  ;;  %v16286_v24 = vor.u32 %v12210_v61, %v10695_v5  ;;  %v12237_v61 = vld [vmem:[%s18167_s18 + $0x8a4] sm:$0xf] }
 0x4f9   : > { %v16274_v57 = vadd.f32 %v5200_v40, %v15884_v25  ;;  %v16288_v25 = vor.u32 %v12209_v9, %v10697_v21  ;;  %v18317_v40 = vld [vmem:[#allocation20_spill] sm:$0xff] }
 0x4fa   : > { %v5576_v8 = vpop.f32.mrf.mxu0 }
 0x4fb   : > { %v5625_v63 = vpop.f32.mrf.mxu1 }
 0x4fc   : > { %v5626_v41 = vadd.f32 %v5625_v63, %v5576_v8  ;;  %v11071_v63 = vld [vmem:[%s18167_s18 + $0x9f0] sm:$0xf] }
 0x4fe   : > { %v16277_v53 = vadd.f32 %v5626_v41, %v15887_v46  ;;  %v5152_v55 = vpop.f32.mrf.mxu2  ;;  %v5201_v47 = vpop.f32.mrf.mxu3  ;;  %v18318_v46 = vld [vmem:[#allocation21_spill] sm:$0xff]  ;;  %v12296_v41 = vld [vmem:[%s18167_s18 + $0x9f4] sm:$0xf0] }
 0x4ff   : > { %v5202_v36 = vadd.f32 %v5201_v47, %v5152_v55  ;;  %v12221_v55 = vld [vmem:[%s18167_s18 + $0x824] sm:$0xf]  ;;  %v10745_v47 = vld [vmem:[%s18167_s18 + $0x828] sm:$0xf0]  ;;  %v11072_v9 = vor.u32 %v12296_v41, %v11071_v63 }
 0x501   : > { %v16284_v16 = vadd.f32 %v5202_v36, %v15894_v42  ;;  %v12280_v42 = vld [vmem:[%s18167_s18 + $0x974] sm:$0xf0]  ;;  %v10748_v36 = vor.u32 %v12221_v55, %v10745_v47  ;;  %6633 = vmatpush.bf16.msra.mxu1 %v11072_v9  ;;  %v10991_v9 = vld [vmem:[%s18167_s18 + $0x950] sm:$0xf] }
 0x502   : > { %v5579_v2 = vpop.f32.mrf.mxu0  ;;  %v11008_v8 = vor.u32 %v12280_v42, %v11007_v39  ;;  %v11063_v39 = vld [vmem:[%s18167_s18 + $0x9e0] sm:$0xf] }
 0x503   : > { %v5628_v12 = vpop.f32.mrf.mxu1  ;;  %5671 = vmatmul.bf16.gmra.mxu2 %v18317_v40  ;;  %5720 = vmatmul.bf16.gmra.mxu3 %v18318_v46  ;;  %v10999_v40 = vld [vmem:[%s18167_s18 + $0x960] sm:$0xf]  ;;  %v12278_v46 = vld [vmem:[%s18167_s18 + $0x964] sm:$0xf0] }
 0x504   : > { %v5629_v31 = vadd.f32 %v5628_v12, %v5579_v2  ;;  %v10809_v2 = vld [vmem:[%s18167_s18 + $0x8a8] sm:$0xf0]  ;;  %6584 = vmatpush.bf16.msra.mxu0 %v11008_v8  ;;  %6170 = vmatpush.bf16.msrb.mxu2 %v10748_v36  ;;  %v11000_v42 = vor.u32 %v12278_v46, %v10999_v40  ;;  %v12294_v8 = vld [vmem:[%s18167_s18 + $0x9e4] sm:$0xf0]  ;;  %v12292_v36 = vld [vmem:[%s18167_s18 + $0x9d4] sm:$0xf0] }
 0x505   : > { %6095 = vmatmul.bf16.gmra.mxu0 %v16286_v24  ;;  %v11064_v41 = vor.u32 %v12294_v8, %v11063_v39  ;;  %v12212_v39 = vld [vmem:[%s16130_s24 + $0x54] sm:$0xf0]  ;;  %v10705_v8 = vld [vmem:[%s16130_s24 + $0x58] sm:$0xf0] }
 0x506   : > { %v16305_v5 = vadd.f32 %v5629_v31, %v15915_v10  ;;  %6144 = vmatmul.bf16.gmra.mxu1 %v16288_v25  ;;  %v5155_v21 = vpop.f32.mrf.mxu2  ;;  %v5204_v10 = vpop.f32.mrf.mxu3  ;;  %v10812_v31 = vor.u32 %v12237_v61, %v10809_v2 }
 0x507   : > { %v5205_v12 = vadd.f32 %v5204_v10, %v5155_v21  ;;  %6634 = vmatpush.bf16.msra.mxu1 %v11064_v41  ;;  %v12276_v21 = vld [vmem:[%s18167_s18 + $0x954] sm:$0xf0] }
 0x508   : > { %6219 = vmatpush.bf16.msrb.mxu3 %v10812_v31  ;;  %6585 = vmatpush.bf16.msra.mxu0 %v11000_v42  ;;  %v10992_v10 = vor.u32 %v12276_v21, %v10991_v9  ;;  %v12211_v42 = vld [vmem:[%s16130_s24 + $0x54] sm:$0xf]  ;;  %v12290_v9 = vld [vmem:[%s18167_s18 + $0x9c4] sm:$0xf0] }
 0x509   : > { %v16334_v63 = vadd.f32 %v5205_v12, %v15944_v29  ;;  %v11055_v29 = vld [vmem:[%s18167_s18 + $0x9d0] sm:$0xf] }
 0x50a   : > { %v5581_v55 = vpop.f32.mrf.mxu0  ;;  %v10703_v12 = vld [vmem:[%s16130_s24 + $0x50] sm:$0xf]  ;;  %v11056_v31 = vor.u32 %v12292_v36, %v11055_v29 }
 0x50b   : > { %v5630_v47 = vpop.f32.mrf.mxu1  ;;  %v16370_v29 = vor.u32 %v12212_v39, %v10703_v12  ;;  %v11039_v39 = vld [vmem:[%s18167_s18 + $0x9b0] sm:$0xf] }
 0x50c   : > { %v5631_v61 = vadd.f32 %v5630_v47, %v5581_v55  ;;  %6586 = vmatpush.bf16.msra.mxu0 %v10992_v10  ;;  %6635 = vmatpush.bf16.msra.mxu1 %v11056_v31  ;;  %v10983_v55 = vld [vmem:[%s18167_s18 + $0x940] sm:$0xf]  ;;  %v12274_v47 = vld [vmem:[%s18167_s18 + $0x944] sm:$0xf0]  ;;  %v16372_v10 = vor.u32 %v12211_v42, %v10705_v8  ;;  %v12219_v42 = vld [vmem:[%s18167_s18 + $0x814] sm:$0xf] }
 0x50d   : > { %v10737_v8 = vld [vmem:[%s18167_s18 + $0x818] sm:$0xf0] }
 0x50e   : > { %v16349_v2 = vadd.f32 %v5631_v61, %v15959_v33  ;;  %v5157_v40 = vpop.f32.mrf.mxu2  ;;  %v5206_v46 = vpop.f32.mrf.mxu3  ;;  %v11047_v33 = vld [vmem:[%s18167_s18 + $0x9c0] sm:$0xf]  ;;  %v10984_v61 = vor.u32 %v12274_v47, %v10983_v55  ;;  %18319 = vst [vmem:[#allocation12_spill] sm:$0xff] %v16372_v10  ;;  %v10975_v55 = vld [vmem:[%s18167_s18 + $0x930] sm:$0xf] }
 0x50f   : > { %v5207_v41 = vadd.f32 %v5206_v46, %v5157_v40  ;;  %v11048_v36 = vor.u32 %v12290_v9, %v11047_v33  ;;  %v10801_v9 = vld [vmem:[%s18167_s18 + $0x898] sm:$0xf0] }
 0x510   : > { %6587 = vmatpush.bf16.msra.mxu0 %v10984_v61  ;;  %v10740_v61 = vor.u32 %v12219_v42, %v10737_v8 }
 0x511   : > { %v16368_v21 = vadd.f32 %v5207_v41, %v15978_v56  ;;  %v12272_v56 = vld [vmem:[%s18167_s18 + $0x934] sm:$0xf0]  ;;  %6636 = vmatpush.bf16.msra.mxu1 %v11048_v36  ;;  %v12235_v41 = vld [vmem:[%s18167_s18 + $0x894] sm:$0xf] }
 0x512   : > { %v5584_v31 = vpop.f32.mrf.mxu0  ;;  %v10976_v12 = vor.u32 %v12272_v56, %v10975_v55  ;;  %v11031_v55 = vld [vmem:[%s18167_s18 + $0x9a0] sm:$0xf]  ;;  %6171 = vmatpush.bf16.msrb.mxu2 %v10740_v61  ;;  %v12284_v61 = vld [vmem:[%s18167_s18 + $0x994] sm:$0xf0] }
 0x513   : > { %v5633_v40 = vpop.f32.mrf.mxu1  ;;  %5676 = vmatmul.bf16.gmra.mxu2 %v15896_v60  ;;  %5725 = vmatmul.bf16.gmra.mxu3 %v15898_v38  ;;  %v12288_v60 = vld [vmem:[%s18167_s18 + $0x9b4] sm:$0xf0] }
 0x514   : > { %v5634_v46 = vadd.f32 %v5633_v40, %v5584_v31  ;;  %v11040_v47 = vor.u32 %v12288_v60, %v11039_v39  ;;  %6588 = vmatpush.bf16.msra.mxu0 %v10976_v12  ;;  %v10804_v31 = vor.u32 %v12235_v41, %v10801_v9  ;;  %v10967_v40 = vld [vmem:[%s18167_s18 + $0x920] sm:$0xf]  ;;  %v12286_v12 = vld [vmem:[%s18167_s18 + $0x9a4] sm:$0xf0] }
 0x515   : > { %6100 = vmatmul.bf16.gmra.mxu0 %v16370_v29  ;;  %v11032_v60 = vor.u32 %v12286_v12, %v11031_v55  ;;  %v12214_v55 = vld [vmem:[%s16130_s24 + $0x64] sm:$0xf0]  ;;  %v10713_v12 = vld [vmem:[%s16130_s24 + $0x68] sm:$0xf0] }
 0x516   : > { %v16389_v38 = vadd.f32 %v5634_v46, %v15999_v58  ;;  %6149 = vmatmul.bf16.gmra.mxu1 %v16372_v10  ;;  %v5160_v33 = vpop.f32.mrf.mxu2  ;;  %v5209_v58 = vpop.f32.mrf.mxu3  ;;  %v12270_v46 = vld [vmem:[%s18167_s18 + $0x924] sm:$0xf0]  ;;  %6220 = vmatpush.bf16.msrb.mxu3 %v10804_v31 }
 0x517   : > { %v5210_v36 = vadd.f32 %v5209_v58, %v5160_v33  ;;  %6637 = vmatpush.bf16.msra.mxu1 %v11040_v47  ;;  %v10968_v56 = vor.u32 %v12270_v46, %v10967_v40  ;;  %v10959_v47 = vld [vmem:[%s18167_s18 + $0x910] sm:$0xf]  ;;  %v12268_v33 = vld [vmem:[%s18167_s18 + $0x914] sm:$0xf0] }
 0x518   : > { %v10960_v58 = vor.u32 %v12268_v33, %v10959_v47  ;;  %v12282_v47 = vld [vmem:[%s18167_s18 + $0x984] sm:$0xf0] }
 0x519   : > { %v16418_v39 = vadd.f32 %v5210_v36, %v16028_v22  ;;  %6589 = vmatpush.bf16.msra.mxu0 %v10968_v56  ;;  %v11023_v22 = vld [vmem:[%s18167_s18 + $0x990] sm:$0xf]  ;;  %v10711_v36 = vld [vmem:[%s16130_s24 + $0x60] sm:$0xf]  ;;  %v12213_v56 = vld [vmem:[%s16130_s24 + $0x64] sm:$0xf] }
 0x51a   : > { %v5586_v42 = vpop.f32.mrf.mxu0  ;;  %v11024_v31 = vor.u32 %v12284_v61, %v11023_v22  ;;  %v16454_v22 = vor.u32 %v12214_v55, %v10711_v36  ;;  %v10729_v36 = vld [vmem:[%s18167_s18 + $0x808] sm:$0xf0] }
 0x51b   : > { %v5635_v8 = vpop.f32.mrf.mxu1  ;;  %6638 = vmatpush.bf16.msra.mxu1 %v11032_v60  ;;  %v10951_v60 = vld [vmem:[%s18167_s18 + $0x900] sm:$0xf] }
 0x51c   : > { %v5636_v41 = vadd.f32 %v5635_v8, %v5586_v42  ;;  %v12266_v8 = vld [vmem:[%s18167_s18 + $0x904] sm:$0xf0]  ;;  %18320 = vst [vmem:[#allocation14_spill] sm:$0xff] %v16454_v22 }
 0x51d   : > { %6590 = vmatpush.bf16.msra.mxu0 %v10960_v58  ;;  %v16456_v58 = vor.u32 %v12213_v56, %v10713_v12  ;;  %v10793_v56 = vld [vmem:[%s18167_s18 + $0x888] sm:$0xf0] }
 0x51e   : > { %v16433_v9 = vadd.f32 %v5636_v41, %v16043_v15  ;;  %v5162_v40 = vpop.f32.mrf.mxu2  ;;  %v5211_v46 = vpop.f32.mrf.mxu3  ;;  %v11015_v15 = vld [vmem:[%s18167_s18 + $0x980] sm:$0xf]  ;;  %v10952_v41 = vor.u32 %v12266_v8, %v10951_v60 }
 0x51f   : > { %v5212_v42 = vadd.f32 %v5211_v46, %v5162_v40  ;;  %6639 = vmatpush.bf16.msra.mxu1 %v11024_v31  ;;  %18321 = vst [vmem:[#allocation15_spill] sm:$0xff] %v16456_v58  ;;  %v11016_v61 = vor.u32 %v12282_v47, %v11015_v15  ;;  %v18322_v31 = vld [vmem:[#allocation13_spill] sm:$0xff] }
 0x521   : > { %v16452_v33 = vadd.f32 %v5212_v42, %v16062_v17  ;;  %6591 = vmatpush.bf16.msra.mxu0 %v10952_v41  ;;  %v12217_v17 = vld [vmem:[%s18167_s18 + $0x804] sm:$0xf] }
 0x522   : > { %v5589_v40 = vpop.f32.mrf.mxu0 }
 0x523   : > { %v5638_v46 = vpop.f32.mrf.mxu1  ;;  %5681 = vmatmul.bf16.gmra.mxu2 %v15980_v7  ;;  %5730 = vmatmul.bf16.gmra.mxu3 %v18322_v31  ;;  %v12233_v7 = vld [vmem:[%s18167_s18 + $0x884] sm:$0xf] }
 0x524   : > { %v5639_v10 = vadd.f32 %v5638_v46, %v5589_v40  ;;  %6640 = vmatpush.bf16.msra.mxu1 %v11016_v61  ;;  %v10796_v42 = vor.u32 %v12233_v7, %v10793_v56  ;;  %v10719_v40 = vld [vmem:[%s16130_s24 + $0x70] sm:$0xf] }
 0x525   : > { %6105 = vmatmul.bf16.gmra.mxu0 %v16454_v22 }
 0x526   : > { %v16461_v60 = vadd.f32 %v5639_v10, %v16071_v35  ;;  %6154 = vmatmul.bf16.gmra.mxu1 %v16456_v58  ;;  %v5165_v55 = vpop.f32.mrf.mxu2  ;;  %v5214_v35 = vpop.f32.mrf.mxu3  ;;  %v10732_v10 = vor.u32 %v12217_v17, %v10729_v36  ;;  %6221 = vmatpush.bf16.msrb.mxu3 %v10796_v42  ;;  %v12216_v17 = vld [vmem:[%s16130_s24 + $0x74] sm:$0xf0]  ;;  %v12215_v36 = vld [vmem:[%s16130_s24 + $0x74] sm:$0xf]  ;;  %v10721_v58 = vld [vmem:[%s16130_s24 + $0x78] sm:$0xf0] }
 0x527   : > { %v5215_v12 = vadd.f32 %v5214_v35, %v5165_v55  ;;  %v16490_v55 = vor.u32 %v12216_v17, %v10719_v40 }
 0x528   : > { %6172 = vmatpush.bf16.msrb.mxu2 %v10732_v10 }
 0x529   : > { %v16478_v8 = vadd.f32 %v5215_v12, %v16088_v43  ;;  %v16492_v43 = vor.u32 %v12215_v36, %v10721_v58 }
 0x52a   : > { %v5591_v15 = vpop.f32.mrf.mxu0 }
 0x52b   : > { %v5640_v41 = vpop.f32.mrf.mxu1 }
 0x52c   : > { %v5641_v47 = vadd.f32 %v5640_v41, %v5591_v15  ;;  %v11073_v15 = vld [vmem:[%s18167_s18 + $0x9f8] sm:$0xf0] }
 0x52e   : > { %v16481_v61 = vadd.f32 %v5641_v47, %v16091_v18  ;;  %v5167_v46 = vpop.f32.mrf.mxu2  ;;  %v5216_v31 = vpop.f32.mrf.mxu3  ;;  %v18323_v18 = vld [vmem:[#allocation18_spill] sm:$0xff] }
 0x52f   : > { %v5217_v22 = vadd.f32 %v5216_v31, %v5167_v46 }
 0x531   : > { %v16488_v7 = vadd.f32 %v5217_v22, %v16098_v4  ;;  %v12279_v4 = vld [vmem:[%s18167_s18 + $0x974] sm:$0xf]  ;;  %v11009_v22 = vld [vmem:[%s18167_s18 + $0x978] sm:$0xf0] }
 0x532   : > { %v5594_v35 = vpop.f32.mrf.mxu0  ;;  %v11012_v42 = vor.u32 %v12279_v4, %v11009_v22  ;;  %v10889_v4 = vld [vmem:[%s16520_s0 + $0x8] sm:$0xf0] }
 0x533   : > { %v5643_v10 = vpop.f32.mrf.mxu1  ;;  %5686 = vmatmul.bf16.gmra.mxu2 %v16064_v23  ;;  %5735 = vmatmul.bf16.gmra.mxu3 %v18323_v18  ;;  %v12295_v23 = vld [vmem:[%s18167_s18 + $0x9f4] sm:$0xf]  ;;  %v12249_v18 = vld [vmem:[%s16520_s0 + $0x4] sm:$0xf] }
 0x534   : > { %v5644_v56 = vadd.f32 %v5643_v10, %v5594_v35  ;;  %v11076_v47 = vor.u32 %v12295_v23, %v11073_v15  ;;  %6682 = vmatpush.bf16.msra.mxu2 %v11012_v42  ;;  %v10887_v35 = vld [vmem:[%s16520_s0] sm:$0xf] }
 0x535   : > { %6110 = vmatmul.bf16.gmra.mxu0 %v16490_v55 }
 0x536   : > { %v16497_v12 = vadd.f32 %v5644_v56, %v16107_v20  ;;  %6159 = vmatmul.bf16.gmra.mxu1 %v16492_v43  ;;  %v5170_v58 = vpop.f32.mrf.mxu2  ;;  %v5219_v20 = vpop.f32.mrf.mxu3  ;;  %6731 = vmatpush.bf16.msra.mxu3 %v11076_v47  ;;  %v12250_v56 = vld [vmem:[%s16520_s0 + $0x4] sm:$0xf0]  ;;  %v11001_v47 = vld [vmem:[%s18167_s18 + $0x968] sm:$0xf0] }
 0x537   : > { %v5220_v41 = vadd.f32 %v5219_v20, %v5170_v58  ;;  %v16532_v58 = vor.u32 %v12250_v56, %v10887_v35  ;;  %v16534_v20 = vor.u32 %v12249_v18, %v10889_v4 }
 0x539   : > { %v16514_v40 = vadd.f32 %v5220_v41, %v16124_v52  ;;  %18324 = vst [vmem:[#allocation19_spill] sm:$0xff] %v16534_v20 }
 0x53a   : > { %v5596_v46 = vpop.f32.mrf.mxu0 }
 0x53b   : > { %v5645_v31 = vpop.f32.mrf.mxu1 }
 0x53c   : > { %v5646_v17 = vadd.f32 %v5645_v31, %v5596_v46  ;;  %v11065_v31 = vld [vmem:[%s18167_s18 + $0x9e8] sm:$0xf0] }
 0x53e   : > { %v16523_v36 = vadd.f32 %v5646_v17, %v16133_v32  ;;  %v5172_v10 = vpop.f32.mrf.mxu2  ;;  %v5221_v52 = vpop.f32.mrf.mxu3 }
 0x53f   : > { %v5222_v22 = vadd.f32 %v5221_v52, %v5172_v10 }
 0x541   : > { %v16530_v23 = vadd.f32 %v5222_v22, %v16140_v6  ;;  %v12277_v6 = vld [vmem:[%s18167_s18 + $0x964] sm:$0xf]  ;;  %v10895_v22 = vld [vmem:[%s16520_s0 + $0x10] sm:$0xf] }
 0x542   : > { %v6076_v42 = vpop.f32.mrf.mxu0  ;;  %v11004_v46 = vor.u32 %v12277_v6, %v11001_v47  ;;  %v12251_v6 = vld [vmem:[%s16520_s0 + $0x14] sm:$0xf]  ;;  %v10897_v47 = vld [vmem:[%s16520_s0 + $0x18] sm:$0xf0] }
 0x543   : > { %v6125_v15 = vpop.f32.mrf.mxu1  ;;  %5691 = vmatmul.bf16.gmra.mxu2 %v16100_v26  ;;  %5740 = vmatmul.bf16.gmra.mxu3 %v16102_v13  ;;  %v12293_v26 = vld [vmem:[%s18167_s18 + $0x9e4] sm:$0xf] }
 0x544   : > { %v6126_v41 = vadd.f32 %v6125_v15, %v6076_v42  ;;  %v11068_v35 = vor.u32 %v12293_v26, %v11065_v31  ;;  %6683 = vmatpush.bf16.msra.mxu2 %v11004_v46 }
 0x545   : > { %6592 = vmatmul.bf16.vlgmr.msra.gmra.mxu0 %v16532_v58 }
 0x546   : > { %v16539_v32 = vadd.f32 %v6126_v41, %v16149_v62  ;;  %6641 = vmatmul.bf16.vlgmr.msra.gmra.mxu1 %v16534_v20  ;;  %v5175_v13 = vpop.f32.mrf.mxu2  ;;  %v5224_v62 = vpop.f32.mrf.mxu3  ;;  %6732 = vmatpush.bf16.msra.mxu3 %v11068_v35  ;;  %v12252_v41 = vld [vmem:[%s16520_s0 + $0x14] sm:$0xf0] }
 0x547   : > { %v5225_v17 = vadd.f32 %v5224_v62, %v5175_v13  ;;  %v16568_v13 = vor.u32 %v12252_v41, %v10895_v22 }
 0x549   : > { %v16556_v10 = vadd.f32 %v5225_v17, %v16166_v14  ;;  %v16570_v14 = vor.u32 %v12251_v6, %v10897_v47 }
 0x54a   : > { %v6078_v52 = vpop.f32.mrf.mxu0 }
 0x54b   : > { %v6127_v56 = vpop.f32.mrf.mxu1  ;;  %18325 = vst [vmem:[#allocation16_spill] sm:$0xff] %v16570_v14 }
 0x54c   : > { %v6128_v18 = vadd.f32 %v6127_v56, %v6078_v52  ;;  %v11057_v56 = vld [vmem:[%s18167_s18 + $0x9d8] sm:$0xf0] }
 0x54e   : > { %v16559_v4 = vadd.f32 %v6128_v18, %v16169_v19  ;;  %v5177_v42 = vpop.f32.mrf.mxu2  ;;  %v5226_v15 = vpop.f32.mrf.mxu3  ;;  %v18326_v19 = vld [vmem:[#allocation11_spill] sm:$0xff] }
 0x54f   : > { %v5227_v20 = vadd.f32 %v5226_v15, %v5177_v42 }
 0x551   : > { %v16566_v26 = vadd.f32 %v5227_v20, %v16176_v48  ;;  %v12275_v48 = vld [vmem:[%s18167_s18 + $0x954] sm:$0xf]  ;;  %v10993_v20 = vld [vmem:[%s18167_s18 + $0x958] sm:$0xf0] }
 0x552   : > { %v6081_v62 = vpop.f32.mrf.mxu0  ;;  %v10996_v52 = vor.u32 %v12275_v48, %v10993_v20  ;;  %v12253_v48 = vld [vmem:[%s16520_s0 + $0x24] sm:$0xf]  ;;  %v10905_v20 = vld [vmem:[%s16520_s0 + $0x28] sm:$0xf0] }
 0x553   : > { %v6130_v46 = vpop.f32.mrf.mxu1  ;;  %6173 = vmatmul.bf16.vlgmr.msrb.gmra.mxu2 %v16142_v11  ;;  %6222 = vmatmul.bf16.vlgmr.msrb.gmra.mxu3 %v18326_v19  ;;  %v12291_v11 = vld [vmem:[%s18167_s18 + $0x9d4] sm:$0xf]  ;;  %v12254_v19 = vld [vmem:[%s16520_s0 + $0x24] sm:$0xf0] }
 0x554   : > { %v6131_v31 = vadd.f32 %v6130_v46, %v6081_v62  ;;  %v11060_v22 = vor.u32 %v12291_v11, %v11057_v56  ;;  %6684 = vmatpush.bf16.msra.mxu2 %v10996_v52  ;;  %v10903_v62 = vld [vmem:[%s16520_s0 + $0x20] sm:$0xf] }
 0x555   : > { %6597 = vmatmul.bf16.gmra.mxu0 %v16568_v13 }
 0x556   : > { %v16575_v17 = vadd.f32 %v6131_v31, %v16185_v54  ;;  %6646 = vmatmul.bf16.gmra.mxu1 %v16570_v14  ;;  %v5657_v35 = vpop.f32.mrf.mxu2  ;;  %v5706_v54 = vpop.f32.mrf.mxu3  ;;  %6733 = vmatpush.bf16.msra.mxu3 %v11060_v22  ;;  %v11049_v22 = vld [vmem:[%s18167_s18 + $0x9c8] sm:$0xf0] }
 0x557   : > { %v5707_v18 = vadd.f32 %v5706_v54, %v5657_v35  ;;  %v16604_v35 = vor.u32 %v12254_v19, %v10903_v62 }
 0x559   : > { %v16592_v42 = vadd.f32 %v5707_v18, %v16202_v28  ;;  %v16606_v28 = vor.u32 %v12253_v48, %v10905_v20  ;;  %v10911_v48 = vld [vmem:[%s16520_s0 + $0x30] sm:$0xf] }
 0x55a   : > { %v6083_v15 = vpop.f32.mrf.mxu0 }
 0x55b   : > { %v6132_v41 = vpop.f32.mrf.mxu1 }
 0x55c   : > { %v6133_v6 = vadd.f32 %v6132_v41, %v6083_v15 }
 0x55e   : > { %v16595_v47 = vadd.f32 %v6133_v6, %v16205_v44  ;;  %v5659_v46 = vpop.f32.mrf.mxu2  ;;  %v5708_v31 = vpop.f32.mrf.mxu3 }
 0x55f   : > { %v5709_v14 = vadd.f32 %v5708_v31, %v5659_v46 }
 0x561   : > { %v16602_v11 = vadd.f32 %v5709_v14, %v16212_v45  ;;  %v12273_v45 = vld [vmem:[%s18167_s18 + $0x944] sm:$0xf]  ;;  %v10985_v14 = vld [vmem:[%s18167_s18 + $0x948] sm:$0xf0] }
 0x562   : > { %v6086_v54 = vpop.f32.mrf.mxu0  ;;  %v10988_v18 = vor.u32 %v12273_v45, %v10985_v14  ;;  %v10913_v45 = vld [vmem:[%s16520_s0 + $0x38] sm:$0xf0] }
 0x563   : > { %v6135_v52 = vpop.f32.mrf.mxu1  ;;  %6178 = vmatmul.bf16.gmra.mxu2 %v16178_v37  ;;  %6227 = vmatmul.bf16.gmra.mxu3 %v16180_v27  ;;  %v12289_v37 = vld [vmem:[%s18167_s18 + $0x9c4] sm:$0xf] }
 0x564   : > { %v6136_v56 = vadd.f32 %v6135_v52, %v6086_v54  ;;  %v11052_v41 = vor.u32 %v12289_v37, %v11049_v22  ;;  %6685 = vmatpush.bf16.msra.mxu2 %v10988_v18  ;;  %v12256_v52 = vld [vmem:[%s16520_s0 + $0x34] sm:$0xf0] }
 0x565   : > { %6602 = vmatmul.bf16.gmra.mxu0 %v16604_v35 }
 0x566   : > { %v16611_v44 = vadd.f32 %v6136_v56, %v16221_v3  ;;  %6651 = vmatmul.bf16.gmra.mxu1 %v16606_v28  ;;  %v5662_v27 = vpop.f32.mrf.mxu2  ;;  %v5711_v3 = vpop.f32.mrf.mxu3  ;;  %6734 = vmatpush.bf16.msra.mxu3 %v11052_v41  ;;  %v12255_v56 = vld [vmem:[%s16520_s0 + $0x34] sm:$0xf] }
 0x567   : > { %v5712_v15 = vadd.f32 %v5711_v3, %v5662_v27  ;;  %v16640_v27 = vor.u32 %v12256_v52, %v10911_v48 }
 0x569   : > { %v16628_v6 = vadd.f32 %v5712_v15, %v16238_v59  ;;  %v16642_v59 = vor.u32 %v12255_v56, %v10913_v45  ;;  %v10977_v15 = vld [vmem:[%s18167_s18 + $0x938] sm:$0xf0]  ;;  %v10919_v45 = vld [vmem:[%s16520_s0 + $0x40] sm:$0xf] }
 0x56a   : > { %v6088_v62 = vpop.f32.mrf.mxu0 }
 0x56b   : > { %v6137_v46 = vpop.f32.mrf.mxu1 }
 0x56c   : > { %v6138_v31 = vadd.f32 %v6137_v46, %v6088_v62  ;;  %v11041_v62 = vld [vmem:[%s18167_s18 + $0x9b8] sm:$0xf0] }
 0x56e   : > { %v16631_v19 = vadd.f32 %v6138_v31, %v16241_v1  ;;  %v5664_v20 = vpop.f32.mrf.mxu2  ;;  %v5713_v54 = vpop.f32.mrf.mxu3 }
 0x56f   : > { %v5714_v14 = vadd.f32 %v5713_v54, %v5664_v20 }
 0x571   : > { %v16638_v37 = vadd.f32 %v5714_v14, %v16248_v50  ;;  %v12271_v50 = vld [vmem:[%s18167_s18 + $0x934] sm:$0xf] }
 0x572   : > { %v6091_v3 = vpop.f32.mrf.mxu0  ;;  %v10980_v41 = vor.u32 %v12271_v50, %v10977_v15  ;;  %v10921_v50 = vld [vmem:[%s16520_s0 + $0x48] sm:$0xf0] }
 0x573   : > { %v6140_v18 = vpop.f32.mrf.mxu1  ;;  %6183 = vmatmul.bf16.gmra.mxu2 %v16214_v49  ;;  %6232 = vmatmul.bf16.gmra.mxu3 %v16216_v34  ;;  %v12287_v49 = vld [vmem:[%s18167_s18 + $0x9b4] sm:$0xf] }
 0x574   : > { %v6141_v22 = vadd.f32 %v6140_v18, %v6091_v3  ;;  %v11044_v31 = vor.u32 %v12287_v49, %v11041_v62  ;;  %6686 = vmatpush.bf16.msra.mxu2 %v10980_v41  ;;  %v12258_v18 = vld [vmem:[%s16520_s0 + $0x44] sm:$0xf0] }
 0x575   : > { %6607 = vmatmul.bf16.gmra.mxu0 %v16640_v27 }
 0x576   : > { %v16647_v1 = vadd.f32 %v6141_v22, %v16257_v0  ;;  %6656 = vmatmul.bf16.gmra.mxu1 %v16642_v59  ;;  %v5667_v34 = vpop.f32.mrf.mxu2  ;;  %v5716_v0 = vpop.f32.mrf.mxu3  ;;  %6735 = vmatpush.bf16.msra.mxu3 %v11044_v31  ;;  %v12257_v22 = vld [vmem:[%s16520_s0 + $0x44] sm:$0xf]  ;;  %v11295_v31 = vld [vmem:[%s18167_s18 + $0xaf0] sm:$0xf] }
 0x577   : > { %v5717_v46 = vadd.f32 %v5716_v0, %v5667_v34  ;;  %v16676_v34 = vor.u32 %v12258_v18, %v10919_v45  ;;  %v11033_v18 = vld [vmem:[%s18167_s18 + $0x9a8] sm:$0xf0] }
 0x579   : > { %v16664_v48 = vadd.f32 %v5717_v46, %v16274_v57  ;;  %v16678_v57 = vor.u32 %v12257_v22, %v10921_v50 }
 0x57a   : > { %v6093_v20 = vpop.f32.mrf.mxu0 }
 0x57b   : > { %v6142_v54 = vpop.f32.mrf.mxu1 }
 0x57c   : > { %v6143_v52 = vadd.f32 %v6142_v54, %v6093_v20  ;;  %v12344_v20 = vld [vmem:[%s18167_s18 + $0xaf4] sm:$0xf0]  ;;  %v10969_v54 = vld [vmem:[%s18167_s18 + $0x928] sm:$0xf0] }
 0x57d   : > { %v11296_v45 = vor.u32 %v12344_v20, %v11295_v31 }
 0x57e   : > { %v16667_v56 = vadd.f32 %v6143_v52, %v16277_v53  ;;  %v5669_v14 = vpop.f32.mrf.mxu2  ;;  %v5718_v3 = vpop.f32.mrf.mxu3  ;;  %v11231_v53 = vld [vmem:[%s18167_s18 + $0xa70] sm:$0xf]  ;;  %v12285_v52 = vld [vmem:[%s18167_s18 + $0x9a4] sm:$0xf] }
 0x57f   : > { %v5719_v15 = vadd.f32 %v5718_v3, %v5669_v14  ;;  %v11036_v50 = vor.u32 %v12285_v52, %v11033_v18  ;;  %7150 = vmatpush.bf16.msrb.mxu1 %v11296_v45  ;;  %v12324_v52 = vld [vmem:[%s18167_s18 + $0xa54] sm:$0xf0] }
 0x581   : > { %v16674_v49 = vadd.f32 %v5719_v15, %v16284_v16  ;;  %v12328_v16 = vld [vmem:[%s18167_s18 + $0xa74] sm:$0xf0]  ;;  %v11223_v15 = vld [vmem:[%s18167_s18 + $0xa60] sm:$0xf]  ;;  %6736 = vmatpush.bf16.msra.mxu3 %v11036_v50 }
 0x582   : > { %v6096_v0 = vpop.f32.mrf.mxu0  ;;  %v11232_v46 = vor.u32 %v12328_v16, %v11231_v53  ;;  %v12342_v53 = vld [vmem:[%s18167_s18 + $0xae4] sm:$0xf0] }
 0x583   : > { %v6145_v41 = vpop.f32.mrf.mxu1  ;;  %6188 = vmatmul.bf16.gmra.mxu2 %v16250_v51  ;;  %6237 = vmatmul.bf16.gmra.mxu3 %v16252_v30  ;;  %v12269_v30 = vld [vmem:[%s18167_s18 + $0x924] sm:$0xf] }
 0x584   : > { %v6146_v62 = vadd.f32 %v6145_v41, %v6096_v0  ;;  %v10972_v3 = vor.u32 %v12269_v30, %v10969_v54  ;;  %7101 = vmatpush.bf16.msrb.mxu0 %v11232_v46  ;;  %v12326_v0 = vld [vmem:[%s18167_s18 + $0xa64] sm:$0xf0]  ;;  %v11287_v41 = vld [vmem:[%s18167_s18 + $0xae0] sm:$0xf]  ;;  %v11215_v54 = vld [vmem:[%s18167_s18 + $0xa50] sm:$0xf] }
 0x585   : > { %6612 = vmatmul.bf16.gmra.mxu0 %v16676_v34  ;;  %v11288_v46 = vor.u32 %v12342_v53, %v11287_v41  ;;  %v11216_v45 = vor.u32 %v12324_v52, %v11215_v54  ;;  %v10929_v41 = vld [vmem:[%s16520_s0 + $0x58] sm:$0xf0]  ;;  %v11207_v53 = vld [vmem:[%s18167_s18 + $0xa40] sm:$0xf] }
 0x586   : > { %v16695_v51 = vadd.f32 %v6146_v62, %v16305_v5  ;;  %6661 = vmatmul.bf16.gmra.mxu1 %v16678_v57  ;;  %v5672_v14 = vpop.f32.mrf.mxu2  ;;  %v5721_v5 = vpop.f32.mrf.mxu3  ;;  %6687 = vmatpush.bf16.msra.mxu2 %v10972_v3  ;;  %v11224_v62 = vor.u32 %v12326_v0, %v11223_v15  ;;  %v10927_v3 = vld [vmem:[%s16520_s0 + $0x50] sm:$0xf]  ;;  %v12260_v15 = vld [vmem:[%s16520_s0 + $0x54] sm:$0xf0]  ;;  %v12259_v0 = vld [vmem:[%s16520_s0 + $0x54] sm:$0xf] }
 0x587   : > { %v5722_v22 = vadd.f32 %v5721_v5, %v5672_v14  ;;  %7151 = vmatpush.bf16.msrb.mxu1 %v11288_v46  ;;  %v12340_v14 = vld [vmem:[%s18167_s18 + $0xad4] sm:$0xf0]  ;;  %v12322_v46 = vld [vmem:[%s18167_s18 + $0xa44] sm:$0xf0]  ;;  %v16760_v54 = vor.u32 %v12260_v15, %v10927_v3  ;;  %v16762_v52 = vor.u32 %v12259_v0, %v10929_v41  ;;  %v12267_v15 = vld [vmem:[%s18167_s18 + $0x914] sm:$0xf] }
 0x588   : > { %7102 = vmatpush.bf16.msrb.mxu0 %v11224_v62  ;;  %v10961_v0 = vld [vmem:[%s18167_s18 + $0x918] sm:$0xf0]  ;;  %v12283_v41 = vld [vmem:[%s18167_s18 + $0x994] sm:$0xf] }
 0x589   : > { %v16724_v16 = vadd.f32 %v5722_v22, %v16334_v63  ;;  %v11279_v63 = vld [vmem:[%s18167_s18 + $0xad0] sm:$0xf] }
 0x58a   : > { %v6098_v31 = vpop.f32.mrf.mxu0  ;;  %v11280_v18 = vor.u32 %v12340_v14, %v11279_v63 }
 0x58b   : > { %v6147_v20 = vpop.f32.mrf.mxu1 }
 0x58c   : > { %v6148_v30 = vadd.f32 %v6147_v20, %v6098_v31  ;;  %7103 = vmatpush.bf16.msrb.mxu0 %v11216_v45  ;;  %7152 = vmatpush.bf16.msrb.mxu1 %v11280_v18  ;;  %v11208_v31 = vor.u32 %v12322_v46, %v11207_v53  ;;  %v12338_v20 = vld [vmem:[%s18167_s18 + $0xac4] sm:$0xf0]  ;;  %v10964_v46 = vor.u32 %v12267_v15, %v10961_v0  ;;  %v11183_v0 = vld [vmem:[%s18167_s18 + $0xa10] sm:$0xf] }
 0x58e   : > { %v16739_v5 = vadd.f32 %v6148_v30, %v16349_v2  ;;  %v5674_v22 = vpop.f32.mrf.mxu2  ;;  %v5723_v50 = vpop.f32.mrf.mxu3  ;;  %v11271_v2 = vld [vmem:[%s18167_s18 + $0xac0] sm:$0xf]  ;;  %6688 = vmatpush.bf16.msra.mxu2 %v10964_v46 }
 0x58f   : > { %v5724_v62 = vadd.f32 %v5723_v50, %v5674_v22  ;;  %v11272_v63 = vor.u32 %v12338_v20, %v11271_v2  ;;  %v11199_v22 = vld [vmem:[%s18167_s18 + $0xa30] sm:$0xf]  ;;  %v11025_v2 = vld [vmem:[%s18167_s18 + $0x998] sm:$0xf0]  ;;  %v10935_v46 = vld [vmem:[%s16520_s0 + $0x60] sm:$0xf] }
 0x590   : > { %7104 = vmatpush.bf16.msrb.mxu0 %v11208_v31  ;;  %v11263_v50 = vld [vmem:[%s18167_s18 + $0xab0] sm:$0xf]  ;;  %v11028_v20 = vor.u32 %v12283_v41, %v11025_v2  ;;  %v12316_v41 = vld [vmem:[%s18167_s18 + $0xa14] sm:$0xf0] }
 0x591   : > { %v16758_v30 = vadd.f32 %v5724_v62, %v16368_v21  ;;  %v12320_v21 = vld [vmem:[%s18167_s18 + $0xa34] sm:$0xf0]  ;;  %7153 = vmatpush.bf16.msrb.mxu1 %v11272_v63  ;;  %v11191_v63 = vld [vmem:[%s18167_s18 + $0xa20] sm:$0xf] }
 0x592   : > { %v6101_v45 = vpop.f32.mrf.mxu0  ;;  %v11200_v3 = vor.u32 %v12320_v21, %v11199_v22  ;;  %v12334_v22 = vld [vmem:[%s18167_s18 + $0xaa4] sm:$0xf0]  ;;  %6737 = vmatpush.bf16.msra.mxu3 %v11028_v20 }
 0x593   : > { %v6150_v14 = vpop.f32.mrf.mxu1  ;;  %6193 = vmatmul.bf16.gmra.mxu2 %v16286_v24  ;;  %6242 = vmatmul.bf16.gmra.mxu3 %v16288_v25  ;;  %v12336_v24 = vld [vmem:[%s18167_s18 + $0xab4] sm:$0xf0] }
 0x594   : > { %v6151_v18 = vadd.f32 %v6150_v14, %v6101_v45  ;;  %v11264_v62 = vor.u32 %v12336_v24, %v11263_v50  ;;  %7105 = vmatpush.bf16.msrb.mxu0 %v11200_v3  ;;  %v12318_v45 = vld [vmem:[%s18167_s18 + $0xa24] sm:$0xf0]  ;;  %v11255_v14 = vld [vmem:[%s18167_s18 + $0xaa0] sm:$0xf] }
 0x595   : > { %6617 = vmatmul.bf16.gmra.mxu0 %v16760_v54  ;;  %v11256_v3 = vor.u32 %v12334_v22, %v11255_v14  ;;  %v10937_v14 = vld [vmem:[%s16520_s0 + $0x68] sm:$0xf0]  ;;  %v11175_v22 = vld [vmem:[%s18167_s18 + $0xa00] sm:$0xf] }
 0x596   : > { %v16779_v25 = vadd.f32 %v6151_v18, %v16389_v38  ;;  %6666 = vmatmul.bf16.gmra.mxu1 %v16762_v52  ;;  %v5677_v53 = vpop.f32.mrf.mxu2  ;;  %v5726_v38 = vpop.f32.mrf.mxu3  ;;  %v11192_v18 = vor.u32 %v12318_v45, %v11191_v63  ;;  %v12262_v63 = vld [vmem:[%s16520_s0 + $0x64] sm:$0xf0]  ;;  %v12261_v45 = vld [vmem:[%s16520_s0 + $0x64] sm:$0xf] }
 0x597   : > { %v5727_v31 = vadd.f32 %v5726_v38, %v5677_v53  ;;  %7154 = vmatpush.bf16.msrb.mxu1 %v11264_v62  ;;  %v11184_v62 = vor.u32 %v12316_v41, %v11183_v0  ;;  %v12332_v53 = vld [vmem:[%s18167_s18 + $0xa94] sm:$0xf0]  ;;  %v16844_v0 = vor.u32 %v12262_v63, %v10935_v46  ;;  %v16846_v41 = vor.u32 %v12261_v45, %v10937_v14  ;;  %v10953_v46 = vld [vmem:[%s18167_s18 + $0x908] sm:$0xf0] }
 0x598   : > { %7106 = vmatpush.bf16.msrb.mxu0 %v11192_v18  ;;  %v11017_v14 = vld [vmem:[%s18167_s18 + $0x988] sm:$0xf0] }
 0x599   : > { %v16808_v21 = vadd.f32 %v5727_v31, %v16418_v39  ;;  %v11247_v39 = vld [vmem:[%s18167_s18 + $0xa90] sm:$0xf]  ;;  %18327 = vst [vmem:[#allocation17_spill] sm:$0xff] %v16846_v41 }
 0x59a   : > { %v6103_v50 = vpop.f32.mrf.mxu0  ;;  %v11248_v2 = vor.u32 %v12332_v53, %v11247_v39 }
 0x59b   : > { %v6152_v24 = vpop.f32.mrf.mxu1  ;;  %7155 = vmatpush.bf16.msrb.mxu1 %v11256_v3  ;;  %v12314_v3 = vld [vmem:[%s18167_s18 + $0xa04] sm:$0xf0] }
 0x59c   : > { %v6153_v15 = vadd.f32 %v6152_v24, %v6103_v50  ;;  %7107 = vmatpush.bf16.msrb.mxu0 %v11184_v62  ;;  %v11176_v50 = vor.u32 %v12314_v3, %v11175_v22  ;;  %v12330_v24 = vld [vmem:[%s18167_s18 + $0xa84] sm:$0xf0] }
 0x59e   : > { %v16823_v38 = vadd.f32 %v6153_v15, %v16433_v9  ;;  %v5679_v31 = vpop.f32.mrf.mxu2  ;;  %v5728_v20 = vpop.f32.mrf.mxu3  ;;  %v11239_v9 = vld [vmem:[%s18167_s18 + $0xa80] sm:$0xf] }
 0x59f   : > { %v5729_v18 = vadd.f32 %v5728_v20, %v5679_v31  ;;  %7156 = vmatpush.bf16.msrb.mxu1 %v11248_v2  ;;  %v11240_v39 = vor.u32 %v12330_v24, %v11239_v9  ;;  %v18328_v2 = vld [vmem:[#allocation12_spill] sm:$0xff] }
 0x5a0   : > { %7108 = vmatpush.bf16.msrb.mxu0 %v11176_v50 }
 0x5a1   : > { %v16842_v15 = vadd.f32 %v5729_v18, %v16452_v33  ;;  %v12265_v33 = vld [vmem:[%s18167_s18 + $0x904] sm:$0xf] }
 0x5a2   : > { %v6106_v62 = vpop.f32.mrf.mxu0  ;;  %v10956_v45 = vor.u32 %v12265_v33, %v10953_v46  ;;  %v12263_v33 = vld [vmem:[%s16520_s0 + $0x74] sm:$0xf]  ;;  %v10945_v46 = vld [vmem:[%s16520_s0 + $0x78] sm:$0xf0] }
 0x5a3   : > { %v6155_v53 = vpop.f32.mrf.mxu1  ;;  %6198 = vmatmul.bf16.gmra.mxu2 %v16370_v29  ;;  %6247 = vmatmul.bf16.gmra.mxu3 %v18328_v2  ;;  %v12281_v29 = vld [vmem:[%s18167_s18 + $0x984] sm:$0xf]  ;;  %v12264_v2 = vld [vmem:[%s16520_s0 + $0x74] sm:$0xf0] }
 0x5a4   : > { %v6156_v31 = vadd.f32 %v6155_v53, %v6106_v62  ;;  %7157 = vmatpush.bf16.msrb.mxu1 %v11240_v39  ;;  %v11020_v22 = vor.u32 %v12281_v29, %v11017_v14  ;;  %6689 = vmatpush.bf16.msra.mxu2 %v10956_v45  ;;  %v10943_v62 = vld [vmem:[%s16520_s0 + $0x70] sm:$0xf] }
 0x5a5   : > { %6622 = vmatmul.bf16.gmra.mxu0 %v16844_v0 }
 0x5a6   : > { %v16851_v20 = vadd.f32 %v6156_v31, %v16461_v60  ;;  %6671 = vmatmul.bf16.gmra.mxu1 %v16846_v41  ;;  %v5682_v63 = vpop.f32.mrf.mxu2  ;;  %v5731_v60 = vpop.f32.mrf.mxu3  ;;  %6738 = vmatpush.bf16.msra.mxu3 %v11020_v22 }
 0x5a7   : > { %v5732_v18 = vadd.f32 %v5731_v60, %v5682_v63  ;;  %v16880_v63 = vor.u32 %v12264_v2, %v10943_v62  ;;  %v11297_v62 = vld [vmem:[%s18167_s18 + $0xaf8] sm:$0xf0] }
 0x5a9   : > { %v16868_v3 = vadd.f32 %v5732_v18, %v16478_v8  ;;  %v16882_v8 = vor.u32 %v12263_v33, %v10945_v46  ;;  %v18329_v18 = vld [vmem:[#allocation14_spill] sm:$0xff] }
 0x5aa   : > { %v6108_v9 = vpop.f32.mrf.mxu0 }
 0x5ab   : > { %v6157_v50 = vpop.f32.mrf.mxu1 }
 0x5ac   : > { %v6158_v24 = vadd.f32 %v6157_v50, %v6108_v9  ;;  %v12343_v9 = vld [vmem:[%s18167_s18 + $0xaf4] sm:$0xf] }
 0x5ae   : > { %v16871_v39 = vadd.f32 %v6158_v24, %v16481_v61  ;;  %v5684_v53 = vpop.f32.mrf.mxu2  ;;  %v5733_v31 = vpop.f32.mrf.mxu3  ;;  %v18330_v61 = vld [vmem:[#allocation15_spill] sm:$0xff] }
 0x5af   : > { %v5734_v41 = vadd.f32 %v5733_v31, %v5684_v53  ;;  %v11300_v31 = vor.u32 %v12343_v9, %v11297_v62 }
 0x5b1   : > { %v16878_v29 = vadd.f32 %v5734_v41, %v16488_v7  ;;  %v12327_v7 = vld [vmem:[%s18167_s18 + $0xa74] sm:$0xf]  ;;  %v11233_v41 = vld [vmem:[%s18167_s18 + $0xa78] sm:$0xf0]  ;;  %7248 = vmatpush.bf16.msrb.mxu3 %v11300_v31 }
 0x5b2   : > { %v6111_v60 = vpop.f32.mrf.mxu0  ;;  %v11236_v24 = vor.u32 %v12327_v7, %v11233_v41  ;;  %v12297_v7 = vld [vmem:[%s16910_s16 + $0x4] sm:$0xf]  ;;  %v11113_v41 = vld [vmem:[%s16910_s16 + $0x8] sm:$0xf0] }
 0x5b3   : > { %v6160_v45 = vpop.f32.mrf.mxu1  ;;  %6203 = vmatmul.bf16.gmra.mxu2 %v18329_v18  ;;  %6252 = vmatmul.bf16.gmra.mxu3 %v18330_v61  ;;  %v12298_v61 = vld [vmem:[%s16910_s16 + $0x4] sm:$0xf0] }
 0x5b4   : > { %v6161_v14 = vadd.f32 %v6160_v45, %v6111_v60  ;;  %7199 = vmatpush.bf16.msrb.mxu2 %v11236_v24  ;;  %v16924_v24 = vor.u32 %v12297_v7, %v11113_v41 }
 0x5b5   : > { %6627 = vmatmul.bf16.gmra.mxu0 %v16880_v63 }
 0x5b6   : > { %v16887_v22 = vadd.f32 %v6161_v14, %v16497_v12  ;;  %6676 = vmatmul.bf16.gmra.mxu1 %v16882_v8  ;;  %v5687_v50 = vpop.f32.mrf.mxu2  ;;  %v5736_v12 = vpop.f32.mrf.mxu3  ;;  %v11111_v14 = vld [vmem:[%s16910_s16] sm:$0xf]  ;;  %18332 = vst [vmem:[#allocation21_spill] sm:$0xff] %v16924_v24 }
 0x5b7   : > { %v5737_v53 = vadd.f32 %v5736_v12, %v5687_v50  ;;  %v16922_v12 = vor.u32 %v12298_v61, %v11111_v14 }
 0x5b9   : > { %v16904_v2 = vadd.f32 %v5737_v53, %v16514_v40  ;;  %18331 = vst [vmem:[#allocation20_spill] sm:$0xff] %v16922_v12 }
 0x5ba   : > { %v6113_v33 = vpop.f32.mrf.mxu0 }
 0x5bb   : > { %v6162_v46 = vpop.f32.mrf.mxu1 }
 0x5bc   : > { %v6163_v60 = vadd.f32 %v6162_v46, %v6113_v33  ;;  %v11225_v33 = vld [vmem:[%s18167_s18 + $0xa68] sm:$0xf0] }
 0x5be   : > { %v16913_v45 = vadd.f32 %v6163_v60, %v16523_v36  ;;  %v5689_v18 = vpop.f32.mrf.mxu2  ;;  %v5738_v40 = vpop.f32.mrf.mxu3  ;;  %v11289_v60 = vld [vmem:[%s18167_s18 + $0xae8] sm:$0xf0] }
 0x5bf   : > { %v5739_v9 = vadd.f32 %v5738_v40, %v5689_v18 }
 0x5c1   : > { %v16920_v50 = vadd.f32 %v5739_v9, %v16530_v23  ;;  %v12325_v23 = vld [vmem:[%s18167_s18 + $0xa64] sm:$0xf] }
 0x5c2   : > { %v6593_v62 = vpop.f32.mrf.mxu0  ;;  %v11228_v46 = vor.u32 %v12325_v23, %v11225_v33  ;;  %v12300_v23 = vld [vmem:[%s16910_s16 + $0x14] sm:$0xf0]  ;;  %v12299_v33 = vld [vmem:[%s16910_s16 + $0x14] sm:$0xf] }
 0x5c3   : > { %v6642_v53 = vpop.f32.mrf.mxu1  ;;  %6208 = vmatmul.bf16.gmra.mxu2 %v16490_v55  ;;  %6257 = vmatmul.bf16.gmra.mxu3 %v16492_v43  ;;  %v12341_v55 = vld [vmem:[%s18167_s18 + $0xae4] sm:$0xf] }
 0x5c4   : > { %v6643_v31 = vadd.f32 %v6642_v53, %v6593_v62  ;;  %v11292_v18 = vor.u32 %v12341_v55, %v11289_v60  ;;  %7200 = vmatpush.bf16.msrb.mxu2 %v11228_v46  ;;  %v11119_v62 = vld [vmem:[%s16910_s16 + $0x10] sm:$0xf] }
 0x5c5   : > { %7109 = vmatmul.bf16.vlgmr.msrb.gmra.mxu0 %v16922_v12 }
 0x5c6   : > { %v16929_v36 = vadd.f32 %v6643_v31, %v16539_v32  ;;  %7158 = vmatmul.bf16.vlgmr.msrb.gmra.mxu1 %v16924_v24  ;;  %v5692_v43 = vpop.f32.mrf.mxu2  ;;  %v5741_v32 = vpop.f32.mrf.mxu3  ;;  %7249 = vmatpush.bf16.msrb.mxu3 %v11292_v18  ;;  %v11121_v24 = vld [vmem:[%s16910_s16 + $0x18] sm:$0xf0] }
 0x5c7   : > { %v5742_v14 = vadd.f32 %v5741_v32, %v5692_v43  ;;  %v16958_v43 = vor.u32 %v12300_v23, %v11119_v62 }
 0x5c9   : > { %v16946_v40 = vadd.f32 %v5742_v14, %v16556_v10  ;;  %v16960_v10 = vor.u32 %v12299_v33, %v11121_v24 }
 0x5ca   : > { %v6595_v61 = vpop.f32.mrf.mxu0 }
 0x5cb   : > { %v6644_v7 = vpop.f32.mrf.mxu1  ;;  %18333 = vst [vmem:[#allocation13_spill] sm:$0xff] %v16960_v10 }
 0x5cc   : > { %v6645_v41 = vadd.f32 %v6644_v7, %v6595_v61  ;;  %v11281_v61 = vld [vmem:[%s18167_s18 + $0xad8] sm:$0xf0] }
 0x5ce   : > { %v16949_v9 = vadd.f32 %v6645_v41, %v16559_v4  ;;  %v5694_v53 = vpop.f32.mrf.mxu2  ;;  %v5743_v31 = vpop.f32.mrf.mxu3  ;;  %v18334_v4 = vld [vmem:[#allocation19_spill] sm:$0xff] }
 0x5cf   : > { %v5744_v12 = vadd.f32 %v5743_v31, %v5694_v53 }
 0x5d1   : > { %v16956_v55 = vadd.f32 %v5744_v12, %v16566_v26  ;;  %v12323_v26 = vld [vmem:[%s18167_s18 + $0xa54] sm:$0xf]  ;;  %v11217_v12 = vld [vmem:[%s18167_s18 + $0xa58] sm:$0xf0] }
 0x5d2   : > { %v6598_v32 = vpop.f32.mrf.mxu0  ;;  %v11220_v18 = vor.u32 %v12323_v26, %v11217_v12  ;;  %v12301_v26 = vld [vmem:[%s16910_s16 + $0x24] sm:$0xf]  ;;  %v11129_v12 = vld [vmem:[%s16910_s16 + $0x28] sm:$0xf0] }
 0x5d3   : > { %v6647_v46 = vpop.f32.mrf.mxu1  ;;  %6690 = vmatmul.bf16.vlgmr.msra.gmra.mxu2 %v16532_v58  ;;  %6739 = vmatmul.bf16.vlgmr.msra.gmra.mxu3 %v18334_v4  ;;  %v12339_v58 = vld [vmem:[%s18167_s18 + $0xad4] sm:$0xf]  ;;  %v12302_v4 = vld [vmem:[%s16910_s16 + $0x24] sm:$0xf0] }
 0x5d4   : > { %v6648_v60 = vadd.f32 %v6647_v46, %v6598_v32  ;;  %v11284_v41 = vor.u32 %v12339_v58, %v11281_v61  ;;  %7201 = vmatpush.bf16.msrb.mxu2 %v11220_v18  ;;  %v11127_v32 = vld [vmem:[%s16910_s16 + $0x20] sm:$0xf] }
 0x5d5   : > { %7114 = vmatmul.bf16.gmra.mxu0 %v16958_v43 }
 0x5d6   : > { %v16965_v14 = vadd.f32 %v6648_v60, %v16575_v17  ;;  %7163 = vmatmul.bf16.gmra.mxu1 %v16960_v10  ;;  %v6174_v24 = vpop.f32.mrf.mxu2  ;;  %v6223_v17 = vpop.f32.mrf.mxu3  ;;  %7250 = vmatpush.bf16.msrb.mxu3 %v11284_v41 }
 0x5d7   : > { %v6224_v7 = vadd.f32 %v6223_v17, %v6174_v24  ;;  %v16994_v24 = vor.u32 %v12302_v4, %v11127_v32 }
 0x5d9   : > { %v16982_v62 = vadd.f32 %v6224_v7, %v16592_v42  ;;  %v16996_v42 = vor.u32 %v12301_v26, %v11129_v12 }
 0x5da   : > { %v6600_v53 = vpop.f32.mrf.mxu0 }
 0x5db   : > { %v6649_v31 = vpop.f32.mrf.mxu1  ;;  %18335 = vst [vmem:[#allocation18_spill] sm:$0xff] %v16996_v42 }
 0x5dc   : > { %v6650_v23 = vadd.f32 %v6649_v31, %v6600_v53  ;;  %v11273_v31 = vld [vmem:[%s18167_s18 + $0xac8] sm:$0xf0] }
 0x5de   : > { %v16985_v33 = vadd.f32 %v6650_v23, %v16595_v47  ;;  %v6176_v46 = vpop.f32.mrf.mxu2  ;;  %v6225_v60 = vpop.f32.mrf.mxu3  ;;  %v18336_v47 = vld [vmem:[#allocation16_spill] sm:$0xff] }
 0x5df   : > { %v6226_v10 = vadd.f32 %v6225_v60, %v6176_v46 }
 0x5e1   : > { %v16992_v58 = vadd.f32 %v6226_v10, %v16602_v11  ;;  %v12321_v11 = vld [vmem:[%s18167_s18 + $0xa44] sm:$0xf]  ;;  %v11209_v10 = vld [vmem:[%s18167_s18 + $0xa48] sm:$0xf0] }
 0x5e2   : > { %v6603_v17 = vpop.f32.mrf.mxu0  ;;  %v11212_v53 = vor.u32 %v12321_v11, %v11209_v10  ;;  %v12303_v11 = vld [vmem:[%s16910_s16 + $0x34] sm:$0xf]  ;;  %v11137_v10 = vld [vmem:[%s16910_s16 + $0x38] sm:$0xf0] }
 0x5e3   : > { %v6652_v18 = vpop.f32.mrf.mxu1  ;;  %6695 = vmatmul.bf16.gmra.mxu2 %v16568_v13  ;;  %6744 = vmatmul.bf16.gmra.mxu3 %v18336_v47  ;;  %v12337_v13 = vld [vmem:[%s18167_s18 + $0xac4] sm:$0xf]  ;;  %v12304_v47 = vld [vmem:[%s16910_s16 + $0x34] sm:$0xf0] }
 0x5e4   : > { %v6653_v61 = vadd.f32 %v6652_v18, %v6603_v17  ;;  %v11276_v32 = vor.u32 %v12337_v13, %v11273_v31  ;;  %7202 = vmatpush.bf16.msrb.mxu2 %v11212_v53  ;;  %v11135_v17 = vld [vmem:[%s16910_s16 + $0x30] sm:$0xf] }
 0x5e5   : > { %7119 = vmatmul.bf16.gmra.mxu0 %v16994_v24 }
 0x5e6   : > { %v17001_v7 = vadd.f32 %v6653_v61, %v16611_v44  ;;  %7168 = vmatmul.bf16.gmra.mxu1 %v16996_v42  ;;  %v6179_v41 = vpop.f32.mrf.mxu2  ;;  %v6228_v44 = vpop.f32.mrf.mxu3  ;;  %7251 = vmatpush.bf16.msrb.mxu3 %v11276_v32  ;;  %v11265_v32 = vld [vmem:[%s18167_s18 + $0xab8] sm:$0xf0] }
 0x5e7   : > { %v6229_v23 = vadd.f32 %v6228_v44, %v6179_v41  ;;  %v17030_v41 = vor.u32 %v12304_v47, %v11135_v17 }
 0x5e9   : > { %v17018_v46 = vadd.f32 %v6229_v23, %v16628_v6  ;;  %v17032_v6 = vor.u32 %v12303_v11, %v11137_v10  ;;  %v11143_v11 = vld [vmem:[%s16910_s16 + $0x40] sm:$0xf] }
 0x5ea   : > { %v6605_v60 = vpop.f32.mrf.mxu0 }
 0x5eb   : > { %v6654_v4 = vpop.f32.mrf.mxu1 }
 0x5ec   : > { %v6655_v26 = vadd.f32 %v6654_v4, %v6605_v60 }
 0x5ee   : > { %v17021_v12 = vadd.f32 %v6655_v26, %v16631_v19  ;;  %v6181_v18 = vpop.f32.mrf.mxu2  ;;  %v6230_v61 = vpop.f32.mrf.mxu3 }
 0x5ef   : > { %v6231_v42 = vadd.f32 %v6230_v61, %v6181_v18 }
 0x5f1   : > { %v17028_v13 = vadd.f32 %v6231_v42, %v16638_v37  ;;  %v12319_v37 = vld [vmem:[%s18167_s18 + $0xa34] sm:$0xf]  ;;  %v11201_v42 = vld [vmem:[%s18167_s18 + $0xa38] sm:$0xf0] }
 0x5f2   : > { %v6608_v44 = vpop.f32.mrf.mxu0  ;;  %v11204_v23 = vor.u32 %v12319_v37, %v11201_v42  ;;  %v11145_v37 = vld [vmem:[%s16910_s16 + $0x48] sm:$0xf0] }
 0x5f3   : > { %v6657_v53 = vpop.f32.mrf.mxu1  ;;  %6700 = vmatmul.bf16.gmra.mxu2 %v16604_v35  ;;  %6749 = vmatmul.bf16.gmra.mxu3 %v16606_v28  ;;  %v12335_v35 = vld [vmem:[%s18167_s18 + $0xab4] sm:$0xf] }
 0x5f4   : > { %v6658_v31 = vadd.f32 %v6657_v53, %v6608_v44  ;;  %v11268_v4 = vor.u32 %v12335_v35, %v11265_v32  ;;  %7203 = vmatpush.bf16.msrb.mxu2 %v11204_v23  ;;  %v12306_v53 = vld [vmem:[%s16910_s16 + $0x44] sm:$0xf0] }
 0x5f5   : > { %7124 = vmatmul.bf16.gmra.mxu0 %v17030_v41 }
 0x5f6   : > { %v17037_v19 = vadd.f32 %v6658_v31, %v16647_v1  ;;  %7173 = vmatmul.bf16.gmra.mxu1 %v17032_v6  ;;  %v6184_v28 = vpop.f32.mrf.mxu2  ;;  %v6233_v1 = vpop.f32.mrf.mxu3  ;;  %7252 = vmatpush.bf16.msrb.mxu3 %v11268_v4  ;;  %v12305_v31 = vld [vmem:[%s16910_s16 + $0x44] sm:$0xf]  ;;  %v11519_v4 = vld [vmem:[%s18167_s18 + $0xbf0] sm:$0xf] }
 0x5f7   : > { %v6234_v60 = vadd.f32 %v6233_v1, %v6184_v28  ;;  %v17066_v28 = vor.u32 %v12306_v53, %v11143_v11  ;;  %v11257_v53 = vld [vmem:[%s18167_s18 + $0xaa8] sm:$0xf0] }
 0x5f9   : > { %v17054_v26 = vadd.f32 %v6234_v60, %v16664_v48  ;;  %v17068_v48 = vor.u32 %v12305_v31, %v11145_v37 }
 0x5fa   : > { %v6610_v17 = vpop.f32.mrf.mxu0 }
 0x5fb   : > { %v6659_v18 = vpop.f32.mrf.mxu1 }
 0x5fc   : > { %v6660_v61 = vadd.f32 %v6659_v18, %v6610_v17  ;;  %v12392_v17 = vld [vmem:[%s18167_s18 + $0xbf4] sm:$0xf0]  ;;  %v11193_v18 = vld [vmem:[%s18167_s18 + $0xa28] sm:$0xf0] }
 0x5fd   : > { %v11520_v11 = vor.u32 %v12392_v17, %v11519_v4 }
 0x5fe   : > { %v17057_v47 = vadd.f32 %v6660_v61, %v16667_v56  ;;  %v6186_v10 = vpop.f32.mrf.mxu2  ;;  %v6235_v44 = vpop.f32.mrf.mxu3  ;;  %v11455_v56 = vld [vmem:[%s18167_s18 + $0xb70] sm:$0xf]  ;;  %v12333_v61 = vld [vmem:[%s18167_s18 + $0xaa4] sm:$0xf] }
 0x5ff   : > { %v6236_v42 = vadd.f32 %v6235_v44, %v6186_v10  ;;  %v11260_v37 = vor.u32 %v12333_v61, %v11257_v53  ;;  %7667 = vmatpush.bf16.msra.mxu1 %v11520_v11  ;;  %v12372_v61 = vld [vmem:[%s18167_s18 + $0xb54] sm:$0xf0] }
 0x601   : > { %v17064_v35 = vadd.f32 %v6236_v42, %v16674_v49  ;;  %v12376_v49 = vld [vmem:[%s18167_s18 + $0xb74] sm:$0xf0]  ;;  %v11447_v42 = vld [vmem:[%s18167_s18 + $0xb60] sm:$0xf]  ;;  %7253 = vmatpush.bf16.msrb.mxu3 %v11260_v37 }
 0x602   : > { %v6613_v1 = vpop.f32.mrf.mxu0  ;;  %v11456_v60 = vor.u32 %v12376_v49, %v11455_v56  ;;  %v12390_v56 = vld [vmem:[%s18167_s18 + $0xbe4] sm:$0xf0] }
 0x603   : > { %v6662_v23 = vpop.f32.mrf.mxu1  ;;  %6705 = vmatmul.bf16.gmra.mxu2 %v16640_v27  ;;  %6754 = vmatmul.bf16.gmra.mxu3 %v16642_v59  ;;  %v12317_v59 = vld [vmem:[%s18167_s18 + $0xa24] sm:$0xf] }
 0x604   : > { %v6663_v32 = vadd.f32 %v6662_v23, %v6613_v1  ;;  %v11196_v44 = vor.u32 %v12317_v59, %v11193_v18  ;;  %7618 = vmatpush.bf16.msra.mxu0 %v11456_v60  ;;  %v12374_v1 = vld [vmem:[%s18167_s18 + $0xb64] sm:$0xf0]  ;;  %v11511_v23 = vld [vmem:[%s18167_s18 + $0xbe0] sm:$0xf]  ;;  %v11439_v18 = vld [vmem:[%s18167_s18 + $0xb50] sm:$0xf] }
 0x605   : > { %7129 = vmatmul.bf16.gmra.mxu0 %v17066_v28  ;;  %v11512_v60 = vor.u32 %v12390_v56, %v11511_v23  ;;  %v11440_v11 = vor.u32 %v12372_v61, %v11439_v18  ;;  %v11153_v23 = vld [vmem:[%s16910_s16 + $0x58] sm:$0xf0]  ;;  %v11431_v56 = vld [vmem:[%s18167_s18 + $0xb40] sm:$0xf] }
 0x606   : > { %v17085_v27 = vadd.f32 %v6663_v32, %v16695_v51  ;;  %7178 = vmatmul.bf16.gmra.mxu1 %v17068_v48  ;;  %v6189_v10 = vpop.f32.mrf.mxu2  ;;  %v6238_v51 = vpop.f32.mrf.mxu3  ;;  %7204 = vmatpush.bf16.msrb.mxu2 %v11196_v44  ;;  %v11448_v32 = vor.u32 %v12374_v1, %v11447_v42  ;;  %v11151_v44 = vld [vmem:[%s16910_s16 + $0x50] sm:$0xf]  ;;  %v12308_v42 = vld [vmem:[%s16910_s16 + $0x54] sm:$0xf0]  ;;  %v12307_v1 = vld [vmem:[%s16910_s16 + $0x54] sm:$0xf] }
 0x607   : > { %v6239_v31 = vadd.f32 %v6238_v51, %v6189_v10  ;;  %7668 = vmatpush.bf16.msra.mxu1 %v11512_v60  ;;  %v12388_v10 = vld [vmem:[%s18167_s18 + $0xbd4] sm:$0xf0]  ;;  %v12370_v60 = vld [vmem:[%s18167_s18 + $0xb44] sm:$0xf0]  ;;  %v17150_v18 = vor.u32 %v12308_v42, %v11151_v44  ;;  %v17152_v61 = vor.u32 %v12307_v1, %v11153_v23  ;;  %v12315_v42 = vld [vmem:[%s18167_s18 + $0xa14] sm:$0xf] }
 0x608   : > { %7619 = vmatpush.bf16.msra.mxu0 %v11448_v32  ;;  %v11185_v1 = vld [vmem:[%s18167_s18 + $0xa18] sm:$0xf0]  ;;  %v12331_v23 = vld [vmem:[%s18167_s18 + $0xa94] sm:$0xf] }
 0x609   : > { %v17114_v49 = vadd.f32 %v6239_v31, %v16724_v16  ;;  %v11503_v16 = vld [vmem:[%s18167_s18 + $0xbd0] sm:$0xf] }
 0x60a   : > { %v6615_v4 = vpop.f32.mrf.mxu0  ;;  %v11504_v53 = vor.u32 %v12388_v10, %v11503_v16 }
 0x60b   : > { %v6664_v17 = vpop.f32.mrf.mxu1 }
 0x60c   : > { %v6665_v59 = vadd.f32 %v6664_v17, %v6615_v4  ;;  %7620 = vmatpush.bf16.msra.mxu0 %v11440_v11  ;;  %7669 = vmatpush.bf16.msra.mxu1 %v11504_v53  ;;  %v11432_v4 = vor.u32 %v12370_v60, %v11431_v56  ;;  %v12386_v17 = vld [vmem:[%s18167_s18 + $0xbc4] sm:$0xf0]  ;;  %v11188_v60 = vor.u32 %v12315_v42, %v11185_v1  ;;  %v11407_v1 = vld [vmem:[%s18167_s18 + $0xb10] sm:$0xf] }
 0x60e   : > { %v17129_v51 = vadd.f32 %v6665_v59, %v16739_v5  ;;  %v6191_v31 = vpop.f32.mrf.mxu2  ;;  %v6240_v37 = vpop.f32.mrf.mxu3  ;;  %v11495_v5 = vld [vmem:[%s18167_s18 + $0xbc0] sm:$0xf]  ;;  %7205 = vmatpush.bf16.msrb.mxu2 %v11188_v60 }
 0x60f   : > { %v6241_v32 = vadd.f32 %v6240_v37, %v6191_v31  ;;  %v11496_v16 = vor.u32 %v12386_v17, %v11495_v5  ;;  %v11423_v31 = vld [vmem:[%s18167_s18 + $0xb30] sm:$0xf]  ;;  %v11249_v5 = vld [vmem:[%s18167_s18 + $0xa98] sm:$0xf0]  ;;  %v11159_v60 = vld [vmem:[%s16910_s16 + $0x60] sm:$0xf] }
 0x610   : > { %7621 = vmatpush.bf16.msra.mxu0 %v11432_v4  ;;  %v11487_v37 = vld [vmem:[%s18167_s18 + $0xbb0] sm:$0xf]  ;;  %v11252_v17 = vor.u32 %v12331_v23, %v11249_v5  ;;  %v12364_v23 = vld [vmem:[%s18167_s18 + $0xb14] sm:$0xf0] }
 0x611   : > { %v17148_v59 = vadd.f32 %v6241_v32, %v16758_v30  ;;  %v12368_v30 = vld [vmem:[%s18167_s18 + $0xb34] sm:$0xf0]  ;;  %7670 = vmatpush.bf16.msra.mxu1 %v11496_v16  ;;  %v11415_v16 = vld [vmem:[%s18167_s18 + $0xb20] sm:$0xf] }
 0x612   : > { %v6618_v11 = vpop.f32.mrf.mxu0  ;;  %v11424_v44 = vor.u32 %v12368_v30, %v11423_v31  ;;  %v12382_v31 = vld [vmem:[%s18167_s18 + $0xba4] sm:$0xf0]  ;;  %7254 = vmatpush.bf16.msrb.mxu3 %v11252_v17 }
 0x613   : > { %v6667_v10 = vpop.f32.mrf.mxu1  ;;  %6710 = vmatmul.bf16.gmra.mxu2 %v16676_v34  ;;  %6759 = vmatmul.bf16.gmra.mxu3 %v16678_v57  ;;  %v12384_v34 = vld [vmem:[%s18167_s18 + $0xbb4] sm:$0xf0] }
 0x614   : > { %v6668_v53 = vadd.f32 %v6667_v10, %v6618_v11  ;;  %v11488_v32 = vor.u32 %v12384_v34, %v11487_v37  ;;  %7622 = vmatpush.bf16.msra.mxu0 %v11424_v44  ;;  %v12366_v11 = vld [vmem:[%s18167_s18 + $0xb24] sm:$0xf0]  ;;  %v11479_v10 = vld [vmem:[%s18167_s18 + $0xba0] sm:$0xf] }
 0x615   : > { %7134 = vmatmul.bf16.gmra.mxu0 %v17150_v18  ;;  %v11480_v44 = vor.u32 %v12382_v31, %v11479_v10  ;;  %v11161_v10 = vld [vmem:[%s16910_s16 + $0x68] sm:$0xf0]  ;;  %v11399_v31 = vld [vmem:[%s18167_s18 + $0xb00] sm:$0xf] }
 0x616   : > { %v17169_v57 = vadd.f32 %v6668_v53, %v16779_v25  ;;  %7183 = vmatmul.bf16.gmra.mxu1 %v17152_v61  ;;  %v6194_v56 = vpop.f32.mrf.mxu2  ;;  %v6243_v25 = vpop.f32.mrf.mxu3  ;;  %v11416_v53 = vor.u32 %v12366_v11, %v11415_v16  ;;  %v12310_v16 = vld [vmem:[%s16910_s16 + $0x64] sm:$0xf0]  ;;  %v12309_v11 = vld [vmem:[%s16910_s16 + $0x64] sm:$0xf] }
 0x617   : > { %v6244_v4 = vadd.f32 %v6243_v25, %v6194_v56  ;;  %7671 = vmatpush.bf16.msra.mxu1 %v11488_v32  ;;  %v11408_v32 = vor.u32 %v12364_v23, %v11407_v1  ;;  %v12380_v56 = vld [vmem:[%s18167_s18 + $0xb94] sm:$0xf0]  ;;  %v17234_v1 = vor.u32 %v12310_v16, %v11159_v60  ;;  %v17236_v23 = vor.u32 %v12309_v11, %v11161_v10  ;;  %v11177_v60 = vld [vmem:[%s18167_s18 + $0xa08] sm:$0xf0] }
 0x618   : > { %7623 = vmatpush.bf16.msra.mxu0 %v11416_v53  ;;  %v11241_v16 = vld [vmem:[%s18167_s18 + $0xa88] sm:$0xf0] }
 0x619   : > { %v17198_v30 = vadd.f32 %v6244_v4, %v16808_v21  ;;  %v11471_v21 = vld [vmem:[%s18167_s18 + $0xb90] sm:$0xf] }
 0x61a   : > { %v6620_v37 = vpop.f32.mrf.mxu0  ;;  %v11472_v5 = vor.u32 %v12380_v56, %v11471_v21 }
 0x61b   : > { %v6669_v34 = vpop.f32.mrf.mxu1  ;;  %7672 = vmatpush.bf16.msra.mxu1 %v11480_v44  ;;  %v12362_v44 = vld [vmem:[%s18167_s18 + $0xb04] sm:$0xf0] }
 0x61c   : > { %v6670_v42 = vadd.f32 %v6669_v34, %v6620_v37  ;;  %7624 = vmatpush.bf16.msra.mxu0 %v11408_v32  ;;  %v11400_v37 = vor.u32 %v12362_v44, %v11399_v31  ;;  %v12378_v34 = vld [vmem:[%s18167_s18 + $0xb84] sm:$0xf0] }
 0x61e   : > { %v17213_v25 = vadd.f32 %v6670_v42, %v16823_v38  ;;  %v6196_v4 = vpop.f32.mrf.mxu2  ;;  %v6245_v17 = vpop.f32.mrf.mxu3  ;;  %v11463_v38 = vld [vmem:[%s18167_s18 + $0xb80] sm:$0xf] }
 0x61f   : > { %v6246_v53 = vadd.f32 %v6245_v17, %v6196_v4  ;;  %7673 = vmatpush.bf16.msra.mxu1 %v11472_v5  ;;  %v11464_v21 = vor.u32 %v12378_v34, %v11463_v38  ;;  %v11167_v34 = vld [vmem:[%s16910_s16 + $0x70] sm:$0xf] }
 0x620   : > { %7625 = vmatpush.bf16.msra.mxu0 %v11400_v37 }
 0x621   : > { %v17232_v42 = vadd.f32 %v6246_v53, %v16842_v15  ;;  %v12313_v15 = vld [vmem:[%s18167_s18 + $0xa04] sm:$0xf] }
 0x622   : > { %v6623_v32 = vpop.f32.mrf.mxu0  ;;  %v11180_v17 = vor.u32 %v12313_v15, %v11177_v60  ;;  %v11169_v15 = vld [vmem:[%s16910_s16 + $0x78] sm:$0xf0] }
 0x623   : > { %v6672_v56 = vpop.f32.mrf.mxu1  ;;  %6715 = vmatmul.bf16.gmra.mxu2 %v16760_v54  ;;  %6764 = vmatmul.bf16.gmra.mxu3 %v16762_v52  ;;  %v12329_v54 = vld [vmem:[%s18167_s18 + $0xa84] sm:$0xf] }
 0x624   : > { %v6673_v4 = vadd.f32 %v6672_v56, %v6623_v32  ;;  %7674 = vmatpush.bf16.msra.mxu1 %v11464_v21  ;;  %v11244_v10 = vor.u32 %v12329_v54, %v11241_v16  ;;  %7206 = vmatpush.bf16.msrb.mxu2 %v11180_v17  ;;  %v12312_v56 = vld [vmem:[%s16910_s16 + $0x74] sm:$0xf0] }
 0x625   : > { %7139 = vmatmul.bf16.gmra.mxu0 %v17234_v1 }
 0x626   : > { %v17241_v5 = vadd.f32 %v6673_v4, %v16851_v20  ;;  %7188 = vmatmul.bf16.gmra.mxu1 %v17236_v23  ;;  %v6199_v52 = vpop.f32.mrf.mxu2  ;;  %v6248_v20 = vpop.f32.mrf.mxu3  ;;  %7255 = vmatpush.bf16.msrb.mxu3 %v11244_v10  ;;  %v12311_v4 = vld [vmem:[%s16910_s16 + $0x74] sm:$0xf]  ;;  %v11457_v10 = vld [vmem:[%s18167_s18 + $0xb78] sm:$0xf0]  ;;  %s12442_s16 = sshll.u32 %s12677_s2, 8 }
 0x627   : > { %v6249_v11 = vadd.f32 %v6248_v20, %v6199_v52  ;;  %v17270_v52 = vor.u32 %v12312_v56, %v11167_v34  ;;  %s8408_s0 = scalar_lea.hbm %s18169_s20, %s12442_s16 }
 0x628   : > { %s8411_s26 = sshll.u32 %s8408_s0, 4  ;;  %s8412_s26 = int_to_ptr.hbm [resolvable:$true] %s8411_s26 }
 0x629   : > { %v17258_v53 = vadd.f32 %v6249_v11, %v16868_v3  ;;  %v17272_v3 = vor.u32 %v12311_v4, %v11169_v15  ;;  %s12499_s24 = sshra.s32 %s8412_s26, 4  ;;  %s12500_s24 = int_to_ptr.hbm [resolvable:$true] %s12499_s24 }
 0x62a   : > { %v6625_v31 = vpop.f32.mrf.mxu0  ;;  %s12501_s23 = scalar_lea.hbm %s12500_s24, 256  ;;  %p12506_p0 = scmp.lt.s32.totalorder %s12500_s24, %s18169_s20 }
 0x62b   : > { %v6674_v44 = vpop.f32.mrf.mxu1  ;;  %p12502_p11 = scmp.ne.s32.totalorder %s12500_s24, %s12501_s23 }
 0x62c   : > { %v6675_v38 = vadd.f32 %v6674_v44, %v6625_v31 }
 0x62d   : > { %p12503_p12 = pnand %p12502_p11, %p12694_p5 }
 0x62e   : > { %v17261_v37 = vadd.f32 %v6675_v38, %v16871_v39  ;;  %v6201_v21 = vpop.f32.mrf.mxu2  ;;  %v6250_v32 = vpop.f32.mrf.mxu3  ;;  %v18337_v39 = vld [vmem:[#allocation17_spill] sm:$0xff]  ;;  %v11521_v38 = vld [vmem:[%s18167_s18 + $0xbf8] sm:$0xf0] }
 0x62f   : > { %v6251_v60 = vadd.f32 %v6250_v32, %v6201_v21  ;;  %p12504_p13 = pneg %p12503_p12 }
 0x631   : > { %v17268_v54 = vadd.f32 %v6251_v60, %v16878_v29  ;;  %v12375_v29 = vld [vmem:[%s18167_s18 + $0xb74] sm:$0xf] }
 0x632   : > { %v6628_v20 = vpop.f32.mrf.mxu0  ;;  %v11460_v44 = vor.u32 %v12375_v29, %v11457_v10  ;;  %v11337_v29 = vld [vmem:[%s17300_s28 + $0x8] sm:$0xf0] }
 0x633   : > { %v6677_v17 = vpop.f32.mrf.mxu1  ;;  %6720 = vmatmul.bf16.gmra.mxu2 %v16844_v0  ;;  %6769 = vmatmul.bf16.gmra.mxu3 %v18337_v39  ;;  %v12391_v0 = vld [vmem:[%s18167_s18 + $0xbf4] sm:$0xf]  ;;  %v12345_v39 = vld [vmem:[%s17300_s28 + $0x4] sm:$0xf] }
 0x634   : > { %v6678_v16 = vadd.f32 %v6677_v17, %v6628_v20  ;;  %v11524_v21 = vor.u32 %v12391_v0, %v11521_v38  ;;  %7716 = vmatpush.bf16.msra.mxu2 %v11460_v44  ;;  %v11335_v20 = vld [vmem:[%s17300_s28] sm:$0xf] }
 0x635   : > { %7144 = vmatmul.bf16.gmra.mxu0 %v17270_v52 }
 0x636   : > { %v17277_v11 = vadd.f32 %v6678_v16, %v16887_v22  ;;  %7193 = vmatmul.bf16.gmra.mxu1 %v17272_v3  ;;  %v6204_v31 = vpop.f32.mrf.mxu2  ;;  %v6253_v22 = vpop.f32.mrf.mxu3  ;;  %7765 = vmatpush.bf16.msra.mxu3 %v11524_v21  ;;  %v12346_v16 = vld [vmem:[%s17300_s28 + $0x4] sm:$0xf0]  ;;  %v11449_v21 = vld [vmem:[%s18167_s18 + $0xb68] sm:$0xf0] }
 0x637   : > { %v6254_v34 = vadd.f32 %v6253_v22, %v6204_v31  ;;  %v17312_v31 = vor.u32 %v12346_v16, %v11335_v20  ;;  %v17314_v22 = vor.u32 %v12345_v39, %v11337_v29 }
 0x639   : > { %v17294_v32 = vadd.f32 %v6254_v34, %v16904_v2  ;;  %18338 = vst [vmem:[#allocation11_spill] sm:$0xff] %v17314_v22 }
 0x63a   : > { %v6630_v56 = vpop.f32.mrf.mxu0 }
 0x63b   : > { %v6679_v4 = vpop.f32.mrf.mxu1 }
 0x63c   : > { %v6680_v15 = vadd.f32 %v6679_v4, %v6630_v56  ;;  %v11513_v4 = vld [vmem:[%s18167_s18 + $0xbe8] sm:$0xf0] }
 0x63e   : > { %v17303_v60 = vadd.f32 %v6680_v15, %v16913_v45  ;;  %v6206_v17 = vpop.f32.mrf.mxu2  ;;  %v6255_v2 = vpop.f32.mrf.mxu3 }
 0x63f   : > { %v6256_v10 = vadd.f32 %v6255_v2, %v6206_v17 }
 0x641   : > { %v17310_v0 = vadd.f32 %v6256_v10, %v16920_v50  ;;  %v12373_v50 = vld [vmem:[%s18167_s18 + $0xb64] sm:$0xf]  ;;  %v11343_v10 = vld [vmem:[%s17300_s28 + $0x10] sm:$0xf] }
 0x642   : > { %v7110_v44 = vpop.f32.mrf.mxu0  ;;  %v11452_v56 = vor.u32 %v12373_v50, %v11449_v21  ;;  %v12347_v50 = vld [vmem:[%s17300_s28 + $0x14] sm:$0xf]  ;;  %v11345_v21 = vld [vmem:[%s17300_s28 + $0x18] sm:$0xf0] }
 0x643   : > { %v7159_v38 = vpop.f32.mrf.mxu1  ;;  %6725 = vmatmul.bf16.gmra.mxu2 %v16880_v63  ;;  %6774 = vmatmul.bf16.gmra.mxu3 %v16882_v8  ;;  %v12389_v63 = vld [vmem:[%s18167_s18 + $0xbe4] sm:$0xf] }
 0x644   : > { %v7160_v34 = vadd.f32 %v7159_v38, %v7110_v44  ;;  %v11516_v20 = vor.u32 %v12389_v63, %v11513_v4  ;;  %7717 = vmatpush.bf16.msra.mxu2 %v11452_v56 }
 0x645   : > { %7626 = vmatmul.bf16.vlgmr.msra.gmra.mxu0 %v17312_v31 }
 0x646   : > { %v17319_v45 = vadd.f32 %v7160_v34, %v16929_v36  ;;  %7675 = vmatmul.bf16.vlgmr.msra.gmra.mxu1 %v17314_v22  ;;  %v6209_v8 = vpop.f32.mrf.mxu2  ;;  %v6258_v36 = vpop.f32.mrf.mxu3  ;;  %7766 = vmatpush.bf16.msra.mxu3 %v11516_v20  ;;  %v12348_v34 = vld [vmem:[%s17300_s28 + $0x14] sm:$0xf0] }
 0x647   : > { %v6259_v15 = vadd.f32 %v6258_v36, %v6209_v8  ;;  %v17348_v8 = vor.u32 %v12348_v34, %v11343_v10  ;;  %v11505_v10 = vld [vmem:[%s18167_s18 + $0xbd8] sm:$0xf0] }
 0x649   : > { %v17336_v17 = vadd.f32 %v6259_v15, %v16946_v40  ;;  %18339 = vst [vmem:[#allocation12_spill] sm:$0xff] %v17348_v8  ;;  %v17350_v40 = vor.u32 %v12347_v50, %v11345_v21  ;;  %v18341_v15 = vld [vmem:[#allocation20_spill] sm:$0xff] }
 0x64a   : > { %v7112_v2 = vpop.f32.mrf.mxu0 }
 0x64b   : > { %v7161_v16 = vpop.f32.mrf.mxu1  ;;  %18340 = vst [vmem:[#allocation14_spill] sm:$0xff] %v17350_v40 }
 0x64c   : > { %v7162_v39 = vadd.f32 %v7161_v16, %v7112_v2  ;;  %v12387_v2 = vld [vmem:[%s18167_s18 + $0xbd4] sm:$0xf] }
 0x64e   : > { %v17339_v29 = vadd.f32 %v7162_v39, %v16949_v9  ;;  %v6211_v44 = vpop.f32.mrf.mxu2  ;;  %v6260_v38 = vpop.f32.mrf.mxu3  ;;  %v18342_v9 = vld [vmem:[#allocation21_spill] sm:$0xff] }
 0x64f   : > { %v6261_v22 = vadd.f32 %v6260_v38, %v6211_v44  ;;  %v11508_v38 = vor.u32 %v12387_v2, %v11505_v10 }
 0x651   : > { %v17346_v63 = vadd.f32 %v6261_v22, %v16956_v55  ;;  %v12371_v55 = vld [vmem:[%s18167_s18 + $0xb54] sm:$0xf]  ;;  %v11441_v22 = vld [vmem:[%s18167_s18 + $0xb58] sm:$0xf0]  ;;  %7767 = vmatpush.bf16.msra.mxu3 %v11508_v38 }
 0x652   : > { %v7115_v36 = vpop.f32.mrf.mxu0  ;;  %v11444_v39 = vor.u32 %v12371_v55, %v11441_v22  ;;  %v12350_v55 = vld [vmem:[%s17300_s28 + $0x24] sm:$0xf0]  ;;  %v12349_v22 = vld [vmem:[%s17300_s28 + $0x24] sm:$0xf] }
 0x653   : > { %v7164_v56 = vpop.f32.mrf.mxu1  ;;  %7207 = vmatmul.bf16.vlgmr.msrb.gmra.mxu2 %v18341_v15  ;;  %7256 = vmatmul.bf16.vlgmr.msrb.gmra.mxu3 %v18342_v9 }
 0x654   : > { %v7165_v4 = vadd.f32 %v7164_v56, %v7115_v36  ;;  %7718 = vmatpush.bf16.msra.mxu2 %v11444_v39 }
 0x655   : > { %7631 = vmatmul.bf16.gmra.mxu0 %v17348_v8 }
 0x656   : > { %v17355_v20 = vadd.f32 %v7165_v4, %v16965_v14  ;;  %7680 = vmatmul.bf16.gmra.mxu1 %v17350_v40  ;;  %v6691_v16 = vpop.f32.mrf.mxu2  ;;  %v6740_v14 = vpop.f32.mrf.mxu3  ;;  %v11351_v4 = vld [vmem:[%s17300_s28 + $0x20] sm:$0xf]  ;;  %v11353_v40 = vld [vmem:[%s17300_s28 + $0x28] sm:$0xf0] }
 0x657   : > { %v6741_v44 = vadd.f32 %v6740_v14, %v6691_v16  ;;  %v17384_v16 = vor.u32 %v12350_v55, %v11351_v4 }
 0x659   : > { %v17372_v34 = vadd.f32 %v6741_v44, %v16982_v62  ;;  %v17386_v62 = vor.u32 %v12349_v22, %v11353_v40 }
 0x65a   : > { %v7117_v50 = vpop.f32.mrf.mxu0 }
 0x65b   : > { %v7166_v21 = vpop.f32.mrf.mxu1  ;;  %18343 = vst [vmem:[#allocation15_spill] sm:$0xff] %v17386_v62 }
 0x65c   : > { %v7167_v36 = vadd.f32 %v7166_v21, %v7117_v50  ;;  %v11497_v50 = vld [vmem:[%s18167_s18 + $0xbc8] sm:$0xf0] }
 0x65e   : > { %v17375_v56 = vadd.f32 %v7167_v36, %v16985_v33  ;;  %v6693_v15 = vpop.f32.mrf.mxu2  ;;  %v6742_v9 = vpop.f32.mrf.mxu3  ;;  %v18344_v33 = vld [vmem:[#allocation13_spill] sm:$0xff] }
 0x65f   : > { %v6743_v8 = vadd.f32 %v6742_v9, %v6693_v15 }
 0x661   : > { %v17382_v2 = vadd.f32 %v6743_v8, %v16992_v58  ;;  %v12369_v58 = vld [vmem:[%s18167_s18 + $0xb44] sm:$0xf]  ;;  %v11433_v8 = vld [vmem:[%s18167_s18 + $0xb48] sm:$0xf0] }
 0x662   : > { %v7120_v14 = vpop.f32.mrf.mxu0  ;;  %v11436_v38 = vor.u32 %v12369_v58, %v11433_v8  ;;  %v12351_v58 = vld [vmem:[%s17300_s28 + $0x34] sm:$0xf]  ;;  %v11361_v8 = vld [vmem:[%s17300_s28 + $0x38] sm:$0xf0] }
 0x663   : > { %v7169_v39 = vpop.f32.mrf.mxu1  ;;  %7212 = vmatmul.bf16.gmra.mxu2 %v16958_v43  ;;  %7261 = vmatmul.bf16.gmra.mxu3 %v18344_v33  ;;  %v12385_v43 = vld [vmem:[%s18167_s18 + $0xbc4] sm:$0xf]  ;;  %v12352_v33 = vld [vmem:[%s17300_s28 + $0x34] sm:$0xf0] }
 0x664   : > { %v7170_v10 = vadd.f32 %v7169_v39, %v7120_v14  ;;  %v11500_v36 = vor.u32 %v12385_v43, %v11497_v50  ;;  %7719 = vmatpush.bf16.msra.mxu2 %v11436_v38  ;;  %v11359_v14 = vld [vmem:[%s17300_s28 + $0x30] sm:$0xf] }
 0x665   : > { %7636 = vmatmul.bf16.gmra.mxu0 %v17384_v16 }
 0x666   : > { %v17391_v44 = vadd.f32 %v7170_v10, %v17001_v7  ;;  %7685 = vmatmul.bf16.gmra.mxu1 %v17386_v62  ;;  %v6696_v40 = vpop.f32.mrf.mxu2  ;;  %v6745_v7 = vpop.f32.mrf.mxu3  ;;  %7768 = vmatpush.bf16.msra.mxu3 %v11500_v36 }
 0x667   : > { %v6746_v21 = vadd.f32 %v6745_v7, %v6696_v40  ;;  %v17420_v40 = vor.u32 %v12352_v33, %v11359_v14 }
 0x669   : > { %v17408_v4 = vadd.f32 %v6746_v21, %v17018_v46  ;;  %v17422_v46 = vor.u32 %v12351_v58, %v11361_v8 }
 0x66a   : > { %v7122_v15 = vpop.f32.mrf.mxu0 }
 0x66b   : > { %v7171_v9 = vpop.f32.mrf.mxu1  ;;  %18345 = vst [vmem:[#allocation19_spill] sm:$0xff] %v17422_v46 }
 0x66c   : > { %v7172_v55 = vadd.f32 %v7171_v9, %v7122_v15  ;;  %v11489_v9 = vld [vmem:[%s18167_s18 + $0xbb8] sm:$0xf0] }
 0x66e   : > { %v17411_v22 = vadd.f32 %v7172_v55, %v17021_v12  ;;  %v6698_v39 = vpop.f32.mrf.mxu2  ;;  %v6747_v10 = vpop.f32.mrf.mxu3  ;;  %v18346_v12 = vld [vmem:[#allocation18_spill] sm:$0xff] }
 0x66f   : > { %v6748_v62 = vadd.f32 %v6747_v10, %v6698_v39 }
 0x671   : > { %v17418_v43 = vadd.f32 %v6748_v62, %v17028_v13  ;;  %v12367_v13 = vld [vmem:[%s18167_s18 + $0xb34] sm:$0xf]  ;;  %v11425_v62 = vld [vmem:[%s18167_s18 + $0xb38] sm:$0xf0] }
 0x672   : > { %v7125_v7 = vpop.f32.mrf.mxu0  ;;  %v11428_v15 = vor.u32 %v12367_v13, %v11425_v62  ;;  %v12353_v13 = vld [vmem:[%s17300_s28 + $0x44] sm:$0xf]  ;;  %v11369_v62 = vld [vmem:[%s17300_s28 + $0x48] sm:$0xf0] }
 0x673   : > { %v7174_v38 = vpop.f32.mrf.mxu1  ;;  %7217 = vmatmul.bf16.gmra.mxu2 %v16994_v24  ;;  %7266 = vmatmul.bf16.gmra.mxu3 %v18346_v12  ;;  %v12383_v24 = vld [vmem:[%s18167_s18 + $0xbb4] sm:$0xf]  ;;  %v12354_v12 = vld [vmem:[%s17300_s28 + $0x44] sm:$0xf0] }
 0x674   : > { %v7175_v50 = vadd.f32 %v7174_v38, %v7125_v7  ;;  %v11492_v14 = vor.u32 %v12383_v24, %v11489_v9  ;;  %7720 = vmatpush.bf16.msra.mxu2 %v11428_v15  ;;  %v11367_v7 = vld [vmem:[%s17300_s28 + $0x40] sm:$0xf] }
 0x675   : > { %7641 = vmatmul.bf16.gmra.mxu0 %v17420_v40 }
 0x676   : > { %v17427_v21 = vadd.f32 %v7175_v50, %v17037_v19  ;;  %7690 = vmatmul.bf16.gmra.mxu1 %v17422_v46  ;;  %v6701_v36 = vpop.f32.mrf.mxu2  ;;  %v6750_v19 = vpop.f32.mrf.mxu3  ;;  %7769 = vmatpush.bf16.msra.mxu3 %v11492_v14  ;;  %v12440_v14 = vld [vmem:[%s18167_s18 + $0xcf4] sm:$0xf0] }
 0x677   : > { %v6751_v55 = vadd.f32 %v6750_v19, %v6701_v36  ;;  %v17456_v36 = vor.u32 %v12354_v12, %v11367_v7 }
 0x679   : > { %v17444_v39 = vadd.f32 %v6751_v55, %v17054_v26  ;;  %v17458_v26 = vor.u32 %v12353_v13, %v11369_v62  ;;  %v11743_v55 = vld [vmem:[%s18167_s18 + $0xcf0] sm:$0xf]  ;;  %v11671_v62 = vld [vmem:[%s18167_s18 + $0xc60] sm:$0xf] }
 0x67a   : > { %v7127_v10 = vpop.f32.mrf.mxu0 }
 0x67b   : > { %v7176_v33 = vpop.f32.mrf.mxu1 }
 0x67c   : > { %v7177_v58 = vadd.f32 %v7176_v33, %v7127_v10  ;;  %v11417_v10 = vld [vmem:[%s18167_s18 + $0xb28] sm:$0xf0]  ;;  %v12381_v33 = vld [vmem:[%s18167_s18 + $0xba4] sm:$0xf] }
 0x67e   : > { %v17447_v8 = vadd.f32 %v7177_v58, %v17057_v47  ;;  %v6703_v38 = vpop.f32.mrf.mxu2  ;;  %v6752_v50 = vpop.f32.mrf.mxu3  ;;  %v11679_v47 = vld [vmem:[%s18167_s18 + $0xc70] sm:$0xf]  ;;  %v11744_v58 = vor.u32 %v12440_v14, %v11743_v55 }
 0x67f   : > { %v6753_v46 = vadd.f32 %v6752_v50, %v6703_v38  ;;  %v11481_v50 = vld [vmem:[%s18167_s18 + $0xba8] sm:$0xf0] }
 0x680   : > { %v11484_v13 = vor.u32 %v12381_v33, %v11481_v50  ;;  %8184 = vmatpush.bf16.msrb.mxu1 %v11744_v58  ;;  %v12420_v33 = vld [vmem:[%s18167_s18 + $0xc54] sm:$0xf0] }
 0x681   : > { %v17454_v24 = vadd.f32 %v6753_v46, %v17064_v35  ;;  %v12424_v35 = vld [vmem:[%s18167_s18 + $0xc74] sm:$0xf0] }
 0x682   : > { %v7130_v19 = vpop.f32.mrf.mxu0  ;;  %v11680_v46 = vor.u32 %v12424_v35, %v11679_v47  ;;  %v12438_v47 = vld [vmem:[%s18167_s18 + $0xce4] sm:$0xf0]  ;;  %7770 = vmatpush.bf16.msra.mxu3 %v11484_v13 }
 0x683   : > { %v7179_v15 = vpop.f32.mrf.mxu1  ;;  %7222 = vmatmul.bf16.gmra.mxu2 %v17030_v41  ;;  %7271 = vmatmul.bf16.gmra.mxu3 %v17032_v6  ;;  %v12365_v6 = vld [vmem:[%s18167_s18 + $0xb24] sm:$0xf] }
 0x684   : > { %v7180_v9 = vadd.f32 %v7179_v15, %v7130_v19  ;;  %v11420_v38 = vor.u32 %v12365_v6, %v11417_v10  ;;  %8135 = vmatpush.bf16.msrb.mxu0 %v11680_v46  ;;  %v12422_v19 = vld [vmem:[%s18167_s18 + $0xc64] sm:$0xf0]  ;;  %v11735_v15 = vld [vmem:[%s18167_s18 + $0xce0] sm:$0xf]  ;;  %v11663_v10 = vld [vmem:[%s18167_s18 + $0xc50] sm:$0xf] }
 0x685   : > { %7646 = vmatmul.bf16.gmra.mxu0 %v17456_v36  ;;  %v11736_v46 = vor.u32 %v12438_v47, %v11735_v15  ;;  %v11664_v58 = vor.u32 %v12420_v33, %v11663_v10  ;;  %v11377_v15 = vld [vmem:[%s17300_s28 + $0x58] sm:$0xf0]  ;;  %v11655_v47 = vld [vmem:[%s18167_s18 + $0xc40] sm:$0xf] }
 0x686   : > { %v17475_v41 = vadd.f32 %v7180_v9, %v17085_v27  ;;  %7695 = vmatmul.bf16.gmra.mxu1 %v17458_v26  ;;  %v6706_v7 = vpop.f32.mrf.mxu2  ;;  %v6755_v27 = vpop.f32.mrf.mxu3  ;;  %7721 = vmatpush.bf16.msra.mxu2 %v11420_v38  ;;  %v11672_v9 = vor.u32 %v12422_v19, %v11671_v62  ;;  %v11375_v38 = vld [vmem:[%s17300_s28 + $0x50] sm:$0xf]  ;;  %v12356_v62 = vld [vmem:[%s17300_s28 + $0x54] sm:$0xf0]  ;;  %v12355_v19 = vld [vmem:[%s17300_s28 + $0x54] sm:$0xf] }
 0x687   : > { %v6756_v12 = vadd.f32 %v6755_v27, %v6706_v7  ;;  %8185 = vmatpush.bf16.msrb.mxu1 %v11736_v46  ;;  %v12436_v7 = vld [vmem:[%s18167_s18 + $0xcd4] sm:$0xf0]  ;;  %v12418_v46 = vld [vmem:[%s18167_s18 + $0xc44] sm:$0xf0]  ;;  %v17540_v10 = vor.u32 %v12356_v62, %v11375_v38  ;;  %v17542_v33 = vor.u32 %v12355_v19, %v11377_v15  ;;  %v12363_v62 = vld [vmem:[%s18167_s18 + $0xb14] sm:$0xf] }
 0x688   : > { %8136 = vmatpush.bf16.msrb.mxu0 %v11672_v9  ;;  %v11409_v19 = vld [vmem:[%s18167_s18 + $0xb18] sm:$0xf0]  ;;  %v12379_v15 = vld [vmem:[%s18167_s18 + $0xb94] sm:$0xf] }
 0x689   : > { %v17504_v35 = vadd.f32 %v6756_v12, %v17114_v49  ;;  %v11727_v49 = vld [vmem:[%s18167_s18 + $0xcd0] sm:$0xf] }
 0x68a   : > { %v7132_v55 = vpop.f32.mrf.mxu0  ;;  %v11728_v50 = vor.u32 %v12436_v7, %v11727_v49 }
 0x68b   : > { %v7181_v14 = vpop.f32.mrf.mxu1 }
 0x68c   : > { %v7182_v6 = vadd.f32 %v7181_v14, %v7132_v55  ;;  %8137 = vmatpush.bf16.msrb.mxu0 %v11664_v58  ;;  %8186 = vmatpush.bf16.msrb.mxu1 %v11728_v50  ;;  %v11656_v55 = vor.u32 %v12418_v46, %v11655_v47  ;;  %v12434_v14 = vld [vmem:[%s18167_s18 + $0xcc4] sm:$0xf0]  ;;  %v11412_v46 = vor.u32 %v12363_v62, %v11409_v19  ;;  %v11631_v19 = vld [vmem:[%s18167_s18 + $0xc10] sm:$0xf] }
 0x68e   : > { %v17519_v27 = vadd.f32 %v7182_v6, %v17129_v51  ;;  %v6708_v12 = vpop.f32.mrf.mxu2  ;;  %v6757_v13 = vpop.f32.mrf.mxu3  ;;  %v11719_v51 = vld [vmem:[%s18167_s18 + $0xcc0] sm:$0xf]  ;;  %7722 = vmatpush.bf16.msra.mxu2 %v11412_v46 }
 0x68f   : > { %v6758_v9 = vadd.f32 %v6757_v13, %v6708_v12  ;;  %v11720_v49 = vor.u32 %v12434_v14, %v11719_v51  ;;  %v11647_v12 = vld [vmem:[%s18167_s18 + $0xc30] sm:$0xf]  ;;  %v11473_v51 = vld [vmem:[%s18167_s18 + $0xb98] sm:$0xf0]  ;;  %v11383_v46 = vld [vmem:[%s17300_s28 + $0x60] sm:$0xf] }
 0x690   : > { %8138 = vmatpush.bf16.msrb.mxu0 %v11656_v55  ;;  %v11711_v13 = vld [vmem:[%s18167_s18 + $0xcb0] sm:$0xf]  ;;  %v11476_v14 = vor.u32 %v12379_v15, %v11473_v51  ;;  %v12412_v15 = vld [vmem:[%s18167_s18 + $0xc14] sm:$0xf0] }
 0x691   : > { %v17538_v6 = vadd.f32 %v6758_v9, %v17148_v59  ;;  %v12416_v59 = vld [vmem:[%s18167_s18 + $0xc34] sm:$0xf0]  ;;  %8187 = vmatpush.bf16.msrb.mxu1 %v11720_v49  ;;  %v11639_v49 = vld [vmem:[%s18167_s18 + $0xc20] sm:$0xf] }
 0x692   : > { %v7135_v58 = vpop.f32.mrf.mxu0  ;;  %v11648_v38 = vor.u32 %v12416_v59, %v11647_v12  ;;  %v12430_v12 = vld [vmem:[%s18167_s18 + $0xca4] sm:$0xf0]  ;;  %7771 = vmatpush.bf16.msra.mxu3 %v11476_v14 }
 0x693   : > { %v7184_v7 = vpop.f32.mrf.mxu1  ;;  %7227 = vmatmul.bf16.gmra.mxu2 %v17066_v28  ;;  %7276 = vmatmul.bf16.gmra.mxu3 %v17068_v48  ;;  %v12432_v28 = vld [vmem:[%s18167_s18 + $0xcb4] sm:$0xf0] }
 0x694   : > { %v7185_v50 = vadd.f32 %v7184_v7, %v7135_v58  ;;  %v11712_v9 = vor.u32 %v12432_v28, %v11711_v13  ;;  %8139 = vmatpush.bf16.msrb.mxu0 %v11648_v38  ;;  %v12414_v58 = vld [vmem:[%s18167_s18 + $0xc24] sm:$0xf0]  ;;  %v11703_v7 = vld [vmem:[%s18167_s18 + $0xca0] sm:$0xf] }
 0x695   : > { %7651 = vmatmul.bf16.gmra.mxu0 %v17540_v10  ;;  %v11704_v38 = vor.u32 %v12430_v12, %v11703_v7  ;;  %v11385_v7 = vld [vmem:[%s17300_s28 + $0x68] sm:$0xf0]  ;;  %v11623_v12 = vld [vmem:[%s18167_s18 + $0xc00] sm:$0xf] }
 0x696   : > { %v17559_v48 = vadd.f32 %v7185_v50, %v17169_v57  ;;  %7700 = vmatmul.bf16.gmra.mxu1 %v17542_v33  ;;  %v6711_v47 = vpop.f32.mrf.mxu2  ;;  %v6760_v57 = vpop.f32.mrf.mxu3  ;;  %v11640_v50 = vor.u32 %v12414_v58, %v11639_v49  ;;  %v12358_v49 = vld [vmem:[%s17300_s28 + $0x64] sm:$0xf0]  ;;  %v12357_v58 = vld [vmem:[%s17300_s28 + $0x64] sm:$0xf] }
 0x697   : > { %v6761_v55 = vadd.f32 %v6760_v57, %v6711_v47  ;;  %8188 = vmatpush.bf16.msrb.mxu1 %v11712_v9  ;;  %v11632_v9 = vor.u32 %v12412_v15, %v11631_v19  ;;  %v12428_v47 = vld [vmem:[%s18167_s18 + $0xc94] sm:$0xf0]  ;;  %v17624_v19 = vor.u32 %v12358_v49, %v11383_v46  ;;  %v17626_v15 = vor.u32 %v12357_v58, %v11385_v7  ;;  %v11401_v46 = vld [vmem:[%s18167_s18 + $0xb08] sm:$0xf0] }
 0x698   : > { %8140 = vmatpush.bf16.msrb.mxu0 %v11640_v50  ;;  %v11465_v49 = vld [vmem:[%s18167_s18 + $0xb88] sm:$0xf0] }
 0x699   : > { %v17588_v59 = vadd.f32 %v6761_v55, %v17198_v30  ;;  %v11695_v30 = vld [vmem:[%s18167_s18 + $0xc90] sm:$0xf] }
 0x69a   : > { %v7137_v13 = vpop.f32.mrf.mxu0  ;;  %v11696_v51 = vor.u32 %v12428_v47, %v11695_v30 }
 0x69b   : > { %v7186_v28 = vpop.f32.mrf.mxu1  ;;  %8189 = vmatpush.bf16.msrb.mxu1 %v11704_v38  ;;  %v12410_v38 = vld [vmem:[%s18167_s18 + $0xc04] sm:$0xf0] }
 0x69c   : > { %v7187_v62 = vadd.f32 %v7186_v28, %v7137_v13  ;;  %8141 = vmatpush.bf16.msrb.mxu0 %v11632_v9  ;;  %v11624_v13 = vor.u32 %v12410_v38, %v11623_v12  ;;  %v12426_v28 = vld [vmem:[%s18167_s18 + $0xc84] sm:$0xf0] }
 0x69e   : > { %v17603_v57 = vadd.f32 %v7187_v62, %v17213_v25  ;;  %v6713_v55 = vpop.f32.mrf.mxu2  ;;  %v6762_v14 = vpop.f32.mrf.mxu3  ;;  %v11687_v25 = vld [vmem:[%s18167_s18 + $0xc80] sm:$0xf] }
 0x69f   : > { %v6763_v50 = vadd.f32 %v6762_v14, %v6713_v55  ;;  %8190 = vmatpush.bf16.msrb.mxu1 %v11696_v51  ;;  %v11688_v30 = vor.u32 %v12426_v28, %v11687_v25  ;;  %v11391_v28 = vld [vmem:[%s17300_s28 + $0x70] sm:$0xf] }
 0x6a0   : > { %8142 = vmatpush.bf16.msrb.mxu0 %v11624_v13 }
 0x6a1   : > { %v17622_v62 = vadd.f32 %v6763_v50, %v17232_v42  ;;  %v12361_v42 = vld [vmem:[%s18167_s18 + $0xb04] sm:$0xf] }
 0x6a2   : > { %v7140_v9 = vpop.f32.mrf.mxu0  ;;  %v11404_v14 = vor.u32 %v12361_v42, %v11401_v46  ;;  %v11393_v42 = vld [vmem:[%s17300_s28 + $0x78] sm:$0xf0] }
 0x6a3   : > { %v7189_v47 = vpop.f32.mrf.mxu1  ;;  %7232 = vmatmul.bf16.gmra.mxu2 %v17150_v18  ;;  %7281 = vmatmul.bf16.gmra.mxu3 %v17152_v61  ;;  %v12377_v18 = vld [vmem:[%s18167_s18 + $0xb84] sm:$0xf] }
 0x6a4   : > { %v7190_v55 = vadd.f32 %v7189_v47, %v7140_v9  ;;  %8191 = vmatpush.bf16.msrb.mxu1 %v11688_v30  ;;  %v11468_v7 = vor.u32 %v12377_v18, %v11465_v49  ;;  %7723 = vmatpush.bf16.msra.mxu2 %v11404_v14  ;;  %v12360_v47 = vld [vmem:[%s17300_s28 + $0x74] sm:$0xf0] }
 0x6a5   : > { %7656 = vmatmul.bf16.gmra.mxu0 %v17624_v19 }
 0x6a6   : > { %v17631_v51 = vadd.f32 %v7190_v55, %v17241_v5  ;;  %7705 = vmatmul.bf16.gmra.mxu1 %v17626_v15  ;;  %v6716_v61 = vpop.f32.mrf.mxu2  ;;  %v6765_v5 = vpop.f32.mrf.mxu3  ;;  %7772 = vmatpush.bf16.msra.mxu3 %v11468_v7  ;;  %v12359_v55 = vld [vmem:[%s17300_s28 + $0x74] sm:$0xf]  ;;  %s12505_s28 = scalar_lea.hbm %s18169_s20, 512 }
 0x6a7   : > { %v6766_v58 = vadd.f32 %v6765_v5, %v6716_v61  ;;  %v17660_v61 = vor.u32 %v12360_v47, %v11391_v28  ;;  %p12507_p1 = scmp.lt.s32.totalorder %s12505_s28, %s12501_s23 }
 0x6a9   : > { %v17648_v50 = vadd.f32 %v6766_v58, %v17258_v53  ;;  %v17662_v53 = vor.u32 %v12359_v55, %v11393_v42  ;;  %v11681_v58 = vld [vmem:[%s18167_s18 + $0xc78] sm:$0xf0]  ;;  %v11559_v42 = vld [vmem:[%s17690_s27] sm:$0xf]  ;;  %p12508_p2 = por %p12507_p1, %p12506_p0 }
 0x6aa   : > { %v7142_v12 = vpop.f32.mrf.mxu0 }
 0x6ab   : > { %v7191_v38 = vpop.f32.mrf.mxu1  ;;  %p12509_p3 = pnand %p12508_p2, %p12504_p13 }
 0x6ac   : > { %v7192_v25 = vadd.f32 %v7191_v38, %v7142_v12  ;;  %v11745_v12 = vld [vmem:[%s18167_s18 + $0xcf8] sm:$0xf0] }
 0x6ae   : > { %v17651_v13 = vadd.f32 %v7192_v25, %v17261_v37  ;;  %v6718_v30 = vpop.f32.mrf.mxu2  ;;  %v6767_v9 = vpop.f32.mrf.mxu3 }
 0x6af   : > { %v6768_v46 = vadd.f32 %v6767_v9, %v6718_v30 }
 0x6b1   : > { %v17658_v18 = vadd.f32 %v6768_v46, %v17268_v54  ;;  %v12423_v54 = vld [vmem:[%s18167_s18 + $0xc74] sm:$0xf] }
 0x6b2   : > { %v7145_v5 = vpop.f32.mrf.mxu0  ;;  %v11684_v7 = vor.u32 %v12423_v54, %v11681_v58 }
 0x6b3   : > { %v7194_v14 = vpop.f32.mrf.mxu1  ;;  %7237 = vmatmul.bf16.gmra.mxu2 %v17234_v1  ;;  %7286 = vmatmul.bf16.gmra.mxu3 %v17236_v23  ;;  %v12439_v1 = vld [vmem:[%s18167_s18 + $0xcf4] sm:$0xf] }
 0x6b4   : > { %v7195_v49 = vadd.f32 %v7194_v14, %v7145_v5  ;;  %v11748_v25 = vor.u32 %v12439_v1, %v11745_v12  ;;  %8233 = vmatpush.bf16.msrb.mxu2 %v11684_v7  ;;  %v12394_v5 = vld [vmem:[%s17690_s27 + $0x4] sm:$0xf0]  ;;  %v12393_v14 = vld [vmem:[%s17690_s27 + $0x4] sm:$0xf] }
 0x6b5   : > { %7661 = vmatmul.bf16.gmra.mxu0 %v17660_v61  ;;  %v17702_v1 = vor.u32 %v12394_v5, %v11559_v42 }
 0x6b6   : > { %v17667_v37 = vadd.f32 %v7195_v49, %v17277_v11  ;;  %7710 = vmatmul.bf16.gmra.mxu1 %v17662_v53  ;;  %v6721_v23 = vpop.f32.mrf.mxu2  ;;  %v6770_v11 = vpop.f32.mrf.mxu3  ;;  %8282 = vmatpush.bf16.msrb.mxu3 %v11748_v25  ;;  %v11561_v49 = vld [vmem:[%s17690_s27 + $0x8] sm:$0xf0] }
 0x6b7   : > { %v6771_v38 = vadd.f32 %v6770_v11, %v6721_v23  ;;  %v17704_v23 = vor.u32 %v12393_v14, %v11561_v49  ;;  %v11567_v49 = vld [vmem:[%s17690_s27 + $0x10] sm:$0xf] }
 0x6b9   : > { %v17684_v28 = vadd.f32 %v6771_v38, %v17294_v32  ;;  %v11673_v38 = vld [vmem:[%s18167_s18 + $0xc68] sm:$0xf0] }
 0x6ba   : > { %v7147_v30 = vpop.f32.mrf.mxu0 }
 0x6bb   : > { %v7196_v9 = vpop.f32.mrf.mxu1 }
 0x6bc   : > { %v7197_v47 = vadd.f32 %v7196_v9, %v7147_v30  ;;  %v11737_v30 = vld [vmem:[%s18167_s18 + $0xce8] sm:$0xf0] }
 0x6be   : > { %v17693_v55 = vadd.f32 %v7197_v47, %v17303_v60  ;;  %v6723_v46 = vpop.f32.mrf.mxu2  ;;  %v6772_v32 = vpop.f32.mrf.mxu3 }
 0x6bf   : > { %v6773_v54 = vadd.f32 %v6772_v32, %v6723_v46 }
 0x6c1   : > { %v17700_v58 = vadd.f32 %v6773_v54, %v17310_v0  ;;  %v12421_v0 = vld [vmem:[%s18167_s18 + $0xc64] sm:$0xf] }
 0x6c2   : > { %v7627_v11 = vpop.f32.mrf.mxu0  ;;  %v11676_v25 = vor.u32 %v12421_v0, %v11673_v38  ;;  %v11569_v0 = vld [vmem:[%s17690_s27 + $0x18] sm:$0xf0] }
 0x6c3   : > { %v7676_v7 = vpop.f32.mrf.mxu1  ;;  %7242 = vmatmul.bf16.gmra.mxu2 %v17270_v52  ;;  %7291 = vmatmul.bf16.gmra.mxu3 %v17272_v3  ;;  %v12437_v52 = vld [vmem:[%s18167_s18 + $0xce4] sm:$0xf] }
 0x6c4   : > { %v7677_v12 = vadd.f32 %v7676_v7, %v7627_v11  ;;  %v11740_v47 = vor.u32 %v12437_v52, %v11737_v30  ;;  %8234 = vmatpush.bf16.msrb.mxu2 %v11676_v25  ;;  %v12396_v7 = vld [vmem:[%s17690_s27 + $0x14] sm:$0xf0] }
 0x6c5   : > { %8143 = vmatmul.bf16.vlgmr.msrb.gmra.mxu0 %v17702_v1 }
 0x6c6   : > { %v17709_v60 = vadd.f32 %v7677_v12, %v17319_v45  ;;  %8192 = vmatmul.bf16.vlgmr.msrb.gmra.mxu1 %v17704_v23  ;;  %v6726_v3 = vpop.f32.mrf.mxu2  ;;  %v6775_v45 = vpop.f32.mrf.mxu3  ;;  %8283 = vmatpush.bf16.msrb.mxu3 %v11740_v47  ;;  %v12395_v12 = vld [vmem:[%s17690_s27 + $0x14] sm:$0xf]  ;;  %v11665_v47 = vld [vmem:[%s18167_s18 + $0xc58] sm:$0xf0] }
 0x6c7   : > { %v6776_v9 = vadd.f32 %v6775_v45, %v6726_v3  ;;  %v17738_v3 = vor.u32 %v12396_v7, %v11567_v49 }
 0x6c9   : > { %v17726_v42 = vadd.f32 %v6776_v9, %v17336_v17  ;;  %v17740_v17 = vor.u32 %v12395_v12, %v11569_v0 }
 0x6ca   : > { %v7629_v46 = vpop.f32.mrf.mxu0 }
 0x6cb   : > { %v7678_v32 = vpop.f32.mrf.mxu1  ;;  %18347 = vst [vmem:[#allocation16_spill] sm:$0xff] %v17740_v17 }
 0x6cc   : > { %v7679_v5 = vadd.f32 %v7678_v32, %v7629_v46 }
 0x6ce   : > { %v17729_v14 = vadd.f32 %v7679_v5, %v17339_v29  ;;  %v6728_v54 = vpop.f32.mrf.mxu2  ;;  %v6777_v11 = vpop.f32.mrf.mxu3  ;;  %v18348_v29 = vld [vmem:[#allocation11_spill] sm:$0xff]  ;;  %v11729_v5 = vld [vmem:[%s18167_s18 + $0xcd8] sm:$0xf0] }
 0x6cf   : > { %v6778_v38 = vadd.f32 %v6777_v11, %v6728_v54 }
 0x6d1   : > { %v17736_v52 = vadd.f32 %v6778_v38, %v17346_v63  ;;  %v12419_v63 = vld [vmem:[%s18167_s18 + $0xc54] sm:$0xf] }
 0x6d2   : > { %v7632_v45 = vpop.f32.mrf.mxu0  ;;  %v11668_v32 = vor.u32 %v12419_v63, %v11665_v47  ;;  %v12397_v63 = vld [vmem:[%s17690_s27 + $0x24] sm:$0xf]  ;;  %v11577_v47 = vld [vmem:[%s17690_s27 + $0x28] sm:$0xf0] }
 0x6d3   : > { %v7681_v25 = vpop.f32.mrf.mxu1  ;;  %7724 = vmatmul.bf16.vlgmr.msra.gmra.mxu2 %v17312_v31  ;;  %7773 = vmatmul.bf16.vlgmr.msra.gmra.mxu3 %v18348_v29  ;;  %v12435_v31 = vld [vmem:[%s18167_s18 + $0xcd4] sm:$0xf]  ;;  %v12398_v29 = vld [vmem:[%s17690_s27 + $0x24] sm:$0xf0] }
 0x6d4   : > { %v7682_v30 = vadd.f32 %v7681_v25, %v7632_v45  ;;  %v11732_v54 = vor.u32 %v12435_v31, %v11729_v5  ;;  %8235 = vmatpush.bf16.msrb.mxu2 %v11668_v32  ;;  %v11575_v45 = vld [vmem:[%s17690_s27 + $0x20] sm:$0xf] }
 0x6d5   : > { %8148 = vmatmul.bf16.gmra.mxu0 %v17738_v3 }
 0x6d6   : > { %v17745_v9 = vadd.f32 %v7682_v30, %v17355_v20  ;;  %8197 = vmatmul.bf16.gmra.mxu1 %v17740_v17  ;;  %v7208_v46 = vpop.f32.mrf.mxu2  ;;  %v7257_v20 = vpop.f32.mrf.mxu3  ;;  %8284 = vmatpush.bf16.msrb.mxu3 %v11732_v54 }
 0x6d7   : > { %v7258_v49 = vadd.f32 %v7257_v20, %v7208_v46  ;;  %v17774_v46 = vor.u32 %v12398_v29, %v11575_v45  ;;  %v11721_v45 = vld [vmem:[%s18167_s18 + $0xcc8] sm:$0xf0] }
 0x6d9   : > { %v17762_v11 = vadd.f32 %v7258_v49, %v17372_v34  ;;  %18349 = vst [vmem:[#allocation17_spill] sm:$0xff] %v17774_v46  ;;  %v17776_v34 = vor.u32 %v12397_v63, %v11577_v47  ;;  %v18351_v49 = vld [vmem:[#allocation12_spill] sm:$0xff] }
 0x6da   : > { %v7634_v7 = vpop.f32.mrf.mxu0 }
 0x6db   : > { %v7683_v12 = vpop.f32.mrf.mxu1  ;;  %18350 = vst [vmem:[#allocation20_spill] sm:$0xff] %v17776_v34 }
 0x6dc   : > { %v7684_v0 = vadd.f32 %v7683_v12, %v7634_v7  ;;  %v12433_v7 = vld [vmem:[%s18167_s18 + $0xcc4] sm:$0xf] }
 0x6de   : > { %v17765_v38 = vadd.f32 %v7684_v0, %v17375_v56  ;;  %v7210_v25 = vpop.f32.mrf.mxu2  ;;  %v7259_v30 = vpop.f32.mrf.mxu3  ;;  %v18352_v56 = vld [vmem:[#allocation14_spill] sm:$0xff] }
 0x6df   : > { %v7260_v17 = vadd.f32 %v7259_v30, %v7210_v25  ;;  %v11724_v30 = vor.u32 %v12433_v7, %v11721_v45 }
 0x6e1   : > { %v17772_v31 = vadd.f32 %v7260_v17, %v17382_v2  ;;  %v12417_v2 = vld [vmem:[%s18167_s18 + $0xc44] sm:$0xf]  ;;  %v11657_v17 = vld [vmem:[%s18167_s18 + $0xc48] sm:$0xf0]  ;;  %8285 = vmatpush.bf16.msrb.mxu3 %v11724_v30 }
 0x6e2   : > { %v7637_v20 = vpop.f32.mrf.mxu0  ;;  %v11660_v0 = vor.u32 %v12417_v2, %v11657_v17  ;;  %v12400_v2 = vld [vmem:[%s17690_s27 + $0x34] sm:$0xf0]  ;;  %v12399_v17 = vld [vmem:[%s17690_s27 + $0x34] sm:$0xf] }
 0x6e3   : > { %v7686_v32 = vpop.f32.mrf.mxu1  ;;  %7729 = vmatmul.bf16.gmra.mxu2 %v18351_v49  ;;  %7778 = vmatmul.bf16.gmra.mxu3 %v18352_v56 }
 0x6e4   : > { %v7687_v5 = vadd.f32 %v7686_v32, %v7637_v20  ;;  %8236 = vmatpush.bf16.msrb.mxu2 %v11660_v0 }
 0x6e5   : > { %8153 = vmatmul.bf16.gmra.mxu0 %v17774_v46 }
 0x6e6   : > { %v17781_v54 = vadd.f32 %v7687_v5, %v17391_v44  ;;  %8202 = vmatmul.bf16.gmra.mxu1 %v17776_v34  ;;  %v7213_v12 = vpop.f32.mrf.mxu2  ;;  %v7262_v44 = vpop.f32.mrf.mxu3  ;;  %v11583_v5 = vld [vmem:[%s17690_s27 + $0x30] sm:$0xf]  ;;  %v11585_v34 = vld [vmem:[%s17690_s27 + $0x38] sm:$0xf0] }
 0x6e7   : > { %v7263_v25 = vadd.f32 %v7262_v44, %v7213_v12  ;;  %v17810_v12 = vor.u32 %v12400_v2, %v11583_v5 }
 0x6e9   : > { %v17798_v29 = vadd.f32 %v7263_v25, %v17408_v4  ;;  %v17812_v4 = vor.u32 %v12399_v17, %v11585_v34 }
 0x6ea   : > { %v7639_v63 = vpop.f32.mrf.mxu0 }
 0x6eb   : > { %v7688_v47 = vpop.f32.mrf.mxu1  ;;  %18353 = vst [vmem:[#allocation21_spill] sm:$0xff] %v17812_v4 }
 0x6ec   : > { %v7689_v20 = vadd.f32 %v7688_v47, %v7639_v63  ;;  %v11713_v63 = vld [vmem:[%s18167_s18 + $0xcb8] sm:$0xf0] }
 0x6ee   : > { %v17801_v32 = vadd.f32 %v7689_v20, %v17411_v22  ;;  %v7215_v49 = vpop.f32.mrf.mxu2  ;;  %v7264_v56 = vpop.f32.mrf.mxu3  ;;  %v18354_v22 = vld [vmem:[#allocation15_spill] sm:$0xff] }
 0x6ef   : > { %v7265_v46 = vadd.f32 %v7264_v56, %v7215_v49 }
 0x6f1   : > { %v17808_v7 = vadd.f32 %v7265_v46, %v17418_v43  ;;  %v12415_v43 = vld [vmem:[%s18167_s18 + $0xc34] sm:$0xf]  ;;  %v11649_v46 = vld [vmem:[%s18167_s18 + $0xc38] sm:$0xf0] }
 0x6f2   : > { %v7642_v44 = vpop.f32.mrf.mxu0  ;;  %v11652_v30 = vor.u32 %v12415_v43, %v11649_v46  ;;  %v12401_v43 = vld [vmem:[%s17690_s27 + $0x44] sm:$0xf]  ;;  %v11593_v46 = vld [vmem:[%s17690_s27 + $0x48] sm:$0xf0] }
 0x6f3   : > { %v7691_v0 = vpop.f32.mrf.mxu1  ;;  %7734 = vmatmul.bf16.gmra.mxu2 %v17384_v16  ;;  %7783 = vmatmul.bf16.gmra.mxu3 %v18354_v22  ;;  %v12431_v16 = vld [vmem:[%s18167_s18 + $0xcb4] sm:$0xf]  ;;  %v12402_v22 = vld [vmem:[%s17690_s27 + $0x44] sm:$0xf0] }
 0x6f4   : > { %v7692_v45 = vadd.f32 %v7691_v0, %v7642_v44  ;;  %v11716_v20 = vor.u32 %v12431_v16, %v11713_v63  ;;  %8237 = vmatpush.bf16.msrb.mxu2 %v11652_v30  ;;  %v11591_v44 = vld [vmem:[%s17690_s27 + $0x40] sm:$0xf] }
 0x6f5   : > { %8158 = vmatmul.bf16.gmra.mxu0 %v17810_v12 }
 0x6f6   : > { %v17817_v25 = vadd.f32 %v7692_v45, %v17427_v21  ;;  %8207 = vmatmul.bf16.gmra.mxu1 %v17812_v4  ;;  %v7218_v34 = vpop.f32.mrf.mxu2  ;;  %v7267_v21 = vpop.f32.mrf.mxu3  ;;  %8286 = vmatpush.bf16.msrb.mxu3 %v11716_v20 }
 0x6f7   : > { %v7268_v47 = vadd.f32 %v7267_v21, %v7218_v34  ;;  %v17846_v34 = vor.u32 %v12402_v22, %v11591_v44 }
 0x6f9   : > { %v17834_v5 = vadd.f32 %v7268_v47, %v17444_v39  ;;  %v17848_v39 = vor.u32 %v12401_v43, %v11593_v46 }
 0x6fa   : > { %v7644_v49 = vpop.f32.mrf.mxu0 }
 0x6fb   : > { %v7693_v56 = vpop.f32.mrf.mxu1  ;;  %18355 = vst [vmem:[#allocation13_spill] sm:$0xff] %v17848_v39 }
 0x6fc   : > { %v7694_v2 = vadd.f32 %v7693_v56, %v7644_v49  ;;  %v11705_v56 = vld [vmem:[%s18167_s18 + $0xca8] sm:$0xf0] }
 0x6fe   : > { %v17837_v17 = vadd.f32 %v7694_v2, %v17447_v8  ;;  %v7220_v0 = vpop.f32.mrf.mxu2  ;;  %v7269_v45 = vpop.f32.mrf.mxu3  ;;  %v18356_v8 = vld [vmem:[#allocation19_spill] sm:$0xff] }
 0x6ff   : > { %v7270_v4 = vadd.f32 %v7269_v45, %v7220_v0 }
 0x701   : > { %v17844_v16 = vadd.f32 %v7270_v4, %v17454_v24  ;;  %v12413_v24 = vld [vmem:[%s18167_s18 + $0xc24] sm:$0xf]  ;;  %v11641_v4 = vld [vmem:[%s18167_s18 + $0xc28] sm:$0xf0] }
 0x702   : > { %v7647_v21 = vpop.f32.mrf.mxu0  ;;  %v11644_v49 = vor.u32 %v12413_v24, %v11641_v4  ;;  %v12403_v24 = vld [vmem:[%s17690_s27 + $0x54] sm:$0xf]  ;;  %v11601_v4 = vld [vmem:[%s17690_s27 + $0x58] sm:$0xf0] }
 0x703   : > { %v7696_v30 = vpop.f32.mrf.mxu1  ;;  %7739 = vmatmul.bf16.gmra.mxu2 %v17420_v40  ;;  %7788 = vmatmul.bf16.gmra.mxu3 %v18356_v8  ;;  %v12429_v40 = vld [vmem:[%s18167_s18 + $0xca4] sm:$0xf]  ;;  %v12404_v8 = vld [vmem:[%s17690_s27 + $0x54] sm:$0xf0] }
 0x704   : > { %v7697_v63 = vadd.f32 %v7696_v30, %v7647_v21  ;;  %v11708_v44 = vor.u32 %v12429_v40, %v11705_v56  ;;  %8238 = vmatpush.bf16.msrb.mxu2 %v11644_v49  ;;  %v11599_v21 = vld [vmem:[%s17690_s27 + $0x50] sm:$0xf] }
 0x705   : > { %8163 = vmatmul.bf16.gmra.mxu0 %v17846_v34 }
 0x706   : > { %v17853_v47 = vadd.f32 %v7697_v63, %v17475_v41  ;;  %8212 = vmatmul.bf16.gmra.mxu1 %v17848_v39  ;;  %v7223_v20 = vpop.f32.mrf.mxu2  ;;  %v7272_v41 = vpop.f32.mrf.mxu3  ;;  %8287 = vmatpush.bf16.msrb.mxu3 %v11708_v44  ;;  %v11697_v44 = vld [vmem:[%s18167_s18 + $0xc98] sm:$0xf0] }
 0x707   : > { %v7273_v2 = vadd.f32 %v7272_v41, %v7223_v20  ;;  %v17882_v20 = vor.u32 %v12404_v8, %v11599_v21 }
 0x709   : > { %v17870_v0 = vadd.f32 %v7273_v2, %v17504_v35  ;;  %v17884_v35 = vor.u32 %v12403_v24, %v11601_v4  ;;  %v11607_v24 = vld [vmem:[%s17690_s27 + $0x60] sm:$0xf] }
 0x70a   : > { %v7649_v45 = vpop.f32.mrf.mxu0 }
 0x70b   : > { %v7698_v22 = vpop.f32.mrf.mxu1 }
 0x70c   : > { %v7699_v43 = vadd.f32 %v7698_v22, %v7649_v45 }
 0x70e   : > { %v17873_v46 = vadd.f32 %v7699_v43, %v17519_v27  ;;  %v7225_v30 = vpop.f32.mrf.mxu2  ;;  %v7274_v63 = vpop.f32.mrf.mxu3 }
 0x70f   : > { %v7275_v39 = vadd.f32 %v7274_v63, %v7225_v30 }
 0x711   : > { %v17880_v40 = vadd.f32 %v7275_v39, %v17538_v6  ;;  %v12411_v6 = vld [vmem:[%s18167_s18 + $0xc14] sm:$0xf]  ;;  %v11633_v39 = vld [vmem:[%s18167_s18 + $0xc18] sm:$0xf0] }
 0x712   : > { %v7652_v41 = vpop.f32.mrf.mxu0  ;;  %v11636_v2 = vor.u32 %v12411_v6, %v11633_v39  ;;  %v11609_v6 = vld [vmem:[%s17690_s27 + $0x68] sm:$0xf0] }
 0x713   : > { %v7701_v49 = vpop.f32.mrf.mxu1  ;;  %7744 = vmatmul.bf16.gmra.mxu2 %v17456_v36  ;;  %7793 = vmatmul.bf16.gmra.mxu3 %v17458_v26  ;;  %v12427_v36 = vld [vmem:[%s18167_s18 + $0xc94] sm:$0xf] }
 0x714   : > { %v7702_v56 = vadd.f32 %v7701_v49, %v7652_v41  ;;  %v11700_v22 = vor.u32 %v12427_v36, %v11697_v44  ;;  %8239 = vmatpush.bf16.msrb.mxu2 %v11636_v2  ;;  %v12406_v49 = vld [vmem:[%s17690_s27 + $0x64] sm:$0xf0] }
 0x715   : > { %8168 = vmatmul.bf16.gmra.mxu0 %v17882_v20 }
 0x716   : > { %v17889_v27 = vadd.f32 %v7702_v56, %v17559_v48  ;;  %8217 = vmatmul.bf16.gmra.mxu1 %v17884_v35  ;;  %v7228_v26 = vpop.f32.mrf.mxu2  ;;  %v7277_v48 = vpop.f32.mrf.mxu3  ;;  %8288 = vmatpush.bf16.msrb.mxu3 %v11700_v22  ;;  %v12405_v56 = vld [vmem:[%s17690_s27 + $0x64] sm:$0xf] }
 0x717   : > { %v7278_v45 = vadd.f32 %v7277_v48, %v7228_v26  ;;  %v17918_v26 = vor.u32 %v12406_v49, %v11607_v24 }
 0x719   : > { %v17906_v43 = vadd.f32 %v7278_v45, %v17588_v59  ;;  %v17920_v59 = vor.u32 %v12405_v56, %v11609_v6  ;;  %v11615_v6 = vld [vmem:[%s17690_s27 + $0x70] sm:$0xf] }
 0x71a   : > { %v7654_v21 = vpop.f32.mrf.mxu0 }
 0x71b   : > { %v7703_v30 = vpop.f32.mrf.mxu1 }
 0x71c   : > { %v7704_v63 = vadd.f32 %v7703_v30, %v7654_v21  ;;  %v12409_v21 = vld [vmem:[%s18167_s18 + $0xc04] sm:$0xf]  ;;  %v11689_v30 = vld [vmem:[%s18167_s18 + $0xc88] sm:$0xf0] }
 0x71e   : > { %v17909_v8 = vadd.f32 %v7704_v63, %v17603_v57  ;;  %v7230_v4 = vpop.f32.mrf.mxu2  ;;  %v7279_v41 = vpop.f32.mrf.mxu3 }
 0x71f   : > { %v7280_v39 = vadd.f32 %v7279_v41, %v7230_v4 }
 0x721   : > { %v17916_v36 = vadd.f32 %v7280_v39, %v17622_v62 }
 0x722   : > { %v7657_v48 = vpop.f32.mrf.mxu0 }
 0x723   : > { %v7706_v2 = vpop.f32.mrf.mxu1  ;;  %7749 = vmatmul.bf16.gmra.mxu2 %v17540_v10  ;;  %7798 = vmatmul.bf16.gmra.mxu3 %v17542_v33  ;;  %v11625_v10 = vld [vmem:[%s18167_s18 + $0xc08] sm:$0xf0]  ;;  %v12425_v33 = vld [vmem:[%s18167_s18 + $0xc84] sm:$0xf] }
 0x724   : > { %v7707_v44 = vadd.f32 %v7706_v2, %v7657_v48  ;;  %v11692_v24 = vor.u32 %v12425_v33, %v11689_v30  ;;  %v12408_v2 = vld [vmem:[%s17690_s27 + $0x74] sm:$0xf0] }
 0x725   : > { %8173 = vmatmul.bf16.gmra.mxu0 %v17918_v26 }
 0x726   : > { %v17925_v57 = vadd.f32 %v7707_v44, %v17631_v51  ;;  %8222 = vmatmul.bf16.gmra.mxu1 %v17920_v59  ;;  %v7233_v62 = vpop.f32.mrf.mxu2  ;;  %v7282_v45 = vpop.f32.mrf.mxu3  ;;  %v11628_v51 = vor.u32 %v12409_v21, %v11625_v10  ;;  %8289 = vmatpush.bf16.msrb.mxu3 %v11692_v24  ;;  %v12407_v44 = vld [vmem:[%s17690_s27 + $0x74] sm:$0xf] }
 0x727   : > { %v7283_v22 = vadd.f32 %v7282_v45, %v7233_v62  ;;  %v11617_v62 = vld [vmem:[%s17690_s27 + $0x78] sm:$0xf0]  ;;  %s857_s27 = sand.u32 1, %s12539_s22  }
 0x728   : > { %8240 = vmatpush.bf16.msrb.mxu2 %v11628_v51  ;;  %s8634_s21 = sshll.u32 %s857_s27, 8  ;;  %s8396_s2 = scalar_lea.sflag [#allocation3], %s857_s27 }
 0x729   : > { %v17942_v63 = vadd.f32 %v7283_v22, %v17648_v50  ;;  %v17954_v50 = vor.u32 %v12408_v2, %v11615_v6  ;;  %v17956_v22 = vor.u32 %v12407_v44, %v11617_v62  ;;  %s17980_s29 = scalar_lea.vmem [#allocation2], %s8634_s21 }
 0x72a   : > { %v7659_v4 = vpop.f32.mrf.mxu0  ;;  %s8409_s25 = sshll.u32 %s17980_s29, 4  ;;  %s8410_s25 = int_to_ptr.vmem [resolvable:$true] %s8409_s25 }
 0x72b   : > { %v7708_v41 = vpop.f32.mrf.mxu1 }
 0x72c   : > { %v7709_v49 = vadd.f32 %v7708_v41, %v7659_v4 }
 0x72e   : > { %v17945_v56 = vadd.f32 %v7709_v49, %v17651_v13  ;;  %v7235_v39 = vpop.f32.mrf.mxu2  ;;  %v7284_v48 = vpop.f32.mrf.mxu3 }
 0x72f   : > { %v7285_v45 = vadd.f32 %v7284_v48, %v7235_v39 }
 0x731   : > { %v17952_v21 = vadd.f32 %v7285_v45, %v17658_v18 }
 0x732   : > { %v7662_v10 = vpop.f32.mrf.mxu0 }
 0x733   : > { %v7711_v33 = vpop.f32.mrf.mxu1  ;;  %7754 = vmatmul.bf16.gmra.mxu2 %v17624_v19  ;;  %7803 = vmatmul.bf16.gmra.mxu3 %v17626_v15 }
 0x734   : > { %v7712_v51 = vadd.f32 %v7711_v33, %v7662_v10 }
 0x735   : > { %8178 = vmatmul.bf16.gmra.mxu0 %v17954_v50 }
 0x736   : > { %v17961_v13 = vadd.f32 %v7712_v51, %v17667_v37  ;;  %8227 = vmatmul.bf16.gmra.mxu1 %v17956_v22  ;;  %v7238_v18 = vpop.f32.mrf.mxu2  ;;  %v7287_v30 = vpop.f32.mrf.mxu3 }
 0x737   : > { %v7288_v24 = vadd.f32 %v7287_v30, %v7238_v18 }
 0x739   : > { %v17966_v4 = vadd.f32 %v7288_v24, %v17684_v28 }
 0x73a   : > { %v7664_v41 = vpop.f32.mrf.mxu0 }
 0x73b   : > { %v7713_v49 = vpop.f32.mrf.mxu1 }
 0x73c   : > { %v7714_v6 = vadd.f32 %v7713_v49, %v7664_v41 }
 0x73e   : > { %v17969_v19 = vadd.f32 %v7714_v6, %v17693_v55  ;;  %v7240_v15 = vpop.f32.mrf.mxu2  ;;  %v7289_v37 = vpop.f32.mrf.mxu3 }
 0x73f   : > { %v7290_v39 = vadd.f32 %v7289_v37, %v7240_v15 }
 0x741   : > { %v17973_v48 = vadd.f32 %v7290_v39, %v17700_v58 }
 0x742   : > { %v8144_v2 = vpop.f32.mrf.mxu0 }
 0x743   : > { %v8193_v44 = vpop.f32.mrf.mxu1  ;;  %7759 = vmatmul.bf16.gmra.mxu2 %v17660_v61  ;;  %7808 = vmatmul.bf16.gmra.mxu3 %v17662_v53 }
 0x744   : > { %v8194_v62 = vadd.f32 %v8193_v44, %v8144_v2 }
 0x746   : > { %v8331_v28 = vadd.f32 %v8194_v62, %v17709_v60  ;;  %v7243_v55 = vpop.f32.mrf.mxu2  ;;  %v7292_v45 = vpop.f32.mrf.mxu3 }
 0x747   : > { %v7293_v58 = vadd.f32 %v7292_v45, %v7243_v55 }
 0x748   : > { %8363 = vst [vmem:[%s17980_s29] sm:$0xff] %v8331_v28 }
 0x749   : > { %v17984_v10 = vadd.f32 %v7293_v58, %v17726_v42 }
 0x74a   : > { %v8146_v33 = vpop.f32.mrf.mxu0 }
 0x74b   : > { %v8195_v51 = vpop.f32.mrf.mxu1 }
 0x74c   : > { %v8196_v18 = vadd.f32 %v8195_v51, %v8146_v33 }
 0x74e   : > { %v8333_v61 = vadd.f32 %v8196_v18, %v17729_v14  ;;  %v7245_v53 = vpop.f32.mrf.mxu2  ;;  %v7294_v30 = vpop.f32.mrf.mxu3 }
 0x74f   : > { %v7295_v60 = vadd.f32 %v7294_v30, %v7245_v53 }
 0x750   : > { %8365 = vst [vmem:[%s17980_s29 + $0x10] sm:$0xff] %v8333_v61 }
 0x751   : > { %v17989_v24 = vadd.f32 %v7295_v60, %v17736_v52 }
 0x752   : > { %v8149_v41 = vpop.f32.mrf.mxu0 }
 0x753   : > { %v8198_v49 = vpop.f32.mrf.mxu1  ;;  %8241 = vmatmul.bf16.vlgmr.msrb.gmra.mxu2 %v17702_v1  ;;  %8290 = vmatmul.bf16.vlgmr.msrb.gmra.mxu3 %v17704_v23 }
 0x754   : > { %v8199_v6 = vadd.f32 %v8198_v49, %v8149_v41 }
 0x756   : > { %v8335_v42 = vadd.f32 %v8199_v6, %v17745_v9  ;;  %v7725_v15 = vpop.f32.mrf.mxu2  ;;  %v7774_v37 = vpop.f32.mrf.mxu3 }
 0x757   : > { %v7775_v14 = vadd.f32 %v7774_v37, %v7725_v15  ;;  %v18358_v37 = vld [vmem:[#allocation17_spill] sm:$0xff] }
 0x758   : > { %8367 = vst [vmem:[%s17980_s29 + $0x20] sm:$0xff] %v8335_v42 }
 0x759   : > { %v17996_v39 = vadd.f32 %v7775_v14, %v17762_v11  ;;  %v18357_v11 = vld [vmem:[#allocation16_spill] sm:$0xff] }
 0x75a   : > { %v8151_v2 = vpop.f32.mrf.mxu0 }
 0x75b   : > { %v8200_v52 = vpop.f32.mrf.mxu1 }
 0x75c   : > { %v8201_v44 = vadd.f32 %v8200_v52, %v8151_v2 }
 0x75e   : > { %v8337_v62 = vadd.f32 %v8201_v44, %v17765_v38  ;;  %v7727_v28 = vpop.f32.mrf.mxu2  ;;  %v7776_v55 = vpop.f32.mrf.mxu3 }
 0x75f   : > { %v7777_v1 = vadd.f32 %v7776_v55, %v7727_v28 }
 0x760   : > { %8369 = vst [vmem:[%s17980_s29 + $0x30] sm:$0xff] %v8337_v62 }
 0x761   : > { %v18001_v23 = vadd.f32 %v7777_v1, %v17772_v31 }
 0x762   : > { %v8154_v9 = vpop.f32.mrf.mxu0 }
 0x763   : > { %v8203_v45 = vpop.f32.mrf.mxu1  ;;  %8246 = vmatmul.bf16.gmra.mxu2 %v17738_v3  ;;  %8295 = vmatmul.bf16.gmra.mxu3 %v18357_v11 }
 0x764   : > { %v8204_v58 = vadd.f32 %v8203_v45, %v8154_v9 }
 0x766   : > { %v8339_v33 = vadd.f32 %v8204_v58, %v17781_v54  ;;  %v7730_v51 = vpop.f32.mrf.mxu2  ;;  %v7779_v18 = vpop.f32.mrf.mxu3 }
 0x767   : > { %v7780_v38 = vadd.f32 %v7779_v18, %v7730_v51 }
 0x768   : > { %8371 = vst [vmem:[%s17980_s29 + $0x40] sm:$0xff] %v8339_v33 }
 0x769   : > { %v18008_v61 = vadd.f32 %v7780_v38, %v17798_v29  ;;  %v18359_v29 = vld [vmem:[#allocation20_spill] sm:$0xff] }
 0x76a   : > { %v8156_v53 = vpop.f32.mrf.mxu0 }
 0x76b   : > { %v8205_v31 = vpop.f32.mrf.mxu1 }
 0x76c   : > { %v8206_v30 = vadd.f32 %v8205_v31, %v8156_v53 }
 0x76e   : > { %v8341_v60 = vadd.f32 %v8206_v30, %v17801_v32  ;;  %v7732_v41 = vpop.f32.mrf.mxu2  ;;  %v7781_v49 = vpop.f32.mrf.mxu3 }
 0x76f   : > { %v7782_v3 = vadd.f32 %v7781_v49, %v7732_v41 }
 0x770   : > { %8373 = vst [vmem:[%s17980_s29 + $0x50] sm:$0xff] %v8341_v60 }
 0x771   : > { %v18013_v6 = vadd.f32 %v7782_v3, %v17808_v7 }
 0x772   : > { %v8159_v54 = vpop.f32.mrf.mxu0 }
 0x773   : > { %v8208_v42 = vpop.f32.mrf.mxu1  ;;  %8251 = vmatmul.bf16.gmra.mxu2 %v18358_v37  ;;  %8300 = vmatmul.bf16.gmra.mxu3 %v18359_v29 }
 0x774   : > { %v8209_v15 = vadd.f32 %v8208_v42, %v8159_v54 }
 0x776   : > { %v8343_v14 = vadd.f32 %v8209_v15, %v17817_v25  ;;  %v7735_v2 = vpop.f32.mrf.mxu2  ;;  %v7784_v52 = vpop.f32.mrf.mxu3 }
 0x777   : > { %v7785_v32 = vadd.f32 %v7784_v52, %v7735_v2 }
 0x778   : > { %8375 = vst [vmem:[%s17980_s29 + $0x60] sm:$0xff] %v8343_v14 }
 0x779   : > { %v18020_v44 = vadd.f32 %v7785_v32, %v17834_v5  ;;  %v18360_v5 = vld [vmem:[#allocation21_spill] sm:$0xff] }
 0x77a   : > { %v8161_v62 = vpop.f32.mrf.mxu0 }
 0x77b   : > { %v8210_v7 = vpop.f32.mrf.mxu1 }
 0x77c   : > { %v8211_v28 = vadd.f32 %v8210_v7, %v8161_v62 }
 0x77e   : > { %v8345_v55 = vadd.f32 %v8211_v28, %v17837_v17  ;;  %v7737_v1 = vpop.f32.mrf.mxu2  ;;  %v7786_v9 = vpop.f32.mrf.mxu3 }
 0x77f   : > { %v7787_v45 = vadd.f32 %v7786_v9, %v7737_v1 }
 0x780   : > { %8377 = vst [vmem:[%s17980_s29 + $0x70] sm:$0xff] %v8345_v55 }
 0x781   : > { %v18025_v58 = vadd.f32 %v7787_v45, %v17844_v16 }
 0x782   : > { %v8164_v25 = vpop.f32.mrf.mxu0 }
 0x783   : > { %v8213_v11 = vpop.f32.mrf.mxu1  ;;  %8256 = vmatmul.bf16.gmra.mxu2 %v17810_v12  ;;  %8305 = vmatmul.bf16.gmra.mxu3 %v18360_v5 }
 0x784   : > { %v8214_v33 = vadd.f32 %v8213_v11, %v8164_v25 }
 0x786   : > { %v8347_v51 = vadd.f32 %v8214_v33, %v17853_v47  ;;  %v7740_v18 = vpop.f32.mrf.mxu2  ;;  %v7789_v38 = vpop.f32.mrf.mxu3 }
 0x787   : > { %v7790_v17 = vadd.f32 %v7789_v38, %v7740_v18 }
 0x788   : > { %8379 = vst [vmem:[%s17980_s29 + $0x80] sm:$0xff] %v8347_v51 }
 0x789   : > { %v18032_v53 = vadd.f32 %v7790_v17, %v17870_v0  ;;  %v18361_v0 = vld [vmem:[#allocation13_spill] sm:$0xff] }
 0x78a   : > { %v8166_v31 = vpop.f32.mrf.mxu0 }
 0x78b   : > { %v8215_v16 = vpop.f32.mrf.mxu1 }
 0x78c   : > { %v8216_v30 = vadd.f32 %v8215_v16, %v8166_v31 }
 0x78e   : > { %v8349_v60 = vadd.f32 %v8216_v30, %v17873_v46  ;;  %v7742_v41 = vpop.f32.mrf.mxu2  ;;  %v7791_v49 = vpop.f32.mrf.mxu3 }
 0x78f   : > { %v7792_v12 = vadd.f32 %v7791_v49, %v7742_v41 }
 0x790   : > { %8381 = vst [vmem:[%s17980_s29 + $0x90] sm:$0xff] %v8349_v60 }
 0x791   : > { %v18037_v3 = vadd.f32 %v7792_v12, %v17880_v40 }
 0x792   : > { %v8169_v47 = vpop.f32.mrf.mxu0 }
 0x793   : > { %v8218_v54 = vpop.f32.mrf.mxu1  ;;  %8261 = vmatmul.bf16.gmra.mxu2 %v17846_v34  ;;  %8310 = vmatmul.bf16.gmra.mxu3 %v18361_v0 }
 0x794   : > { %v8219_v42 = vadd.f32 %v8218_v54, %v8169_v47 }
 0x796   : > { %v8351_v15 = vadd.f32 %v8219_v42, %v17889_v27  ;;  %v7745_v37 = vpop.f32.mrf.mxu2  ;;  %v7794_v29 = vpop.f32.mrf.mxu3 }
 0x797   : > { %v7795_v46 = vadd.f32 %v7794_v29, %v7745_v37 }
 0x798   : > { %8383 = vst [vmem:[%s17980_s29 + $0xa0] sm:$0xff] %v8351_v15 }
 0x799   : > { %v18044_v14 = vadd.f32 %v7795_v46, %v17906_v43 }
 0x79a   : > { %v8171_v2 = vpop.f32.mrf.mxu0 }
 0x79b   : > { %v8220_v40 = vpop.f32.mrf.mxu1 }
 0x79c   : > { %v8221_v52 = vadd.f32 %v8220_v40, %v8171_v2 }
 0x79e   : > { %v8353_v32 = vadd.f32 %v8221_v52, %v17909_v8  ;;  %v7747_v62 = vpop.f32.mrf.mxu2  ;;  %v7796_v7 = vpop.f32.mrf.mxu3 }
 0x79f   : > { %v7797_v34 = vadd.f32 %v7796_v7, %v7747_v62 }
 0x7a0   : > { %8385 = vst [vmem:[%s17980_s29 + $0xb0] sm:$0xff] %v8353_v32 }
 0x7a1   : > { %v18049_v28 = vadd.f32 %v7797_v34, %v17916_v36 }
 0x7a2   : > { %v8174_v27 = vpop.f32.mrf.mxu0 }
 0x7a3   : > { %v8223_v55 = vpop.f32.mrf.mxu1  ;;  %8266 = vmatmul.bf16.gmra.mxu2 %v17882_v20  ;;  %8315 = vmatmul.bf16.gmra.mxu3 %v17884_v35 }
 0x7a4   : > { %v8224_v1 = vadd.f32 %v8223_v55, %v8174_v27 }
 0x7a6   : > { %v8355_v43 = vadd.f32 %v8224_v1, %v17925_v57  ;;  %v7750_v9 = vpop.f32.mrf.mxu2  ;;  %v7799_v45 = vpop.f32.mrf.mxu3 }
 0x7a7   : > { %v7800_v8 = vadd.f32 %v7799_v45, %v7750_v9 }
 0x7a8   : > { %8387 = vst [vmem:[%s17980_s29 + $0xc0] sm:$0xff] %v8355_v43 }
 0x7a9   : > { %v18056_v25 = vadd.f32 %v7800_v8, %v17942_v63 }
 0x7aa   : > { %v8176_v11 = vpop.f32.mrf.mxu0 }
 0x7ab   : > { %v8225_v36 = vpop.f32.mrf.mxu1 }
 0x7ac   : > { %v8226_v33 = vadd.f32 %v8225_v36, %v8176_v11 }
 0x7ae   : > { %v8357_v5 = vadd.f32 %v8226_v33, %v17945_v56  ;;  %v7752_v51 = vpop.f32.mrf.mxu2  ;;  %v7801_v18 = vpop.f32.mrf.mxu3 }
 0x7af   : > { %v7802_v20 = vadd.f32 %v7801_v18, %v7752_v51 }
 0x7b0   : > { %8389 = vst [vmem:[%s17980_s29 + $0xd0] sm:$0xff] %v8357_v5 }
 0x7b1   : > { %v18061_v35 = vadd.f32 %v7802_v20, %v17952_v21 }
 0x7b2   : > { %v8179_v57 = vpop.f32.mrf.mxu0 }
 0x7b3   : > { %v8228_v38 = vpop.f32.mrf.mxu1  ;;  %8271 = vmatmul.bf16.gmra.mxu2 %v17918_v26  ;;  %8320 = vmatmul.bf16.gmra.mxu3 %v17920_v59 }
 0x7b4   : > { %v8229_v17 = vadd.f32 %v8228_v38, %v8179_v57 }
 0x7b6   : > { %v8359_v63 = vadd.f32 %v8229_v17, %v17961_v13  ;;  %v7755_v31 = vpop.f32.mrf.mxu2  ;;  %v7804_v16 = vpop.f32.mrf.mxu3 }
 0x7b7   : > { %v7805_v56 = vadd.f32 %v7804_v16, %v7755_v31 }
 0x7b8   : > { %8391 = vst [vmem:[%s17980_s29 + $0xe0] sm:$0xff] %v8359_v63 }
 0x7b9   : > { %v18068_v30 = vadd.f32 %v7805_v56, %v17966_v4 }
 0x7ba   : > { %v8181_v60 = vpop.f32.mrf.mxu0 }
 0x7bb   : > { %v8230_v21 = vpop.f32.mrf.mxu1 }
 0x7bc   : > { %v8231_v41 = vadd.f32 %v8230_v21, %v8181_v60 }
 0x7be   : > { %v8361_v49 = vadd.f32 %v8231_v41, %v17969_v19  ;;  %v7757_v12 = vpop.f32.mrf.mxu2  ;;  %v7806_v47 = vpop.f32.mrf.mxu3 }
 0x7bf   : > { %v7807_v26 = vadd.f32 %v7806_v47, %v7757_v12 }
 0x7c0   : > { %8393 = vst [vmem:[%s17980_s29 + $0xf0] sm:$0xff] %v8361_v49 }
 0x7c1   : > { %v18073_v59 = vadd.f32 %v7807_v26, %v17973_v48 }
 0x7c3   : > { %8276 = vmatmul.bf16.gmra.mxu2 %v17954_v50  ;;  %8325 = vmatmul.bf16.gmra.mxu3 %v17956_v22 }
 0x7c6   : > { %v7760_v13 = vpop.f32.mrf.mxu2  ;;  %v7809_v4 = vpop.f32.mrf.mxu3 }
 0x7c7   : > { %v7810_v54 = vadd.f32 %v7809_v4, %v7760_v13 }
 0x7c9   : > { %v18078_v42 = vadd.f32 %v7810_v54, %v17984_v10 }
 0x7ce   : > { %v7762_v19 = vpop.f32.mrf.mxu2  ;;  %v7811_v0 = vpop.f32.mrf.mxu3 }
 0x7cf   : > { %v7812_v15 = vadd.f32 %v7811_v0, %v7762_v19 }
 0x7d1   : > { %v18081_v37 = vadd.f32 %v7812_v15, %v17989_v24 }
 0x7d6   : > { %v8242_v48 = vpop.f32.mrf.mxu2  ;;  %v8291_v29 = vpop.f32.mrf.mxu3 }
 0x7d7   : > { %v8292_v46 = vadd.f32 %v8291_v29, %v8242_v48 }
 0x7d9   : > { %v8332_v50 = vadd.f32 %v8292_v46, %v17996_v39 }
 0x7db   : > { %8364 = vst [vmem:[%s17980_s29 + $0x8] sm:$0xff] %v8332_v50 }
 0x7de   : > { %v8244_v22 = vpop.f32.mrf.mxu2  ;;  %v8293_v2 = vpop.f32.mrf.mxu3 }
 0x7df   : > { %v8294_v40 = vadd.f32 %v8293_v2, %v8244_v22 }
 0x7e1   : > { %v8334_v10 = vadd.f32 %v8294_v40, %v18001_v23 }
 0x7e3   : > { %8366 = vst [vmem:[%s17980_s29 + $0x18] sm:$0xff] %v8334_v10 }
 0x7e6   : > { %v8247_v52 = vpop.f32.mrf.mxu2  ;;  %v8296_v32 = vpop.f32.mrf.mxu3 }
 0x7e7   : > { %v8297_v62 = vadd.f32 %v8296_v32, %v8247_v52 }
 0x7e9   : > { %v8336_v24 = vadd.f32 %v8297_v62, %v18008_v61 }
 0x7eb   : > { %8368 = vst [vmem:[%s17980_s29 + $0x28] sm:$0xff] %v8336_v24 }
 0x7ee   : > { %v8249_v7 = vpop.f32.mrf.mxu2  ;;  %v8298_v34 = vpop.f32.mrf.mxu3 }
 0x7ef   : > { %v8299_v27 = vadd.f32 %v8298_v34, %v8249_v7 }
 0x7f1   : > { %v8338_v39 = vadd.f32 %v8299_v27, %v18013_v6 }
 0x7f3   : > { %8370 = vst [vmem:[%s17980_s29 + $0x38] sm:$0xff] %v8338_v39 }
 0x7f6   : > { %v8252_v55 = vpop.f32.mrf.mxu2  ;;  %v8301_v1 = vpop.f32.mrf.mxu3 }
 0x7f7   : > { %v8302_v43 = vadd.f32 %v8301_v1, %v8252_v55 }
 0x7f9   : > { %v8340_v23 = vadd.f32 %v8302_v43, %v18020_v44 }
 0x7fb   : > { %8372 = vst [vmem:[%s17980_s29 + $0x48] sm:$0xff] %v8340_v23 }
 0x7fe   : > { %v8254_v9 = vpop.f32.mrf.mxu2  ;;  %v8303_v45 = vpop.f32.mrf.mxu3 }
 0x7ff   : > { %v8304_v8 = vadd.f32 %v8303_v45, %v8254_v9 }
 0x801   : > { %v8342_v61 = vadd.f32 %v8304_v8, %v18025_v58 }
 0x803   : > { %8374 = vst [vmem:[%s17980_s29 + $0x58] sm:$0xff] %v8342_v61 }
 0x806   : > { %v8257_v11 = vpop.f32.mrf.mxu2  ;;  %v8306_v36 = vpop.f32.mrf.mxu3 }
 0x807   : > { %v8307_v33 = vadd.f32 %v8306_v36, %v8257_v11 }
 0x809   : > { %v8344_v6 = vadd.f32 %v8307_v33, %v18032_v53 }
 0x80b   : > { %8376 = vst [vmem:[%s17980_s29 + $0x68] sm:$0xff] %v8344_v6 }
 0x80e   : > { %v8259_v5 = vpop.f32.mrf.mxu2  ;;  %v8308_v51 = vpop.f32.mrf.mxu3 }
 0x80f   : > { %v8309_v18 = vadd.f32 %v8308_v51, %v8259_v5 }
 0x811   : > { %v8346_v44 = vadd.f32 %v8309_v18, %v18037_v3 }
 0x813   : > { %8378 = vst [vmem:[%s17980_s29 + $0x78] sm:$0xff] %v8346_v44 }
 0x816   : > { %v8262_v20 = vpop.f32.mrf.mxu2  ;;  %v8311_v57 = vpop.f32.mrf.mxu3 }
 0x817   : > { %v8312_v38 = vadd.f32 %v8311_v57, %v8262_v20 }
 0x819   : > { %v8348_v58 = vadd.f32 %v8312_v38, %v18044_v14 }
 0x81b   : > { %8380 = vst [vmem:[%s17980_s29 + $0x88] sm:$0xff] %v8348_v58 }
 0x81e   : > { %v8264_v17 = vpop.f32.mrf.mxu2  ;;  %v8313_v63 = vpop.f32.mrf.mxu3 }
 0x81f   : > { %v8314_v31 = vadd.f32 %v8313_v63, %v8264_v17 }
 0x821   : > { %v8350_v53 = vadd.f32 %v8314_v31, %v18049_v28 }
 0x823   : > { %8382 = vst [vmem:[%s17980_s29 + $0x98] sm:$0xff] %v8350_v53 }
 0x826   : > { %v8267_v16 = vpop.f32.mrf.mxu2  ;;  %v8316_v56 = vpop.f32.mrf.mxu3 }
 0x827   : > { %v8317_v60 = vadd.f32 %v8316_v56, %v8267_v16 }
 0x829   : > { %v8352_v3 = vadd.f32 %v8317_v60, %v18056_v25 }
 0x82b   : > { %8384 = vst [vmem:[%s17980_s29 + $0xa8] sm:$0xff] %v8352_v3 }
 0x82e   : > { %v8269_v21 = vpop.f32.mrf.mxu2  ;;  %v8318_v41 = vpop.f32.mrf.mxu3 }
 0x82f   : > { %v8319_v49 = vadd.f32 %v8318_v41, %v8269_v21 }
 0x831   : > { %v8354_v14 = vadd.f32 %v8319_v49, %v18061_v35 }
 0x833   : > { %8386 = vst [vmem:[%s17980_s29 + $0xb8] sm:$0xff] %v8354_v14 }
 0x836   : > { %v8272_v12 = vpop.f32.mrf.mxu2  ;;  %v8321_v47 = vpop.f32.mrf.mxu3 }
 0x837   : > { %v8322_v28 = vadd.f32 %v8321_v47, %v8272_v12 }
 0x839   : > { %v8356_v26 = vadd.f32 %v8322_v28, %v18068_v30 }
 0x83b   : > { %8388 = vst [vmem:[%s17980_s29 + $0xc8] sm:$0xff] %v8356_v26 }
 0x83e   : > { %v8274_v13 = vpop.f32.mrf.mxu2  ;;  %v8323_v4 = vpop.f32.mrf.mxu3 }
 0x83f   : > { %v8324_v25 = vadd.f32 %v8323_v4, %v8274_v13 }
 0x841   : > { %v8358_v54 = vadd.f32 %v8324_v25, %v18073_v59 }
 0x843   : > { %8390 = vst [vmem:[%s17980_s29 + $0xd8] sm:$0xff] %v8358_v54 }
 0x846   : > { %v8277_v19 = vpop.f32.mrf.mxu2  ;;  %v8326_v0 = vpop.f32.mrf.mxu3 }
 0x847   : > { %v8327_v35 = vadd.f32 %v8326_v0, %v8277_v19 }
 0x849   : > { %v8360_v15 = vadd.f32 %v8327_v35, %v18078_v42 }
 0x84b   : > { %8392 = vst [vmem:[%s17980_s29 + $0xe8] sm:$0xff] %v8360_v15 }
 0x84e   : > { %v8279_v30 = vpop.f32.mrf.mxu2  ;;  %v8328_v48 = vpop.f32.mrf.mxu3 }
 0x84f   : > { %v8329_v59 = vadd.f32 %v8328_v48, %v8279_v30 }
 0x851   : > { %v8362_v29 = vadd.f32 %v8329_v59, %v18081_v37 }
 0x853   : > { %8394 = vst [vmem:[%s17980_s29 + $0xf8] sm:$0xff] %v8362_v29 }
 0x854   : > { %12512 = shalt.err (!%p12509_p3)
}
 0x855   : > { %s12549_s27 = smov 256   ;;  %s12550_s29 = smov 16  }
 0x856   : > { %12443 = dma.vmem_to_hbm [thread:$0]  (%p12694_p5), %s8410_s25, 4096, %s8412_s26, %s8396_s2, %s12549_s27, %s12549_s27, %s12550_s29  }
 0x857 PF: > { %s18362_s14 = sld [smem:[#allocation7_spill]] }
 0x858   : > { %s18363_s30 = sld [smem:[#allocation5_spill]] }
 0x85d   : > { %p12449_p4 = scmp.ge.s32.totalorder %s18362_s14, 2 }
 0x85e   : > { %s8426_s3 = sand.u32 1, %s18363_s30  }
 0x85f   : > { %p12446_p7 = pnand %p12449_p4, %p12698_p6  ;;  %s8427_s1 = scalar_lea.sflag [#allocation3], %s8426_s3 }
 0x861   : > { %p12447_p8 = pneg %p12446_p7 }
 0x863   : > { %12530 = dma.done.wait (%p12447_p8), %s8427_s1, 4096  }
 0x864   : > { %12532 = vsyncadd (%p12447_p8), %s8427_s1, 4294963200  ;;  %s18365_s24 = sld [smem:[#allocation8_spill]]  ;;  %s18368_s1 = smov %s12539_s22 }
 0x865   : > { %s18366_s23 = sld [smem:[#allocation6_spill]] }
 0x866   : > { %s18367_s28 = sld [smem:[#allocation9_spill]] }
 0x86a   : > { %p30_p9 = scmp.ge.s32.totalorder %s18365_s24, 4  }
 0x86b   : > { %s18369_s22 = smov %s18366_s23 }
 0x86c   : > { %s18370_s23 = smov %s18367_s28  ;;  %32 = sbr.rel (!%p30_p9) target bundleno = 11 (0xb), region = 186 }
 0x871   :  { %8433 = vsyncpa [#allocation3], 1 }
 0x872   :  { %8435 = vsyncpa [#allocation3 + $0x1], 1 }

</bundles_post_ra>
